<compile_context>
chip_gen: v7x
topology: tpu7x:2x2x1
jax: 0.10.0
libtpu: 0.0.40
codegen_flags: <defaults>
</compile_context>

<pallas_src>
import jax
import jax.numpy as jnp
from jax.experimental import pallas as pl
from jax.experimental.pallas import tpu as pltpu


# ---------------------------------------------------------------------------
# One fused kernel: emb+relu -> [spatial adj, spatial gconv+glu1+res,
#                                temporal gconv+glu2+res] x L -> re_emb+denorm
# ---------------------------------------------------------------------------
def _cgstt_fused_kernel(
    ms_ref, tadj_ref,                                   # SMEM scalar tables
    x_ref, emb_w_ref, emb_b_ref,                        # VMEM inputs
    wq_ref, wk_ref,
    g1w1_ref, g1b1_ref, g1w2_ref, g1b2_ref,
    g2w1_ref, g2b1_ref, g2w2_ref, g2b2_ref,
    re_w_ref, re_b_ref,
    out_ref,                                            # (tdx, B, N, F)
    hbuf_ref, zbuf_ref,                                 # VMEM scratch
):
    T, B, N, F = x_ref.shape
    C = emb_w_ref.shape[1]
    L = wq_ref.shape[0]
    P = zbuf_ref.shape[0]                               # tdx
    K = T * B                                           # batched-matmul batch count
    M = K * N                                           # rows for all (.., C) matmuls

    # ---- embedding + relu -------------------------------------------------
    x = x_ref[...]                                      # (T,B,N,F)
    if F == 1:
        # K=1 "matmul" is an outer product -> VPU broadcast, skip the MXU.
        h = x * emb_w_ref[...].reshape(1, 1, 1, C)
    else:
        h = jnp.dot(x.reshape(M, F), emb_w_ref[...],
                    preferred_element_type=jnp.float32).reshape(T, B, N, C)
    h = jnp.maximum(h + emb_b_ref[...].reshape(1, 1, 1, C), 0.0)
    hbuf_ref[...] = h

    inv_sqrt_c = 1.0 / float(C) ** 0.5

    for l in range(L):
        h4 = hbuf_ref[...]                              # (T,B,N,C) layer input
        h2 = h4.reshape(M, C)
        h3 = h4.reshape(K, N, C)

        # ---- spatial graph construction: softmax((xm Wq)(xm Wk)^T / sqrt(C))
        xm = jnp.mean(h4, axis=(0, 1))                  # (N,C)
        q = jnp.dot(xm, wq_ref[l], preferred_element_type=jnp.float32)
        k = jnp.dot(xm, wk_ref[l], preferred_element_type=jnp.float32)
        score = jax.lax.dot_general(
            q, k, (((1,), (1,)), ((), ())),
            preferred_element_type=jnp.float32) * inv_sqrt_c
        score = score - jnp.max(score, axis=-1, keepdims=True)
        e = jnp.exp(score)
        adj = e / jnp.sum(e, axis=-1, keepdims=True)    # (N,N)

        # ---- spatial graph conv (one batched matmul over K=T*B) + glu1 + res
        adj_b = jnp.broadcast_to(adj, (K, N, N))
        y3 = jax.lax.dot_general(
            adj_b, h3, (((2,), (1,)), ((0,), (0,))),
            preferred_element_type=jnp.float32)         # (K,N,C)
        y2 = y3.reshape(M, C)
        a1 = jnp.dot(y2, g1w1_ref[l], preferred_element_type=jnp.float32) + g1b1_ref[l]
        g1 = jnp.dot(y2, g1w2_ref[l], preferred_element_type=jnp.float32) + g1b2_ref[l]
        hs2 = a1 * jax.nn.sigmoid(g1) + h2              # (M,C)
        hs4 = hs2.reshape(T, B, N, C)
        hbuf_ref[...] = hs4

        # ---- temporal graph conv: z[p] = sum_q t_adj[p,q] * hs[q]
        # tiny (tdx,T) adjacency -> SMEM scalars + VPU broadcast FMA
        # (no (T, N*C) lane-merge relayout, no degenerate K=T matmul).
        base = l * P * T
        for p in range(P):
            acc = tadj_ref[base + p * T] * hs4[0]
            for qq in range(1, T):
                acc = acc + tadj_ref[base + p * T + qq] * hs4[qq]
            zbuf_ref[p] = acc                           # (B,N,C)

        # glu2 on all tdx steps at once + residual; overwrite h[:tdx] in place
        z2 = zbuf_ref[...].reshape(P * B * N, C)
        a2 = jnp.dot(z2, g2w1_ref[l], preferred_element_type=jnp.float32) + g2b1_ref[l]
        g2 = jnp.dot(z2, g2w2_ref[l], preferred_element_type=jnp.float32) + g2b2_ref[l]
        top = (a2 * jax.nn.sigmoid(g2)).reshape(P, B, N, C) + hs4[:P]
        hbuf_ref[pl.ds(0, P), :, :, :] = top            # tail [tdx:] stays as-is

    # ---- re-embedding on first tdx steps + de-normalization ----------------
    hf2 = hbuf_ref[pl.ds(0, P), :, :, :].reshape(P * B * N, C)
    o2 = jnp.dot(hf2, re_w_ref[...], preferred_element_type=jnp.float32) + re_b_ref[...]
    mean = ms_ref[0]
    std = ms_ref[1]
    out_ref[...] = (o2 * std + mean).reshape(P, B, N, F)


# ---------------------------------------------------------------------------
# Wrapper: stage='source', ep < S2D branch
# ---------------------------------------------------------------------------
def forward_source(params, x, tdx, mean_std):
    b, t, n, f = x.shape
    c = params["emb_w"].shape[1]
    layers = params["layers"]
    L = len(layers)

    # time-major input so every in-kernel time slice is a leading-axis access
    xt = jnp.transpose(x, (1, 0, 2, 3))                             # (T,B,N,F)

    # stack per-layer weights once (tiny)
    wq = jnp.stack([lp["w_adj"][:, :c] for lp in layers])           # (L,C,C)
    wk = jnp.stack([lp["w_adj"][:, c:] for lp in layers])           # (L,C,C)
    g1w1 = jnp.stack([lp["glu1_w1"] for lp in layers])
    g1b1 = jnp.stack([lp["glu1_b1"] for lp in layers]).reshape(L, 1, c)
    g1w2 = jnp.stack([lp["glu1_w2"] for lp in layers])
    g1b2 = jnp.stack([lp["glu1_b2"] for lp in layers]).reshape(L, 1, c)
    g2w1 = jnp.stack([lp["glu2_w1"] for lp in layers])
    g2b1 = jnp.stack([lp["glu2_b1"] for lp in layers]).reshape(L, 1, c)
    g2w2 = jnp.stack([lp["glu2_w2"] for lp in layers])
    g2b2 = jnp.stack([lp["glu2_b2"] for lp in layers]).reshape(L, 1, c)
    tadj = jnp.stack([lp["t_adj"][:tdx] for lp in layers]).reshape(-1)  # (L*tdx*T,)
    ms = jnp.asarray(mean_std, jnp.float32).reshape(2)              # [mean, std]

    smem = pl.BlockSpec(memory_space=pltpu.MemorySpace.SMEM)
    vmem = pl.BlockSpec(memory_space=pltpu.MemorySpace.VMEM)

    out = pl.pallas_call(
        _cgstt_fused_kernel,
        out_shape=jax.ShapeDtypeStruct((tdx, b, n, f), jnp.float32),
        in_specs=[smem, smem] + [vmem] * 15,
        out_specs=vmem,
        scratch_shapes=[pltpu.VMEM((t, b, n, c), jnp.float32),      # activation h
                        pltpu.VMEM((tdx, b, n, c), jnp.float32)],   # temporal z
    )(ms, tadj, xt,
      params["emb_w"], params["emb_b"].reshape(1, c),
      wq, wk, g1w1, g1b1, g1w2, g1b2, g2w1, g2b1, g2w2, g2b2,
      params["re_w"], params["re_b"].reshape(1, f))

    out = jnp.transpose(out, (1, 0, 2, 3))                          # (B,tdx,N,F)
    if f == 1:
        out = out[..., 0]         # matches torch .squeeze(-1) semantics for F==1
    return out


# ---------------------------------------------------------------------------
# Deterministic parameter initialization (synthetic, no checkpoint load)
# ---------------------------------------------------------------------------
def init_params(key, num_features, d_model, his_num, pred_num, num_layers):
    ks = jax.random.split(key, 4 + num_layers)
    p = {
        "emb_w": 0.1 * jax.random.normal(ks[0], (num_features, d_model), jnp.float32),
        "emb_b": 0.1 * jax.random.normal(ks[1], (d_model,), jnp.float32),
        "re_w": 0.1 * jax.random.normal(ks[2], (d_model, num_features), jnp.float32),
        "re_b": 0.1 * jax.random.normal(ks[3], (num_features,), jnp.float32),
        "layers": [],
    }
    for l in range(num_layers):
        lk = jax.random.split(ks[4 + l], 10)
        p["layers"].append(dict(
            w_adj=0.1 * jax.random.normal(lk[0], (d_model, 2 * d_model), jnp.float32),
            glu1_w1=0.1 * jax.random.normal(lk[1], (d_model, d_model), jnp.float32),
            glu1_b1=0.1 * jax.random.normal(lk[2], (d_model,), jnp.float32),
            glu1_w2=0.1 * jax.random.normal(lk[3], (d_model, d_model), jnp.float32),
            glu1_b2=0.1 * jax.random.normal(lk[4], (d_model,), jnp.float32),
            t_adj=0.1 * jax.random.normal(lk[5], (pred_num, his_num), jnp.float32),
            glu2_w1=0.1 * jax.random.normal(lk[6], (d_model, d_model), jnp.float32),
            glu2_b1=0.1 * jax.random.normal(lk[7], (d_model,), jnp.float32),
            glu2_w2=0.1 * jax.random.normal(lk[8], (d_model, d_model), jnp.float32),
            glu2_b2=0.1 * jax.random.normal(lk[9], (d_model,), jnp.float32),
        ))
    return p


if __name__ == "__main__":
    # small shapes: batch=2, his_num=8, nodes=16, features=1, d_model=32, layers=2
    B, T, N, F = 2, 8, 16, 1
    D_MODEL, PRED, TDX, NUM_LAYERS = 32, 8, 4, 2
    MEAN_STD = jnp.asarray([1.5, 2.0], jnp.float32)

    key = jax.random.PRNGKey(0)
    pkey, xkey = jax.random.split(key)
    params = init_params(pkey, F, D_MODEL, T, PRED, NUM_LAYERS)
    x = jax.random.normal(xkey, (B, T, N, F), jnp.float32)

    fwd = jax.jit(forward_source, static_argnums=(2,))
    out = fwd(params, x, TDX, MEAN_STD)                 # (B, TDX, N)
    jax.block_until_ready(out)
    assert out.shape == (B, TDX, N)
    print("KERNEL_OK")
</pallas_src>

<mosaic_0001>
module attributes {stable_mosaic.version = 11 : i64} {
  func.func @_cgstt_fused_kernel(%arg0: memref<2xf32, #tpu.memory_space<smem>>, %arg1: memref<64xf32, #tpu.memory_space<smem>>, %arg2: memref<8x2x16x1xf32, #tpu.memory_space<vmem>>, %arg3: memref<1x32xf32, #tpu.memory_space<vmem>>, %arg4: memref<1x32xf32, #tpu.memory_space<vmem>>, %arg5: memref<2x32x32xf32, #tpu.memory_space<vmem>>, %arg6: memref<2x32x32xf32, #tpu.memory_space<vmem>>, %arg7: memref<2x32x32xf32, #tpu.memory_space<vmem>>, %arg8: memref<2x1x32xf32, #tpu.memory_space<vmem>>, %arg9: memref<2x32x32xf32, #tpu.memory_space<vmem>>, %arg10: memref<2x1x32xf32, #tpu.memory_space<vmem>>, %arg11: memref<2x32x32xf32, #tpu.memory_space<vmem>>, %arg12: memref<2x1x32xf32, #tpu.memory_space<vmem>>, %arg13: memref<2x32x32xf32, #tpu.memory_space<vmem>>, %arg14: memref<2x1x32xf32, #tpu.memory_space<vmem>>, %arg15: memref<32x1xf32, #tpu.memory_space<vmem>>, %arg16: memref<1x1xf32, #tpu.memory_space<vmem>>, %arg17: memref<4x2x16x1xf32, #tpu.memory_space<vmem>>, %arg18: memref<8x2x16x32xf32, #tpu.memory_space<vmem>>, %arg19: memref<4x2x16x32xf32, #tpu.memory_space<vmem>>) attributes {dimension_semantics = [], scalar_prefetch = 0 : i64, scratch_operands = 2 : i64, tpu.core_type = #tpu.core_type<tc>} {
    %c0 = arith.constant 0 : index
    %c0_0 = arith.constant 0 : index
    %c0_1 = arith.constant 0 : index
    %c0_2 = arith.constant 0 : index
    %0 = vector.load %arg2[%c0, %c0_0, %c0_1, %c0_2] : memref<8x2x16x1xf32, #tpu.memory_space<vmem>>, vector<8x2x16x1xf32>
    %c0_3 = arith.constant 0 : index
    %c0_4 = arith.constant 0 : index
    %1 = vector.load %arg3[%c0_3, %c0_4] : memref<1x32xf32, #tpu.memory_space<vmem>>, vector<1x32xf32>
    %2 = vector.shape_cast %1 : vector<1x32xf32> to vector<1x1x1x32xf32>
    %3 = vector.broadcast %0 : vector<8x2x16x1xf32> to vector<8x2x16x32xf32>
    %4 = vector.broadcast %2 : vector<1x1x1x32xf32> to vector<8x2x16x32xf32>
    %5 = arith.mulf %3, %4 : vector<8x2x16x32xf32>
    %c0_5 = arith.constant 0 : index
    %c0_6 = arith.constant 0 : index
    %6 = vector.load %arg4[%c0_5, %c0_6] : memref<1x32xf32, #tpu.memory_space<vmem>>, vector<1x32xf32>
    %7 = vector.shape_cast %6 : vector<1x32xf32> to vector<1x1x1x32xf32>
    %8 = vector.broadcast %7 : vector<1x1x1x32xf32> to vector<8x2x16x32xf32>
    %9 = arith.addf %5, %8 : vector<8x2x16x32xf32>
    %cst = arith.constant 0.000000e+00 : f32
    %10 = vector.broadcast %cst : f32 to vector<8x2x16x32xf32>
    %11 = arith.maximumf %9, %10 : vector<8x2x16x32xf32>
    %c0_7 = arith.constant 0 : index
    %c0_8 = arith.constant 0 : index
    %c0_9 = arith.constant 0 : index
    %c0_10 = arith.constant 0 : index
    %12 = vector.load %arg18[%c0_7, %c0_8, %c0_9, %c0_10] : memref<8x2x16x32xf32, #tpu.memory_space<vmem>>, vector<8x2x16x32xf32>
    tpu.vector_store %arg18[%c0_7, %c0_8, %c0_9, %c0_10], %11 {strides = array<i32>} : memref<8x2x16x32xf32, #tpu.memory_space<vmem>>, vector<8x2x16x32xf32>,
    %c0_11 = arith.constant 0 : index
    %c0_12 = arith.constant 0 : index
    %c0_13 = arith.constant 0 : index
    %c0_14 = arith.constant 0 : index
    %13 = vector.load %arg18[%c0_11, %c0_12, %c0_13, %c0_14] : memref<8x2x16x32xf32, #tpu.memory_space<vmem>>, vector<8x2x16x32xf32>
    %14 = vector.shape_cast %13 : vector<8x2x16x32xf32> to vector<256x32xf32>
    %15 = vector.shape_cast %13 : vector<8x2x16x32xf32> to vector<16x16x32xf32>
    %cst_15 = arith.constant dense<0.000000e+00> : vector<16x32xf32>
    %16 = vector.multi_reduction <add>, %13, %cst_15 [0, 1] : vector<8x2x16x32xf32> to vector<16x32xf32>
    %cst_16 = arith.constant 1.600000e+01 : f32
    %17 = vector.broadcast %cst_16 : f32 to vector<16x32xf32>
    %18 = arith.divf %16, %17 : vector<16x32xf32>
    %c0_17 = arith.constant 0 : index
    %c0_18 = arith.constant 0 : index
    %c0_19 = arith.constant 0 : index
    %19 = vector.load %arg5[%c0_17, %c0_18, %c0_19] : memref<2x32x32xf32, #tpu.memory_space<vmem>>, vector<1x32x32xf32>
    %20 = vector.shape_cast %19 : vector<1x32x32xf32> to vector<32x32xf32>
    %cst_20 = arith.constant dense<0.000000e+00> : vector<16x32xf32>
    %21 = tpu.matmul %18, %20, %cst_20 {dimension_numbers = #tpu.dot_dimension_numbers<[1], [0], [0], [1], [0, 0, 1, 1], [], []>} : vector<16x32xf32>, vector<32x32xf32>, vector<16x32xf32> -> vector<16x32xf32>
    %c0_21 = arith.constant 0 : index
    %c0_22 = arith.constant 0 : index
    %c0_23 = arith.constant 0 : index
    %22 = vector.load %arg6[%c0_21, %c0_22, %c0_23] : memref<2x32x32xf32, #tpu.memory_space<vmem>>, vector<1x32x32xf32>
    %23 = vector.shape_cast %22 : vector<1x32x32xf32> to vector<32x32xf32>
    %cst_24 = arith.constant dense<0.000000e+00> : vector<16x32xf32>
    %24 = tpu.matmul %18, %23, %cst_24 {dimension_numbers = #tpu.dot_dimension_numbers<[1], [0], [0], [1], [0, 0, 1, 1], [], []>} : vector<16x32xf32>, vector<32x32xf32>, vector<16x32xf32> -> vector<16x32xf32>
    %cst_25 = arith.constant dense<0.000000e+00> : vector<16x16xf32>
    %25 = tpu.matmul %21, %24, %cst_25 {dimension_numbers = #tpu.dot_dimension_numbers<[1], [1], [0], [0], [0, 0, 1, 0], [], []>} : vector<16x32xf32>, vector<16x32xf32>, vector<16x16xf32> -> vector<16x16xf32>
    %cst_26 = arith.constant 0.176776692 : f32
    %26 = vector.broadcast %cst_26 : f32 to vector<16x16xf32>
    %27 = arith.mulf %25, %26 : vector<16x16xf32>
    %cst_27 = arith.constant dense<0xFF800000> : vector<16xf32>
    %28 = vector.multi_reduction <maximumf>, %27, %cst_27 [1] : vector<16x16xf32> to vector<16xf32>
    %29 = vector.shape_cast %28 : vector<16xf32> to vector<16x1xf32>
    %30 = vector.broadcast %29 : vector<16x1xf32> to vector<16x16xf32>
    %31 = arith.subf %27, %30 : vector<16x16xf32>
    %32 = math.exp %31 : vector<16x16xf32>
    %cst_28 = arith.constant dense<0.000000e+00> : vector<16xf32>
    %33 = vector.multi_reduction <add>, %32, %cst_28 [1] : vector<16x16xf32> to vector<16xf32>
    %34 = vector.shape_cast %33 : vector<16xf32> to vector<16x1xf32>
    %35 = vector.broadcast %34 : vector<16x1xf32> to vector<16x16xf32>
    %36 = arith.divf %32, %35 : vector<16x16xf32>
    %37 = vector.shape_cast %36 : vector<16x16xf32> to vector<1x16x16xf32>
    %38 = vector.broadcast %37 : vector<1x16x16xf32> to vector<16x16x16xf32>
    %cst_29 = arith.constant dense<0.000000e+00> : vector<16x16x32xf32>
    %39 = tpu.matmul %38, %15, %cst_29 {dimension_numbers = #tpu.dot_dimension_numbers<[2], [1], [1], [2], [0, 0, 0, 1, 1, 2], [0], [0]>} : vector<16x16x16xf32>, vector<16x16x32xf32>, vector<16x16x32xf32> -> vector<16x16x32xf32>
    %40 = vector.shape_cast %39 : vector<16x16x32xf32> to vector<256x32xf32>
    %c0_30 = arith.constant 0 : index
    %c0_31 = arith.constant 0 : index
    %c0_32 = arith.constant 0 : index
    %41 = vector.load %arg7[%c0_30, %c0_31, %c0_32] : memref<2x32x32xf32, #tpu.memory_space<vmem>>, vector<1x32x32xf32>
    %42 = vector.shape_cast %41 : vector<1x32x32xf32> to vector<32x32xf32>
    %cst_33 = arith.constant dense<0.000000e+00> : vector<256x32xf32>
    %43 = tpu.matmul %40, %42, %cst_33 {dimension_numbers = #tpu.dot_dimension_numbers<[1], [0], [0], [1], [0, 0, 1, 1], [], []>} : vector<256x32xf32>, vector<32x32xf32>, vector<256x32xf32> -> vector<256x32xf32>
    %c0_34 = arith.constant 0 : index
    %c0_35 = arith.constant 0 : index
    %c0_36 = arith.constant 0 : index
    %44 = vector.load %arg8[%c0_34, %c0_35, %c0_36] : memref<2x1x32xf32, #tpu.memory_space<vmem>>, vector<1x1x32xf32>
    %45 = vector.shape_cast %44 : vector<1x1x32xf32> to vector<1x32xf32>
    %46 = vector.broadcast %45 : vector<1x32xf32> to vector<256x32xf32>
    %47 = arith.addf %43, %46 : vector<256x32xf32>
    %c0_37 = arith.constant 0 : index
    %c0_38 = arith.constant 0 : index
    %c0_39 = arith.constant 0 : index
    %48 = vector.load %arg9[%c0_37, %c0_38, %c0_39] : memref<2x32x32xf32, #tpu.memory_space<vmem>>, vector<1x32x32xf32>
    %49 = vector.shape_cast %48 : vector<1x32x32xf32> to vector<32x32xf32>
    %cst_40 = arith.constant dense<0.000000e+00> : vector<256x32xf32>
    %50 = tpu.matmul %40, %49, %cst_40 {dimension_numbers = #tpu.dot_dimension_numbers<[1], [0], [0], [1], [0, 0, 1, 1], [], []>} : vector<256x32xf32>, vector<32x32xf32>, vector<256x32xf32> -> vector<256x32xf32>
    %c0_41 = arith.constant 0 : index
    %c0_42 = arith.constant 0 : index
    %c0_43 = arith.constant 0 : index
    %51 = vector.load %arg10[%c0_41, %c0_42, %c0_43] : memref<2x1x32xf32, #tpu.memory_space<vmem>>, vector<1x1x32xf32>
    %52 = vector.shape_cast %51 : vector<1x1x32xf32> to vector<1x32xf32>
    %53 = vector.broadcast %52 : vector<1x32xf32> to vector<256x32xf32>
    %54 = arith.addf %50, %53 : vector<256x32xf32>
    %55 = arith.negf %54 : vector<256x32xf32>
    %56 = math.exp %55 : vector<256x32xf32>
    %cst_44 = arith.constant 1.000000e+00 : f32
    %57 = vector.broadcast %cst_44 : f32 to vector<256x32xf32>
    %58 = arith.addf %57, %56 : vector<256x32xf32>
    %59 = arith.divf %57, %58 : vector<256x32xf32>
    %60 = arith.mulf %47, %59 : vector<256x32xf32>
    %61 = arith.addf %60, %14 : vector<256x32xf32>
    %62 = vector.shape_cast %61 : vector<256x32xf32> to vector<8x2x16x32xf32>
    %c0_45 = arith.constant 0 : index
    %c0_46 = arith.constant 0 : index
    %c0_47 = arith.constant 0 : index
    %c0_48 = arith.constant 0 : index
    %63 = vector.load %arg18[%c0_45, %c0_46, %c0_47, %c0_48] : memref<8x2x16x32xf32, #tpu.memory_space<vmem>>, vector<8x2x16x32xf32>
    tpu.vector_store %arg18[%c0_45, %c0_46, %c0_47, %c0_48], %62 {strides = array<i32>} : memref<8x2x16x32xf32, #tpu.memory_space<vmem>>, vector<8x2x16x32xf32>,
    %c0_49 = arith.constant 0 : index
    %64 = memref.load %arg1[%c0_49] : memref<64xf32, #tpu.memory_space<smem>>
    %65 = vector.extract_strided_slice %62 {offsets = [0, 0, 0, 0], sizes = [1, 2, 16, 32], strides = [1, 1, 1, 1]} : vector<8x2x16x32xf32> to vector<1x2x16x32xf32>
    %66 = vector.shape_cast %65 : vector<1x2x16x32xf32> to vector<2x16x32xf32>
    %67 = vector.broadcast %64 : f32 to vector<2x16x32xf32>
    %68 = arith.mulf %67, %66 : vector<2x16x32xf32>
    %c1 = arith.constant 1 : index
    %69 = memref.load %arg1[%c1] : memref<64xf32, #tpu.memory_space<smem>>
    %70 = vector.extract_strided_slice %62 {offsets = [1, 0, 0, 0], sizes = [1, 2, 16, 32], strides = [1, 1, 1, 1]} : vector<8x2x16x32xf32> to vector<1x2x16x32xf32>
    %71 = vector.shape_cast %70 : vector<1x2x16x32xf32> to vector<2x16x32xf32>
    %72 = vector.broadcast %69 : f32 to vector<2x16x32xf32>
    %73 = arith.mulf %72, %71 : vector<2x16x32xf32>
    %74 = arith.addf %68, %73 : vector<2x16x32xf32>
    %c2 = arith.constant 2 : index
    %75 = memref.load %arg1[%c2] : memref<64xf32, #tpu.memory_space<smem>>
    %76 = vector.extract_strided_slice %62 {offsets = [2, 0, 0, 0], sizes = [1, 2, 16, 32], strides = [1, 1, 1, 1]} : vector<8x2x16x32xf32> to vector<1x2x16x32xf32>
    %77 = vector.shape_cast %76 : vector<1x2x16x32xf32> to vector<2x16x32xf32>
    %78 = vector.broadcast %75 : f32 to vector<2x16x32xf32>
    %79 = arith.mulf %78, %77 : vector<2x16x32xf32>
    %80 = arith.addf %74, %79 : vector<2x16x32xf32>
    %c3 = arith.constant 3 : index
    %81 = memref.load %arg1[%c3] : memref<64xf32, #tpu.memory_space<smem>>
    %82 = vector.extract_strided_slice %62 {offsets = [3, 0, 0, 0], sizes = [1, 2, 16, 32], strides = [1, 1, 1, 1]} : vector<8x2x16x32xf32> to vector<1x2x16x32xf32>
    %83 = vector.shape_cast %82 : vector<1x2x16x32xf32> to vector<2x16x32xf32>
    %84 = vector.broadcast %81 : f32 to vector<2x16x32xf32>
    %85 = arith.mulf %84, %83 : vector<2x16x32xf32>
    %86 = arith.addf %80, %85 : vector<2x16x32xf32>
    %c4 = arith.constant 4 : index
    %87 = memref.load %arg1[%c4] : memref<64xf32, #tpu.memory_space<smem>>
    %88 = vector.extract_strided_slice %62 {offsets = [4, 0, 0, 0], sizes = [1, 2, 16, 32], strides = [1, 1, 1, 1]} : vector<8x2x16x32xf32> to vector<1x2x16x32xf32>
    %89 = vector.shape_cast %88 : vector<1x2x16x32xf32> to vector<2x16x32xf32>
    %90 = vector.broadcast %87 : f32 to vector<2x16x32xf32>
    %91 = arith.mulf %90, %89 : vector<2x16x32xf32>
    %92 = arith.addf %86, %91 : vector<2x16x32xf32>
    %c5 = arith.constant 5 : index
    %93 = memref.load %arg1[%c5] : memref<64xf32, #tpu.memory_space<smem>>
    %94 = vector.extract_strided_slice %62 {offsets = [5, 0, 0, 0], sizes = [1, 2, 16, 32], strides = [1, 1, 1, 1]} : vector<8x2x16x32xf32> to vector<1x2x16x32xf32>
    %95 = vector.shape_cast %94 : vector<1x2x16x32xf32> to vector<2x16x32xf32>
    %96 = vector.broadcast %93 : f32 to vector<2x16x32xf32>
    %97 = arith.mulf %96, %95 : vector<2x16x32xf32>
    %98 = arith.addf %92, %97 : vector<2x16x32xf32>
    %c6 = arith.constant 6 : index
    %99 = memref.load %arg1[%c6] : memref<64xf32, #tpu.memory_space<smem>>
    %100 = vector.extract_strided_slice %62 {offsets = [6, 0, 0, 0], sizes = [1, 2, 16, 32], strides = [1, 1, 1, 1]} : vector<8x2x16x32xf32> to vector<1x2x16x32xf32>
    %101 = vector.shape_cast %100 : vector<1x2x16x32xf32> to vector<2x16x32xf32>
    %102 = vector.broadcast %99 : f32 to vector<2x16x32xf32>
    %103 = arith.mulf %102, %101 : vector<2x16x32xf32>
    %104 = arith.addf %98, %103 : vector<2x16x32xf32>
    %c7 = arith.constant 7 : index
    %105 = memref.load %arg1[%c7] : memref<64xf32, #tpu.memory_space<smem>>
    %106 = vector.extract_strided_slice %62 {offsets = [7, 0, 0, 0], sizes = [1, 2, 16, 32], strides = [1, 1, 1, 1]} : vector<8x2x16x32xf32> to vector<1x2x16x32xf32>
    %107 = vector.shape_cast %106 : vector<1x2x16x32xf32> to vector<2x16x32xf32>
    %108 = vector.broadcast %105 : f32 to vector<2x16x32xf32>
    %109 = arith.mulf %108, %107 : vector<2x16x32xf32>
    %110 = arith.addf %104, %109 : vector<2x16x32xf32>
    %c0_50 = arith.constant 0 : index
    %c0_51 = arith.constant 0 : index
    %c0_52 = arith.constant 0 : index
    %c0_53 = arith.constant 0 : index
    %111 = vector.load %arg19[%c0_50, %c0_51, %c0_52, %c0_53] : memref<4x2x16x32xf32, #tpu.memory_space<vmem>>, vector<1x2x16x32xf32>
    %112 = vector.shape_cast %111 : vector<1x2x16x32xf32> to vector<2x16x32xf32>
    %113 = vector.shape_cast %110 : vector<2x16x32xf32> to vector<1x2x16x32xf32>
    tpu.vector_store %arg19[%c0_50, %c0_51, %c0_52, %c0_53], %113 {strides = array<i32>} : memref<4x2x16x32xf32, #tpu.memory_space<vmem>>, vector<1x2x16x32xf32>,
    %c8 = arith.constant 8 : index
    %114 = memref.load %arg1[%c8] : memref<64xf32, #tpu.memory_space<smem>>
    %115 = vector.extract_strided_slice %62 {offsets = [0, 0, 0, 0], sizes = [1, 2, 16, 32], strides = [1, 1, 1, 1]} : vector<8x2x16x32xf32> to vector<1x2x16x32xf32>
    %116 = vector.shape_cast %115 : vector<1x2x16x32xf32> to vector<2x16x32xf32>
    %117 = vector.broadcast %114 : f32 to vector<2x16x32xf32>
    %118 = arith.mulf %117, %116 : vector<2x16x32xf32>
    %c9 = arith.constant 9 : index
    %119 = memref.load %arg1[%c9] : memref<64xf32, #tpu.memory_space<smem>>
    %120 = vector.extract_strided_slice %62 {offsets = [1, 0, 0, 0], sizes = [1, 2, 16, 32], strides = [1, 1, 1, 1]} : vector<8x2x16x32xf32> to vector<1x2x16x32xf32>
    %121 = vector.shape_cast %120 : vector<1x2x16x32xf32> to vector<2x16x32xf32>
    %122 = vector.broadcast %119 : f32 to vector<2x16x32xf32>
    %123 = arith.mulf %122, %121 : vector<2x16x32xf32>
    %124 = arith.addf %118, %123 : vector<2x16x32xf32>
    %c10 = arith.constant 10 : index
    %125 = memref.load %arg1[%c10] : memref<64xf32, #tpu.memory_space<smem>>
    %126 = vector.extract_strided_slice %62 {offsets = [2, 0, 0, 0], sizes = [1, 2, 16, 32], strides = [1, 1, 1, 1]} : vector<8x2x16x32xf32> to vector<1x2x16x32xf32>
    %127 = vector.shape_cast %126 : vector<1x2x16x32xf32> to vector<2x16x32xf32>
    %128 = vector.broadcast %125 : f32 to vector<2x16x32xf32>
    %129 = arith.mulf %128, %127 : vector<2x16x32xf32>
    %130 = arith.addf %124, %129 : vector<2x16x32xf32>
    %c11 = arith.constant 11 : index
    %131 = memref.load %arg1[%c11] : memref<64xf32, #tpu.memory_space<smem>>
    %132 = vector.extract_strided_slice %62 {offsets = [3, 0, 0, 0], sizes = [1, 2, 16, 32], strides = [1, 1, 1, 1]} : vector<8x2x16x32xf32> to vector<1x2x16x32xf32>
    %133 = vector.shape_cast %132 : vector<1x2x16x32xf32> to vector<2x16x32xf32>
    %134 = vector.broadcast %131 : f32 to vector<2x16x32xf32>
    %135 = arith.mulf %134, %133 : vector<2x16x32xf32>
    %136 = arith.addf %130, %135 : vector<2x16x32xf32>
    %c12 = arith.constant 12 : index
    %137 = memref.load %arg1[%c12] : memref<64xf32, #tpu.memory_space<smem>>
    %138 = vector.extract_strided_slice %62 {offsets = [4, 0, 0, 0], sizes = [1, 2, 16, 32], strides = [1, 1, 1, 1]} : vector<8x2x16x32xf32> to vector<1x2x16x32xf32>
    %139 = vector.shape_cast %138 : vector<1x2x16x32xf32> to vector<2x16x32xf32>
    %140 = vector.broadcast %137 : f32 to vector<2x16x32xf32>
    %141 = arith.mulf %140, %139 : vector<2x16x32xf32>
    %142 = arith.addf %136, %141 : vector<2x16x32xf32>
    %c13 = arith.constant 13 : index
    %143 = memref.load %arg1[%c13] : memref<64xf32, #tpu.memory_space<smem>>
    %144 = vector.extract_strided_slice %62 {offsets = [5, 0, 0, 0], sizes = [1, 2, 16, 32], strides = [1, 1, 1, 1]} : vector<8x2x16x32xf32> to vector<1x2x16x32xf32>
    %145 = vector.shape_cast %144 : vector<1x2x16x32xf32> to vector<2x16x32xf32>
    %146 = vector.broadcast %143 : f32 to vector<2x16x32xf32>
    %147 = arith.mulf %146, %145 : vector<2x16x32xf32>
    %148 = arith.addf %142, %147 : vector<2x16x32xf32>
    %c14 = arith.constant 14 : index
    %149 = memref.load %arg1[%c14] : memref<64xf32, #tpu.memory_space<smem>>
    %150 = vector.extract_strided_slice %62 {offsets = [6, 0, 0, 0], sizes = [1, 2, 16, 32], strides = [1, 1, 1, 1]} : vector<8x2x16x32xf32> to vector<1x2x16x32xf32>
    %151 = vector.shape_cast %150 : vector<1x2x16x32xf32> to vector<2x16x32xf32>
    %152 = vector.broadcast %149 : f32 to vector<2x16x32xf32>
    %153 = arith.mulf %152, %151 : vector<2x16x32xf32>
    %154 = arith.addf %148, %153 : vector<2x16x32xf32>
    %c15 = arith.constant 15 : index
    %155 = memref.load %arg1[%c15] : memref<64xf32, #tpu.memory_space<smem>>
    %156 = vector.extract_strided_slice %62 {offsets = [7, 0, 0, 0], sizes = [1, 2, 16, 32], strides = [1, 1, 1, 1]} : vector<8x2x16x32xf32> to vector<1x2x16x32xf32>
    %157 = vector.shape_cast %156 : vector<1x2x16x32xf32> to vector<2x16x32xf32>
    %158 = vector.broadcast %155 : f32 to vector<2x16x32xf32>
    %159 = arith.mulf %158, %157 : vector<2x16x32xf32>
    %160 = arith.addf %154, %159 : vector<2x16x32xf32>
    %c1_54 = arith.constant 1 : index
    %c0_55 = arith.constant 0 : index
    %c0_56 = arith.constant 0 : index
    %c0_57 = arith.constant 0 : index
    %161 = vector.load %arg19[%c1_54, %c0_55, %c0_56, %c0_57] : memref<4x2x16x32xf32, #tpu.memory_space<vmem>>, vector<1x2x16x32xf32>
    %162 = vector.shape_cast %161 : vector<1x2x16x32xf32> to vector<2x16x32xf32>
    %163 = vector.shape_cast %160 : vector<2x16x32xf32> to vector<1x2x16x32xf32>
    tpu.vector_store %arg19[%c1_54, %c0_55, %c0_56, %c0_57], %163 {strides = array<i32>} : memref<4x2x16x32xf32, #tpu.memory_space<vmem>>, vector<1x2x16x32xf32>,
    %c16 = arith.constant 16 : index
    %164 = memref.load %arg1[%c16] : memref<64xf32, #tpu.memory_space<smem>>
    %165 = vector.extract_strided_slice %62 {offsets = [0, 0, 0, 0], sizes = [1, 2, 16, 32], strides = [1, 1, 1, 1]} : vector<8x2x16x32xf32> to vector<1x2x16x32xf32>
    %166 = vector.shape_cast %165 : vector<1x2x16x32xf32> to vector<2x16x32xf32>
    %167 = vector.broadcast %164 : f32 to vector<2x16x32xf32>
    %168 = arith.mulf %167, %166 : vector<2x16x32xf32>
    %c17 = arith.constant 17 : index
    %169 = memref.load %arg1[%c17] : memref<64xf32, #tpu.memory_space<smem>>
    %170 = vector.extract_strided_slice %62 {offsets = [1, 0, 0, 0], sizes = [1, 2, 16, 32], strides = [1, 1, 1, 1]} : vector<8x2x16x32xf32> to vector<1x2x16x32xf32>
    %171 = vector.shape_cast %170 : vector<1x2x16x32xf32> to vector<2x16x32xf32>
    %172 = vector.broadcast %169 : f32 to vector<2x16x32xf32>
    %173 = arith.mulf %172, %171 : vector<2x16x32xf32>
    %174 = arith.addf %168, %173 : vector<2x16x32xf32>
    %c18 = arith.constant 18 : index
    %175 = memref.load %arg1[%c18] : memref<64xf32, #tpu.memory_space<smem>>
    %176 = vector.extract_strided_slice %62 {offsets = [2, 0, 0, 0], sizes = [1, 2, 16, 32], strides = [1, 1, 1, 1]} : vector<8x2x16x32xf32> to vector<1x2x16x32xf32>
    %177 = vector.shape_cast %176 : vector<1x2x16x32xf32> to vector<2x16x32xf32>
    %178 = vector.broadcast %175 : f32 to vector<2x16x32xf32>
    %179 = arith.mulf %178, %177 : vector<2x16x32xf32>
    %180 = arith.addf %174, %179 : vector<2x16x32xf32>
    %c19 = arith.constant 19 : index
    %181 = memref.load %arg1[%c19] : memref<64xf32, #tpu.memory_space<smem>>
    %182 = vector.extract_strided_slice %62 {offsets = [3, 0, 0, 0], sizes = [1, 2, 16, 32], strides = [1, 1, 1, 1]} : vector<8x2x16x32xf32> to vector<1x2x16x32xf32>
    %183 = vector.shape_cast %182 : vector<1x2x16x32xf32> to vector<2x16x32xf32>
    %184 = vector.broadcast %181 : f32 to vector<2x16x32xf32>
    %185 = arith.mulf %184, %183 : vector<2x16x32xf32>
    %186 = arith.addf %180, %185 : vector<2x16x32xf32>
    %c20 = arith.constant 20 : index
    %187 = memref.load %arg1[%c20] : memref<64xf32, #tpu.memory_space<smem>>
    %188 = vector.extract_strided_slice %62 {offsets = [4, 0, 0, 0], sizes = [1, 2, 16, 32], strides = [1, 1, 1, 1]} : vector<8x2x16x32xf32> to vector<1x2x16x32xf32>
    %189 = vector.shape_cast %188 : vector<1x2x16x32xf32> to vector<2x16x32xf32>
    %190 = vector.broadcast %187 : f32 to vector<2x16x32xf32>
    %191 = arith.mulf %190, %189 : vector<2x16x32xf32>
    %192 = arith.addf %186, %191 : vector<2x16x32xf32>
    %c21 = arith.constant 21 : index
    %193 = memref.load %arg1[%c21] : memref<64xf32, #tpu.memory_space<smem>>
    %194 = vector.extract_strided_slice %62 {offsets = [5, 0, 0, 0], sizes = [1, 2, 16, 32], strides = [1, 1, 1, 1]} : vector<8x2x16x32xf32> to vector<1x2x16x32xf32>
    %195 = vector.shape_cast %194 : vector<1x2x16x32xf32> to vector<2x16x32xf32>
    %196 = vector.broadcast %193 : f32 to vector<2x16x32xf32>
    %197 = arith.mulf %196, %195 : vector<2x16x32xf32>
    %198 = arith.addf %192, %197 : vector<2x16x32xf32>
    %c22 = arith.constant 22 : index
    %199 = memref.load %arg1[%c22] : memref<64xf32, #tpu.memory_space<smem>>
    %200 = vector.extract_strided_slice %62 {offsets = [6, 0, 0, 0], sizes = [1, 2, 16, 32], strides = [1, 1, 1, 1]} : vector<8x2x16x32xf32> to vector<1x2x16x32xf32>
    %201 = vector.shape_cast %200 : vector<1x2x16x32xf32> to vector<2x16x32xf32>
    %202 = vector.broadcast %199 : f32 to vector<2x16x32xf32>
    %203 = arith.mulf %202, %201 : vector<2x16x32xf32>
    %204 = arith.addf %198, %203 : vector<2x16x32xf32>
    %c23 = arith.constant 23 : index
    %205 = memref.load %arg1[%c23] : memref<64xf32, #tpu.memory_space<smem>>
    %206 = vector.extract_strided_slice %62 {offsets = [7, 0, 0, 0], sizes = [1, 2, 16, 32], strides = [1, 1, 1, 1]} : vector<8x2x16x32xf32> to vector<1x2x16x32xf32>
    %207 = vector.shape_cast %206 : vector<1x2x16x32xf32> to vector<2x16x32xf32>
    %208 = vector.broadcast %205 : f32 to vector<2x16x32xf32>
    %209 = arith.mulf %208, %207 : vector<2x16x32xf32>
    %210 = arith.addf %204, %209 : vector<2x16x32xf32>
    %c2_58 = arith.constant 2 : index
    %c0_59 = arith.constant 0 : index
    %c0_60 = arith.constant 0 : index
    %c0_61 = arith.constant 0 : index
    %211 = vector.load %arg19[%c2_58, %c0_59, %c0_60, %c0_61] : memref<4x2x16x32xf32, #tpu.memory_space<vmem>>, vector<1x2x16x32xf32>
    %212 = vector.shape_cast %211 : vector<1x2x16x32xf32> to vector<2x16x32xf32>
    %213 = vector.shape_cast %210 : vector<2x16x32xf32> to vector<1x2x16x32xf32>
    tpu.vector_store %arg19[%c2_58, %c0_59, %c0_60, %c0_61], %213 {strides = array<i32>} : memref<4x2x16x32xf32, #tpu.memory_space<vmem>>, vector<1x2x16x32xf32>,
    %c24 = arith.constant 24 : index
    %214 = memref.load %arg1[%c24] : memref<64xf32, #tpu.memory_space<smem>>
    %215 = vector.extract_strided_slice %62 {offsets = [0, 0, 0, 0], sizes = [1, 2, 16, 32], strides = [1, 1, 1, 1]} : vector<8x2x16x32xf32> to vector<1x2x16x32xf32>
    %216 = vector.shape_cast %215 : vector<1x2x16x32xf32> to vector<2x16x32xf32>
    %217 = vector.broadcast %214 : f32 to vector<2x16x32xf32>
    %218 = arith.mulf %217, %216 : vector<2x16x32xf32>
    %c25 = arith.constant 25 : index
    %219 = memref.load %arg1[%c25] : memref<64xf32, #tpu.memory_space<smem>>
    %220 = vector.extract_strided_slice %62 {offsets = [1, 0, 0, 0], sizes = [1, 2, 16, 32], strides = [1, 1, 1, 1]} : vector<8x2x16x32xf32> to vector<1x2x16x32xf32>
    %221 = vector.shape_cast %220 : vector<1x2x16x32xf32> to vector<2x16x32xf32>
    %222 = vector.broadcast %219 : f32 to vector<2x16x32xf32>
    %223 = arith.mulf %222, %221 : vector<2x16x32xf32>
    %224 = arith.addf %218, %223 : vector<2x16x32xf32>
    %c26 = arith.constant 26 : index
    %225 = memref.load %arg1[%c26] : memref<64xf32, #tpu.memory_space<smem>>
    %226 = vector.extract_strided_slice %62 {offsets = [2, 0, 0, 0], sizes = [1, 2, 16, 32], strides = [1, 1, 1, 1]} : vector<8x2x16x32xf32> to vector<1x2x16x32xf32>
    %227 = vector.shape_cast %226 : vector<1x2x16x32xf32> to vector<2x16x32xf32>
    %228 = vector.broadcast %225 : f32 to vector<2x16x32xf32>
    %229 = arith.mulf %228, %227 : vector<2x16x32xf32>
    %230 = arith.addf %224, %229 : vector<2x16x32xf32>
    %c27 = arith.constant 27 : index
    %231 = memref.load %arg1[%c27] : memref<64xf32, #tpu.memory_space<smem>>
    %232 = vector.extract_strided_slice %62 {offsets = [3, 0, 0, 0], sizes = [1, 2, 16, 32], strides = [1, 1, 1, 1]} : vector<8x2x16x32xf32> to vector<1x2x16x32xf32>
    %233 = vector.shape_cast %232 : vector<1x2x16x32xf32> to vector<2x16x32xf32>
    %234 = vector.broadcast %231 : f32 to vector<2x16x32xf32>
    %235 = arith.mulf %234, %233 : vector<2x16x32xf32>
    %236 = arith.addf %230, %235 : vector<2x16x32xf32>
    %c28 = arith.constant 28 : index
    %237 = memref.load %arg1[%c28] : memref<64xf32, #tpu.memory_space<smem>>
    %238 = vector.extract_strided_slice %62 {offsets = [4, 0, 0, 0], sizes = [1, 2, 16, 32], strides = [1, 1, 1, 1]} : vector<8x2x16x32xf32> to vector<1x2x16x32xf32>
    %239 = vector.shape_cast %238 : vector<1x2x16x32xf32> to vector<2x16x32xf32>
    %240 = vector.broadcast %237 : f32 to vector<2x16x32xf32>
    %241 = arith.mulf %240, %239 : vector<2x16x32xf32>
    %242 = arith.addf %236, %241 : vector<2x16x32xf32>
    %c29 = arith.constant 29 : index
    %243 = memref.load %arg1[%c29] : memref<64xf32, #tpu.memory_space<smem>>
    %244 = vector.extract_strided_slice %62 {offsets = [5, 0, 0, 0], sizes = [1, 2, 16, 32], strides = [1, 1, 1, 1]} : vector<8x2x16x32xf32> to vector<1x2x16x32xf32>
    %245 = vector.shape_cast %244 : vector<1x2x16x32xf32> to vector<2x16x32xf32>
    %246 = vector.broadcast %243 : f32 to vector<2x16x32xf32>
    %247 = arith.mulf %246, %245 : vector<2x16x32xf32>
    %248 = arith.addf %242, %247 : vector<2x16x32xf32>
    %c30 = arith.constant 30 : index
    %249 = memref.load %arg1[%c30] : memref<64xf32, #tpu.memory_space<smem>>
    %250 = vector.extract_strided_slice %62 {offsets = [6, 0, 0, 0], sizes = [1, 2, 16, 32], strides = [1, 1, 1, 1]} : vector<8x2x16x32xf32> to vector<1x2x16x32xf32>
    %251 = vector.shape_cast %250 : vector<1x2x16x32xf32> to vector<2x16x32xf32>
    %252 = vector.broadcast %249 : f32 to vector<2x16x32xf32>
    %253 = arith.mulf %252, %251 : vector<2x16x32xf32>
    %254 = arith.addf %248, %253 : vector<2x16x32xf32>
    %c31 = arith.constant 31 : index
    %255 = memref.load %arg1[%c31] : memref<64xf32, #tpu.memory_space<smem>>
    %256 = vector.extract_strided_slice %62 {offsets = [7, 0, 0, 0], sizes = [1, 2, 16, 32], strides = [1, 1, 1, 1]} : vector<8x2x16x32xf32> to vector<1x2x16x32xf32>
    %257 = vector.shape_cast %256 : vector<1x2x16x32xf32> to vector<2x16x32xf32>
    %258 = vector.broadcast %255 : f32 to vector<2x16x32xf32>
    %259 = arith.mulf %258, %257 : vector<2x16x32xf32>
    %260 = arith.addf %254, %259 : vector<2x16x32xf32>
    %c3_62 = arith.constant 3 : index
    %c0_63 = arith.constant 0 : index
    %c0_64 = arith.constant 0 : index
    %c0_65 = arith.constant 0 : index
    %261 = vector.load %arg19[%c3_62, %c0_63, %c0_64, %c0_65] : memref<4x2x16x32xf32, #tpu.memory_space<vmem>>, vector<1x2x16x32xf32>
    %262 = vector.shape_cast %261 : vector<1x2x16x32xf32> to vector<2x16x32xf32>
    %263 = vector.shape_cast %260 : vector<2x16x32xf32> to vector<1x2x16x32xf32>
    tpu.vector_store %arg19[%c3_62, %c0_63, %c0_64, %c0_65], %263 {strides = array<i32>} : memref<4x2x16x32xf32, #tpu.memory_space<vmem>>, vector<1x2x16x32xf32>,
    %c0_66 = arith.constant 0 : index
    %c0_67 = arith.constant 0 : index
    %c0_68 = arith.constant 0 : index
    %c0_69 = arith.constant 0 : index
    %264 = vector.load %arg19[%c0_66, %c0_67, %c0_68, %c0_69] : memref<4x2x16x32xf32, #tpu.memory_space<vmem>>, vector<4x2x16x32xf32>
    %265 = vector.shape_cast %264 : vector<4x2x16x32xf32> to vector<128x32xf32>
    %c0_70 = arith.constant 0 : index
    %c0_71 = arith.constant 0 : index
    %c0_72 = arith.constant 0 : index
    %266 = vector.load %arg11[%c0_70, %c0_71, %c0_72] : memref<2x32x32xf32, #tpu.memory_space<vmem>>, vector<1x32x32xf32>
    %267 = vector.shape_cast %266 : vector<1x32x32xf32> to vector<32x32xf32>
    %cst_73 = arith.constant dense<0.000000e+00> : vector<128x32xf32>
    %268 = tpu.matmul %265, %267, %cst_73 {dimension_numbers = #tpu.dot_dimension_numbers<[1], [0], [0], [1], [0, 0, 1, 1], [], []>} : vector<128x32xf32>, vector<32x32xf32>, vector<128x32xf32> -> vector<128x32xf32>
    %c0_74 = arith.constant 0 : index
    %c0_75 = arith.constant 0 : index
    %c0_76 = arith.constant 0 : index
    %269 = vector.load %arg12[%c0_74, %c0_75, %c0_76] : memref<2x1x32xf32, #tpu.memory_space<vmem>>, vector<1x1x32xf32>
    %270 = vector.shape_cast %269 : vector<1x1x32xf32> to vector<1x32xf32>
    %271 = vector.broadcast %270 : vector<1x32xf32> to vector<128x32xf32>
    %272 = arith.addf %268, %271 : vector<128x32xf32>
    %c0_77 = arith.constant 0 : index
    %c0_78 = arith.constant 0 : index
    %c0_79 = arith.constant 0 : index
    %273 = vector.load %arg13[%c0_77, %c0_78, %c0_79] : memref<2x32x32xf32, #tpu.memory_space<vmem>>, vector<1x32x32xf32>
    %274 = vector.shape_cast %273 : vector<1x32x32xf32> to vector<32x32xf32>
    %cst_80 = arith.constant dense<0.000000e+00> : vector<128x32xf32>
    %275 = tpu.matmul %265, %274, %cst_80 {dimension_numbers = #tpu.dot_dimension_numbers<[1], [0], [0], [1], [0, 0, 1, 1], [], []>} : vector<128x32xf32>, vector<32x32xf32>, vector<128x32xf32> -> vector<128x32xf32>
    %c0_81 = arith.constant 0 : index
    %c0_82 = arith.constant 0 : index
    %c0_83 = arith.constant 0 : index
    %276 = vector.load %arg14[%c0_81, %c0_82, %c0_83] : memref<2x1x32xf32, #tpu.memory_space<vmem>>, vector<1x1x32xf32>
    %277 = vector.shape_cast %276 : vector<1x1x32xf32> to vector<1x32xf32>
    %278 = vector.broadcast %277 : vector<1x32xf32> to vector<128x32xf32>
    %279 = arith.addf %275, %278 : vector<128x32xf32>
    %280 = arith.negf %279 : vector<128x32xf32>
    %281 = math.exp %280 : vector<128x32xf32>
    %cst_84 = arith.constant 1.000000e+00 : f32
    %282 = vector.broadcast %cst_84 : f32 to vector<128x32xf32>
    %283 = arith.addf %282, %281 : vector<128x32xf32>
    %284 = arith.divf %282, %283 : vector<128x32xf32>
    %285 = arith.mulf %272, %284 : vector<128x32xf32>
    %286 = vector.shape_cast %285 : vector<128x32xf32> to vector<4x2x16x32xf32>
    %287 = vector.extract_strided_slice %62 {offsets = [0, 0, 0, 0], sizes = [4, 2, 16, 32], strides = [1, 1, 1, 1]} : vector<8x2x16x32xf32> to vector<4x2x16x32xf32>
    %288 = arith.addf %286, %287 : vector<4x2x16x32xf32>
    %c0_85 = arith.constant 0 : index
    %c0_86 = arith.constant 0 : index
    %c0_87 = arith.constant 0 : index
    %c0_88 = arith.constant 0 : index
    %289 = vector.load %arg18[%c0_85, %c0_86, %c0_87, %c0_88] : memref<8x2x16x32xf32, #tpu.memory_space<vmem>>, vector<4x2x16x32xf32>
    tpu.vector_store %arg18[%c0_85, %c0_86, %c0_87, %c0_88], %288 {strides = array<i32>} : memref<8x2x16x32xf32, #tpu.memory_space<vmem>>, vector<4x2x16x32xf32>,
    %c0_89 = arith.constant 0 : index
    %c0_90 = arith.constant 0 : index
    %c0_91 = arith.constant 0 : index
    %c0_92 = arith.constant 0 : index
    %290 = vector.load %arg18[%c0_89, %c0_90, %c0_91, %c0_92] : memref<8x2x16x32xf32, #tpu.memory_space<vmem>>, vector<8x2x16x32xf32>
    %291 = vector.shape_cast %290 : vector<8x2x16x32xf32> to vector<256x32xf32>
    %292 = vector.shape_cast %290 : vector<8x2x16x32xf32> to vector<16x16x32xf32>
    %cst_93 = arith.constant dense<0.000000e+00> : vector<16x32xf32>
    %293 = vector.multi_reduction <add>, %290, %cst_93 [0, 1] : vector<8x2x16x32xf32> to vector<16x32xf32>
    %cst_94 = arith.constant 1.600000e+01 : f32
    %294 = vector.broadcast %cst_94 : f32 to vector<16x32xf32>
    %295 = arith.divf %293, %294 : vector<16x32xf32>
    %c1_95 = arith.constant 1 : index
    %c0_96 = arith.constant 0 : index
    %c0_97 = arith.constant 0 : index
    %296 = vector.load %arg5[%c1_95, %c0_96, %c0_97] : memref<2x32x32xf32, #tpu.memory_space<vmem>>, vector<1x32x32xf32>
    %297 = vector.shape_cast %296 : vector<1x32x32xf32> to vector<32x32xf32>
    %cst_98 = arith.constant dense<0.000000e+00> : vector<16x32xf32>
    %298 = tpu.matmul %295, %297, %cst_98 {dimension_numbers = #tpu.dot_dimension_numbers<[1], [0], [0], [1], [0, 0, 1, 1], [], []>} : vector<16x32xf32>, vector<32x32xf32>, vector<16x32xf32> -> vector<16x32xf32>
    %c1_99 = arith.constant 1 : index
    %c0_100 = arith.constant 0 : index
    %c0_101 = arith.constant 0 : index
    %299 = vector.load %arg6[%c1_99, %c0_100, %c0_101] : memref<2x32x32xf32, #tpu.memory_space<vmem>>, vector<1x32x32xf32>
    %300 = vector.shape_cast %299 : vector<1x32x32xf32> to vector<32x32xf32>
    %cst_102 = arith.constant dense<0.000000e+00> : vector<16x32xf32>
    %301 = tpu.matmul %295, %300, %cst_102 {dimension_numbers = #tpu.dot_dimension_numbers<[1], [0], [0], [1], [0, 0, 1, 1], [], []>} : vector<16x32xf32>, vector<32x32xf32>, vector<16x32xf32> -> vector<16x32xf32>
    %cst_103 = arith.constant dense<0.000000e+00> : vector<16x16xf32>
    %302 = tpu.matmul %298, %301, %cst_103 {dimension_numbers = #tpu.dot_dimension_numbers<[1], [1], [0], [0], [0, 0, 1, 0], [], []>} : vector<16x32xf32>, vector<16x32xf32>, vector<16x16xf32> -> vector<16x16xf32>
    %cst_104 = arith.constant 0.176776692 : f32
    %303 = vector.broadcast %cst_104 : f32 to vector<16x16xf32>
    %304 = arith.mulf %302, %303 : vector<16x16xf32>
    %cst_105 = arith.constant dense<0xFF800000> : vector<16xf32>
    %305 = vector.multi_reduction <maximumf>, %304, %cst_105 [1] : vector<16x16xf32> to vector<16xf32>
    %306 = vector.shape_cast %305 : vector<16xf32> to vector<16x1xf32>
    %307 = vector.broadcast %306 : vector<16x1xf32> to vector<16x16xf32>
    %308 = arith.subf %304, %307 : vector<16x16xf32>
    %309 = math.exp %308 : vector<16x16xf32>
    %cst_106 = arith.constant dense<0.000000e+00> : vector<16xf32>
    %310 = vector.multi_reduction <add>, %309, %cst_106 [1] : vector<16x16xf32> to vector<16xf32>
    %311 = vector.shape_cast %310 : vector<16xf32> to vector<16x1xf32>
    %312 = vector.broadcast %311 : vector<16x1xf32> to vector<16x16xf32>
    %313 = arith.divf %309, %312 : vector<16x16xf32>
    %314 = vector.shape_cast %313 : vector<16x16xf32> to vector<1x16x16xf32>
    %315 = vector.broadcast %314 : vector<1x16x16xf32> to vector<16x16x16xf32>
    %cst_107 = arith.constant dense<0.000000e+00> : vector<16x16x32xf32>
    %316 = tpu.matmul %315, %292, %cst_107 {dimension_numbers = #tpu.dot_dimension_numbers<[2], [1], [1], [2], [0, 0, 0, 1, 1, 2], [0], [0]>} : vector<16x16x16xf32>, vector<16x16x32xf32>, vector<16x16x32xf32> -> vector<16x16x32xf32>
    %317 = vector.shape_cast %316 : vector<16x16x32xf32> to vector<256x32xf32>
    %c1_108 = arith.constant 1 : index
    %c0_109 = arith.constant 0 : index
    %c0_110 = arith.constant 0 : index
    %318 = vector.load %arg7[%c1_108, %c0_109, %c0_110] : memref<2x32x32xf32, #tpu.memory_space<vmem>>, vector<1x32x32xf32>
    %319 = vector.shape_cast %318 : vector<1x32x32xf32> to vector<32x32xf32>
    %cst_111 = arith.constant dense<0.000000e+00> : vector<256x32xf32>
    %320 = tpu.matmul %317, %319, %cst_111 {dimension_numbers = #tpu.dot_dimension_numbers<[1], [0], [0], [1], [0, 0, 1, 1], [], []>} : vector<256x32xf32>, vector<32x32xf32>, vector<256x32xf32> -> vector<256x32xf32>
    %c1_112 = arith.constant 1 : index
    %c0_113 = arith.constant 0 : index
    %c0_114 = arith.constant 0 : index
    %321 = vector.load %arg8[%c1_112, %c0_113, %c0_114] : memref<2x1x32xf32, #tpu.memory_space<vmem>>, vector<1x1x32xf32>
    %322 = vector.shape_cast %321 : vector<1x1x32xf32> to vector<1x32xf32>
    %323 = vector.broadcast %322 : vector<1x32xf32> to vector<256x32xf32>
    %324 = arith.addf %320, %323 : vector<256x32xf32>
    %c1_115 = arith.constant 1 : index
    %c0_116 = arith.constant 0 : index
    %c0_117 = arith.constant 0 : index
    %325 = vector.load %arg9[%c1_115, %c0_116, %c0_117] : memref<2x32x32xf32, #tpu.memory_space<vmem>>, vector<1x32x32xf32>
    %326 = vector.shape_cast %325 : vector<1x32x32xf32> to vector<32x32xf32>
    %cst_118 = arith.constant dense<0.000000e+00> : vector<256x32xf32>
    %327 = tpu.matmul %317, %326, %cst_118 {dimension_numbers = #tpu.dot_dimension_numbers<[1], [0], [0], [1], [0, 0, 1, 1], [], []>} : vector<256x32xf32>, vector<32x32xf32>, vector<256x32xf32> -> vector<256x32xf32>
    %c1_119 = arith.constant 1 : index
    %c0_120 = arith.constant 0 : index
    %c0_121 = arith.constant 0 : index
    %328 = vector.load %arg10[%c1_119, %c0_120, %c0_121] : memref<2x1x32xf32, #tpu.memory_space<vmem>>, vector<1x1x32xf32>
    %329 = vector.shape_cast %328 : vector<1x1x32xf32> to vector<1x32xf32>
    %330 = vector.broadcast %329 : vector<1x32xf32> to vector<256x32xf32>
    %331 = arith.addf %327, %330 : vector<256x32xf32>
    %332 = arith.negf %331 : vector<256x32xf32>
    %333 = math.exp %332 : vector<256x32xf32>
    %cst_122 = arith.constant 1.000000e+00 : f32
    %334 = vector.broadcast %cst_122 : f32 to vector<256x32xf32>
    %335 = arith.addf %334, %333 : vector<256x32xf32>
    %336 = arith.divf %334, %335 : vector<256x32xf32>
    %337 = arith.mulf %324, %336 : vector<256x32xf32>
    %338 = arith.addf %337, %291 : vector<256x32xf32>
    %339 = vector.shape_cast %338 : vector<256x32xf32> to vector<8x2x16x32xf32>
    %c0_123 = arith.constant 0 : index
    %c0_124 = arith.constant 0 : index
    %c0_125 = arith.constant 0 : index
    %c0_126 = arith.constant 0 : index
    %340 = vector.load %arg18[%c0_123, %c0_124, %c0_125, %c0_126] : memref<8x2x16x32xf32, #tpu.memory_space<vmem>>, vector<8x2x16x32xf32>
    tpu.vector_store %arg18[%c0_123, %c0_124, %c0_125, %c0_126], %339 {strides = array<i32>} : memref<8x2x16x32xf32, #tpu.memory_space<vmem>>, vector<8x2x16x32xf32>,
    %c32 = arith.constant 32 : index
    %341 = memref.load %arg1[%c32] : memref<64xf32, #tpu.memory_space<smem>>
    %342 = vector.extract_strided_slice %339 {offsets = [0, 0, 0, 0], sizes = [1, 2, 16, 32], strides = [1, 1, 1, 1]} : vector<8x2x16x32xf32> to vector<1x2x16x32xf32>
    %343 = vector.shape_cast %342 : vector<1x2x16x32xf32> to vector<2x16x32xf32>
    %344 = vector.broadcast %341 : f32 to vector<2x16x32xf32>
    %345 = arith.mulf %344, %343 : vector<2x16x32xf32>
    %c33 = arith.constant 33 : index
    %346 = memref.load %arg1[%c33] : memref<64xf32, #tpu.memory_space<smem>>
    %347 = vector.extract_strided_slice %339 {offsets = [1, 0, 0, 0], sizes = [1, 2, 16, 32], strides = [1, 1, 1, 1]} : vector<8x2x16x32xf32> to vector<1x2x16x32xf32>
    %348 = vector.shape_cast %347 : vector<1x2x16x32xf32> to vector<2x16x32xf32>
    %349 = vector.broadcast %346 : f32 to vector<2x16x32xf32>
    %350 = arith.mulf %349, %348 : vector<2x16x32xf32>
    %351 = arith.addf %345, %350 : vector<2x16x32xf32>
    %c34 = arith.constant 34 : index
    %352 = memref.load %arg1[%c34] : memref<64xf32, #tpu.memory_space<smem>>
    %353 = vector.extract_strided_slice %339 {offsets = [2, 0, 0, 0], sizes = [1, 2, 16, 32], strides = [1, 1, 1, 1]} : vector<8x2x16x32xf32> to vector<1x2x16x32xf32>
    %354 = vector.shape_cast %353 : vector<1x2x16x32xf32> to vector<2x16x32xf32>
    %355 = vector.broadcast %352 : f32 to vector<2x16x32xf32>
    %356 = arith.mulf %355, %354 : vector<2x16x32xf32>
    %357 = arith.addf %351, %356 : vector<2x16x32xf32>
    %c35 = arith.constant 35 : index
    %358 = memref.load %arg1[%c35] : memref<64xf32, #tpu.memory_space<smem>>
    %359 = vector.extract_strided_slice %339 {offsets = [3, 0, 0, 0], sizes = [1, 2, 16, 32], strides = [1, 1, 1, 1]} : vector<8x2x16x32xf32> to vector<1x2x16x32xf32>
    %360 = vector.shape_cast %359 : vector<1x2x16x32xf32> to vector<2x16x32xf32>
    %361 = vector.broadcast %358 : f32 to vector<2x16x32xf32>
    %362 = arith.mulf %361, %360 : vector<2x16x32xf32>
    %363 = arith.addf %357, %362 : vector<2x16x32xf32>
    %c36 = arith.constant 36 : index
    %364 = memref.load %arg1[%c36] : memref<64xf32, #tpu.memory_space<smem>>
    %365 = vector.extract_strided_slice %339 {offsets = [4, 0, 0, 0], sizes = [1, 2, 16, 32], strides = [1, 1, 1, 1]} : vector<8x2x16x32xf32> to vector<1x2x16x32xf32>
    %366 = vector.shape_cast %365 : vector<1x2x16x32xf32> to vector<2x16x32xf32>
    %367 = vector.broadcast %364 : f32 to vector<2x16x32xf32>
    %368 = arith.mulf %367, %366 : vector<2x16x32xf32>
    %369 = arith.addf %363, %368 : vector<2x16x32xf32>
    %c37 = arith.constant 37 : index
    %370 = memref.load %arg1[%c37] : memref<64xf32, #tpu.memory_space<smem>>
    %371 = vector.extract_strided_slice %339 {offsets = [5, 0, 0, 0], sizes = [1, 2, 16, 32], strides = [1, 1, 1, 1]} : vector<8x2x16x32xf32> to vector<1x2x16x32xf32>
    %372 = vector.shape_cast %371 : vector<1x2x16x32xf32> to vector<2x16x32xf32>
    %373 = vector.broadcast %370 : f32 to vector<2x16x32xf32>
    %374 = arith.mulf %373, %372 : vector<2x16x32xf32>
    %375 = arith.addf %369, %374 : vector<2x16x32xf32>
    %c38 = arith.constant 38 : index
    %376 = memref.load %arg1[%c38] : memref<64xf32, #tpu.memory_space<smem>>
    %377 = vector.extract_strided_slice %339 {offsets = [6, 0, 0, 0], sizes = [1, 2, 16, 32], strides = [1, 1, 1, 1]} : vector<8x2x16x32xf32> to vector<1x2x16x32xf32>
    %378 = vector.shape_cast %377 : vector<1x2x16x32xf32> to vector<2x16x32xf32>
    %379 = vector.broadcast %376 : f32 to vector<2x16x32xf32>
    %380 = arith.mulf %379, %378 : vector<2x16x32xf32>
    %381 = arith.addf %375, %380 : vector<2x16x32xf32>
    %c39 = arith.constant 39 : index
    %382 = memref.load %arg1[%c39] : memref<64xf32, #tpu.memory_space<smem>>
    %383 = vector.extract_strided_slice %339 {offsets = [7, 0, 0, 0], sizes = [1, 2, 16, 32], strides = [1, 1, 1, 1]} : vector<8x2x16x32xf32> to vector<1x2x16x32xf32>
    %384 = vector.shape_cast %383 : vector<1x2x16x32xf32> to vector<2x16x32xf32>
    %385 = vector.broadcast %382 : f32 to vector<2x16x32xf32>
    %386 = arith.mulf %385, %384 : vector<2x16x32xf32>
    %387 = arith.addf %381, %386 : vector<2x16x32xf32>
    %c0_127 = arith.constant 0 : index
    %c0_128 = arith.constant 0 : index
    %c0_129 = arith.constant 0 : index
    %c0_130 = arith.constant 0 : index
    %388 = vector.load %arg19[%c0_127, %c0_128, %c0_129, %c0_130] : memref<4x2x16x32xf32, #tpu.memory_space<vmem>>, vector<1x2x16x32xf32>
    %389 = vector.shape_cast %388 : vector<1x2x16x32xf32> to vector<2x16x32xf32>
    %390 = vector.shape_cast %387 : vector<2x16x32xf32> to vector<1x2x16x32xf32>
    tpu.vector_store %arg19[%c0_127, %c0_128, %c0_129, %c0_130], %390 {strides = array<i32>} : memref<4x2x16x32xf32, #tpu.memory_space<vmem>>, vector<1x2x16x32xf32>,
    %c40 = arith.constant 40 : index
    %391 = memref.load %arg1[%c40] : memref<64xf32, #tpu.memory_space<smem>>
    %392 = vector.extract_strided_slice %339 {offsets = [0, 0, 0, 0], sizes = [1, 2, 16, 32], strides = [1, 1, 1, 1]} : vector<8x2x16x32xf32> to vector<1x2x16x32xf32>
    %393 = vector.shape_cast %392 : vector<1x2x16x32xf32> to vector<2x16x32xf32>
    %394 = vector.broadcast %391 : f32 to vector<2x16x32xf32>
    %395 = arith.mulf %394, %393 : vector<2x16x32xf32>
    %c41 = arith.constant 41 : index
    %396 = memref.load %arg1[%c41] : memref<64xf32, #tpu.memory_space<smem>>
    %397 = vector.extract_strided_slice %339 {offsets = [1, 0, 0, 0], sizes = [1, 2, 16, 32], strides = [1, 1, 1, 1]} : vector<8x2x16x32xf32> to vector<1x2x16x32xf32>
    %398 = vector.shape_cast %397 : vector<1x2x16x32xf32> to vector<2x16x32xf32>
    %399 = vector.broadcast %396 : f32 to vector<2x16x32xf32>
    %400 = arith.mulf %399, %398 : vector<2x16x32xf32>
    %401 = arith.addf %395, %400 : vector<2x16x32xf32>
    %c42 = arith.constant 42 : index
    %402 = memref.load %arg1[%c42] : memref<64xf32, #tpu.memory_space<smem>>
    %403 = vector.extract_strided_slice %339 {offsets = [2, 0, 0, 0], sizes = [1, 2, 16, 32], strides = [1, 1, 1, 1]} : vector<8x2x16x32xf32> to vector<1x2x16x32xf32>
    %404 = vector.shape_cast %403 : vector<1x2x16x32xf32> to vector<2x16x32xf32>
    %405 = vector.broadcast %402 : f32 to vector<2x16x32xf32>
    %406 = arith.mulf %405, %404 : vector<2x16x32xf32>
    %407 = arith.addf %401, %406 : vector<2x16x32xf32>
    %c43 = arith.constant 43 : index
    %408 = memref.load %arg1[%c43] : memref<64xf32, #tpu.memory_space<smem>>
    %409 = vector.extract_strided_slice %339 {offsets = [3, 0, 0, 0], sizes = [1, 2, 16, 32], strides = [1, 1, 1, 1]} : vector<8x2x16x32xf32> to vector<1x2x16x32xf32>
    %410 = vector.shape_cast %409 : vector<1x2x16x32xf32> to vector<2x16x32xf32>
    %411 = vector.broadcast %408 : f32 to vector<2x16x32xf32>
    %412 = arith.mulf %411, %410 : vector<2x16x32xf32>
    %413 = arith.addf %407, %412 : vector<2x16x32xf32>
    %c44 = arith.constant 44 : index
    %414 = memref.load %arg1[%c44] : memref<64xf32, #tpu.memory_space<smem>>
    %415 = vector.extract_strided_slice %339 {offsets = [4, 0, 0, 0], sizes = [1, 2, 16, 32], strides = [1, 1, 1, 1]} : vector<8x2x16x32xf32> to vector<1x2x16x32xf32>
    %416 = vector.shape_cast %415 : vector<1x2x16x32xf32> to vector<2x16x32xf32>
    %417 = vector.broadcast %414 : f32 to vector<2x16x32xf32>
    %418 = arith.mulf %417, %416 : vector<2x16x32xf32>
    %419 = arith.addf %413, %418 : vector<2x16x32xf32>
    %c45 = arith.constant 45 : index
    %420 = memref.load %arg1[%c45] : memref<64xf32, #tpu.memory_space<smem>>
    %421 = vector.extract_strided_slice %339 {offsets = [5, 0, 0, 0], sizes = [1, 2, 16, 32], strides = [1, 1, 1, 1]} : vector<8x2x16x32xf32> to vector<1x2x16x32xf32>
    %422 = vector.shape_cast %421 : vector<1x2x16x32xf32> to vector<2x16x32xf32>
    %423 = vector.broadcast %420 : f32 to vector<2x16x32xf32>
    %424 = arith.mulf %423, %422 : vector<2x16x32xf32>
    %425 = arith.addf %419, %424 : vector<2x16x32xf32>
    %c46 = arith.constant 46 : index
    %426 = memref.load %arg1[%c46] : memref<64xf32, #tpu.memory_space<smem>>
    %427 = vector.extract_strided_slice %339 {offsets = [6, 0, 0, 0], sizes = [1, 2, 16, 32], strides = [1, 1, 1, 1]} : vector<8x2x16x32xf32> to vector<1x2x16x32xf32>
    %428 = vector.shape_cast %427 : vector<1x2x16x32xf32> to vector<2x16x32xf32>
    %429 = vector.broadcast %426 : f32 to vector<2x16x32xf32>
    %430 = arith.mulf %429, %428 : vector<2x16x32xf32>
    %431 = arith.addf %425, %430 : vector<2x16x32xf32>
    %c47 = arith.constant 47 : index
    %432 = memref.load %arg1[%c47] : memref<64xf32, #tpu.memory_space<smem>>
    %433 = vector.extract_strided_slice %339 {offsets = [7, 0, 0, 0], sizes = [1, 2, 16, 32], strides = [1, 1, 1, 1]} : vector<8x2x16x32xf32> to vector<1x2x16x32xf32>
    %434 = vector.shape_cast %433 : vector<1x2x16x32xf32> to vector<2x16x32xf32>
    %435 = vector.broadcast %432 : f32 to vector<2x16x32xf32>
    %436 = arith.mulf %435, %434 : vector<2x16x32xf32>
    %437 = arith.addf %431, %436 : vector<2x16x32xf32>
    %c1_131 = arith.constant 1 : index
    %c0_132 = arith.constant 0 : index
    %c0_133 = arith.constant 0 : index
    %c0_134 = arith.constant 0 : index
    %438 = vector.load %arg19[%c1_131, %c0_132, %c0_133, %c0_134] : memref<4x2x16x32xf32, #tpu.memory_space<vmem>>, vector<1x2x16x32xf32>
    %439 = vector.shape_cast %438 : vector<1x2x16x32xf32> to vector<2x16x32xf32>
    %440 = vector.shape_cast %437 : vector<2x16x32xf32> to vector<1x2x16x32xf32>
    tpu.vector_store %arg19[%c1_131, %c0_132, %c0_133, %c0_134], %440 {strides = array<i32>} : memref<4x2x16x32xf32, #tpu.memory_space<vmem>>, vector<1x2x16x32xf32>,
    %c48 = arith.constant 48 : index
    %441 = memref.load %arg1[%c48] : memref<64xf32, #tpu.memory_space<smem>>
    %442 = vector.extract_strided_slice %339 {offsets = [0, 0, 0, 0], sizes = [1, 2, 16, 32], strides = [1, 1, 1, 1]} : vector<8x2x16x32xf32> to vector<1x2x16x32xf32>
    %443 = vector.shape_cast %442 : vector<1x2x16x32xf32> to vector<2x16x32xf32>
    %444 = vector.broadcast %441 : f32 to vector<2x16x32xf32>
    %445 = arith.mulf %444, %443 : vector<2x16x32xf32>
    %c49 = arith.constant 49 : index
    %446 = memref.load %arg1[%c49] : memref<64xf32, #tpu.memory_space<smem>>
    %447 = vector.extract_strided_slice %339 {offsets = [1, 0, 0, 0], sizes = [1, 2, 16, 32], strides = [1, 1, 1, 1]} : vector<8x2x16x32xf32> to vector<1x2x16x32xf32>
    %448 = vector.shape_cast %447 : vector<1x2x16x32xf32> to vector<2x16x32xf32>
    %449 = vector.broadcast %446 : f32 to vector<2x16x32xf32>
    %450 = arith.mulf %449, %448 : vector<2x16x32xf32>
    %451 = arith.addf %445, %450 : vector<2x16x32xf32>
    %c50 = arith.constant 50 : index
    %452 = memref.load %arg1[%c50] : memref<64xf32, #tpu.memory_space<smem>>
    %453 = vector.extract_strided_slice %339 {offsets = [2, 0, 0, 0], sizes = [1, 2, 16, 32], strides = [1, 1, 1, 1]} : vector<8x2x16x32xf32> to vector<1x2x16x32xf32>
    %454 = vector.shape_cast %453 : vector<1x2x16x32xf32> to vector<2x16x32xf32>
    %455 = vector.broadcast %452 : f32 to vector<2x16x32xf32>
    %456 = arith.mulf %455, %454 : vector<2x16x32xf32>
    %457 = arith.addf %451, %456 : vector<2x16x32xf32>
    %c51 = arith.constant 51 : index
    %458 = memref.load %arg1[%c51] : memref<64xf32, #tpu.memory_space<smem>>
    %459 = vector.extract_strided_slice %339 {offsets = [3, 0, 0, 0], sizes = [1, 2, 16, 32], strides = [1, 1, 1, 1]} : vector<8x2x16x32xf32> to vector<1x2x16x32xf32>
    %460 = vector.shape_cast %459 : vector<1x2x16x32xf32> to vector<2x16x32xf32>
    %461 = vector.broadcast %458 : f32 to vector<2x16x32xf32>
    %462 = arith.mulf %461, %460 : vector<2x16x32xf32>
    %463 = arith.addf %457, %462 : vector<2x16x32xf32>
    %c52 = arith.constant 52 : index
    %464 = memref.load %arg1[%c52] : memref<64xf32, #tpu.memory_space<smem>>
    %465 = vector.extract_strided_slice %339 {offsets = [4, 0, 0, 0], sizes = [1, 2, 16, 32], strides = [1, 1, 1, 1]} : vector<8x2x16x32xf32> to vector<1x2x16x32xf32>
    %466 = vector.shape_cast %465 : vector<1x2x16x32xf32> to vector<2x16x32xf32>
    %467 = vector.broadcast %464 : f32 to vector<2x16x32xf32>
    %468 = arith.mulf %467, %466 : vector<2x16x32xf32>
    %469 = arith.addf %463, %468 : vector<2x16x32xf32>
    %c53 = arith.constant 53 : index
    %470 = memref.load %arg1[%c53] : memref<64xf32, #tpu.memory_space<smem>>
    %471 = vector.extract_strided_slice %339 {offsets = [5, 0, 0, 0], sizes = [1, 2, 16, 32], strides = [1, 1, 1, 1]} : vector<8x2x16x32xf32> to vector<1x2x16x32xf32>
    %472 = vector.shape_cast %471 : vector<1x2x16x32xf32> to vector<2x16x32xf32>
    %473 = vector.broadcast %470 : f32 to vector<2x16x32xf32>
    %474 = arith.mulf %473, %472 : vector<2x16x32xf32>
    %475 = arith.addf %469, %474 : vector<2x16x32xf32>
    %c54 = arith.constant 54 : index
    %476 = memref.load %arg1[%c54] : memref<64xf32, #tpu.memory_space<smem>>
    %477 = vector.extract_strided_slice %339 {offsets = [6, 0, 0, 0], sizes = [1, 2, 16, 32], strides = [1, 1, 1, 1]} : vector<8x2x16x32xf32> to vector<1x2x16x32xf32>
    %478 = vector.shape_cast %477 : vector<1x2x16x32xf32> to vector<2x16x32xf32>
    %479 = vector.broadcast %476 : f32 to vector<2x16x32xf32>
    %480 = arith.mulf %479, %478 : vector<2x16x32xf32>
    %481 = arith.addf %475, %480 : vector<2x16x32xf32>
    %c55 = arith.constant 55 : index
    %482 = memref.load %arg1[%c55] : memref<64xf32, #tpu.memory_space<smem>>
    %483 = vector.extract_strided_slice %339 {offsets = [7, 0, 0, 0], sizes = [1, 2, 16, 32], strides = [1, 1, 1, 1]} : vector<8x2x16x32xf32> to vector<1x2x16x32xf32>
    %484 = vector.shape_cast %483 : vector<1x2x16x32xf32> to vector<2x16x32xf32>
    %485 = vector.broadcast %482 : f32 to vector<2x16x32xf32>
    %486 = arith.mulf %485, %484 : vector<2x16x32xf32>
    %487 = arith.addf %481, %486 : vector<2x16x32xf32>
    %c2_135 = arith.constant 2 : index
    %c0_136 = arith.constant 0 : index
    %c0_137 = arith.constant 0 : index
    %c0_138 = arith.constant 0 : index
    %488 = vector.load %arg19[%c2_135, %c0_136, %c0_137, %c0_138] : memref<4x2x16x32xf32, #tpu.memory_space<vmem>>, vector<1x2x16x32xf32>
    %489 = vector.shape_cast %488 : vector<1x2x16x32xf32> to vector<2x16x32xf32>
    %490 = vector.shape_cast %487 : vector<2x16x32xf32> to vector<1x2x16x32xf32>
    tpu.vector_store %arg19[%c2_135, %c0_136, %c0_137, %c0_138], %490 {strides = array<i32>} : memref<4x2x16x32xf32, #tpu.memory_space<vmem>>, vector<1x2x16x32xf32>,
    %c56 = arith.constant 56 : index
    %491 = memref.load %arg1[%c56] : memref<64xf32, #tpu.memory_space<smem>>
    %492 = vector.extract_strided_slice %339 {offsets = [0, 0, 0, 0], sizes = [1, 2, 16, 32], strides = [1, 1, 1, 1]} : vector<8x2x16x32xf32> to vector<1x2x16x32xf32>
    %493 = vector.shape_cast %492 : vector<1x2x16x32xf32> to vector<2x16x32xf32>
    %494 = vector.broadcast %491 : f32 to vector<2x16x32xf32>
    %495 = arith.mulf %494, %493 : vector<2x16x32xf32>
    %c57 = arith.constant 57 : index
    %496 = memref.load %arg1[%c57] : memref<64xf32, #tpu.memory_space<smem>>
    %497 = vector.extract_strided_slice %339 {offsets = [1, 0, 0, 0], sizes = [1, 2, 16, 32], strides = [1, 1, 1, 1]} : vector<8x2x16x32xf32> to vector<1x2x16x32xf32>
    %498 = vector.shape_cast %497 : vector<1x2x16x32xf32> to vector<2x16x32xf32>
    %499 = vector.broadcast %496 : f32 to vector<2x16x32xf32>
    %500 = arith.mulf %499, %498 : vector<2x16x32xf32>
    %501 = arith.addf %495, %500 : vector<2x16x32xf32>
    %c58 = arith.constant 58 : index
    %502 = memref.load %arg1[%c58] : memref<64xf32, #tpu.memory_space<smem>>
    %503 = vector.extract_strided_slice %339 {offsets = [2, 0, 0, 0], sizes = [1, 2, 16, 32], strides = [1, 1, 1, 1]} : vector<8x2x16x32xf32> to vector<1x2x16x32xf32>
    %504 = vector.shape_cast %503 : vector<1x2x16x32xf32> to vector<2x16x32xf32>
    %505 = vector.broadcast %502 : f32 to vector<2x16x32xf32>
    %506 = arith.mulf %505, %504 : vector<2x16x32xf32>
    %507 = arith.addf %501, %506 : vector<2x16x32xf32>
    %c59 = arith.constant 59 : index
    %508 = memref.load %arg1[%c59] : memref<64xf32, #tpu.memory_space<smem>>
    %509 = vector.extract_strided_slice %339 {offsets = [3, 0, 0, 0], sizes = [1, 2, 16, 32], strides = [1, 1, 1, 1]} : vector<8x2x16x32xf32> to vector<1x2x16x32xf32>
    %510 = vector.shape_cast %509 : vector<1x2x16x32xf32> to vector<2x16x32xf32>
    %511 = vector.broadcast %508 : f32 to vector<2x16x32xf32>
    %512 = arith.mulf %511, %510 : vector<2x16x32xf32>
    %513 = arith.addf %507, %512 : vector<2x16x32xf32>
    %c60 = arith.constant 60 : index
    %514 = memref.load %arg1[%c60] : memref<64xf32, #tpu.memory_space<smem>>
    %515 = vector.extract_strided_slice %339 {offsets = [4, 0, 0, 0], sizes = [1, 2, 16, 32], strides = [1, 1, 1, 1]} : vector<8x2x16x32xf32> to vector<1x2x16x32xf32>
    %516 = vector.shape_cast %515 : vector<1x2x16x32xf32> to vector<2x16x32xf32>
    %517 = vector.broadcast %514 : f32 to vector<2x16x32xf32>
    %518 = arith.mulf %517, %516 : vector<2x16x32xf32>
    %519 = arith.addf %513, %518 : vector<2x16x32xf32>
    %c61 = arith.constant 61 : index
    %520 = memref.load %arg1[%c61] : memref<64xf32, #tpu.memory_space<smem>>
    %521 = vector.extract_strided_slice %339 {offsets = [5, 0, 0, 0], sizes = [1, 2, 16, 32], strides = [1, 1, 1, 1]} : vector<8x2x16x32xf32> to vector<1x2x16x32xf32>
    %522 = vector.shape_cast %521 : vector<1x2x16x32xf32> to vector<2x16x32xf32>
    %523 = vector.broadcast %520 : f32 to vector<2x16x32xf32>
    %524 = arith.mulf %523, %522 : vector<2x16x32xf32>
    %525 = arith.addf %519, %524 : vector<2x16x32xf32>
    %c62 = arith.constant 62 : index
    %526 = memref.load %arg1[%c62] : memref<64xf32, #tpu.memory_space<smem>>
    %527 = vector.extract_strided_slice %339 {offsets = [6, 0, 0, 0], sizes = [1, 2, 16, 32], strides = [1, 1, 1, 1]} : vector<8x2x16x32xf32> to vector<1x2x16x32xf32>
    %528 = vector.shape_cast %527 : vector<1x2x16x32xf32> to vector<2x16x32xf32>
    %529 = vector.broadcast %526 : f32 to vector<2x16x32xf32>
    %530 = arith.mulf %529, %528 : vector<2x16x32xf32>
    %531 = arith.addf %525, %530 : vector<2x16x32xf32>
    %c63 = arith.constant 63 : index
    %532 = memref.load %arg1[%c63] : memref<64xf32, #tpu.memory_space<smem>>
    %533 = vector.extract_strided_slice %339 {offsets = [7, 0, 0, 0], sizes = [1, 2, 16, 32], strides = [1, 1, 1, 1]} : vector<8x2x16x32xf32> to vector<1x2x16x32xf32>
    %534 = vector.shape_cast %533 : vector<1x2x16x32xf32> to vector<2x16x32xf32>
    %535 = vector.broadcast %532 : f32 to vector<2x16x32xf32>
    %536 = arith.mulf %535, %534 : vector<2x16x32xf32>
    %537 = arith.addf %531, %536 : vector<2x16x32xf32>
    %c3_139 = arith.constant 3 : index
    %c0_140 = arith.constant 0 : index
    %c0_141 = arith.constant 0 : index
    %c0_142 = arith.constant 0 : index
    %538 = vector.load %arg19[%c3_139, %c0_140, %c0_141, %c0_142] : memref<4x2x16x32xf32, #tpu.memory_space<vmem>>, vector<1x2x16x32xf32>
    %539 = vector.shape_cast %538 : vector<1x2x16x32xf32> to vector<2x16x32xf32>
    %540 = vector.shape_cast %537 : vector<2x16x32xf32> to vector<1x2x16x32xf32>
    tpu.vector_store %arg19[%c3_139, %c0_140, %c0_141, %c0_142], %540 {strides = array<i32>} : memref<4x2x16x32xf32, #tpu.memory_space<vmem>>, vector<1x2x16x32xf32>,
    %c0_143 = arith.constant 0 : index
    %c0_144 = arith.constant 0 : index
    %c0_145 = arith.constant 0 : index
    %c0_146 = arith.constant 0 : index
    %541 = vector.load %arg19[%c0_143, %c0_144, %c0_145, %c0_146] : memref<4x2x16x32xf32, #tpu.memory_space<vmem>>, vector<4x2x16x32xf32>
    %542 = vector.shape_cast %541 : vector<4x2x16x32xf32> to vector<128x32xf32>
    %c1_147 = arith.constant 1 : index
    %c0_148 = arith.constant 0 : index
    %c0_149 = arith.constant 0 : index
    %543 = vector.load %arg11[%c1_147, %c0_148, %c0_149] : memref<2x32x32xf32, #tpu.memory_space<vmem>>, vector<1x32x32xf32>
    %544 = vector.shape_cast %543 : vector<1x32x32xf32> to vector<32x32xf32>
    %cst_150 = arith.constant dense<0.000000e+00> : vector<128x32xf32>
    %545 = tpu.matmul %542, %544, %cst_150 {dimension_numbers = #tpu.dot_dimension_numbers<[1], [0], [0], [1], [0, 0, 1, 1], [], []>} : vector<128x32xf32>, vector<32x32xf32>, vector<128x32xf32> -> vector<128x32xf32>
    %c1_151 = arith.constant 1 : index
    %c0_152 = arith.constant 0 : index
    %c0_153 = arith.constant 0 : index
    %546 = vector.load %arg12[%c1_151, %c0_152, %c0_153] : memref<2x1x32xf32, #tpu.memory_space<vmem>>, vector<1x1x32xf32>
    %547 = vector.shape_cast %546 : vector<1x1x32xf32> to vector<1x32xf32>
    %548 = vector.broadcast %547 : vector<1x32xf32> to vector<128x32xf32>
    %549 = arith.addf %545, %548 : vector<128x32xf32>
    %c1_154 = arith.constant 1 : index
    %c0_155 = arith.constant 0 : index
    %c0_156 = arith.constant 0 : index
    %550 = vector.load %arg13[%c1_154, %c0_155, %c0_156] : memref<2x32x32xf32, #tpu.memory_space<vmem>>, vector<1x32x32xf32>
    %551 = vector.shape_cast %550 : vector<1x32x32xf32> to vector<32x32xf32>
    %cst_157 = arith.constant dense<0.000000e+00> : vector<128x32xf32>
    %552 = tpu.matmul %542, %551, %cst_157 {dimension_numbers = #tpu.dot_dimension_numbers<[1], [0], [0], [1], [0, 0, 1, 1], [], []>} : vector<128x32xf32>, vector<32x32xf32>, vector<128x32xf32> -> vector<128x32xf32>
    %c1_158 = arith.constant 1 : index
    %c0_159 = arith.constant 0 : index
    %c0_160 = arith.constant 0 : index
    %553 = vector.load %arg14[%c1_158, %c0_159, %c0_160] : memref<2x1x32xf32, #tpu.memory_space<vmem>>, vector<1x1x32xf32>
    %554 = vector.shape_cast %553 : vector<1x1x32xf32> to vector<1x32xf32>
    %555 = vector.broadcast %554 : vector<1x32xf32> to vector<128x32xf32>
    %556 = arith.addf %552, %555 : vector<128x32xf32>
    %557 = arith.negf %556 : vector<128x32xf32>
    %558 = math.exp %557 : vector<128x32xf32>
    %cst_161 = arith.constant 1.000000e+00 : f32
    %559 = vector.broadcast %cst_161 : f32 to vector<128x32xf32>
    %560 = arith.addf %559, %558 : vector<128x32xf32>
    %561 = arith.divf %559, %560 : vector<128x32xf32>
    %562 = arith.mulf %549, %561 : vector<128x32xf32>
    %563 = vector.shape_cast %562 : vector<128x32xf32> to vector<4x2x16x32xf32>
    %564 = vector.extract_strided_slice %339 {offsets = [0, 0, 0, 0], sizes = [4, 2, 16, 32], strides = [1, 1, 1, 1]} : vector<8x2x16x32xf32> to vector<4x2x16x32xf32>
    %565 = arith.addf %563, %564 : vector<4x2x16x32xf32>
    %c0_162 = arith.constant 0 : index
    %c0_163 = arith.constant 0 : index
    %c0_164 = arith.constant 0 : index
    %c0_165 = arith.constant 0 : index
    %566 = vector.load %arg18[%c0_162, %c0_163, %c0_164, %c0_165] : memref<8x2x16x32xf32, #tpu.memory_space<vmem>>, vector<4x2x16x32xf32>
    tpu.vector_store %arg18[%c0_162, %c0_163, %c0_164, %c0_165], %565 {strides = array<i32>} : memref<8x2x16x32xf32, #tpu.memory_space<vmem>>, vector<4x2x16x32xf32>,
    %c0_166 = arith.constant 0 : index
    %c0_167 = arith.constant 0 : index
    %c0_168 = arith.constant 0 : index
    %c0_169 = arith.constant 0 : index
    %567 = vector.load %arg18[%c0_166, %c0_167, %c0_168, %c0_169] : memref<8x2x16x32xf32, #tpu.memory_space<vmem>>, vector<4x2x16x32xf32>
    %568 = vector.shape_cast %567 : vector<4x2x16x32xf32> to vector<128x32xf32>
    %c0_170 = arith.constant 0 : index
    %c0_171 = arith.constant 0 : index
    %569 = vector.load %arg15[%c0_170, %c0_171] : memref<32x1xf32, #tpu.memory_space<vmem>>, vector<32x1xf32>
    %cst_172 = arith.constant dense<0.000000e+00> : vector<128x1xf32>
    %570 = tpu.matmul %568, %569, %cst_172 {dimension_numbers = #tpu.dot_dimension_numbers<[1], [0], [0], [1], [0, 0, 1, 1], [], []>} : vector<128x32xf32>, vector<32x1xf32>, vector<128x1xf32> -> vector<128x1xf32>
    %c0_173 = arith.constant 0 : index
    %c0_174 = arith.constant 0 : index
    %571 = vector.load %arg16[%c0_173, %c0_174] : memref<1x1xf32, #tpu.memory_space<vmem>>, vector<1x1xf32>
    %572 = vector.broadcast %571 : vector<1x1xf32> to vector<128x1xf32>
    %573 = arith.addf %570, %572 : vector<128x1xf32>
    %c0_175 = arith.constant 0 : index
    %574 = memref.load %arg0[%c0_175] : memref<2xf32, #tpu.memory_space<smem>>
    %c1_176 = arith.constant 1 : index
    %575 = memref.load %arg0[%c1_176] : memref<2xf32, #tpu.memory_space<smem>>
    %576 = vector.broadcast %575 : f32 to vector<128x1xf32>
    %577 = arith.mulf %573, %576 : vector<128x1xf32>
    %578 = vector.broadcast %574 : f32 to vector<128x1xf32>
    %579 = arith.addf %577, %578 : vector<128x1xf32>
    %580 = vector.shape_cast %579 : vector<128x1xf32> to vector<4x2x16x1xf32>
    %c0_177 = arith.constant 0 : index
    %c0_178 = arith.constant 0 : index
    %c0_179 = arith.constant 0 : index
    %c0_180 = arith.constant 0 : index
    %581 = vector.load %arg17[%c0_177, %c0_178, %c0_179, %c0_180] : memref<4x2x16x1xf32, #tpu.memory_space<vmem>>, vector<4x2x16x1xf32>
    tpu.vector_store %arg17[%c0_177, %c0_178, %c0_179, %c0_180], %580 {strides = array<i32>} : memref<4x2x16x1xf32, #tpu.memory_space<vmem>>, vector<4x2x16x1xf32>,
    return
  }
}

</mosaic_0001>

<bundles_post_ra>
// kernel: forward_source.1
= control target key start
LH: loop header
LB: loop body
LE: loop exit
PB: predicated region body
PF: predicated region fallthrough
CT: control target
= control target key end

     0   :  { %s13030_s0 = inlined_call_operand.vmem [shape: f32[2], index: 0, kind: input, shape index: {}]   ;;  %s13031_s1 = inlined_call_operand.vmem [shape: f32[64], index: 1, kind: input, shape index: {}]   ;;  %s13032_s2 = inlined_call_operand.vmem [shape: f32[8,2,16,1], index: 2, kind: input, shape index: {}]   ;;  %s13033_s3 = inlined_call_operand.vmem [shape: f32[1,32], index: 3, kind: input, shape index: {}]   ;;  %s13034_s4 = inlined_call_operand.vmem [shape: f32[1,32], index: 4, kind: input, shape index: {}]   ;;  %s13035_s5 = inlined_call_operand.vmem [shape: f32[2,32,32], index: 5, kind: input, shape index: {}]   ;;  %s13036_s6 = inlined_call_operand.vmem [shape: f32[2,32,32], index: 6, kind: input, shape index: {}]   ;;  %s13037_s7 = inlined_call_operand.vmem [shape: f32[2,32,32], index: 7, kind: input, shape index: {}]   ;;  %s13038_s8 = inlined_call_operand.vmem [shape: f32[2,1,32], index: 8, kind: input, shape index: {}]   ;;  %s13039_s9 = inlined_call_operand.vmem [shape: f32[2,32,32], index: 9, kind: input, shape index: {}]   ;;  %s13040_s10 = inlined_call_operand.vmem [shape: f32[2,1,32], index: 10, kind: input, shape index: {}]   ;;  %s13041_s11 = inlined_call_operand.vmem [shape: f32[2,32,32], index: 11, kind: input, shape index: {}]   ;;  %s13042_s12 = inlined_call_operand.vmem [shape: f32[2,1,32], index: 12, kind: input, shape index: {}]   ;;  %s13043_s13 = inlined_call_operand.vmem [shape: f32[2,32,32], index: 13, kind: input, shape index: {}]   ;;  %s13044_s14 = inlined_call_operand.vmem [shape: f32[2,1,32], index: 14, kind: input, shape index: {}]   ;;  %s13045_s15 = inlined_call_operand.vmem [shape: f32[32,1], index: 15, kind: input, shape index: {}]   ;;  %s13046_s16 = inlined_call_operand.<no memory space> [shape: f32[1,1], index: 16, kind: input, shape index: {}]   ;;  %s13047_s17 = inlined_call_operand.vmem [shape: f32[4,2,16,1], index: 17, kind: output, shape index: {}]  }
   0x1   :  { %13108 = sst [smem:[#allocation60_spill]] %s13030_s0  ;;  %v22_v0 = vstv %s13046_s16 }
   0x2   :  { %13109 = sst [smem:[#allocation61_spill]] %s13031_s1  ;;  %23 = vst [vmem:[#allocation4] sm:$0x1] %v22_v0 }
   0x3   :  { %24 = vsyncpa [#allocation6], 0  ;;  %s13110_s28 = sld [smem:[#allocation60_spill]] }
   0x9   :  { %s32_s29 = sshll.u32 %s13110_s28, 4  ;;  %s33_s29 = int_to_ptr.vmem [resolvable:$true] %s32_s29 }
   0xa   :  { %25 = vsyncpa [#allocation8], 0  ;;  %s13111_s18 = sld [smem:[#allocation61_spill]]  ;;  %s9534_s1 = scalar_lea.vmem %s33_s29, 16 }
   0xb   :  { %p9535_p0 = scmp.ne.s32.totalorder %s33_s29, %s9534_s1  ;;  %p9539_p1 = scmp.lt.s32.totalorder %s33_s29, %s33_s29 }
   0xc   :  { %p9540_p2 = scmp.lt.s32.totalorder %s9534_s1, %s9534_s1 }
   0xe   :  { %p9541_p3 = por %p9540_p2, %p9539_p1 }
  0x10   :  { %s42_s19 = sshll.u32 %s13111_s18, 4  ;;  %p9542_p4 = pnand %p9541_p3, %p9535_p0  ;;  %s43_s19 = int_to_ptr.vmem [resolvable:$true] %s42_s19 }
  0x12   :  { %9545 = shalt.err (!%p9542_p4)
}
  0x13   :  { %s9562_s16 = smov [#allocation5]   ;;  %s9546_s20 = scalar_lea.vmem %s43_s19, 16 }
  0x14   :  { %35 = dma.vmem_to_smem %s33_s29, 16, %s9562_s16, [#allocation6]  }
  0x15   :  { %p9547_p5 = scmp.ne.s32.totalorder %s43_s19, %s9546_s20  ;;  %p9551_p6 = scmp.lt.s32.totalorder %s43_s19, %s43_s19 }
  0x16   :  { %p9552_p7 = scmp.lt.s32.totalorder %s9546_s20, %s9546_s20 }
  0x18   :  { %p9553_p8 = por %p9552_p7, %p9551_p6 }
  0x1a   :  { %p9554_p9 = pnand %p9553_p8, %p9547_p5 }
  0x1c   :  { %9557 = shalt.err (!%p9554_p9)
}
  0x1d   :  { %s9563_s21 = smov [#allocation7]  }
  0x1e   :  { %45 = dma.vmem_to_smem %s43_s19, 16, %s9563_s21, [#allocation8]  }
  0x1f   :  { %9558 = dma.done.wait [#allocation6], 16  }
  0x20   :  { %9559 = vsyncadd [#allocation6], 4294967280 }
  0x21   :  { %9560 = dma.done.wait [#allocation8], 16  }
  0x22   :  { %9561 = vsyncadd [#allocation8], 4294967280 }
  0x23   :  { %82 = sfence }
  0x24   :  { %v84_v1 = vld [vmem:[%s13032_s2 + $0x8] sm:$0xff]  ;;  %v83_v2 = vld [vmem:[%s13032_s2] sm:$0xff]  ;;  %v9564_v3 = vmov 0   ;;  %v86_v4 = vld [vmem:[%s13032_s2 + $0x18] sm:$0xff]  ;;  %vm385_vm0 = vcmask 261120   ;;  %vm768_vm2 = vcmask 130048  }
  0x25   :  { %9067 = vset.pattern.permute.xlu1 %v9564_v3  ;;  %9066 = vset.pattern.permute.xlu0 %v9564_v3  ;;  %v85_v5 = vld [vmem:[%s13032_s2 + $0x10] sm:$0xff]  ;;  %v88_v6 = vld [vmem:[%s13032_s2 + $0x28] sm:$0xff]  ;;  %v87_v7 = vld [vmem:[%s13032_s2 + $0x20] sm:$0xff]  ;;  %s2853_s28 = sld [smem:[#allocation7]]  ;;  %s10395_s18 = sld [smem:[#allocation7 + $0x1]]  ;;  %vm7235_vm3 = vcmask 7168  }
  0x26   :  { %123 = vperm.xlu1 %9067, %v84_v1   ;;  %118 = vperm.xlu0 %9066, %v83_v2   ;;  %v90_v8 = vld [vmem:[%s13032_s2 + $0x38] sm:$0xff]  ;;  %v89_v9 = vld [vmem:[%s13032_s2 + $0x30] sm:$0xff]  ;;  %v600_v10 = vld [vmem:[%s13036_s6] sm:$0xff]  ;;  %s10388_s29 = sld [smem:[#allocation7 + $0x8]]  ;;  %s10397_s19 = sld [smem:[#allocation7 + $0x9]] }
  0x27   :  { %v601_v11 = vld [vmem:[%s13036_s6 + $0x8] sm:$0xff]  ;;  %v602_v13 = vld [vmem:[%s13036_s6 + $0x10] sm:$0xff]  ;;  %v603_v14 = vld [vmem:[%s13036_s6 + $0x18] sm:$0xff]  ;;  %s10390_s0 = sld [smem:[#allocation7 + $0x10]]  ;;  %s10399_s1 = sld [smem:[#allocation7 + $0x11]] }
  0x28   :  { %v8823_v12 = vpack.c.bf16 %v601_v11, %v600_v10  ;;  %v8827_v15 = vpack.c.bf16 %v603_v14, %v602_v13  ;;  %v92_v16 = vld [vmem:[%s13032_s2 + $0x48] sm:$0xff]  ;;  %v91_v17 = vld [vmem:[%s13032_s2 + $0x40] sm:$0xff]  ;;  %v94_v18 = vld [vmem:[%s13032_s2 + $0x58] sm:$0xff]  ;;  %s10393_s30 = sld [smem:[#allocation7 + $0x18]]  ;;  %s10402_s16 = sld [smem:[#allocation7 + $0x19]] }
  0x29   :  { %v93_v19 = vld [vmem:[%s13032_s2 + $0x50] sm:$0xff]  ;;  %v96_v20 = vld [vmem:[%s13032_s2 + $0x68] sm:$0xff]  ;;  %v95_v21 = vld [vmem:[%s13032_s2 + $0x60] sm:$0xff]  ;;  %s10405_s20 = sld [smem:[#allocation7 + $0x2]]  ;;  %s10423_s23 = sld [smem:[#allocation7 + $0x3]] }
  0x2a   :  { %133 = vperm.xlu1 %9067, %v86_v4   ;;  %128 = vperm.xlu0 %9066, %v85_v5   ;;  %v98_v22 = vld [vmem:[%s13032_s2 + $0x78] sm:$0xff]  ;;  %v97_v23 = vld [vmem:[%s13032_s2 + $0x70] sm:$0xff]  ;;  %v100_v24 = vld [vmem:[%s13032_s2 + $0x88] sm:$0xff]  ;;  %s10407_s21 = sld [smem:[#allocation7 + $0xa]]  ;;  %s10425_s24 = sld [smem:[#allocation7 + $0xb]] }
  0x2b   :  { %8824 = vmatprep.subr.bf16.mxu1 %v8823_v12  ;;  %v99_v25 = vld [vmem:[%s13032_s2 + $0x80] sm:$0xff]  ;;  %v102_v26 = vld [vmem:[%s13032_s2 + $0x98] sm:$0xff]  ;;  %v101_v27 = vld [vmem:[%s13032_s2 + $0x90] sm:$0xff]  ;;  %s10414_s22 = sld [smem:[#allocation7 + $0x1a]]  ;;  %s10440_s25 = sld [smem:[#allocation7 + $0x4]] }
  0x2c   :  { %8826 = vmatpush3.bf16.msra.mxu1 %v8823_v12  ;;  %v104_v28 = vld [vmem:[%s13032_s2 + $0xa8] sm:$0xff]  ;;  %v103_v29 = vld [vmem:[%s13032_s2 + $0xa0] sm:$0xff]  ;;  %v106_v30 = vld [vmem:[%s13032_s2 + $0xb8] sm:$0xff]  ;;  %s10446_s26 = sld [smem:[#allocation7 + $0xc]]  ;;  %s11767_s27 = sld [smem:[#allocation7 + $0x39]] }
  0x2d   :  { %8828 = vmatprep.subr.bf16.mxu1 %v8827_v15  ;;  %v105_v31 = vld [vmem:[%s13032_s2 + $0xb0] sm:$0xff]  ;;  %v108_v32 = vld [vmem:[%s13032_s2 + $0xc8] sm:$0xff]  ;;  %v107_v33 = vld [vmem:[%s13032_s2 + $0xc0] sm:$0xff] }
  0x2e   :  { %143 = vperm.xlu1 %9067, %v88_v6   ;;  %138 = vperm.xlu0 %9066, %v87_v7   ;;  %v110_v34 = vld [vmem:[%s13032_s2 + $0xd8] sm:$0xff]  ;;  %v109_v35 = vld [vmem:[%s13032_s2 + $0xd0] sm:$0xff]  ;;  %v112_v36 = vld [vmem:[%s13032_s2 + $0xe8] sm:$0xff] }
  0x2f   :  { %v111_v37 = vld [vmem:[%s13032_s2 + $0xe0] sm:$0xff]  ;;  %v114_v38 = vld [vmem:[%s13032_s2 + $0xf8] sm:$0xff]  ;;  %v113_v39 = vld [vmem:[%s13032_s2 + $0xf0] sm:$0xff]  ;;  %s10409_s2 = sld [smem:[#allocation7 + $0x12]] }
  0x30   :  { %8830 = vmatpush3.bf16.msra.mxu1 %v8827_v15  ;;  %v515_v40 = vld [vmem:[%s13035_s5] sm:$0xff]  ;;  %v516_v41 = vld [vmem:[%s13035_s5 + $0x8] sm:$0xff]  ;;  %v517_v42 = vld [vmem:[%s13035_s5 + $0x10] sm:$0xff] }
  0x31   :  { %v8815_v43 = vpack.c.bf16 %v516_v41, %v515_v40  ;;  %v518_v44 = vld [vmem:[%s13035_s5 + $0x18] sm:$0xff]  ;;  %v9787_v46 = vld [vmem:[%s13033_s3] ss:$0 sm:$0xff]  ;;  %vm10032_vm1 = vmpackc.low %vm385_vm0, %vm385_vm0  ;;  %s10433_s3 = sld [smem:[#allocation7 + $0x13]] }
  0x32   :  { %153 = vperm.xlu1 %9067, %v90_v8   ;;  %148 = vperm.xlu0 %9066, %v89_v9   ;;  %v8819_v45 = vpack.c.bf16 %v518_v44, %v517_v42  ;;  %v9792_v47 = vld [vmem:[%s13034_s4] ss:$0 sm:$0xff]  ;;  %s10435_s4 = sld [smem:[#allocation7 + $0x1b]] }
  0x33   :  { %8816 = vmatprep.subr.bf16.mxu0 %v8815_v43 }
  0x34   :  { %8818 = vmatpush3.bf16.msra.mxu0 %v8815_v43 }
  0x35   :  { %8820 = vmatprep.subr.bf16.mxu0 %v8819_v45 }
  0x36   :  { %163 = vperm.xlu1 %9067, %v92_v16   ;;  %158 = vperm.xlu0 %9066, %v91_v17  }
  0x38   :  { %8822 = vmatpush3.bf16.msra.mxu0 %v8819_v45 }
  0x3a   :  { %173 = vperm.xlu1 %9067, %v94_v18   ;;  %168 = vperm.xlu0 %9066, %v93_v19  }
  0x3e   :  { %183 = vperm.xlu1 %9067, %v96_v20   ;;  %178 = vperm.xlu0 %9066, %v95_v21  }
  0x42   :  { %193 = vperm.xlu1 %9067, %v98_v22   ;;  %188 = vperm.xlu0 %9066, %v97_v23  }
  0x46   :  { %203 = vperm.xlu1 %9067, %v100_v24   ;;  %198 = vperm.xlu0 %9066, %v99_v25  }
  0x4a   :  { %213 = vperm.xlu1 %9067, %v102_v26   ;;  %208 = vperm.xlu0 %9066, %v101_v27  }
  0x4e   :  { %223 = vperm.xlu1 %9067, %v104_v28   ;;  %218 = vperm.xlu0 %9066, %v103_v29  }
  0x52   :  { %233 = vperm.xlu1 %9067, %v106_v30   ;;  %228 = vperm.xlu0 %9066, %v105_v31  }
  0x56   :  { %243 = vperm.xlu1 %9067, %v108_v32   ;;  %238 = vperm.xlu0 %9066, %v107_v33  }
  0x5a   :  { %253 = vperm.xlu1 %9067, %v110_v34   ;;  %248 = vperm.xlu0 %9066, %v109_v35  }
  0x5e   :  { %263 = vperm.xlu1 %9067, %v112_v36   ;;  %258 = vperm.xlu0 %9066, %v111_v37  }
  0x62   :  { %273 = vperm.xlu1 %9067, %v114_v38   ;;  %268 = vperm.xlu0 %9066, %v113_v39  }
  0xa5   :  { %v124_v48 = vpop.permute.xlu1 %123  ;;  %v119_v49 = vpop.permute.xlu0 %118 }
  0xa6   :  { %v283_v50 = vmul.f32 %v9787_v46, %v124_v48  ;;  %v282_v51 = vmul.f32 %v9787_v46, %v119_v49 }
  0xa8   :  { %v322_v52 = vadd.f32 %v9792_v47, %v283_v50  ;;  %v321_v53 = vadd.f32 %v9792_v47, %v282_v51 }
  0xa9   :  { %v134_v54 = vpop.permute.xlu1 %133  ;;  %v129_v55 = vpop.permute.xlu0 %128 }
  0xaa   :  { %v354_v56 = vmax.f32 %v322_v52, 0.0  ;;  %v353_v57 = vmax.f32 %v321_v53, 0.0  ;;  %v285_v58 = vmul.f32 %v9787_v46, %v134_v54  ;;  %v284_v59 = vmul.f32 %v9787_v46, %v129_v55 }
  0xac   :  { %387 = vst.msk [vmem:[#allocation2 + $0x8] sm:$0xff] %vm385_vm0, %v354_v56  ;;  %386 = vst.msk [vmem:[#allocation2] sm:$0xff] %vm385_vm0, %v353_v57  ;;  %v324_v60 = vadd.f32 %v9792_v47, %v285_v58  ;;  %v323_v61 = vadd.f32 %v9792_v47, %v284_v59 }
  0xad   :  { %v144_v62 = vpop.permute.xlu1 %143  ;;  %v139_v63 = vpop.permute.xlu0 %138 }
  0xae   :  { %v356_v0 = vmax.f32 %v324_v60, 0.0  ;;  %v355_v1 = vmax.f32 %v323_v61, 0.0  ;;  %v287_v2 = vmul.f32 %v9787_v46, %v144_v62  ;;  %v286_v3 = vmul.f32 %v9787_v46, %v139_v63 }
  0xb0   :  { %389 = vst.msk [vmem:[#allocation2 + $0x18] sm:$0xff] %vm385_vm0, %v356_v0  ;;  %388 = vst.msk [vmem:[#allocation2 + $0x10] sm:$0xff] %vm385_vm0, %v355_v1  ;;  %v326_v4 = vadd.f32 %v9792_v47, %v287_v2  ;;  %v325_v5 = vadd.f32 %v9792_v47, %v286_v3 }
  0xb1   :  { %v154_v6 = vpop.permute.xlu1 %153  ;;  %v149_v7 = vpop.permute.xlu0 %148 }
  0xb2   :  { %v358_v8 = vmax.f32 %v326_v4, 0.0  ;;  %v357_v9 = vmax.f32 %v325_v5, 0.0  ;;  %v289_v10 = vmul.f32 %v9787_v46, %v154_v6  ;;  %v288_v11 = vmul.f32 %v9787_v46, %v149_v7 }
  0xb3   :  { %v9812_v12 = vld [vmem:[#allocation2] sm:$0xff]  ;;  %v9814_v13 = vld [vmem:[#allocation2 + $0x8] sm:$0xff] }
  0xb4   :  { %391 = vst.msk [vmem:[#allocation2 + $0x28] sm:$0xff] %vm385_vm0, %v358_v8  ;;  %390 = vst.msk [vmem:[#allocation2 + $0x20] sm:$0xff] %vm385_vm0, %v357_v9  ;;  %v328_v14 = vadd.f32 %v9792_v47, %v289_v10  ;;  %v327_v15 = vadd.f32 %v9792_v47, %v288_v11  ;;  %v9822_v18 = vpack.c.bf16 %v9814_v13, %v9812_v12 }
  0xb5   :  { %v164_v16 = vpop.permute.xlu1 %163  ;;  %v159_v17 = vpop.permute.xlu0 %158 }
  0xb6   :  { %v360_v19 = vmax.f32 %v328_v14, 0.0  ;;  %v359_v20 = vmax.f32 %v327_v15, 0.0  ;;  %v291_v21 = vmul.f32 %v9787_v46, %v164_v16  ;;  %v290_v22 = vmul.f32 %v9787_v46, %v159_v17  ;;  %8838 = vmatprep.subr.bf16.mxu1 %v9822_v18 }
  0xb7   :  { %v9861_v5 = vld [vmem:[#allocation2 + $0x10] sm:$0xff]  ;;  %v9863_v6 = vld [vmem:[#allocation2 + $0x18] sm:$0xff] }
  0xb8   :  { %393 = vst.msk [vmem:[#allocation2 + $0x38] sm:$0xff] %vm385_vm0, %v360_v19  ;;  %392 = vst.msk [vmem:[#allocation2 + $0x30] sm:$0xff] %vm385_vm0, %v359_v20  ;;  %v330_v23 = vadd.f32 %v9792_v47, %v291_v21  ;;  %v329_v24 = vadd.f32 %v9792_v47, %v290_v22  ;;  %v451_v17 = vsel %vm385_vm0, %v9861_v5, 0.0  ;;  %v482_v19 = vsel %vm385_vm0, %v9863_v6, 0.0 }
  0xb9   :  { %v174_v25 = vpop.permute.xlu1 %173  ;;  %v169_v26 = vpop.permute.xlu0 %168 }
  0xba   :  { %v362_v27 = vmax.f32 %v330_v23, 0.0  ;;  %v361_v28 = vmax.f32 %v329_v24, 0.0  ;;  %v293_v29 = vmul.f32 %v9787_v46, %v174_v25  ;;  %v292_v30 = vmul.f32 %v9787_v46, %v169_v26 }
  0xbb   :  { %v9871_v15 = vld [vmem:[#allocation2 + $0x20] sm:$0xff]  ;;  %v9873_v16 = vld [vmem:[#allocation2 + $0x28] sm:$0xff] }
  0xbc   :  { %395 = vst.msk [vmem:[#allocation2 + $0x48] sm:$0xff] %vm385_vm0, %v362_v27  ;;  %394 = vst.msk [vmem:[#allocation2 + $0x40] sm:$0xff] %vm385_vm0, %v361_v28  ;;  %v332_v31 = vadd.f32 %v9792_v47, %v293_v29  ;;  %v331_v32 = vadd.f32 %v9792_v47, %v292_v30  ;;  %v450_v28 = vsel %vm385_vm0, %v9812_v12, 0.0  ;;  %v481_v29 = vsel %vm385_vm0, %v9814_v13, 0.0 }
  0xbd   :  { %v184_v33 = vpop.permute.xlu1 %183  ;;  %v179_v34 = vpop.permute.xlu0 %178  ;;  %v453_v30 = vsel %vm385_vm0, %v9871_v15, 0.0 }
  0xbe   :  { %v364_v35 = vmax.f32 %v332_v31, 0.0  ;;  %v363_v36 = vmax.f32 %v331_v32, 0.0  ;;  %v295_v37 = vmul.f32 %v9787_v46, %v184_v33  ;;  %v294_v38 = vmul.f32 %v9787_v46, %v179_v34 }
  0xbf   :  { %v9879_v22 = vld [vmem:[#allocation2 + $0x30] sm:$0xff]  ;;  %v9881_v23 = vld [vmem:[#allocation2 + $0x38] sm:$0xff]  ;;  %v484_v31 = vsel %vm385_vm0, %v9873_v16, 0.0 }
  0xc0   :  { %397 = vst.msk [vmem:[#allocation2 + $0x58] sm:$0xff] %vm385_vm0, %v364_v35  ;;  %396 = vst.msk [vmem:[#allocation2 + $0x50] sm:$0xff] %vm385_vm0, %v363_v36  ;;  %v334_v39 = vadd.f32 %v9792_v47, %v295_v37  ;;  %v333_v40 = vadd.f32 %v9792_v47, %v294_v38  ;;  %v452_v35 = vadd.f32 %v451_v17, %v450_v28  ;;  %v455_v13 = vsel %vm385_vm0, %v9879_v22, 0.0 }
  0xc1   :  { %v194_v41 = vpop.permute.xlu1 %193  ;;  %v189_v42 = vpop.permute.xlu0 %188  ;;  %v483_v36 = vadd.f32 %v482_v19, %v481_v29  ;;  %v486_v37 = vsel %vm385_vm0, %v9881_v23, 0.0 }
  0xc2   :  { %v366_v43 = vmax.f32 %v334_v39, 0.0  ;;  %v365_v44 = vmax.f32 %v333_v40, 0.0  ;;  %v297_v45 = vmul.f32 %v9787_v46, %v194_v41  ;;  %v296_v48 = vmul.f32 %v9787_v46, %v189_v42 }
  0xc3   :  { %v9897_v34 = vld [vmem:[#allocation2 + $0x40] sm:$0xff]  ;;  %v9899_v12 = vld [vmem:[#allocation2 + $0x48] sm:$0xff] }
  0xc4   :  { %399 = vst.msk [vmem:[#allocation2 + $0x68] sm:$0xff] %vm385_vm0, %v366_v43  ;;  %398 = vst.msk [vmem:[#allocation2 + $0x60] sm:$0xff] %vm385_vm0, %v365_v44  ;;  %v336_v49 = vadd.f32 %v9792_v47, %v297_v45  ;;  %v335_v50 = vadd.f32 %v9792_v47, %v296_v48  ;;  %v454_v48 = vadd.f32 %v453_v30, %v452_v35 }
  0xc5   :  { %v204_v51 = vpop.permute.xlu1 %203  ;;  %v199_v52 = vpop.permute.xlu0 %198 }
  0xc6   :  { %v368_v53 = vmax.f32 %v336_v49, 0.0  ;;  %v367_v54 = vmax.f32 %v335_v50, 0.0  ;;  %v299_v55 = vmul.f32 %v9787_v46, %v204_v51  ;;  %v298_v56 = vmul.f32 %v9787_v46, %v199_v52 }
  0xc7   :  { %v9907_v44 = vld [vmem:[#allocation2 + $0x50] sm:$0xff]  ;;  %v9909_v45 = vld [vmem:[#allocation2 + $0x58] sm:$0xff]  ;;  %v485_v49 = vadd.f32 %v484_v31, %v483_v36  ;;  %v457_v50 = vsel %vm385_vm0, %v9897_v34, 0.0  ;;  %v488_v51 = vsel %vm385_vm0, %v9899_v12, 0.0 }
  0xc8   :  { %401 = vst.msk [vmem:[#allocation2 + $0x78] sm:$0xff] %vm385_vm0, %v368_v53  ;;  %400 = vst.msk [vmem:[#allocation2 + $0x70] sm:$0xff] %vm385_vm0, %v367_v54  ;;  %v338_v57 = vadd.f32 %v9792_v47, %v299_v55  ;;  %v337_v58 = vadd.f32 %v9792_v47, %v298_v56  ;;  %v456_v54 = vadd.f32 %v455_v13, %v454_v48 }
  0xc9   :  { %v214_v59 = vpop.permute.xlu1 %213  ;;  %v209_v60 = vpop.permute.xlu0 %208  ;;  %v487_v55 = vadd.f32 %v486_v37, %v485_v49 }
  0xca   :  { %v370_v61 = vmax.f32 %v338_v57, 0.0  ;;  %v369_v62 = vmax.f32 %v337_v58, 0.0  ;;  %v301_v63 = vmul.f32 %v9787_v46, %v214_v59  ;;  %v300_v0 = vmul.f32 %v9787_v46, %v209_v60 }
  0xcb   :  { %v9919_v58 = vld [vmem:[#allocation2 + $0x60] sm:$0xff]  ;;  %v459_v59 = vsel %vm385_vm0, %v9907_v44, 0.0  ;;  %v9923_v60 = vld [vmem:[#allocation2 + $0x68] sm:$0xff] }
  0xcc   :  { %403 = vst.msk [vmem:[#allocation2 + $0x88] sm:$0xff] %vm385_vm0, %v370_v61  ;;  %402 = vst.msk [vmem:[#allocation2 + $0x80] sm:$0xff] %vm385_vm0, %v369_v62  ;;  %v340_v1 = vadd.f32 %v9792_v47, %v301_v63  ;;  %v339_v2 = vadd.f32 %v9792_v47, %v300_v0  ;;  %v490_v61 = vsel %vm385_vm0, %v9909_v45, 0.0 }
  0xcd   :  { %v224_v3 = vpop.permute.xlu1 %223  ;;  %v219_v4 = vpop.permute.xlu0 %218 }
  0xce   :  { %v372_v7 = vmax.f32 %v340_v1, 0.0  ;;  %v371_v8 = vmax.f32 %v339_v2, 0.0  ;;  %v303_v9 = vmul.f32 %v9787_v46, %v224_v3  ;;  %v302_v10 = vmul.f32 %v9787_v46, %v219_v4 }
  0xcf   :  { %v9929_v2 = vld [vmem:[#allocation2 + $0x70] sm:$0xff]  ;;  %v9931_v3 = vld [vmem:[#allocation2 + $0x78] sm:$0xff]  ;;  %v458_v4 = vadd.f32 %v457_v50, %v456_v54 }
  0xd0   :  { %405 = vst.msk [vmem:[#allocation2 + $0x98] sm:$0xff] %vm385_vm0, %v372_v7  ;;  %404 = vst.msk [vmem:[#allocation2 + $0x90] sm:$0xff] %vm385_vm0, %v371_v8  ;;  %v342_v11 = vadd.f32 %v9792_v47, %v303_v9  ;;  %v341_v14 = vadd.f32 %v9792_v47, %v302_v10  ;;  %v489_v7 = vadd.f32 %v488_v51, %v487_v55  ;;  %v461_v10 = vsel %vm385_vm0, %v9919_v58, 0.0 }
  0xd1   :  { %v234_v20 = vpop.permute.xlu1 %233  ;;  %v229_v21 = vpop.permute.xlu0 %228 }
  0xd2   :  { %v374_v24 = vmax.f32 %v342_v11, 0.0  ;;  %v373_v25 = vmax.f32 %v341_v14, 0.0  ;;  %v305_v26 = vmul.f32 %v9787_v46, %v234_v20  ;;  %v304_v27 = vmul.f32 %v9787_v46, %v229_v21 }
  0xd3   :  { %v492_v11 = vsel %vm385_vm0, %v9923_v60, 0.0  ;;  %v9941_v19 = vld [vmem:[#allocation2 + $0x80] sm:$0xff]  ;;  %v460_v20 = vadd.f32 %v459_v59, %v458_v4  ;;  %v463_v21 = vsel %vm385_vm0, %v9929_v2, 0.0 }
  0xd4   :  { %407 = vst.msk [vmem:[#allocation2 + $0xa8] sm:$0xff] %vm385_vm0, %v374_v24  ;;  %406 = vst.msk [vmem:[#allocation2 + $0xa0] sm:$0xff] %vm385_vm0, %v373_v25  ;;  %v344_v32 = vadd.f32 %v9792_v47, %v305_v26  ;;  %v343_v33 = vadd.f32 %v9792_v47, %v304_v27  ;;  %v9945_v24 = vld [vmem:[#allocation2 + $0x88] sm:$0xff]  ;;  %v491_v25 = vadd.f32 %v490_v61, %v489_v7  ;;  %v494_v26 = vsel %vm385_vm0, %v9931_v3, 0.0 }
  0xd5   :  { %v244_v38 = vpop.permute.xlu1 %243  ;;  %v239_v39 = vpop.permute.xlu0 %238  ;;  %v465_v37 = vsel %vm385_vm0, %v9941_v19, 0.0 }
  0xd6   :  { %v376_v40 = vmax.f32 %v344_v32, 0.0  ;;  %v375_v41 = vmax.f32 %v343_v33, 0.0  ;;  %v307_v42 = vmul.f32 %v9787_v46, %v244_v38  ;;  %v306_v43 = vmul.f32 %v9787_v46, %v239_v39 }
  0xd7   :  { %v9951_v31 = vld [vmem:[#allocation2 + $0x90] sm:$0xff]  ;;  %v9953_v32 = vld [vmem:[#allocation2 + $0x98] sm:$0xff]  ;;  %v462_v33 = vadd.f32 %v461_v10, %v460_v20  ;;  %v493_v35 = vadd.f32 %v492_v11, %v491_v25  ;;  %v496_v38 = vsel %vm385_vm0, %v9945_v24, 0.0 }
  0xd8   :  { %409 = vst.msk [vmem:[#allocation2 + $0xb8] sm:$0xff] %vm385_vm0, %v376_v40  ;;  %408 = vst.msk [vmem:[#allocation2 + $0xb0] sm:$0xff] %vm385_vm0, %v375_v41  ;;  %v346_v52 = vadd.f32 %v9792_v47, %v307_v42  ;;  %v345_v53 = vadd.f32 %v9792_v47, %v306_v43  ;;  %v467_v43 = vsel %vm385_vm0, %v9951_v31, 0.0  ;;  %v498_v50 = vsel %vm385_vm0, %v9953_v32, 0.0 }
  0xd9   :  { %v254_v56 = vpop.permute.xlu1 %253  ;;  %v249_v57 = vpop.permute.xlu0 %248  ;;  %v464_v42 = vadd.f32 %v463_v21, %v462_v33  ;;  %v495_v49 = vadd.f32 %v494_v26, %v493_v35 }
  0xda   :  { %v378_v62 = vmax.f32 %v346_v52, 0.0  ;;  %v377_v63 = vmax.f32 %v345_v53, 0.0  ;;  %v309_v0 = vmul.f32 %v9787_v46, %v254_v56  ;;  %v308_v1 = vmul.f32 %v9787_v46, %v249_v57 }
  0xdb   :  { %v9963_v41 = vld [vmem:[#allocation2 + $0xa0] sm:$0xff]  ;;  %v9967_v48 = vld [vmem:[#allocation2 + $0xa8] sm:$0xff]  ;;  %v466_v56 = vadd.f32 %v465_v37, %v464_v42  ;;  %v497_v59 = vadd.f32 %v496_v38, %v495_v49 }
  0xdc   :  { %411 = vst.msk [vmem:[#allocation2 + $0xc8] sm:$0xff] %vm385_vm0, %v378_v62  ;;  %410 = vst.msk [vmem:[#allocation2 + $0xc0] sm:$0xff] %vm385_vm0, %v377_v63  ;;  %v348_v8 = vadd.f32 %v9792_v47, %v309_v0  ;;  %v347_v9 = vadd.f32 %v9792_v47, %v308_v1  ;;  %v469_v63 = vsel %vm385_vm0, %v9963_v41, 0.0 }
  0xdd   :  { %v264_v14 = vpop.permute.xlu1 %263  ;;  %v259_v17 = vpop.permute.xlu0 %258  ;;  %v468_v1 = vadd.f32 %v467_v43, %v466_v56  ;;  %v499_v7 = vadd.f32 %v498_v50, %v497_v59  ;;  %v8841_v59 = vpack.c.bf16 %v9863_v6, %v9861_v5  ;;  %v8853_v5 = vpack.c.bf16 %v9899_v12, %v9897_v34 }
  0xde   :  { %v380_v27 = vmax.f32 %v348_v8, 0.0  ;;  %v379_v28 = vmax.f32 %v347_v9, 0.0  ;;  %v311_v29 = vmul.f32 %v9787_v46, %v264_v14  ;;  %v310_v30 = vmul.f32 %v9787_v46, %v259_v17 }
  0xdf   :  { %v9973_v55 = vld [vmem:[#allocation2 + $0xb0] sm:$0xff]  ;;  %v9975_v57 = vld [vmem:[#allocation2 + $0xb8] sm:$0xff]  ;;  %v470_v14 = vadd.f32 %v469_v63, %v468_v1  ;;  %v13112_v1 = vmov 0 }
  0xe0   :  { %413 = vst.msk [vmem:[#allocation2 + $0xd8] sm:$0xff] %vm385_vm0, %v380_v27  ;;  %412 = vst.msk [vmem:[#allocation2 + $0xd0] sm:$0xff] %vm385_vm0, %v379_v28  ;;  %v350_v13 = vadd.f32 %v9792_v47, %v311_v29  ;;  %v349_v36 = vadd.f32 %v9792_v47, %v310_v30  ;;  %v471_v10 = vsel %vm385_vm0, %v9973_v55, 0.0  ;;  %v13113_v1 = vsel %vm10032_vm1, 4294967295, %v13112_v1 }
  0xe1   :  { %v274_v39 = vpop.permute.xlu1 %273  ;;  %v269_v40 = vpop.permute.xlu0 %268  ;;  %v472_v26 = vadd.f32 %v471_v10, %v470_v14  ;;  %13114 = vst [vmem:[#allocation11_spill] sm:$0xff] %v13113_v1 }
  0xe2   :  { %v382_v51 = vmax.f32 %v350_v13, 0.0  ;;  %v381_v52 = vmax.f32 %v349_v36, 0.0  ;;  %v313_v53 = vmul.f32 %v9787_v46, %v274_v39  ;;  %v312_v54 = vmul.f32 %v9787_v46, %v269_v40 }
  0xe3   :  { %v500_v46 = vsel %vm385_vm0, %v9967_v48, 0.0  ;;  %v9985_v0 = vld [vmem:[#allocation2 + $0xc0] sm:$0xff]  ;;  %v9987_v4 = vld [vmem:[#allocation2 + $0xc8] sm:$0xff] }
  0xe4   :  { %415 = vst.msk [vmem:[#allocation2 + $0xe8] sm:$0xff] %vm385_vm0, %v382_v51  ;;  %414 = vst.msk [vmem:[#allocation2 + $0xe0] sm:$0xff] %vm385_vm0, %v381_v52  ;;  %v352_v61 = vadd.f32 %v9792_v47, %v313_v53  ;;  %v351_v62 = vadd.f32 %v9792_v47, %v312_v54  ;;  %v502_v47 = vsel %vm385_vm0, %v9975_v57, 0.0  ;;  %v501_v20 = vadd.f32 %v500_v46, %v499_v7 }
  0xe5   :  { %v473_v21 = vsel %vm385_vm0, %v9985_v0, 0.0  ;;  %v504_v25 = vsel %vm385_vm0, %v9987_v4, 0.0 }
  0xe6   :  { %v384_v8 = vmax.f32 %v352_v61, 0.0  ;;  %v383_v9 = vmax.f32 %v351_v62, 0.0  ;;  %v503_v27 = vadd.f32 %v502_v47, %v501_v20  ;;  %v474_v33 = vadd.f32 %v473_v21, %v472_v26 }
  0xe7   :  { %v9993_v11 = vld [vmem:[#allocation2 + $0xd0] sm:$0xff]  ;;  %v9995_v17 = vld [vmem:[#allocation2 + $0xd8] sm:$0xff] }
  0xe8   :  { %417 = vst.msk [vmem:[#allocation2 + $0xf8] sm:$0xff] %vm385_vm0, %v384_v8  ;;  %416 = vst.msk [vmem:[#allocation2 + $0xf0] sm:$0xff] %vm385_vm0, %v383_v9  ;;  %v475_v28 = vsel %vm385_vm0, %v9993_v11, 0.0  ;;  %v506_v29 = vsel %vm385_vm0, %v9995_v17, 0.0  ;;  %v505_v13 = vadd.f32 %v504_v25, %v503_v27 }
  0xe9   :  { %v476_v38 = vadd.f32 %v475_v28, %v474_v33 }
  0xea   :  { %v507_v39 = vadd.f32 %v506_v29, %v505_v13 }
  0xeb   :  { %v10007_v30 = vld [vmem:[#allocation2 + $0xe0] sm:$0xff]  ;;  %v10009_v35 = vld [vmem:[#allocation2 + $0xe8] sm:$0xff] }
  0xec   :  { %v477_v36 = vsel %vm385_vm0, %v10007_v30, 0.0  ;;  %v508_v37 = vsel %vm385_vm0, %v10009_v35, 0.0 }
  0xed   :  { %v478_v42 = vadd.f32 %v477_v36, %v476_v38  ;;  %v509_v49 = vadd.f32 %v508_v37, %v507_v39  ;;  %v8849_v39 = vpack.c.bf16 %v9881_v23, %v9879_v22  ;;  %v8857_v22 = vpack.c.bf16 %v9909_v45, %v9907_v44 }
  0xee   :  { %v8869_v23 = vpack.c.bf16 %v9945_v24, %v9941_v19  ;;  %v8865_v44 = vpack.c.bf16 %v9931_v3, %v9929_v2  ;;  %v8877_v45 = vpack.c.bf16 %v9967_v48, %v9963_v41  ;;  %v8881_v2 = vpack.c.bf16 %v9975_v57, %v9973_v55  ;;  %v1997_v3 = vld [vmem:[%s13037_s7] sm:$0xff]  ;;  %v1998_v19 = vld [vmem:[%s13037_s7 + $0x8] sm:$0xff]  ;;  %v1999_v41 = vld [vmem:[%s13037_s7 + $0x10] sm:$0xff] }
  0xef   :  { %v10015_v40 = vld [vmem:[#allocation2 + $0xf0] sm:$0xff]  ;;  %v10017_v43 = vld [vmem:[#allocation2 + $0xf8] sm:$0xff]  ;;  %v8893_v24 = vpack.c.bf16 %v10009_v35, %v10007_v30 }
  0xf0   :  { %v479_v50 = vsel %vm385_vm0, %v10015_v40, 0.0  ;;  %v510_v51 = vsel %vm385_vm0, %v10017_v43, 0.0  ;;  %v2000_v48 = vld [vmem:[%s13037_s7 + $0x18] sm:$0xff]  ;;  %v8897_v57 = vpack.c.bf16 %v10017_v43, %v10015_v40 }
  0xf1   :  { %v480_v52 = vadd.f32 %v479_v50, %v478_v42  ;;  %v511_v53 = vadd.f32 %v510_v51, %v509_v49  ;;  %v8861_v42 = vpack.c.bf16 %v9923_v60, %v9919_v58  ;;  %v8873_v58 = vpack.c.bf16 %v9953_v32, %v9951_v31 }
  0xf2   :  { %v8885_v60 = vpack.c.bf16 %v9987_v4, %v9985_v0  ;;  %v8901_v31 = vpack.c.bf16 %v1998_v19, %v1997_v3  ;;  %v8889_v32 = vpack.c.bf16 %v9995_v17, %v9993_v11  ;;  %v8905_v55 = vpack.c.bf16 %v2000_v48, %v1999_v41  ;;  %v2329_v0 = vld [vmem:[%s13039_s9] sm:$0xff]  ;;  %v2330_v4 = vld [vmem:[%s13039_s9 + $0x8] sm:$0xff] }
  0xf3   :  { %v513_v54 = vmul.f32 0.0625, %v480_v52  ;;  %v514_v56 = vmul.f32 0.0625, %v511_v53  ;;  %v8909_v11 = vpack.c.bf16 %v2330_v4, %v2329_v0 }
  0xf5   :  { %8157 = vmatprep.mubr.msk.f32.mxu0 %vm385_vm0, %v513_v54  ;;  %8168 = vmatprep.mubr.msk.f32.mxu1 %vm385_vm0, %v513_v54 }
  0xf6   :  { %8158 = vmatmul.mubr.msk.f32.vlgmr.msra.gmra.mrb[0].mxu0 %vm385_vm0, %v514_v56  ;;  %8169 = vmatmul.mubr.msk.f32.vlgmr.msra.gmra.mrb[0].mxu1 %vm385_vm0, %v514_v56 }
  0xf7   :  { %8840 = vmatpush3.bf16.msra.mxu1 %v9822_v18  ;;  %v8845_v18 = vpack.c.bf16 %v9873_v16, %v9871_v15 }
  0xf8   :  { %8842 = vmatprep.subr.bf16.mxu1 %v8841_v59 }
 0x1c9   :  { %v8159_v61 = vpop.f32.mrb[0].mxu0  ;;  %v8170_v62 = vpop.f32.mrb[0].mxu1 }
 0x1ca   :  { %v591_v63 = vpop.f32.mrb[1].mxu0  ;;  %v670_v46 = vpop.f32.mrb[1].mxu1 }
 0x1cb   :  { %v8831_v7 = vpack.c.bf16 %v8170_v62, %v670_v46  ;;  %8175 = vmatprep.mubr.msk.f32.mxu0 %vm385_vm0, %v591_v63 }
 0x1cd   :  { %8833 = vmatprep.subr.msk.bf16.mxu0 %vm10032_vm1, %v8831_v7 }
 0x1ce   :  { %8836 = vmatpush3.bf16.xpose.msk.msra.mxu0 %vm10032_vm1, %v8831_v7 }
 0x1cf   :  { %8846 = vmatprep.subr.bf16.mxu0 %v8845_v18 }
 0x1d5   :  { %8176 = vmatmul.mubr.msk.f32.vlgmr.msra.gmra.mrb[2].mxu0 %vm385_vm0, %v8159_v61 }
 0x1d6   :  { %8848 = vmatpush3.bf16.msra.mxu0 %v8845_v18 }
 0x1d7   :  { %8854 = vmatprep.subr.bf16.mxu0 %v8853_v5 }
 0x2a8   :  { %v8177_v6 = vpop.f32.mrb[2].mxu0 }
 0x2a9   :  { %v767_v8 = vmul.f32 0.17677669, %v8177_v6  ;;  %v757_v9 = vpop.f32.mrb[3].mxu0  ;;  %v2331_v6 = vld [vmem:[%s13039_s9 + $0x10] sm:$0xff] }
 0x2aa   :  { %v766_v10 = vmul.f32 0.17677669, %v757_v9 }
 0x2ab   :  { %v772_v47 = vsel %vm768_vm2, %v767_v8, -inf }
 0x2ac   :  { %773 = vmax.xlane.f32.xlu1 %v772_v47  ;;  %v769_v15 = vsel %vm768_vm2, %v766_v10, -inf }
 0x2ad   :  { %770 = vmax.xlane.f32.xlu0 %v769_v15 }
 0x339   :  { %v774_v16 = vpop.xlane.xlu1 %773 }
 0x33a   :  { %v776_v14 = vsub.f32 %v767_v8, %v774_v16  ;;  %v771_v20 = vpop.xlane.xlu0 %770  ;;  %v2332_v8 = vld [vmem:[%s13039_s9 + $0x18] sm:$0xff] }
 0x33b   :  { %v775_v21 = vsub.f32 %v766_v10, %v771_v20  ;;  %v8913_v16 = vpack.c.bf16 %v2332_v8, %v2331_v6 }
 0x33c   :  { %v779_v25 = vmul.f32 1.442695, %v776_v14 }
 0x33d   :  { %v777_v26 = vmul.f32 1.442695, %v775_v21 }
 0x33f   :  { %9068 = vpow2.f32 %v777_v26 }
 0x340   :  { %9070 = vpow2.f32 %v779_v25 }
 0x349   :  { %v9069_v34 = vpop.eup %9068 }
 0x34a   :  { %v781_v12 = vsel %vm768_vm2, %v9069_v34, 0.0  ;;  %v9071_v27 = vpop.eup %9070 }
 0x34b   :  { %782 = vadd.xlane.f32.xlu0 %v781_v12  ;;  %v784_v28 = vsel %vm768_vm2, %v9071_v27, 0.0 }
 0x34f   :  { %785 = vadd.xlane.f32.xlu0 %v784_v28 }
 0x3d8   :  { %v783_v29 = vpop.xlane.xlu0 %782 }
 0x3d9   :  { %9072 = vrcp.f32 %v783_v29 }
 0x3dc   :  { %v786_v33 = vpop.xlane.xlu0 %785 }
 0x3dd   :  { %9074 = vrcp.f32 %v786_v33 }
 0x3e3   :  { %v9073_v13 = vpop.eup %9072 }
 0x3e4   :  { %v10050_v36 = vmul.f32 %v9073_v13, %v9069_v34 }
 0x3e6   :  { %8182 = vmatprep.mubr.msk.f32.mxu1 %vm768_vm2, %v10050_v36  ;;  %8196 = vmatprep.mubr.msk.f32.mxu0 %vm768_vm2, %v10050_v36 }
 0x3e7   :  { %v9075_v37 = vpop.eup %9074 }
 0x3e8   :  { %v10056_v38 = vmul.f32 %v9075_v37, %v9071_v27 }
 0x3ea   :  { %8183 = vmatmul.mubr.msk.f32.vlgmr.msra.gmra.mrb[2].mxu1 %vm768_vm2, %v10056_v38  ;;  %8197 = vmatmul.mubr.msk.f32.vlgmr.msra.gmra.mrb[4].mxu0 %vm768_vm2, %v10056_v38 }
 0x3eb   :  { %8844 = vmatpush3.bf16.msra.mxu1 %v8841_v59  ;;  %8856 = vmatpush3.bf16.msra.mxu0 %v8853_v5 }
 0x3ec   :  { %8189 = vmatprep.mubr.msk.f32.mxu1 %vm768_vm2, %v10050_v36  ;;  %8850 = vmatprep.subr.bf16.mxu1 %v8849_v39 }
 0x3ed   :  { %8210 = vmatprep.mubr.msk.f32.mxu0 %vm768_vm2, %v10050_v36  ;;  %8862 = vmatprep.subr.bf16.mxu0 %v8861_v42 }
 0x3ee   :  { %8190 = vmatmul.mubr.msk.f32.vlgmr.msra.gmra.mrb[4].mxu1 %vm768_vm2, %v10056_v38  ;;  %8211 = vmatmul.mubr.msk.f32.vlgmr.msra.gmra.mrb[6].mxu0 %vm768_vm2, %v10056_v38 }
 0x3ef   :  { %8852 = vmatpush3.bf16.msra.mxu1 %v8849_v39  ;;  %8864 = vmatpush3.bf16.msra.mxu0 %v8861_v42  ;;  %v3396_v42 = vld [vmem:[%s13043_s13] sm:$0xff] }
 0x3f0   :  { %8203 = vmatprep.mubr.msk.f32.mxu1 %vm768_vm2, %v10050_v36  ;;  %8858 = vmatprep.subr.bf16.mxu1 %v8857_v22 }
 0x3f1   :  { %8224 = vmatprep.mubr.msk.f32.mxu0 %vm768_vm2, %v10050_v36  ;;  %8870 = vmatprep.subr.bf16.mxu0 %v8869_v23 }
 0x3f2   :  { %8204 = vmatmul.mubr.msk.f32.vlgmr.msra.gmra.mrb[6].mxu1 %vm768_vm2, %v10056_v38  ;;  %8225 = vmatmul.mubr.msk.f32.vlgmr.msra.gmra.mrb[8].mxu0 %vm768_vm2, %v10056_v38 }
 0x3f3   :  { %8860 = vmatpush3.bf16.msra.mxu1 %v8857_v22  ;;  %8872 = vmatpush3.bf16.msra.mxu0 %v8869_v23  ;;  %v3397_v22 = vld [vmem:[%s13043_s13 + $0x8] sm:$0xff] }
 0x3f4   :  { %8217 = vmatprep.mubr.msk.f32.mxu1 %vm768_vm2, %v10050_v36  ;;  %8866 = vmatprep.subr.bf16.mxu1 %v8865_v44  ;;  %v8925_v23 = vpack.c.bf16 %v3397_v22, %v3396_v42 }
 0x3f5   :  { %8238 = vmatprep.mubr.msk.f32.mxu0 %vm768_vm2, %v10050_v36  ;;  %8878 = vmatprep.subr.bf16.mxu0 %v8877_v45 }
 0x3f6   :  { %8218 = vmatmul.mubr.msk.f32.vlgmr.msra.gmra.mrb[8].mxu1 %vm768_vm2, %v10056_v38  ;;  %8239 = vmatmul.mubr.msk.f32.vlgmr.msra.gmra.mrb[10].mxu0 %vm768_vm2, %v10056_v38 }
 0x3f7   :  { %8868 = vmatpush3.bf16.msra.mxu1 %v8865_v44  ;;  %8880 = vmatpush3.bf16.msra.mxu0 %v8877_v45 }
 0x3f8   :  { %8231 = vmatprep.mubr.msk.f32.mxu1 %vm768_vm2, %v10050_v36  ;;  %8874 = vmatprep.subr.bf16.mxu1 %v8873_v58 }
 0x3f9   :  { %8252 = vmatprep.mubr.msk.f32.mxu0 %vm768_vm2, %v10050_v36  ;;  %8886 = vmatprep.subr.bf16.mxu0 %v8885_v60 }
 0x3fa   :  { %8232 = vmatmul.mubr.msk.f32.vlgmr.msra.gmra.mrb[10].mxu1 %vm768_vm2, %v10056_v38  ;;  %8253 = vmatmul.mubr.msk.f32.vlgmr.msra.gmra.mrb[12].mxu0 %vm768_vm2, %v10056_v38 }
 0x3fb   :  { %8876 = vmatpush3.bf16.msra.mxu1 %v8873_v58  ;;  %8888 = vmatpush3.bf16.msra.mxu0 %v8885_v60  ;;  %v10319_v58 = vld [vmem:[%s13038_s8] ss:$0 sm:$0xff] }
 0x3fc   :  { %8245 = vmatprep.mubr.msk.f32.mxu1 %vm768_vm2, %v10050_v36  ;;  %8882 = vmatprep.subr.bf16.mxu1 %v8881_v2 }
 0x3fd   :  { %8266 = vmatprep.mubr.msk.f32.mxu0 %vm768_vm2, %v10050_v36  ;;  %8894 = vmatprep.subr.bf16.mxu0 %v8893_v24 }
 0x3fe   :  { %8246 = vmatmul.mubr.msk.f32.vlgmr.msra.gmra.mrb[12].mxu1 %vm768_vm2, %v10056_v38  ;;  %8267 = vmatmul.mubr.msk.f32.vlgmr.msra.gmra.mrb[14].mxu0 %vm768_vm2, %v10056_v38 }
 0x3ff   :  { %8884 = vmatpush3.bf16.msra.mxu1 %v8881_v2  ;;  %8896 = vmatpush3.bf16.msra.mxu0 %v8893_v24 }
 0x400   :  { %8259 = vmatprep.mubr.msk.f32.mxu1 %vm768_vm2, %v10050_v36  ;;  %8890 = vmatprep.subr.bf16.mxu1 %v8889_v32 }
 0x401   :  { %8280 = vmatprep.mubr.msk.f32.mxu0 %vm768_vm2, %v10050_v36  ;;  %8902 = vmatprep.subr.bf16.mxu0 %v8901_v31 }
 0x402   :  { %8260 = vmatmul.mubr.msk.f32.vlgmr.msra.gmra.mrb[14].mxu1 %vm768_vm2, %v10056_v38  ;;  %8281 = vmatmul.mubr.msk.f32.vlgmr.msra.gmra.mrb[16].mxu0 %vm768_vm2, %v10056_v38 }
 0x403   :  { %8892 = vmatpush3.bf16.msra.mxu1 %v8889_v32  ;;  %8273 = vmatprep.mubr.msk.f32.mxu1 %vm768_vm2, %v10050_v36 }
 0x404   :  { %8898 = vmatprep.subr.bf16.mxu1 %v8897_v57  ;;  %8904 = vmatpush3.bf16.msra.mxu0 %v8901_v31 }
 0x405   :  { %8906 = vmatprep.subr.bf16.mxu0 %v8905_v55 }
 0x406   :  { %8274 = vmatmul.mubr.msk.f32.vlgmr.msra.gmra.mrb[16].mxu1 %vm768_vm2, %v10056_v38 }
 0x407   :  { %8900 = vmatpush3.bf16.msra.mxu1 %v8897_v57  ;;  %8287 = vmatprep.mubr.msk.f32.mxu1 %vm768_vm2, %v10050_v36 }
 0x408   :  { %8908 = vmatpush3.bf16.msra.mxu0 %v8905_v55  ;;  %9059 = vmatprep.subr.bf16.mxu1 %v8901_v31 }
 0x40a   :  { %8288 = vmatmul.mubr.msk.f32.vlgmr.msra.gmra.mrb[18].mxu1 %vm768_vm2, %v10056_v38 }
 0x40b   :  { %9061 = vmatpush3.bf16.msra.mxu1 %v8901_v31 }
 0x40c   :  { %9060 = vmatprep.subr.bf16.mxu1 %v8905_v55 }
 0x40f   :  { %9062 = vmatpush3.bf16.msra.mxu1 %v8905_v55 }
 0x410   :  { %8910 = vmatprep.subr.bf16.mxu1 %v8909_v11 }
 0x4bd   :  { %v10160_v17 = vpop.f32.mrb[2].mxu1  ;;  %v10162_v30 = vpop.f32.mrb[4].mxu0 }
 0x4be   :  { %v10164_v35 = vpop.f32.mrb[3].mxu1  ;;  %v10166_v40 = vpop.f32.mrb[5].mxu0 }
 0x4bf   :  { %8298 = vmatprep.mubr.msk.f32.mxu0 %vm385_vm0, %v10164_v35 }
 0x4c0   :  { %8299 = vmatmul.mubr.msk.f32.vlgmr.msra.gmra.mrb[18].mxu0 %vm385_vm0, %v10160_v17 }
 0x4c1   :  { %v10172_v43 = vpop.f32.mrb[4].mxu1  ;;  %v10174_v49 = vpop.f32.mrb[6].mxu0 }
 0x4c2   :  { %v10176_v50 = vpop.f32.mrb[5].mxu1  ;;  %v10178_v51 = vpop.f32.mrb[7].mxu0 }
 0x4c3   :  { %8301 = vmatprep.mubr.msk.f32.mxu0 %vm385_vm0, %v10176_v50 }
 0x4c4   :  { %8302 = vmatmul.mubr.msk.f32.gmra.mrb[20].mxu0 %vm385_vm0, %v10172_v43 }
 0x4c5   :  { %v10184_v52 = vpop.f32.mrb[6].mxu1  ;;  %v10186_v53 = vpop.f32.mrb[8].mxu0  ;;  %8304 = vmatprep.mubr.msk.f32.mxu0 %vm385_vm0, %v10166_v40 }
 0x4c6   :  { %v1088_v54 = vpop.f32.mrb[7].mxu1  ;;  %v10190_v56 = vpop.f32.mrb[9].mxu0 }
 0x4c8   :  { %8305 = vmatmul.mubr.msk.f32.gmra.mrb[22].mxu0 %vm385_vm0, %v10162_v30 }
 0x4c9   :  { %v10194_v59 = vpop.f32.mrb[8].mxu1  ;;  %v10196_v61 = vpop.f32.mrb[10].mxu0  ;;  %8307 = vmatprep.mubr.msk.f32.mxu0 %vm385_vm0, %v1088_v54 }
 0x4ca   :  { %v1238_v62 = vpop.f32.mrb[9].mxu1  ;;  %v10199_v63 = vpop.f32.mrb[11].mxu0 }
 0x4cc   :  { %8308 = vmatmul.mubr.msk.f32.gmra.mrb[24].mxu0 %vm385_vm0, %v10184_v52 }
 0x4cd   :  { %v8233_v46 = vpop.f32.mrb[10].mxu1  ;;  %v10203_v7 = vpop.f32.mrb[12].mxu0  ;;  %8310 = vmatprep.mubr.msk.f32.mxu0 %vm385_vm0, %v10178_v51 }
 0x4ce   :  { %v1388_v18 = vpop.f32.mrb[11].mxu1  ;;  %v1613_v5 = vpop.f32.mrb[13].mxu0 }
 0x4d0   :  { %8311 = vmatmul.mubr.msk.f32.gmra.mrb[26].mxu0 %vm385_vm0, %v10174_v49 }
 0x4d1   :  { %v8247_v9 = vpop.f32.mrb[12].mxu1  ;;  %v8268_v10 = vpop.f32.mrb[14].mxu0  ;;  %8313 = vmatprep.mubr.msk.f32.mxu0 %vm385_vm0, %v1238_v62 }
 0x4d2   :  { %v1538_v47 = vpop.f32.mrb[13].mxu1  ;;  %v1763_v15 = vpop.f32.mrb[15].mxu0 }
 0x4d3   :  { %8334 = vmatprep.mubr.msk.f32.mxu1 %vm385_vm0, %v1763_v15 }
 0x4d4   :  { %8314 = vmatmul.mubr.msk.f32.gmra.mrb[28].mxu0 %vm385_vm0, %v10194_v59  ;;  %8335 = vmatmul.mubr.msk.f32.vlgmr.msra.gmra.mrb[20].mxu1 %vm385_vm0, %v8268_v10 }
 0x4d5   :  { %v8261_v14 = vpop.f32.mrb[14].mxu1  ;;  %v8282_v20 = vpop.f32.mrb[16].mxu0  ;;  %8316 = vmatprep.mubr.msk.f32.mxu0 %vm385_vm0, %v10190_v56  ;;  %8912 = vmatpush3.bf16.msra.mxu1 %v8909_v11 }
 0x4d6   :  { %v1688_v21 = vpop.f32.mrb[15].mxu1  ;;  %v1913_v25 = vpop.f32.mrb[17].mxu0  ;;  %8914 = vmatprep.subr.bf16.mxu1 %v8913_v16 }
 0x4d8   :  { %8317 = vmatmul.mubr.msk.f32.gmra.mrb[30].mxu0 %vm385_vm0, %v10186_v53 }
 0x4d9   :  { %v8275_v26 = vpop.f32.mrb[16].mxu1  ;;  %8319 = vmatprep.mubr.msk.f32.mxu0 %vm385_vm0, %v1388_v18  ;;  %8916 = vmatpush3.bf16.msra.mxu1 %v8913_v16 }
 0x4da   :  { %v1838_v34 = vpop.f32.mrb[17].mxu1  ;;  %8926 = vmatprep.subr.bf16.mxu1 %v8925_v23 }
 0x4db   :  { %8337 = vmatprep.mubr.msk.f32.mxu1 %vm385_vm0, %v1838_v34 }
 0x4dc   :  { %8320 = vmatmul.mubr.msk.f32.gmra.mrb[32].mxu0 %vm385_vm0, %v8233_v46  ;;  %8338 = vmatmul.mubr.msk.f32.gmra.mrb[22].mxu1 %vm385_vm0, %v8275_v26 }
 0x4dd   :  { %v8289_v12 = vpop.f32.mrb[18].mxu1  ;;  %8322 = vmatprep.mubr.msk.f32.mxu0 %vm385_vm0, %v10199_v63  ;;  %8340 = vmatprep.mubr.msk.f32.mxu1 %vm385_vm0, %v1913_v25 }
 0x4de   :  { %v1988_v27 = vpop.f32.mrb[19].mxu1 }
 0x4e0   :  { %8323 = vmatmul.mubr.msk.f32.gmra.mrb[34].mxu0 %vm385_vm0, %v10196_v61  ;;  %8341 = vmatmul.mubr.msk.f32.gmra.mrb[24].mxu1 %vm385_vm0, %v8282_v20 }
 0x4e1   :  { %8325 = vmatprep.mubr.msk.f32.mxu0 %vm385_vm0, %v1538_v47  ;;  %8343 = vmatprep.mubr.msk.f32.mxu1 %vm385_vm0, %v1988_v27 }
 0x4e4   :  { %8326 = vmatmul.mubr.msk.f32.gmra.mrb[36].mxu0 %vm385_vm0, %v8247_v9  ;;  %8344 = vmatmul.mubr.msk.f32.gmra.mrb[26].mxu1 %vm385_vm0, %v8289_v12 }
 0x4e5   :  { %8328 = vmatprep.mubr.msk.f32.mxu0 %vm385_vm0, %v1613_v5  ;;  %8354 = vmatprep.mubr.msk.f32.mxu1 %vm385_vm0, %v10164_v35 }
 0x4e8   :  { %8329 = vmatmul.mubr.msk.f32.gmra.mrb[38].mxu0 %vm385_vm0, %v10203_v7  ;;  %8355 = vmatmul.mubr.msk.f32.vlgmr.msra.gmra.mrb[28].mxu1 %vm385_vm0, %v10160_v17 }
 0x4e9   :  { %8331 = vmatprep.mubr.msk.f32.mxu0 %vm385_vm0, %v1688_v21  ;;  %8357 = vmatprep.mubr.msk.f32.mxu1 %vm385_vm0, %v10176_v50 }
 0x4ea   :  { %8928 = vmatpush3.bf16.msra.mxu1 %v8925_v23 }
 0x4ec   :  { %8332 = vmatmul.mubr.msk.f32.gmra.mrb[40].mxu0 %vm385_vm0, %v8261_v14  ;;  %8358 = vmatmul.mubr.msk.f32.gmra.mrb[30].mxu1 %vm385_vm0, %v10172_v43 }
 0x4ed   :  { %8360 = vmatprep.mubr.msk.f32.mxu1 %vm385_vm0, %v10166_v40 }
 0x4f0   :  { %8361 = vmatmul.mubr.msk.f32.gmra.mrb[32].mxu1 %vm385_vm0, %v10162_v30 }
 0x4f1   :  { %8363 = vmatprep.mubr.msk.f32.mxu1 %vm385_vm0, %v1088_v54 }
 0x4f4   :  { %8364 = vmatmul.mubr.msk.f32.gmra.mrb[34].mxu1 %vm385_vm0, %v10184_v52 }
 0x4f5   :  { %8366 = vmatprep.mubr.msk.f32.mxu1 %vm385_vm0, %v10178_v51 }
 0x4f8   :  { %8367 = vmatmul.mubr.msk.f32.gmra.mrb[36].mxu1 %vm385_vm0, %v10174_v49 }
 0x4f9   :  { %8369 = vmatprep.mubr.msk.f32.mxu1 %vm385_vm0, %v1238_v62 }
 0x4fc   :  { %8370 = vmatmul.mubr.msk.f32.gmra.mrb[38].mxu1 %vm385_vm0, %v10194_v59 }
 0x4fd   :  { %8372 = vmatprep.mubr.msk.f32.mxu1 %vm385_vm0, %v10190_v56 }
 0x500   :  { %8373 = vmatmul.mubr.msk.f32.gmra.mrb[40].mxu1 %vm385_vm0, %v10186_v53 }
 0x501   :  { %8375 = vmatprep.mubr.msk.f32.mxu1 %vm385_vm0, %v1388_v18 }
 0x504   :  { %8376 = vmatmul.mubr.msk.f32.gmra.mrb[42].mxu1 %vm385_vm0, %v8233_v46 }
 0x505   :  { %8378 = vmatprep.mubr.msk.f32.mxu1 %vm385_vm0, %v10199_v63 }
 0x508   :  { %8379 = vmatmul.mubr.msk.f32.gmra.mrb[44].mxu1 %vm385_vm0, %v10196_v61  ;;  %v10369_v61 = vld [vmem:[%s13040_s10] ss:$0 sm:$0xff] }
 0x509   :  { %8381 = vmatprep.mubr.msk.f32.mxu1 %vm385_vm0, %v1538_v47 }
 0x50c   :  { %8382 = vmatmul.mubr.msk.f32.gmra.mrb[46].mxu1 %vm385_vm0, %v8247_v9 }
 0x50d   :  { %8384 = vmatprep.mubr.msk.f32.mxu1 %vm385_vm0, %v1613_v5 }
 0x510   :  { %8385 = vmatmul.mubr.msk.f32.gmra.mrb[48].mxu1 %vm385_vm0, %v10203_v7 }
 0x511   :  { %8387 = vmatprep.mubr.msk.f32.mxu1 %vm385_vm0, %v1688_v21 }
 0x514   :  { %8388 = vmatmul.mubr.msk.f32.gmra.mrb[50].mxu1 %vm385_vm0, %v8261_v14 }
 0x515   :  { %8390 = vmatprep.mubr.msk.f32.mxu1 %vm385_vm0, %v1763_v15 }
 0x518   :  { %8391 = vmatmul.mubr.msk.f32.gmra.mrb[52].mxu1 %vm385_vm0, %v8268_v10 }
 0x519   :  { %8393 = vmatprep.mubr.msk.f32.mxu1 %vm385_vm0, %v1838_v34 }
 0x51c   :  { %8394 = vmatmul.mubr.msk.f32.gmra.mrb[54].mxu1 %vm385_vm0, %v8275_v26 }
 0x51d   :  { %8396 = vmatprep.mubr.msk.f32.mxu1 %vm385_vm0, %v1913_v25 }
 0x520   :  { %8397 = vmatmul.mubr.msk.f32.gmra.mrb[56].mxu1 %vm385_vm0, %v8282_v20 }
 0x521   :  { %8399 = vmatprep.mubr.msk.f32.mxu1 %vm385_vm0, %v1988_v27 }
 0x524   :  { %8400 = vmatmul.mubr.msk.f32.gmra.mrb[58].mxu1 %vm385_vm0, %v8289_v12 }
 0x593   :  { %v10290_v28 = vpop.f32.mrb[18].mxu0 }
 0x594   :  { %v10292_v29 = vpop.f32.mrb[19].mxu0 }
 0x597   :  { %v10294_v33 = vpop.f32.mrb[20].mxu0 }
 0x598   :  { %v10296_v13 = vpop.f32.mrb[21].mxu0 }
 0x59b   :  { %v10298_v36 = vpop.f32.mrb[22].mxu0 }
 0x59c   :  { %v10300_v37 = vpop.f32.mrb[23].mxu0 }
 0x59f   :  { %v10302_v38 = vpop.f32.mrb[24].mxu0 }
 0x5a0   :  { %v10304_v39 = vpop.f32.mrb[25].mxu0 }
 0x5a3   :  { %v10312_v44 = vpop.f32.mrb[26].mxu0 }
 0x5a4   :  { %v10314_v45 = vpop.f32.mrb[27].mxu0 }
 0x5a7   :  { %v10321_v60 = vpop.f32.mrb[28].mxu0  ;;  %v8336_v2 = vpop.f32.mrb[20].mxu1 }
 0x5a8   :  { %v10324_v3 = vadd.f32 %v8336_v2, %v10319_v58  ;;  %v10326_v19 = vpop.f32.mrb[29].mxu0  ;;  %v2290_v24 = vpop.f32.mrb[21].mxu1 }
 0x5a9   :  { %v10329_v31 = vadd.f32 %v10319_v58, %v2290_v24 }
 0x5aa   :  { %13115 = vst [vmem:[#allocation12_spill] sm:$0xff] %v10324_v3 }
 0x5ab   :  { %13116 = vst [vmem:[#allocation13_spill] sm:$0xff] %v10329_v31  ;;  %v10331_v32 = vpop.f32.mrb[30].mxu0 }
 0x5ac   :  { %v10333_v41 = vpop.f32.mrb[31].mxu0 }
 0x5af   :  { %v10335_v48 = vpop.f32.mrb[32].mxu0  ;;  %v8339_v55 = vpop.f32.mrb[22].mxu1 }
 0x5b0   :  { %v10338_v57 = vadd.f32 %v8339_v55, %v10319_v58  ;;  %v10340_v0 = vpop.f32.mrb[33].mxu0  ;;  %v2300_v4 = vpop.f32.mrb[23].mxu1 }
 0x5b1   :  { %v10343_v11 = vadd.f32 %v10319_v58, %v2300_v4 }
 0x5b2   :  { %13117 = vst [vmem:[#allocation14_spill] sm:$0xff] %v10338_v57 }
 0x5b3   :  { %13118 = vst [vmem:[#allocation15_spill] sm:$0xff] %v10343_v11  ;;  %v10345_v17 = vpop.f32.mrb[34].mxu0  ;;  %v8342_v30 = vpop.f32.mrb[24].mxu1 }
 0x5b4   :  { %v10348_v35 = vadd.f32 %v8342_v30, %v10319_v58  ;;  %v10350_v40 = vpop.f32.mrb[35].mxu0  ;;  %v2310_v43 = vpop.f32.mrb[25].mxu1 }
 0x5b5   :  { %v10353_v49 = vadd.f32 %v10319_v58, %v2310_v43 }
 0x5b6   :  { %13119 = vst [vmem:[#allocation16_spill] sm:$0xff] %v10348_v35 }
 0x5b7   :  { %13120 = vst [vmem:[#allocation17_spill] sm:$0xff] %v10353_v49  ;;  %v10355_v50 = vpop.f32.mrb[36].mxu0  ;;  %v8345_v51 = vpop.f32.mrb[26].mxu1 }
 0x5b8   :  { %v10358_v52 = vadd.f32 %v8345_v51, %v10319_v58  ;;  %v2260_v53 = vpop.f32.mrb[37].mxu0  ;;  %v2320_v54 = vpop.f32.mrb[27].mxu1 }
 0x5b9   :  { %v10361_v56 = vadd.f32 %v10319_v58, %v2260_v53  ;;  %v10364_v59 = vadd.f32 %v10319_v58, %v2320_v54 }
 0x5ba   :  { %13121 = vst [vmem:[#allocation18_spill] sm:$0xff] %v10358_v52 }
 0x5bb   :  { %13122 = vst [vmem:[#allocation19_spill] sm:$0xff] %v10361_v56  ;;  %13123 = vst [vmem:[#allocation20_spill] sm:$0xff] %v10364_v59  ;;  %v8330_v62 = vpop.f32.mrb[38].mxu0  ;;  %v8356_v63 = vpop.f32.mrb[28].mxu1  ;;  %v10502_v59 = vstv %s10433_s3  ;;  %s10549_s3 = sld [smem:[#allocation7 + $0x6]] }
 0x5bc   :  { %v10372_v46 = vadd.f32 %v8330_v62, %v10319_v58  ;;  %v2412_v7 = vadd.f32 %v8356_v63, %v10369_v61  ;;  %v2270_v18 = vpop.f32.mrb[39].mxu0  ;;  %v2406_v5 = vpop.f32.mrb[29].mxu1  ;;  %13130 = vst [vmem:[#allocation27_spill] sm:$0xff] %v10502_v59 }
 0x5bd   :  { %v10376_v6 = vadd.f32 %v10319_v58, %v2270_v18  ;;  %v2407_v8 = vadd.f32 %v10369_v61, %v2406_v5  ;;  %v10411_v18 = vstv %s2853_s28  ;;  %s11771_s28 = sld [smem:[#allocation7 + $0x2a]] }
 0x5be   :  { %13124 = vst [vmem:[#allocation21_spill] sm:$0xff] %v10372_v46  ;;  %v7367_v9 = vmul.f32 -1.442695, %v2412_v7 }
 0x5bf   :  { %13125 = vst [vmem:[#allocation22_spill] sm:$0xff] %v10376_v6  ;;  %v7366_v10 = vmul.f32 -1.442695, %v2407_v8  ;;  %v8333_v47 = vpop.f32.mrb[40].mxu0  ;;  %v8359_v15 = vpop.f32.mrb[30].mxu1 }
 0x5c0   :  { %9076 = vpow2.f32 %v7367_v9  ;;  %v10380_v16 = vadd.f32 %v8333_v47, %v10319_v58  ;;  %v2422_v14 = vadd.f32 %v8359_v15, %v10369_v61  ;;  %v2280_v20 = vpop.f32.mrb[41].mxu0  ;;  %v2416_v21 = vpop.f32.mrb[31].mxu1  ;;  %v10420_v47 = vstv %s10390_s0  ;;  %s10575_s0 = sld [smem:[#allocation7 + $0x7]] }
 0x5c1   :  { %9078 = vpow2.f32 %v7366_v10  ;;  %v10384_v25 = vadd.f32 %v10319_v58, %v2280_v20  ;;  %v2417_v26 = vadd.f32 %v10369_v61, %v2416_v21  ;;  %v10417_v10 = vstv %s10388_s29  ;;  %s11775_s29 = sld [smem:[#allocation7 + $0x32]] }
 0x5c2   :  { %13126 = vst [vmem:[#allocation23_spill] sm:$0xff] %v10380_v16  ;;  %v7369_v34 = vmul.f32 -1.442695, %v2422_v14  ;;  %v10428_v20 = vstv %s10393_s30  ;;  %v10431_v21 = vstv %s10395_s18  ;;  %s10458_s30 = sld [smem:[#allocation7 + $0x14]] }
 0x5c3   :  { %13127 = vst [vmem:[#allocation24_spill] sm:$0xff] %v10384_v25  ;;  %v7368_v12 = vmul.f32 -1.442695, %v2417_v26  ;;  %v8362_v27 = vpop.f32.mrb[32].mxu1  ;;  %s10466_s18 = sld [smem:[#allocation7 + $0x1c]] }
 0x5c4   :  { %9080 = vpow2.f32 %v7369_v34  ;;  %v2432_v42 = vadd.f32 %v8362_v27, %v10369_v61  ;;  %v2426_v22 = vpop.f32.mrb[33].mxu1  ;;  %v10438_v27 = vstv %s10397_s19  ;;  %s10471_s19 = sld [smem:[#allocation7 + $0x5]] }
 0x5c5   :  { %9082 = vpow2.f32 %v7368_v12  ;;  %v2427_v23 = vadd.f32 %v10369_v61, %v2426_v22 }
 0x5c6   :  { %v7371_v2 = vmul.f32 -1.442695, %v2432_v42 }
 0x5c7   :  { %v7370_v24 = vmul.f32 -1.442695, %v2427_v23  ;;  %v8365_v55 = vpop.f32.mrb[34].mxu1 }
 0x5c8   :  { %9084 = vpow2.f32 %v7371_v2  ;;  %v2442_v4 = vadd.f32 %v8365_v55, %v10369_v61  ;;  %v2436_v30 = vpop.f32.mrb[35].mxu1  ;;  %v10443_v2 = vstv %s10399_s1  ;;  %v10521_v49 = vstv %s10458_s30  ;;  %s11099_s30 = sld [smem:[#allocation7 + $0xf]]  ;;  %s11751_s1 = sld [smem:[#allocation7 + $0x30]] }
 0x5c9   :  { %9086 = vpow2.f32 %v7370_v24  ;;  %v2437_v43 = vadd.f32 %v10369_v61, %v2436_v30  ;;  %v3193_v30 = vld [vmem:[%s13041_s11 + $0x8] sm:$0xff]  ;;  %13134 = vst [vmem:[#allocation31_spill] sm:$0xff] %v10521_v49  ;;  %v10526_v11 = vstv %s10466_s18  ;;  %s11107_s18 = sld [smem:[#allocation7 + $0x17]] }
 0x5ca   :  { %v9077_v51 = vpop.eup %9076  ;;  %v7373_v53 = vmul.f32 -1.442695, %v2442_v4  ;;  %v3192_v4 = vld [vmem:[%s13041_s11] sm:$0xff]  ;;  %13136 = vst [vmem:[#allocation33_spill] sm:$0xff] %v10526_v11  ;;  %v9471_v11 = vld [vmem:[#allocation2 + $0x10] sm:$0xff] }
 0x5cb   :  { %v9079_v54 = vpop.eup %9078  ;;  %v2662_v62 = vadd.f32 1.0, %v9077_v51  ;;  %v7372_v63 = vmul.f32 -1.442695, %v2437_v43  ;;  %v8368_v7 = vpop.f32.mrb[36].mxu1  ;;  %v10455_v43 = vstv %s10402_s16  ;;  %s11753_s16 = sld [smem:[#allocation7 + $0x38]] }
 0x5cc   :  { %v2661_v5 = vadd.f32 1.0, %v9079_v54  ;;  %9088 = vpow2.f32 %v7373_v53  ;;  %v2452_v8 = vadd.f32 %v8368_v7, %v10369_v61  ;;  %v2446_v9 = vpop.f32.mrb[37].mxu1  ;;  %v8917_v53 = vpack.c.bf16 %v3193_v30, %v3192_v4 }
 0x5cd   :  { %9090 = vrcp.f32 %v2662_v62  ;;  %v2447_v15 = vadd.f32 %v10369_v61, %v2446_v9  ;;  %v10461_v62 = vstv %s10405_s20  ;;  %v10469_v9 = vstv %s10409_s2  ;;  %s11760_s20 = sld [smem:[#allocation7 + $0x21]] }
 0x5ce   :  { %v9081_v14 = vpop.eup %9080  ;;  %9092 = vrcp.f32 %v2661_v5  ;;  %v7375_v26 = vmul.f32 -1.442695, %v2452_v8  ;;  %8918 = vmatprep.subr.bf16.mxu0 %v8917_v53  ;;  %v10490_v4 = vstv %s10425_s24  ;;  %s10509_s24 = sld [smem:[#allocation7 + $0x1d]]  ;;  %s11765_s2 = sld [smem:[#allocation7 + $0x31]] }
 0x5cf   :  { %v9083_v34 = vpop.eup %9082  ;;  %v2664_v12 = vadd.f32 1.0, %v9081_v14  ;;  %9094 = vpow2.f32 %v7372_v63  ;;  %v7374_v42 = vmul.f32 -1.442695, %v2447_v15  ;;  %v8371_v22 = vpop.f32.mrb[38].mxu1  ;;  %v10464_v63 = vstv %s10407_s21  ;;  %8920 = vmatpush3.bf16.msra.mxu0 %v8917_v53  ;;  %13129 = vst [vmem:[#allocation26_spill] sm:$0xff] %v10490_v4  ;;  %s11762_s21 = sld [smem:[#allocation7 + $0x29]] }
 0x5d0   :  { %v2663_v23 = vadd.f32 1.0, %v9083_v34  ;;  %9096 = vpow2.f32 %v7375_v26  ;;  %v2462_v24 = vadd.f32 %v8371_v22, %v10369_v61  ;;  %v2456_v55 = vpop.f32.mrb[39].mxu1  ;;  %v10474_v34 = vstv %s10414_s22  ;;  %s10492_s22 = sld [smem:[#allocation7 + $0xd]] }
 0x5d1   :  { %9098 = vrcp.f32 %v2664_v12  ;;  %v2457_v51 = vadd.f32 %v10369_v61, %v2456_v55  ;;  %v10487_v55 = vstv %s10423_s23  ;;  %v2176_v53 = vadd.f32 %v10290_v28, %v10319_v58  ;;  %s10507_s23 = sld [smem:[#allocation7 + $0x15]] }
 0x5d2   :  { %v9085_v54 = vpop.eup %9084  ;;  %9100 = vrcp.f32 %v2663_v23  ;;  %v7377_v7 = vmul.f32 -1.442695, %v2462_v24  ;;  %v3398_v23 = vld [vmem:[%s13043_s13 + $0x10] sm:$0xff]  ;;  %13128 = vst [vmem:[#allocation25_spill] sm:$0xff] %v10487_v55 }
 0x5d3   :  { %v9087_v5 = vpop.eup %9086  ;;  %v2666_v8 = vadd.f32 1.0, %v9085_v54  ;;  %9102 = vpow2.f32 %v7374_v42  ;;  %v7376_v15 = vmul.f32 -1.442695, %v2457_v51  ;;  %v8374_v14 = vpop.f32.mrb[40].mxu1  ;;  %v3399_v42 = vld [vmem:[%s13043_s13 + $0x18] sm:$0xff]  ;;  %v3194_v24 = vld [vmem:[%s13041_s11 + $0x10] sm:$0xff] }
 0x5d4   :  { %v2665_v26 = vadd.f32 1.0, %v9087_v5  ;;  %9104 = vpow2.f32 %v7377_v7  ;;  %v2472_v12 = vadd.f32 %v8374_v14, %v10369_v61  ;;  %v2466_v22 = vpop.f32.mrb[41].mxu1  ;;  %v8929_v30 = vpack.c.bf16 %v3399_v42, %v3398_v23  ;;  %v3195_v51 = vld [vmem:[%s13041_s11 + $0x18] sm:$0xff] }
 0x5d5   :  { %9106 = vrcp.f32 %v2666_v8  ;;  %v8921_v5 = vpack.c.bf16 %v3195_v51, %v3194_v24  ;;  %v2171_v14 = vadd.f32 %v10319_v58, %v10292_v29  ;;  %v10505_v23 = vstv %s10435_s4  ;;  %s10551_s4 = sld [smem:[#allocation7 + $0xe]] }
 0x5d6   :  { %v9089_v54 = vpop.eup %9088  ;;  %9108 = vrcp.f32 %v2665_v26  ;;  %v7379_v7 = vmul.f32 -1.442695, %v2472_v12  ;;  %13131 = vst [vmem:[#allocation28_spill] sm:$0xff] %v10505_v23  ;;  %8930 = vmatprep.subr.bf16.mxu1 %v8929_v30  ;;  %v10514_v24 = vstv %s10440_s25  ;;  %v10517_v29 = vstv %s10446_s26  ;;  %s10563_s25 = sld [smem:[#allocation7 + $0x16]] }
 0x5d7   :  { %v9091_v8 = vpop.eup %9090  ;;  %v2668_v1 = vadd.f32 1.0, %v9089_v54  ;;  %v8377_v42 = vpop.f32.mrb[42].mxu1  ;;  %9110 = vpow2.f32 %v7376_v15  ;;  %13132 = vst [vmem:[#allocation29_spill] sm:$0xff] %v10514_v24  ;;  %13133 = vst [vmem:[#allocation30_spill] sm:$0xff] %v10517_v29  ;;  %8932 = vmatpush3.bf16.msra.mxu1 %v8929_v30  ;;  %8922 = vmatprep.subr.bf16.mxu0 %v8921_v5  ;;  %v2467_v52 = vadd.f32 %v10369_v61, %v2466_v22  ;;  %v9469_v22 = vld [vmem:[#allocation2] sm:$0xff]  ;;  %s10565_s26 = sld [smem:[#allocation7 + $0x1e]] }
 0x5d8   :  { %v9093_v28 = vpop.eup %9092  ;;  %v2758_v26 = vmul.f32 %v9091_v8, %v2176_v53  ;;  %v10511_v12 = vpop.f32.mrb[43].mxu1  ;;  %8924 = vmatpush3.bf16.msra.mxu0 %v8921_v5  ;;  %v9468_v53 = vld [vmem:[#allocation2 + $0x8] sm:$0xff]  ;;  %v2186_v30 = vadd.f32 %v10294_v33, %v10319_v58  ;;  %v2206_v33 = vadd.f32 %v10302_v38, %v10319_v58  ;;  %v2482_v38 = vadd.f32 %v8377_v42, %v10369_v61 }
 0x5d9   :  { %v9095_v51 = vpop.eup %9094  ;;  %v2757_v54 = vmul.f32 %v9093_v28, %v2171_v14  ;;  %9112 = vrcp.f32 %v2668_v1  ;;  %v2181_v1 = vadd.f32 %v10319_v58, %v10296_v13 }
 0x5da   :  { %v9097_v35 = vpop.eup %9096  ;;  %v10523_v15 = vadd.f32 %v9468_v53, %v2758_v26  ;;  %v2667_v8 = vadd.f32 1.0, %v9095_v51  ;;  %9114 = vpow2.f32 %v7379_v7  ;;  %v2196_v7 = vadd.f32 %v10298_v36, %v10319_v58 }
 0x5db   :  { %v9099_v57 = vpop.eup %9098  ;;  %v10532_v14 = vadd.f32 %v9469_v22, %v2757_v54  ;;  %v2670_v5 = vadd.f32 1.0, %v9097_v35  ;;  %v10534_v28 = vpop.f32.mrb[44].mxu1  ;;  %v2191_v51 = vadd.f32 %v10319_v58, %v10300_v37  ;;  %v10547_v54 = vstv %s10471_s19  ;;  %s11109_s19 = sld [smem:[#allocation7 + $0x1f]] }
 0x5dc   :  { %13135 = vst [vmem:[#allocation32_spill] sm:$0xff] %v10523_v15  ;;  %v9101_v26 = vpop.eup %9100  ;;  %2822 = vst.msk [vmem:[#allocation2 + $0x8] sm:$0xff] %vm385_vm0, %v10523_v15  ;;  %v10544_v13 = vpop.f32.mrb[45].mxu1  ;;  %v10555_v36 = vadd.f32 %v10319_v58, %v10304_v39  ;;  %v7378_v37 = vmul.f32 -1.442695, %v2467_v52  ;;  %v10561_v53 = vstv %s10492_s22  ;;  %v2760_v31 = vmul.f32 %v9099_v57, %v2186_v30  ;;  %s11769_s22 = sld [smem:[#allocation7 + $0x22]] }
 0x5dd   :  { %13137 = vst [vmem:[#allocation34_spill] sm:$0xff] %v10532_v14  ;;  %13138 = vst [vmem:[#allocation35_spill] sm:$0xff] %v10547_v54  ;;  %v9103_v35 = vpop.eup %9102  ;;  %v2759_v3 = vmul.f32 %v9101_v26, %v2181_v1  ;;  %9116 = vrcp.f32 %v2667_v8  ;;  %v10570_v54 = vstv %s10507_s23  ;;  %v10573_v52 = vstv %s10509_s24  ;;  %s11780_s23 = sld [smem:[#allocation7 + $0x3a]]  ;;  %s11783_s24 = sld [smem:[#allocation7 + $0x23]] }
 0x5de   :  { %2821 = vst.msk [vmem:[#allocation2] sm:$0xff] %vm385_vm0, %v10532_v14  ;;  %13139 = vst [vmem:[#allocation36_spill] sm:$0xff] %v10561_v53  ;;  %v9105_v22 = vpop.eup %9104  ;;  %v2669_v39 = vadd.f32 1.0, %v9103_v35  ;;  %9118 = vrcp.f32 %v2670_v5  ;;  %v9470_v53 = vld [vmem:[#allocation2 + $0x18] sm:$0xff]  ;;  %v2216_v1 = vadd.f32 %v10312_v44, %v10319_v58  ;;  %v2211_v5 = vadd.f32 %v10319_v58, %v10314_v45 }
 0x5df   :  { %v9107_v25 = vpop.eup %9106  ;;  %v2672_v16 = vadd.f32 1.0, %v9105_v22  ;;  %v10567_v6 = vpop.f32.mrb[46].mxu1  ;;  %13140 = vst [vmem:[#allocation37_spill] sm:$0xff] %v10570_v54  ;;  %13141 = vst [vmem:[#allocation38_spill] sm:$0xff] %v10573_v52  ;;  %v10577_v46 = vadd.f32 %v9470_v53, %v2760_v31  ;;  %v10579_v57 = vadd.f32 %v9471_v11, %v2759_v3  ;;  %v10589_v31 = vadd.f32 %v10321_v60, %v10319_v58 }
 0x5e0   :  { %v9109_v42 = vpop.eup %9108  ;;  %v2762_v8 = vmul.f32 %v9107_v25, %v2196_v7  ;;  %9120 = vrcp.f32 %v2669_v39  ;;  %v10581_v30 = vpop.f32.mrb[47].mxu1  ;;  %v10593_v3 = vadd.f32 %v10319_v58, %v10326_v19  ;;  %v7381_v44 = vmul.f32 -1.442695, %v2482_v38  ;;  %v9473_v38 = vld [vmem:[#allocation2 + $0x20] sm:$0xff] }
 0x5e1   :  { %13142 = vst [vmem:[#allocation39_spill] sm:$0xff] %v10577_v46  ;;  %13143 = vst [vmem:[#allocation40_spill] sm:$0xff] %v10579_v57  ;;  %v2761_v26 = vmul.f32 %v9109_v42, %v2191_v51  ;;  %9122 = vrcp.f32 %v2672_v16  ;;  %v9111_v35 = vpop.eup %9110  ;;  %v10601_v60 = vadd.f32 %v10331_v32, %v10319_v58  ;;  %v10605_v19 = vadd.f32 %v10319_v58, %v10333_v41  ;;  %v9472_v32 = vld [vmem:[#allocation2 + $0x28] sm:$0xff] }
 0x5e2   :  { %2824 = vst.msk [vmem:[#allocation2 + $0x18] sm:$0xff] %vm385_vm0, %v10577_v46  ;;  %2823 = vst.msk [vmem:[#allocation2 + $0x10] sm:$0xff] %vm385_vm0, %v10579_v57  ;;  %9124 = vpow2.f32 %v7378_v37  ;;  %v10609_v11 = vadd.f32 %v10335_v48, %v10319_v58  ;;  %v2477_v16 = vadd.f32 %v10369_v61, %v10511_v12  ;;  %v10617_v51 = vadd.f32 %v10319_v58, %v10340_v0 }
 0x5e3   :  { %v9113_v45 = vpop.eup %9112  ;;  %v10613_v25 = vpop.f32.mrb[48].mxu1  ;;  %v10619_v37 = vadd.f32 %v9472_v32, %v2762_v8  ;;  %v10621_v41 = vadd.f32 %v9473_v38, %v2761_v26  ;;  %v10626_v22 = vstv %s10549_s3  ;;  %v10629_v12 = vstv %s10551_s4  ;;  %s11787_s3 = sld [smem:[#allocation7 + $0x33]] }
 0x5e4   :  { %v9115_v7 = vpop.eup %9114  ;;  %13144 = vst [vmem:[#allocation41_spill] sm:$0xff] %v10617_v51  ;;  %v2764_v53 = vmul.f32 %v9113_v45, %v2206_v33  ;;  %v10623_v48 = vpop.f32.mrb[49].mxu1  ;;  %13146 = vst [vmem:[#allocation43_spill] sm:$0xff] %v10626_v22  ;;  %v10632_v39 = vstv %s10563_s25  ;;  %v10635_v42 = vstv %s10565_s26  ;;  %v10639_v0 = vadd.f32 %v10345_v17, %v10319_v58  ;;  %s11797_s4 = sld [smem:[#allocation7 + $0x3b]]  ;;  %s11808_s25 = sld [smem:[#allocation7 + $0x24]] }
 0x5e5   :  { %13145 = vst [vmem:[#allocation42_spill] sm:$0xff] %v10619_v37  ;;  %13147 = vst [vmem:[#allocation44_spill] sm:$0xff] %v10629_v12  ;;  %v10643_v8 = vadd.f32 %v10319_v58, %v10350_v40  ;;  %v2671_v33 = vadd.f32 1.0, %v9111_v35  ;;  %9126 = vpow2.f32 %v7381_v44  ;;  %v10651_v26 = vadd.f32 %v10355_v50, %v10319_v58  ;;  %s11819_s26 = sld [smem:[#allocation7 + $0x34]] }
 0x5e6   :  { %13148 = vst [vmem:[#allocation45_spill] sm:$0xff] %v10632_v39  ;;  %13149 = vst [vmem:[#allocation46_spill] sm:$0xff] %v10635_v42  ;;  %v2674_v45 = vadd.f32 1.0, %v9115_v7  ;;  %v10653_v32 = vmul.f32 -1.442695, %v2477_v16  ;;  %v10658_v38 = vstv %s10575_s0  ;;  %v2856_v42 = vmul.f32 %v10411_v18, %v10523_v15  ;;  %s11821_s0 = sld [smem:[#allocation7 + $0x3c]] }
 0x5e7   :  { %13150 = vst [vmem:[#allocation47_spill] sm:$0xff] %v10639_v0  ;;  %13151 = vst [vmem:[#allocation48_spill] sm:$0xff] %v10643_v8  ;;  %v10655_v17 = vpop.f32.mrb[50].mxu1  ;;  %v9117_v40 = vpop.eup %9116  ;;  %v2936_v39 = vmul.f32 %v10417_v10, %v10523_v15  ;;  %v2492_v35 = vadd.f32 %v10534_v28, %v10369_v61  ;;  %v2487_v58 = vadd.f32 %v10369_v61, %v10544_v13  ;;  %v9474_v28 = vld [vmem:[#allocation2 + $0x38] sm:$0xff]  ;;  %9128 = vrcp.f32 %v2671_v33 }
 0x5e8   :  { %2826 = vst.msk [vmem:[#allocation2 + $0x28] sm:$0xff] %vm385_vm0, %v10619_v37  ;;  %2825 = vst.msk [vmem:[#allocation2 + $0x20] sm:$0xff] %vm385_vm0, %v10621_v41  ;;  %v10668_v50 = vpop.f32.mrb[51].mxu1  ;;  %v9119_v44 = vpop.eup %9118  ;;  %v3017_v16 = vmul.f32 %v10420_v47, %v10523_v15  ;;  %v3098_v7 = vmul.f32 %v10428_v20, %v10523_v15  ;;  %v2935_v12 = vmul.f32 %v10417_v10, %v10532_v14  ;;  %9130 = vrcp.f32 %v2674_v45  ;;  %v9476_v45 = vld [vmem:[#allocation2 + $0x48] sm:$0xff] }
 0x5e9   :  { %13152 = vst [vmem:[#allocation49_spill] sm:$0xff] %v10651_v26  ;;  %13153 = vst [vmem:[#allocation50_spill] sm:$0xff] %v10655_v17  ;;  %v10678_v52 = vadd.f32 %v9474_v28, %v2764_v53  ;;  %v2763_v13 = vmul.f32 %v9117_v40, %v10555_v36  ;;  %v2766_v54 = vmul.f32 %v9119_v44, %v2216_v1  ;;  %v7383_v1 = vmul.f32 -1.442695, %v2492_v35  ;;  %v9477_v28 = vld [vmem:[#allocation2 + $0x40] sm:$0xff] }
 0x5ea   :  { %13154 = vst [vmem:[#allocation51_spill] sm:$0xff] %v10658_v38  ;;  %13155 = vst [vmem:[#allocation52_spill] sm:$0xff] %v10668_v50  ;;  %v2855_v38 = vmul.f32 %v10411_v18, %v10532_v14  ;;  %v9121_v22 = vpop.eup %9120  ;;  %v3016_v29 = vmul.f32 %v10420_v47, %v10532_v14  ;;  %v10685_v15 = vmul.f32 %v10428_v20, %v10532_v14  ;;  %v10699_v33 = vmul.f32 -1.442695, %v2487_v58 }
 0x5eb   :  { %v9123_v49 = vpop.eup %9122  ;;  %v2765_v56 = vmul.f32 %v9121_v22, %v2211_v5  ;;  %v10687_v24 = vpop.f32.mrb[52].mxu1  ;;  %v10691_v53 = vmul.f32 %v10411_v18, %v10577_v46  ;;  %v10695_v36 = vmul.f32 %v10417_v10, %v10577_v46  ;;  %2828 = vst.msk [vmem:[#allocation2 + $0x38] sm:$0xff] %vm385_vm0, %v10678_v52  ;;  %v9475_v5 = vld [vmem:[#allocation2 + $0x30] sm:$0xff]  ;;  %v10705_v44 = vadd.f32 %v9476_v45, %v2766_v54 }
 0x5ec   :  { %13156 = vst [vmem:[#allocation53_spill] sm:$0xff] %v10687_v24  ;;  %v9125_v26 = vpop.eup %9124  ;;  %v10701_v40 = vpop.f32.mrb[53].mxu1  ;;  %v10703_v22 = vadd.f32 %v9475_v5, %v2763_v13  ;;  %v2768_v8 = vmul.f32 %v9123_v49, %v10589_v31  ;;  %v2862_v0 = vmul.f32 %v10431_v21, %v10619_v37  ;;  %v2942_v35 = vmul.f32 %v10438_v27, %v10619_v37 }
 0x5ed   :  { %13157 = vst [vmem:[#allocation54_spill] sm:$0xff] %v10701_v40  ;;  %v10707_v14 = vadd.f32 %v9477_v28, %v2765_v56  ;;  %v3023_v58 = vmul.f32 %v10443_v2, %v10619_v37  ;;  %v3104_v13 = vmul.f32 %v10455_v43, %v10619_v37  ;;  %v3019_v54 = vmul.f32 %v10420_v47, %v10577_v46 }
 0x5ee   :  { %v3100_v56 = vmul.f32 %v10428_v20, %v10577_v46  ;;  %v2861_v49 = vmul.f32 %v10431_v21, %v10621_v41  ;;  %2827 = vst.msk [vmem:[#allocation2 + $0x30] sm:$0xff] %vm385_vm0, %v10703_v22  ;;  %2830 = vst.msk [vmem:[#allocation2 + $0x48] sm:$0xff] %vm385_vm0, %v10705_v44  ;;  %v2673_v31 = vadd.f32 1.0, %v9125_v26  ;;  %v2857_v28 = vmul.f32 %v10411_v18, %v10579_v57 }
 0x5ef   :  { %2829 = vst.msk [vmem:[#allocation2 + $0x40] sm:$0xff] %vm385_vm0, %v10707_v14  ;;  %v10730_v5 = vpop.f32.mrb[54].mxu1  ;;  %v9127_v45 = vpop.eup %9126  ;;  %v2941_v37 = vmul.f32 %v10438_v27, %v10621_v41  ;;  %v3022_v46 = vmul.f32 %v10443_v2, %v10621_v41  ;;  %v2502_v51 = vadd.f32 %v10567_v6, %v10369_v61  ;;  %v2937_v26 = vmul.f32 %v10417_v10, %v10579_v57 }
 0x5f0   :  { %13158 = vst [vmem:[#allocation55_spill] sm:$0xff] %v10730_v5  ;;  %v10740_v40 = vpop.f32.mrb[55].mxu1  ;;  %v3018_v5 = vmul.f32 %v10420_v47, %v10579_v57  ;;  %v3099_v18 = vmul.f32 %v10428_v20, %v10579_v57  ;;  %v3103_v23 = vmul.f32 %v10455_v43, %v10621_v41  ;;  %v2866_v24 = vadd.f32 %v2862_v0, %v2856_v42 }
 0x5f1   :  { %13159 = vst [vmem:[#allocation56_spill] sm:$0xff] %v10740_v40  ;;  %v2946_v59 = vadd.f32 %v2942_v35, %v2936_v39  ;;  %v10750_v4 = vadd.f32 %v3023_v58, %v3017_v16  ;;  %v10752_v55 = vadd.f32 %v3104_v13, %v3098_v7  ;;  %v10754_v6 = vadd.f32 %v2861_v49, %v2855_v38  ;;  %v9478_v40 = vld [vmem:[#allocation2 + $0x58] sm:$0xff]  ;;  %v9129_v17 = vpop.eup %9128  ;;  %v9479_v35 = vld [vmem:[#allocation2 + $0x50] sm:$0xff] }
 0x5f2   :  { %v10756_v50 = vadd.f32 %v9478_v40, %v2768_v8  ;;  %9132 = vrcp.f32 %v2673_v31  ;;  %v2676_v10 = vadd.f32 1.0, %v9127_v45  ;;  %v10760_v20 = vadd.f32 %v2941_v37, %v2935_v12  ;;  %v9131_v0 = vpop.eup %9130 }
 0x5f3   :  { %v10758_v47 = vpop.f32.mrb[56].mxu1  ;;  %v10762_v57 = vadd.f32 %v3022_v46, %v3016_v29  ;;  %9134 = vpow2.f32 %v10653_v32  ;;  %v7385_v39 = vmul.f32 -1.442695, %v2502_v51  ;;  %v2864_v38 = vmul.f32 %v10431_v21, %v10678_v52 }
 0x5f4   :  { %v10765_v42 = vpop.f32.mrb[57].mxu1  ;;  %v2944_v8 = vmul.f32 %v10438_v27, %v10678_v52  ;;  %v3025_v16 = vmul.f32 %v10443_v2, %v10678_v52  ;;  %2832 = vst.msk [vmem:[#allocation2 + $0x58] sm:$0xff] %vm385_vm0, %v10756_v50  ;;  %v2497_v46 = vadd.f32 %v10369_v61, %v10581_v30  ;;  %v3106_v29 = vmul.f32 %v10455_v43, %v10678_v52 }
 0x5f5   :  { %v2767_v51 = vmul.f32 %v9129_v17, %v10593_v3  ;;  %v2770_v37 = vmul.f32 %v9131_v0, %v10601_v60  ;;  %9136 = vrcp.f32 %v2676_v10  ;;  %v2863_v12 = vmul.f32 %v10431_v21, %v10703_v22  ;;  %v9480_v60 = vld [vmem:[#allocation2 + $0x68] sm:$0xff] }
 0x5f6   :  { %v2943_v32 = vmul.f32 %v10438_v27, %v10703_v22  ;;  %v3024_v7 = vmul.f32 %v10443_v2, %v10703_v22  ;;  %9138 = vpow2.f32 %v7383_v1  ;;  %v3105_v30 = vmul.f32 %v10455_v43, %v10703_v22 }
 0x5f7   :  { %v10787_v40 = vpop.f32.mrb[58].mxu1  ;;  %v10791_v3 = vadd.f32 %v9479_v35, %v2767_v51  ;;  %v10793_v17 = vadd.f32 %v9480_v60, %v2770_v37  ;;  %9140 = vpow2.f32 %v10699_v33  ;;  %v3107_v27 = vadd.f32 %v3103_v23, %v10685_v15 }
 0x5f8   :  { %v10796_v21 = vpop.f32.mrb[59].mxu1  ;;  %v2868_v2 = vadd.f32 %v2864_v38, %v10691_v53  ;;  %v2872_v1 = vmul.f32 %v10461_v62, %v10705_v44  ;;  %9142 = vpow2.f32 %v7385_v39  ;;  %v2948_v43 = vadd.f32 %v2944_v8, %v10695_v36 }
 0x5f9   :  { %13160 = vst [vmem:[#allocation57_spill] sm:$0xff] %v10791_v3  ;;  %13161 = vst [vmem:[#allocation58_spill] sm:$0xff] %v10793_v17  ;;  %v3029_v58 = vadd.f32 %v3025_v16, %v3019_v54  ;;  %v3110_v13 = vadd.f32 %v3106_v29, %v3100_v56  ;;  %v2952_v49 = vmul.f32 %v10464_v63, %v10705_v44  ;;  %v7384_v31 = vmul.f32 -1.442695, %v2497_v46 }
 0x5fa   :  { %2831 = vst.msk [vmem:[#allocation2 + $0x50] sm:$0xff] %vm385_vm0, %v10791_v3  ;;  %2834 = vst.msk [vmem:[#allocation2 + $0x68] sm:$0xff] %vm385_vm0, %v10793_v17  ;;  %v10809_v23 = vadd.f32 %v2863_v12, %v2857_v28  ;;  %v10811_v15 = vadd.f32 %v2943_v32, %v2937_v26  ;;  %v3033_v53 = vmul.f32 %v10469_v9, %v10705_v44 }
 0x5fb   :  { %v3114_v36 = vmul.f32 %v10474_v34, %v10705_v44  ;;  %v10817_v33 = vadd.f32 %v3024_v7, %v3018_v5  ;;  %v10819_v54 = vadd.f32 %v3105_v30, %v3099_v18  ;;  %v2871_v56 = vmul.f32 %v10461_v62, %v10707_v14 }
 0x5fc   :  { %v9133_v45 = vpop.eup %9132  ;;  %v2951_v28 = vmul.f32 %v10464_v63, %v10707_v14  ;;  %v3032_v26 = vmul.f32 %v10469_v9, %v10707_v14  ;;  %v3113_v10 = vmul.f32 %v10474_v34, %v10707_v14  ;;  %v10829_v39 = vadd.f32 %v2872_v1, %v2866_v24  ;;  %v13163_v1 = vld [vmem:[#allocation50_spill] sm:$0xff] }
 0x5fd   :  { %v9135_v5 = vpop.eup %9134  ;;  %v2769_v18 = vmul.f32 %v9133_v45, %v10605_v19  ;;  %v2956_v0 = vadd.f32 %v2952_v49, %v2946_v59  ;;  %9144 = vpow2.f32 %v7384_v31  ;;  %v2512_v38 = vadd.f32 %v10613_v25, %v10369_v61  ;;  %v9481_v19 = vld [vmem:[#allocation2 + $0x60] sm:$0xff] }
 0x5fe   :  { %v2874_v8 = vmul.f32 %v10461_v62, %v10756_v50  ;;  %v2675_v16 = vadd.f32 1.0, %v9135_v5  ;;  %v10837_v46 = vadd.f32 %v3033_v53, %v10750_v4  ;;  %v10840_v29 = vadd.f32 %v3114_v36, %v10752_v55  ;;  %v9482_v53 = vld [vmem:[#allocation2 + $0x78] sm:$0xff] }
 0x5ff   :  { %v9137_v24 = vpop.eup %9136  ;;  %v2954_v51 = vmul.f32 %v10464_v63, %v10756_v50  ;;  %v3035_v59 = vmul.f32 %v10469_v9, %v10756_v50  ;;  %v10846_v37 = vadd.f32 %v9481_v19, %v2769_v18  ;;  %v7387_v25 = vmul.f32 -1.442695, %v2512_v38  ;;  %v13167_v18 = vld [vmem:[#allocation26_spill] sm:$0xff] }
 0x600   :  { %v9139_v12 = vpop.eup %9138  ;;  %v3116_v32 = vmul.f32 %v10474_v34, %v10756_v50  ;;  %v2772_v4 = vmul.f32 %v9137_v24, %v10609_v11  ;;  %9146 = vrcp.f32 %v2675_v16  ;;  %v2507_v55 = vadd.f32 %v10369_v61, %v10623_v48  ;;  %v13168_v16 = vld [vmem:[#allocation27_spill] sm:$0xff]  ;;  %v13169_v24 = vld [vmem:[#allocation53_spill] sm:$0xff] }
 0x601   :  { %13162 = vst [vmem:[#allocation59_spill] sm:$0xff] %v10846_v37  ;;  %v9141_v7 = vpop.eup %9140  ;;  %2833 = vst.msk [vmem:[#allocation2 + $0x60] sm:$0xff] %vm385_vm0, %v10846_v37  ;;  %v10856_v30 = vadd.f32 %v2871_v56, %v10754_v6  ;;  %v10859_v35 = vadd.f32 %v2951_v28, %v10760_v20  ;;  %v10862_v60 = vadd.f32 %v3032_v26, %v10762_v57  ;;  %v2678_v48 = vadd.f32 1.0, %v9139_v12 }
 0x602   :  { %v2522_v11 = vadd.f32 %v13163_v1, %v10369_v61  ;;  %v9143_v49 = vpop.eup %9142  ;;  %v10866_v36 = vadd.f32 %v9482_v53, %v2772_v4  ;;  %v2677_v31 = vadd.f32 1.0, %v9141_v7  ;;  %9148 = vpow2.f32 %v7387_v25 }
 0x603   :  { %v10868_v45 = vadd.f32 %v3113_v10, %v3107_v27  ;;  %v10870_v6 = vadd.f32 %v2874_v8, %v2868_v2  ;;  %v10872_v56 = vadd.f32 %v2954_v51, %v2948_v43  ;;  %v10874_v20 = vadd.f32 %v3035_v59, %v3029_v58  ;;  %v13165_v43 = vld [vmem:[#allocation52_spill] sm:$0xff]  ;;  %v13166_v10 = vld [vmem:[#allocation25_spill] sm:$0xff] }
 0x604   :  { %13164 = vst [vmem:[#allocation50_spill] sm:$0xff] %v10866_v36  ;;  %v2873_v57 = vmul.f32 %v10461_v62, %v10791_v3  ;;  %v2953_v28 = vmul.f32 %v10464_v63, %v10791_v3  ;;  %2836 = vst.msk [vmem:[#allocation2 + $0x78] sm:$0xff] %vm385_vm0, %v10866_v36  ;;  %v10882_v26 = vadd.f32 %v3116_v32, %v3110_v13  ;;  %v7386_v5 = vmul.f32 -1.442695, %v2507_v55  ;;  %v13170_v59 = vld [vmem:[#allocation28_spill] sm:$0xff]  ;;  %v13171_v55 = vld [vmem:[#allocation54_spill] sm:$0xff] }
 0x605   :  { %v3034_v27 = vmul.f32 %v10469_v9, %v10791_v3  ;;  %9150 = vrcp.f32 %v2678_v48  ;;  %v2680_v2 = vadd.f32 1.0, %v9143_v49  ;;  %v2517_v58 = vadd.f32 %v10369_v61, %v13165_v43  ;;  %v13173_v48 = vld [vmem:[#allocation41_spill] sm:$0xff] }
 0x606   :  { %v2882_v62 = vmul.f32 %v13166_v10, %v10793_v17  ;;  %v2962_v63 = vmul.f32 %v13167_v18, %v10793_v17  ;;  %9152 = vrcp.f32 %v2677_v31  ;;  %v7389_v38 = vmul.f32 -1.442695, %v2522_v11 }
 0x607   :  { %v9145_v8 = vpop.eup %9144  ;;  %v3115_v13 = vmul.f32 %v10474_v34, %v10791_v3  ;;  %v3043_v9 = vmul.f32 %v13168_v16, %v10793_v17  ;;  %9154 = vrcp.f32 %v2680_v2  ;;  %v2532_v51 = vadd.f32 %v13169_v24, %v10369_v61  ;;  %v9483_v2 = vld [vmem:[#allocation2 + $0x70] sm:$0xff]  ;;  %v13189_v3 = vld [vmem:[#allocation22_spill] sm:$0xff] }
 0x608   :  { %v3124_v19 = vmul.f32 %v13170_v59, %v10793_v17  ;;  %v2679_v25 = vadd.f32 1.0, %v9145_v8  ;;  %v10901_v12 = vadd.f32 %v2873_v57, %v10809_v23  ;;  %9156 = vpow2.f32 %v7386_v5  ;;  %v13172_v23 = vld [vmem:[#allocation55_spill] sm:$0xff] }
 0x609   :  { %v10904_v32 = vadd.f32 %v2953_v28, %v10811_v15  ;;  %v10907_v34 = vadd.f32 %v3034_v27, %v10817_v33  ;;  %v7388_v4 = vmul.f32 -1.442695, %v2517_v58  ;;  %v2527_v7 = vadd.f32 %v10369_v61, %v13171_v55  ;;  %v13174_v33 = vld [vmem:[#allocation56_spill] sm:$0xff] }
 0x60a   :  { %v9147_v1 = vpop.eup %9146  ;;  %v10912_v11 = vadd.f32 %v2882_v62, %v10829_v39  ;;  %v10914_v49 = vadd.f32 %v2962_v63, %v2956_v0  ;;  %9158 = vpow2.f32 %v7389_v38  ;;  %v2542_v53 = vadd.f32 %v13172_v23, %v10369_v61 }
 0x60b   :  { %v2771_v15 = vmul.f32 %v9147_v1, %v13173_v48  ;;  %9160 = vrcp.f32 %v2679_v25  ;;  %v7391_v31 = vmul.f32 -1.442695, %v2532_v51  ;;  %v2537_v57 = vadd.f32 %v10369_v61, %v13174_v33  ;;  %v13176_v51 = vld [vmem:[#allocation47_spill] sm:$0xff]  ;;  %v13177_v1 = vld [vmem:[#allocation48_spill] sm:$0xff] }
 0x60c   :  { %v9149_v28 = vpop.eup %9148  ;;  %v10922_v5 = vadd.f32 %v3043_v9, %v10837_v46  ;;  %v10925_v39 = vadd.f32 %v3124_v19, %v10840_v29  ;;  %v10928_v0 = vadd.f32 %v3115_v13, %v10819_v54  ;;  %v2552_v27 = vadd.f32 %v10758_v47, %v10369_v61  ;;  %v9484_v48 = vld [vmem:[#allocation2 + $0x88] sm:$0xff] }
 0x60d   :  { %v10932_v43 = vadd.f32 %v9483_v2, %v2771_v15  ;;  %v2682_v58 = vadd.f32 1.0, %v9149_v28  ;;  %9162 = vpow2.f32 %v7388_v4  ;;  %v7390_v62 = vmul.f32 -1.442695, %v2527_v7  ;;  %v9485_v28 = vld [vmem:[#allocation2 + $0x80] sm:$0xff] }
 0x60e   :  { %v2881_v63 = vmul.f32 %v13166_v10, %v10846_v37  ;;  %v2961_v46 = vmul.f32 %v13167_v18, %v10846_v37  ;;  %v3042_v29 = vmul.f32 %v13168_v16, %v10846_v37  ;;  %v7393_v54 = vmul.f32 -1.442695, %v2542_v53 }
 0x60f   :  { %13175 = vst [vmem:[#allocation52_spill] sm:$0xff] %v10932_v43  ;;  %v9151_v38 = vpop.eup %9150  ;;  %v3123_v47 = vmul.f32 %v13170_v59, %v10846_v37  ;;  %v2884_v8 = vmul.f32 %v13166_v10, %v10866_v36  ;;  %2835 = vst.msk [vmem:[#allocation2 + $0x70] sm:$0xff] %vm385_vm0, %v10932_v43  ;;  %9164 = vpow2.f32 %v7391_v31  ;;  %v7392_v13 = vmul.f32 -1.442695, %v2537_v57  ;;  %v13178_v31 = vld [vmem:[#allocation49_spill] sm:$0xff] }
 0x610   :  { %v9153_v9 = vpop.eup %9152  ;;  %v2964_v24 = vmul.f32 %v13167_v18, %v10866_v36  ;;  %v2774_v19 = vmul.f32 %v9151_v38, %v13176_v51  ;;  %9166 = vrcp.f32 %v2682_v58  ;;  %v7395_v25 = vmul.f32 -1.442695, %v2552_v27 }
 0x611   :  { %v9155_v4 = vpop.eup %9154  ;;  %v3045_v55 = vmul.f32 %v13168_v16, %v10866_v36  ;;  %v3126_v7 = vmul.f32 %v13170_v59, %v10866_v36  ;;  %v2773_v23 = vmul.f32 %v9153_v9, %v13177_v1  ;;  %9168 = vpow2.f32 %v7390_v62 }
 0x612   :  { %v9157_v53 = vpop.eup %9156  ;;  %v2806_v15 = vadd.f32 %v9484_v48, %v2774_v19  ;;  %v2776_v33 = vmul.f32 %v9155_v4, %v13178_v31  ;;  %9170 = vpow2.f32 %v7393_v54  ;;  %v2547_v57 = vadd.f32 %v10369_v61, %v10765_v42 }
 0x613   :  { %v2805_v27 = vadd.f32 %v9485_v28, %v2773_v23  ;;  %9172 = vpow2.f32 %v7392_v13  ;;  %v2562_v2 = vadd.f32 %v10787_v40, %v10369_v61  ;;  %v2557_v58 = vadd.f32 %v10369_v61, %v10796_v21 }
 0x614   :  { %v9159_v38 = vpop.eup %9158  ;;  %2838 = vst.msk [vmem:[#allocation2 + $0x88] sm:$0xff] %vm385_vm0, %v2806_v15  ;;  %v2885_v62 = vadd.f32 %v2881_v63, %v10856_v30  ;;  %v10964_v9 = vadd.f32 %v2961_v46, %v10859_v35  ;;  %v2681_v54 = vadd.f32 1.0, %v9157_v53  ;;  %9174 = vpow2.f32 %v7395_v25  ;;  %v13181_v25 = vld [vmem:[#allocation30_spill] sm:$0xff] }
 0x615   :  { %v9161_v42 = vpop.eup %9160  ;;  %2837 = vst.msk [vmem:[#allocation2 + $0x80] sm:$0xff] %vm385_vm0, %v2805_v27  ;;  %v10968_v13 = vadd.f32 %v3042_v29, %v10862_v60  ;;  %v10971_v40 = vadd.f32 %v3123_v47, %v10868_v45  ;;  %v10974_v61 = vadd.f32 %v2884_v8, %v10870_v6  ;;  %v10977_v21 = vadd.f32 %v2964_v24, %v10872_v56  ;;  %v13179_v6 = vld [vmem:[#allocation29_spill] sm:$0xff]  ;;  %v13180_v24 = vld [vmem:[#allocation19_spill] sm:$0xff] }
 0x616   :  { %v2883_v30 = vmul.f32 %v13166_v10, %v10932_v43  ;;  %v10982_v35 = vadd.f32 %v3045_v55, %v10874_v20  ;;  %v10985_v63 = vadd.f32 %v3126_v7, %v10882_v26  ;;  %v10987_v60 = vmul.f32 -1.442695, %v2547_v57  ;;  %v9486_v8 = vld [vmem:[#allocation2 + $0x98] sm:$0xff]  ;;  %v9487_v57 = vld [vmem:[#allocation2 + $0x90] sm:$0xff] }
 0x617   :  { %v9163_v46 = vpop.eup %9162  ;;  %v2963_v45 = vmul.f32 %v13167_v18, %v10932_v43  ;;  %v2892_v29 = vmul.f32 %v13179_v6, %v2806_v15  ;;  %v10992_v47 = vmul.f32 -1.442695, %v2562_v2  ;;  %v10994_v56 = vmul.f32 -1.442695, %v2557_v58  ;;  %v13182_v18 = vld [vmem:[#allocation31_spill] sm:$0xff]  ;;  %v13183_v7 = vld [vmem:[#allocation33_spill] sm:$0xff] }
 0x618   :  { %v2808_v10 = vadd.f32 %v9486_v8, %v2776_v33  ;;  %v2775_v20 = vmul.f32 %v9161_v42, %v13180_v24  ;;  %9176 = vrcp.f32 %v2681_v54  ;;  %v2684_v51 = vadd.f32 1.0, %v9159_v38 }
 0x619   :  { %v9165_v26 = vpop.eup %9164  ;;  %v10999_v19 = vmul.f32 %v13168_v16, %v10932_v43  ;;  %v2972_v4 = vmul.f32 %v13181_v25, %v2806_v15  ;;  %v3053_v55 = vmul.f32 %v13182_v18, %v2806_v15  ;;  %v3134_v1 = vmul.f32 %v13183_v7, %v2806_v15  ;;  %v13184_v15 = vld [vmem:[#allocation21_spill] sm:$0xff] }
 0x61a   :  { %v9167_v23 = vpop.eup %9166  ;;  %v11006_v53 = vmul.f32 %v13170_v59, %v10932_v43  ;;  %v2891_v48 = vmul.f32 %v13179_v6, %v2805_v27  ;;  %2840 = vst.msk [vmem:[#allocation2 + $0x98] sm:$0xff] %vm385_vm0, %v2808_v10  ;;  %v11011_v31 = vadd.f32 %v2883_v30, %v10901_v12  ;;  %v2683_v16 = vadd.f32 1.0, %v9163_v46 }
 0x61b   :  { %v9169_v33 = vpop.eup %9168  ;;  %v11013_v28 = vadd.f32 %v9487_v57, %v2775_v20  ;;  %v11016_v2 = vadd.f32 %v2963_v45, %v10904_v32  ;;  %v2778_v58 = vmul.f32 %v9167_v23, %v13184_v15  ;;  %9178 = vrcp.f32 %v2684_v51 }
 0x61c   :  { %v9171_v59 = vpop.eup %9170  ;;  %v2896_v38 = vadd.f32 %v2892_v29, %v10912_v11  ;;  %v2971_v54 = vmul.f32 %v13181_v25, %v2805_v27  ;;  %v3052_v42 = vmul.f32 %v13182_v18, %v2805_v27  ;;  %v3133_v12 = vmul.f32 %v13183_v7, %v2805_v27  ;;  %v9488_v11 = vld [vmem:[#allocation2 + $0xa8] sm:$0xff] }
 0x61d   :  { %v9173_v30 = vpop.eup %9172  ;;  %v2976_v46 = vadd.f32 %v2972_v4, %v10914_v49  ;;  %v3057_v8 = vadd.f32 %v3053_v55, %v10922_v5  ;;  %v3138_v32 = vadd.f32 %v3134_v1, %v10925_v39  ;;  %2839 = vst.msk [vmem:[#allocation2 + $0x90] sm:$0xff] %vm385_vm0, %v11013_v28  ;;  %v2686_v45 = vadd.f32 1.0, %v9165_v26  ;;  %v13185_v5 = vld [vmem:[#allocation35_spill] sm:$0xff]  ;;  %v13186_v55 = vld [vmem:[#allocation36_spill] sm:$0xff]  ;;  %v13187_v26 = vld [vmem:[#allocation37_spill] sm:$0xff] }
 0x61e   :  { %v9175_v24 = vpop.eup %9174  ;;  %v2895_v20 = vadd.f32 %v2891_v48, %v2885_v62  ;;  %v2810_v29 = vadd.f32 %v9488_v11, %v2778_v58  ;;  %9180 = vrcp.f32 %v2683_v16  ;;  %v2685_v51 = vadd.f32 1.0, %v9169_v33  ;;  %v13188_v62 = vld [vmem:[#allocation38_spill] sm:$0xff] }
 0x61f   :  { %v2894_v23 = vmul.f32 %v13179_v6, %v2808_v10  ;;  %v2974_v27 = vmul.f32 %v13181_v25, %v2808_v10  ;;  %v3055_v49 = vmul.f32 %v13182_v18, %v2808_v10  ;;  %v2688_v4 = vadd.f32 1.0, %v9171_v59 }
 0x620   :  { %2842 = vst.msk [vmem:[#allocation2 + $0xa8] sm:$0xff] %vm385_vm0, %v2810_v29  ;;  %v2902_v39 = vmul.f32 %v13185_v5, %v2810_v29  ;;  %v2982_v1 = vmul.f32 %v13186_v55, %v2810_v29  ;;  %v3063_v57 = vmul.f32 %v13187_v26, %v2810_v29  ;;  %v3144_v48 = vmul.f32 %v13188_v62, %v2810_v29 }
 0x621   :  { %v3136_v16 = vmul.f32 %v13183_v7, %v2808_v10  ;;  %9182 = vrcp.f32 %v2686_v45  ;;  %v2687_v33 = vadd.f32 1.0, %v9173_v30  ;;  %v2690_v15 = vadd.f32 1.0, %v9175_v24  ;;  %v9489_v45 = vld [vmem:[#allocation2 + $0xa0] sm:$0xff] }
 0x622   :  { %v9177_v58 = vpop.eup %9176  ;;  %v11037_v11 = vadd.f32 %v2902_v39, %v2896_v38  ;;  %v11039_v43 = vadd.f32 %v2982_v1, %v2976_v46  ;;  %v11041_v59 = vadd.f32 %v3063_v57, %v3057_v8  ;;  %v11043_v36 = vadd.f32 %v3144_v48, %v3138_v32 }
 0x623   :  { %v2975_v37 = vadd.f32 %v2971_v54, %v10964_v9  ;;  %v3056_v17 = vadd.f32 %v3052_v42, %v10968_v13  ;;  %v2777_v29 = vmul.f32 %v9177_v58, %v13189_v3  ;;  %9184 = vrcp.f32 %v2685_v51  ;;  %v13190_v13 = vld [vmem:[#allocation23_spill] sm:$0xff]  ;;  %v9490_v42 = vld [vmem:[#allocation2 + $0xb8] sm:$0xff] }
 0x624   :  { %v3137_v10 = vadd.f32 %v3133_v12, %v10971_v40  ;;  %v2898_v30 = vadd.f32 %v2894_v23, %v10974_v61  ;;  %v2978_v38 = vadd.f32 %v2974_v27, %v10977_v21  ;;  %9186 = vrcp.f32 %v2688_v4 }
 0x625   :  { %v9179_v46 = vpop.eup %9178  ;;  %v3059_v8 = vadd.f32 %v3055_v49, %v10982_v35  ;;  %v3140_v32 = vadd.f32 %v3136_v16, %v10985_v63  ;;  %v2809_v24 = vadd.f32 %v9489_v45, %v2777_v29  ;;  %9188 = vrcp.f32 %v2687_v33 }
 0x626   :  { %v2893_v9 = vmul.f32 %v13179_v6, %v11013_v28  ;;  %v2973_v3 = vmul.f32 %v13181_v25, %v11013_v28  ;;  %v2780_v40 = vmul.f32 %v9179_v46, %v13190_v13  ;;  %9190 = vrcp.f32 %v2690_v15  ;;  %v13194_v13 = vld [vmem:[#allocation14_spill] sm:$0xff] }
 0x627   :  { %2841 = vst.msk [vmem:[#allocation2 + $0xa0] sm:$0xff] %vm385_vm0, %v2809_v24  ;;  %v2901_v61 = vmul.f32 %v13185_v5, %v2809_v24  ;;  %v2981_v21 = vmul.f32 %v13186_v55, %v2809_v24  ;;  %v3062_v35 = vmul.f32 %v13187_v26, %v2809_v24  ;;  %v3143_v63 = vmul.f32 %v13188_v62, %v2809_v24  ;;  %v9492_v24 = vld [vmem:[#allocation2 + $0xc8] sm:$0xff] }
 0x628   :  { %v9181_v54 = vpop.eup %9180  ;;  %v3054_v6 = vmul.f32 %v13182_v18, %v11013_v28  ;;  %v3135_v25 = vmul.f32 %v13183_v7, %v11013_v28  ;;  %v2812_v12 = vadd.f32 %v9490_v42, %v2780_v40  ;;  %9192 = vpow2.f32 %v10987_v60  ;;  %v13198_v42 = vld [vmem:[#allocation45_spill] sm:$0xff] }
 0x629   :  { %v11068_v51 = vadd.f32 %v2901_v61, %v2895_v20  ;;  %v11070_v23 = vadd.f32 %v2981_v21, %v2975_v37  ;;  %v11072_v27 = vadd.f32 %v3062_v35, %v3056_v17  ;;  %v11074_v49 = vadd.f32 %v3143_v63, %v3137_v10  ;;  %v13191_v37 = vld [vmem:[#allocation24_spill] sm:$0xff]  ;;  %v13195_v61 = vld [vmem:[#allocation15_spill] sm:$0xff] }
 0x62a   :  { %2844 = vst.msk [vmem:[#allocation2 + $0xb8] sm:$0xff] %vm385_vm0, %v2812_v12  ;;  %v2904_v4 = vmul.f32 %v13185_v5, %v2812_v12  ;;  %v2984_v18 = vmul.f32 %v13186_v55, %v2812_v12  ;;  %v3065_v7 = vmul.f32 %v13187_v26, %v2812_v12  ;;  %v3146_v28 = vmul.f32 %v13188_v62, %v2812_v12 }
 0x62b   :  { %v9183_v39 = vpop.eup %9182  ;;  %v3048_v60 = vadd.f32 %v10999_v19, %v10907_v34  ;;  %v3129_v17 = vadd.f32 %v11006_v53, %v10928_v0  ;;  %v2779_v20 = vmul.f32 %v9181_v54, %v13191_v37  ;;  %9194 = vpow2.f32 %v10992_v47  ;;  %v9491_v19 = vld [vmem:[#allocation2 + $0xb0] sm:$0xff] }
 0x62c   :  { %v11087_v1 = vadd.f32 %v2904_v4, %v2898_v30  ;;  %v11089_v57 = vadd.f32 %v2984_v18, %v2978_v38  ;;  %v11091_v48 = vadd.f32 %v3065_v7, %v3059_v8  ;;  %v11093_v16 = vadd.f32 %v3146_v28, %v3140_v32  ;;  %v13192_v0 = vld [vmem:[#allocation12_spill] sm:$0xff]  ;;  %v13193_v30 = vld [vmem:[#allocation13_spill] sm:$0xff]  ;;  %v13199_v4 = vld [vmem:[#allocation46_spill] sm:$0xff] }
 0x62d   :  { %v9185_v33 = vpop.eup %9184  ;;  %v2897_v15 = vadd.f32 %v2893_v9, %v11011_v31  ;;  %v2977_v34 = vadd.f32 %v2973_v3, %v11016_v2  ;;  %v2811_v58 = vadd.f32 %v9491_v19, %v2779_v20  ;;  %v2782_v53 = vmul.f32 %v9183_v39, %v13192_v0  ;;  %v9493_v3 = vld [vmem:[#allocation2 + $0xc0] sm:$0xff] }
 0x62e   :  { %v9187_v29 = vpop.eup %9186  ;;  %v3058_v10 = vadd.f32 %v3054_v6, %v3048_v60  ;;  %v3139_v47 = vadd.f32 %v3135_v25, %v3129_v17  ;;  %v2781_v46 = vmul.f32 %v9185_v33, %v13193_v30  ;;  %9196 = vpow2.f32 %v10994_v56  ;;  %v13197_v6 = vld [vmem:[#allocation44_spill] sm:$0xff] }
 0x62f   :  { %v9189_v38 = vpop.eup %9188  ;;  %2843 = vst.msk [vmem:[#allocation2 + $0xb0] sm:$0xff] %vm385_vm0, %v2811_v58  ;;  %v2903_v31 = vmul.f32 %v13185_v5, %v2811_v58  ;;  %v2983_v2 = vmul.f32 %v13186_v55, %v2811_v58  ;;  %v3064_v8 = vmul.f32 %v13187_v26, %v2811_v58  ;;  %v3145_v32 = vmul.f32 %v13188_v62, %v2811_v58  ;;  %v13196_v62 = vld [vmem:[#allocation43_spill] sm:$0xff] }
 0x630   :  { %v9191_v45 = vpop.eup %9190  ;;  %v2814_v9 = vadd.f32 %v9492_v24, %v2782_v53  ;;  %v2813_v56 = vadd.f32 %v9493_v3, %v2781_v46  ;;  %v2784_v40 = vmul.f32 %v9187_v29, %v13194_v13  ;;  %v2783_v21 = vmul.f32 %v9189_v38, %v13195_v61 }
 0x631   :  { %v2907_v5 = vadd.f32 %v2903_v31, %v2897_v15  ;;  %v2987_v35 = vadd.f32 %v2983_v2, %v2977_v34  ;;  %v3068_v55 = vadd.f32 %v3064_v8, %v3058_v10  ;;  %v3149_v63 = vadd.f32 %v3145_v32, %v3139_v47 }
 0x632   :  { %v9193_v26 = vpop.eup %9192  ;;  %2846 = vst.msk [vmem:[#allocation2 + $0xc8] sm:$0xff] %vm385_vm0, %v2814_v9  ;;  %v2912_v54 = vmul.f32 %v13196_v62, %v2814_v9  ;;  %v2992_v25 = vmul.f32 %v13197_v6, %v2814_v9  ;;  %v3073_v12 = vmul.f32 %v13198_v42, %v2814_v9  ;;  %v3154_v18 = vmul.f32 %v13199_v4, %v2814_v9 }
 0x633   :  { %2845 = vst.msk [vmem:[#allocation2 + $0xc0] sm:$0xff] %vm385_vm0, %v2813_v56  ;;  %v2911_v7 = vmul.f32 %v13196_v62, %v2813_v56  ;;  %v2991_v28 = vmul.f32 %v13197_v6, %v2813_v56  ;;  %v3072_v39 = vmul.f32 %v13198_v42, %v2813_v56  ;;  %v3153_v60 = vmul.f32 %v13199_v4, %v2813_v56 }
 0x634   :  { %v2916_v17 = vadd.f32 %v2912_v54, %v11037_v11  ;;  %v2996_v37 = vadd.f32 %v2992_v25, %v11039_v43  ;;  %v3077_v20 = vadd.f32 %v3073_v12, %v11041_v59  ;;  %v3158_v33 = vadd.f32 %v3154_v18, %v11043_v36  ;;  %v9494_v11 = vld [vmem:[#allocation2 + $0xd8] sm:$0xff]  ;;  %v9495_v43 = vld [vmem:[#allocation2 + $0xd0] sm:$0xff] }
 0x635   :  { %v9195_v15 = vpop.eup %9194  ;;  %v11128_v34 = vadd.f32 %v2911_v7, %v11068_v51  ;;  %v11131_v19 = vadd.f32 %v2991_v28, %v11070_v23  ;;  %v11134_v58 = vadd.f32 %v3072_v39, %v11072_v27  ;;  %v11137_v0 = vadd.f32 %v3153_v60, %v11074_v49  ;;  %v13200_v59 = vld [vmem:[#allocation16_spill] sm:$0xff]  ;;  %v13202_v12 = vld [vmem:[#allocation17_spill] sm:$0xff]  ;;  %v13203_v18 = vld [vmem:[#allocation18_spill] sm:$0xff] }
 0x636   :  { %v2816_v53 = vadd.f32 %v9494_v11, %v2784_v40  ;;  %v2815_v29 = vadd.f32 %v9495_v43, %v2783_v21  ;;  %v2786_v10 = vmul.f32 %v9191_v45, %v13200_v59  ;;  %v11141_v36 = vstv %s11099_s30  ;;  %v9497_v39 = vld [vmem:[#allocation2 + $0xe0] sm:$0xff]  ;;  %s11834_s30 = sld [smem:[#allocation7 + $0x2d]] }
 0x637   :  { %v11144_v47 = vstv %s11107_s18  ;;  %v11147_v51 = vstv %s11109_s19  ;;  %v2689_v23 = vadd.f32 1.0, %v9193_v26  ;;  %v2692_v30 = vadd.f32 1.0, %v9195_v15  ;;  %v9496_v26 = vld [vmem:[#allocation2 + $0xe8] sm:$0xff]  ;;  %s11746_s18 = sld [smem:[#allocation7 + $0x20]] }
 0x638   :  { %v9197_v46 = vpop.eup %9196  ;;  %2848 = vst.msk [vmem:[#allocation2 + $0xd8] sm:$0xff] %vm385_vm0, %v2816_v53  ;;  %v2914_v27 = vmul.f32 %v13196_v62, %v2816_v53  ;;  %v2994_v49 = vmul.f32 %v13197_v6, %v2816_v53  ;;  %v3075_v38 = vmul.f32 %v13198_v42, %v2816_v53  ;;  %v3156_v31 = vmul.f32 %v13199_v4, %v2816_v53  ;;  %s11749_s19 = sld [smem:[#allocation7 + $0x28]] }
 0x639   :  { %2847 = vst.msk [vmem:[#allocation2 + $0xd0] sm:$0xff] %vm385_vm0, %v2815_v29  ;;  %v2913_v2 = vmul.f32 %v13196_v62, %v2815_v29  ;;  %v2993_v8 = vmul.f32 %v13197_v6, %v2815_v29  ;;  %v3074_v32 = vmul.f32 %v13198_v42, %v2815_v29  ;;  %v3155_v45 = vmul.f32 %v13199_v4, %v2815_v29 }
 0x63a   :  { %v2918_v24 = vadd.f32 %v2914_v27, %v11087_v1  ;;  %v2998_v9 = vadd.f32 %v2994_v49, %v11089_v57  ;;  %v3079_v3 = vadd.f32 %v3075_v38, %v11091_v48  ;;  %v3160_v56 = vadd.f32 %v3156_v31, %v11093_v16  ;;  %v13201_v1 = vld [vmem:[#allocation51_spill] sm:$0xff] }
 0x63b   :  { %v11163_v13 = vadd.f32 %v2913_v2, %v2907_v5  ;;  %v11165_v40 = vadd.f32 %v2993_v8, %v2987_v35  ;;  %v11167_v61 = vadd.f32 %v3074_v32, %v3068_v55  ;;  %v11169_v21 = vadd.f32 %v3155_v45, %v3149_v63  ;;  %v9499_v32 = vld [vmem:[#allocation2 + $0xf0] sm:$0xff] }
 0x63c   :  { %v2818_v62 = vadd.f32 %v9496_v26, %v2786_v10  ;;  %9198 = vrcp.f32 %v2689_v23  ;;  %v2691_v54 = vadd.f32 1.0, %v9197_v46 }
 0x63d   :  { %9200 = vrcp.f32 %v2692_v30 }
 0x63e   :  { %2850 = vst.msk [vmem:[#allocation2 + $0xe8] sm:$0xff] %vm385_vm0, %v2818_v62  ;;  %v2922_v57 = vmul.f32 %v13201_v1, %v2818_v62  ;;  %v3002_v48 = vmul.f32 %v11141_v36, %v2818_v62  ;;  %v3083_v16 = vmul.f32 %v11144_v47, %v2818_v62  ;;  %v3164_v5 = vmul.f32 %v11147_v51, %v2818_v62 }
 0x63f   :  { %9202 = vrcp.f32 %v2691_v54 }
 0x640   :  { %v2926_v35 = vadd.f32 %v2922_v57, %v2916_v17  ;;  %v3006_v55 = vadd.f32 %v3002_v48, %v2996_v37  ;;  %v3087_v63 = vadd.f32 %v3083_v16, %v3077_v20  ;;  %v3168_v6 = vadd.f32 %v3164_v5, %v3158_v33  ;;  %v9498_v17 = vld [vmem:[#allocation2 + $0xf8] sm:$0xff]  ;;  %v13204_v20 = vld [vmem:[#allocation20_spill] sm:$0xff] }
 0x642   :  { %2930 = vst.msk [vmem:[#allocation3 + $0x8] sm:$0xff] %vm385_vm0, %v2926_v35  ;;  %3011 = vst.msk [vmem:[#allocation3 + $0x28] sm:$0xff] %vm385_vm0, %v3006_v55  ;;  %v7485_v55 = vld [vmem:[%s13036_s6 + $0x20] sm:$0xff] }
 0x643   :  { %3092 = vst.msk [vmem:[#allocation3 + $0x48] sm:$0xff] %vm385_vm0, %v3087_v63  ;;  %3173 = vst.msk [vmem:[#allocation3 + $0x68] sm:$0xff] %vm385_vm0, %v3168_v6  ;;  %v7486_v63 = vld [vmem:[%s13036_s6 + $0x28] sm:$0xff] }
 0x644   :  { %v8941_v6 = vpack.c.bf16 %v7486_v63, %v7485_v55 }
 0x646   :  { %v9199_v25 = vpop.eup %9198  ;;  %8942 = vmatprep.subr.bf16.mxu1 %v8941_v6 }
 0x647   :  { %v9201_v42 = vpop.eup %9200  ;;  %v2785_v4 = vmul.f32 %v9199_v25, %v13202_v12  ;;  %v7487_v25 = vld [vmem:[%s13036_s6 + $0x30] sm:$0xff] }
 0x648   :  { %v2788_v7 = vmul.f32 %v9201_v42, %v13203_v18  ;;  %v7488_v42 = vld [vmem:[%s13036_s6 + $0x38] sm:$0xff]  ;;  %v7480_v18 = vld [vmem:[%s13035_s5 + $0x28] sm:$0xff]  ;;  %s11832_s6 = sld [smem:[#allocation7 + $0x25]] }
 0x649   :  { %v9203_v28 = vpop.eup %9202  ;;  %v2817_v60 = vadd.f32 %v9497_v39, %v2785_v4  ;;  %v8945_v12 = vpack.c.bf16 %v7488_v42, %v7487_v25  ;;  %v7479_v4 = vld [vmem:[%s13035_s5 + $0x20] sm:$0xff]  ;;  %v7482_v39 = vld [vmem:[%s13035_s5 + $0x38] sm:$0xff] }
 0x64a   :  { %v2820_v37 = vadd.f32 %v9498_v17, %v2788_v7  ;;  %v2787_v33 = vmul.f32 %v9203_v28, %v13204_v20  ;;  %v3185_v54 = vld [vmem:[#allocation3 + $0x48] sm:$0xff]  ;;  %v7481_v7 = vld [vmem:[%s13035_s5 + $0x30] sm:$0xff]  ;;  %v8933_v28 = vpack.c.bf16 %v7480_v18, %v7479_v4  ;;  %v11277_v17 = vld [vmem:[%s13044_s14] ss:$0 sm:$0xff]  ;;  %s11850_s5 = sld [smem:[#allocation7 + $0x35]] }
 0x64b   :  { %2849 = vst.msk [vmem:[#allocation2 + $0xe0] sm:$0xff] %vm385_vm0, %v2817_v60  ;;  %v2921_v15 = vmul.f32 %v13201_v1, %v2817_v60  ;;  %v3001_v11 = vmul.f32 %v11141_v36, %v2817_v60  ;;  %v3082_v53 = vmul.f32 %v11144_v47, %v2817_v60  ;;  %v3163_v43 = vmul.f32 %v11147_v51, %v2817_v60  ;;  %v3189_v16 = vld [vmem:[#allocation3 + $0x68] sm:$0xff] }
 0x64c   :  { %2852 = vst.msk [vmem:[#allocation2 + $0xf8] sm:$0xff] %vm385_vm0, %v2820_v37  ;;  %v2924_v29 = vmul.f32 %v13201_v1, %v2820_v37  ;;  %v3004_v59 = vmul.f32 %v11141_v36, %v2820_v37  ;;  %v3085_v10 = vmul.f32 %v11144_v47, %v2820_v37  ;;  %v3166_v23 = vmul.f32 %v11147_v51, %v2820_v37 }
 0x64d   :  { %v2925_v30 = vadd.f32 %v2921_v15, %v11128_v34  ;;  %v3005_v46 = vadd.f32 %v3001_v11, %v11131_v19  ;;  %v3086_v27 = vadd.f32 %v3082_v53, %v11134_v58  ;;  %v3167_v49 = vadd.f32 %v3163_v43, %v11137_v0  ;;  %8934 = vmatprep.subr.bf16.mxu0 %v8933_v28 }
 0x64e   :  { %v2928_v38 = vadd.f32 %v2924_v29, %v2918_v24  ;;  %v3008_v31 = vadd.f32 %v3004_v59, %v2998_v9  ;;  %v3089_v2 = vadd.f32 %v3085_v10, %v3079_v3  ;;  %v3170_v8 = vadd.f32 %v3166_v23, %v3160_v56 }
 0x64f   :  { %2929 = vst.msk [vmem:[#allocation3] sm:$0xff] %vm385_vm0, %v2925_v30  ;;  %3010 = vst.msk [vmem:[#allocation3 + $0x20] sm:$0xff] %vm385_vm0, %v3005_v46  ;;  %v2819_v34 = vadd.f32 %v9499_v32, %v2787_v33  ;;  %v8937_v60 = vpack.c.bf16 %v7482_v39, %v7481_v7  ;;  %v11317_v7 = vld [vmem:[%s13042_s12] ss:$0 sm:$0xff] }
 0x650   :  { %3091 = vst.msk [vmem:[#allocation3 + $0x40] sm:$0xff] %vm385_vm0, %v3086_v27  ;;  %3172 = vst.msk [vmem:[#allocation3 + $0x60] sm:$0xff] %vm385_vm0, %v3167_v49 }
 0x651   :  { %2932 = vst.msk [vmem:[#allocation3 + $0x18] sm:$0xff] %vm385_vm0, %v2928_v38  ;;  %3013 = vst.msk [vmem:[#allocation3 + $0x38] sm:$0xff] %vm385_vm0, %v3008_v31  ;;  %v2923_v19 = vmul.f32 %v13201_v1, %v2819_v34  ;;  %v3003_v58 = vmul.f32 %v11141_v36, %v2819_v34  ;;  %v3084_v0 = vmul.f32 %v11144_v47, %v2819_v34  ;;  %v3177_v47 = vld [vmem:[#allocation3 + $0x8] sm:$0xff] }
 0x652   :  { %3094 = vst.msk [vmem:[#allocation3 + $0x58] sm:$0xff] %vm385_vm0, %v3089_v2  ;;  %3175 = vst.msk [vmem:[#allocation3 + $0x78] sm:$0xff] %vm385_vm0, %v3170_v8  ;;  %v3165_v45 = vmul.f32 %v11147_v51, %v2819_v34 }
 0x653   :  { %2851 = vst.msk [vmem:[#allocation2 + $0xf0] sm:$0xff] %vm385_vm0, %v2819_v34  ;;  %v2927_v24 = vadd.f32 %v2923_v19, %v11163_v13  ;;  %v3007_v9 = vadd.f32 %v3003_v58, %v11165_v40  ;;  %v3088_v3 = vadd.f32 %v3084_v0, %v11167_v61  ;;  %v3181_v61 = vld [vmem:[#allocation3 + $0x28] sm:$0xff] }
 0x654   :  { %v3169_v56 = vadd.f32 %v3165_v45, %v11169_v21 }
 0x655   :  { %2931 = vst.msk [vmem:[#allocation3 + $0x10] sm:$0xff] %vm385_vm0, %v2927_v24  ;;  %3012 = vst.msk [vmem:[#allocation3 + $0x30] sm:$0xff] %vm385_vm0, %v3007_v9 }
 0x656   :  { %3093 = vst.msk [vmem:[#allocation3 + $0x50] sm:$0xff] %vm385_vm0, %v3088_v3  ;;  %3174 = vst.msk [vmem:[#allocation3 + $0x70] sm:$0xff] %vm385_vm0, %v3169_v56  ;;  %v3176_v36 = vld [vmem:[#allocation3] sm:$0xff] }
 0x657   :  { %8410 = vmatprep.mubr.msk.f32.mxu0 %vm385_vm0, %v3176_v36  ;;  %8442 = vmatprep.mubr.msk.f32.mxu1 %vm385_vm0, %v3176_v36  ;;  %v3180_v40 = vld [vmem:[#allocation3 + $0x20] sm:$0xff] }
 0x658   :  { %8411 = vmatmul.mubr.msk.f32.vlgmr.msra.gmra.mrb[42].mxu0 %vm385_vm0, %v3177_v47  ;;  %8443 = vmatmul.mubr.msk.f32.vlgmr.msra.gmra.mrb[60].mxu1 %vm385_vm0, %v3177_v47  ;;  %v3179_v13 = vld [vmem:[#allocation3 + $0x18] sm:$0xff]  ;;  %v3184_v62 = vld [vmem:[#allocation3 + $0x40] sm:$0xff] }
 0x659   :  { %v3183_v26 = vld [vmem:[#allocation3 + $0x38] sm:$0xff]  ;;  %v3188_v48 = vld [vmem:[#allocation3 + $0x60] sm:$0xff]  ;;  %8944 = vmatpush3.bf16.msra.mxu1 %v8941_v6  ;;  %8936 = vmatpush3.bf16.msra.mxu0 %v8933_v28 }
 0x65a   :  { %v3187_v57 = vld [vmem:[#allocation3 + $0x58] sm:$0xff]  ;;  %8946 = vmatprep.subr.bf16.mxu1 %v8945_v12  ;;  %8938 = vmatprep.subr.bf16.mxu0 %v8937_v60 }
 0x65b   :  { %v3191_v35 = vld [vmem:[#allocation3 + $0x78] sm:$0xff] }
 0x65c   :  { %v3178_v51 = vld [vmem:[#allocation3 + $0x10] sm:$0xff] }
 0x65d   :  { %8413 = vmatprep.mubr.msk.f32.mxu0 %vm385_vm0, %v3178_v51  ;;  %8445 = vmatprep.mubr.msk.f32.mxu1 %vm385_vm0, %v3178_v51  ;;  %v3182_v21 = vld [vmem:[#allocation3 + $0x30] sm:$0xff] }
 0x65e   :  { %8414 = vmatmul.mubr.msk.f32.gmra.mrb[44].mxu0 %vm385_vm0, %v3179_v13  ;;  %8446 = vmatmul.mubr.msk.f32.gmra.mrb[62].mxu1 %vm385_vm0, %v3179_v13  ;;  %v3186_v1 = vld [vmem:[#allocation3 + $0x50] sm:$0xff] }
 0x65f   :  { %8416 = vmatprep.mubr.msk.f32.mxu0 %vm385_vm0, %v3180_v40  ;;  %8448 = vmatprep.mubr.msk.f32.mxu1 %vm385_vm0, %v3180_v40  ;;  %v3190_v5 = vld [vmem:[#allocation3 + $0x70] sm:$0xff] }
 0x660   :  { %8948 = vmatpush3.bf16.msra.mxu1 %v8945_v12  ;;  %8940 = vmatpush3.bf16.msra.mxu0 %v8937_v60 }
 0x662   :  { %8417 = vmatmul.mubr.msk.f32.gmra.mrb[46].mxu0 %vm385_vm0, %v3181_v61  ;;  %8449 = vmatmul.mubr.msk.f32.gmra.mrb[64].mxu1 %vm385_vm0, %v3181_v61 }
 0x663   :  { %8419 = vmatprep.mubr.msk.f32.mxu0 %vm385_vm0, %v3182_v21  ;;  %8451 = vmatprep.mubr.msk.f32.mxu1 %vm385_vm0, %v3182_v21 }
 0x666   :  { %8420 = vmatmul.mubr.msk.f32.gmra.mrb[48].mxu0 %vm385_vm0, %v3183_v26  ;;  %8452 = vmatmul.mubr.msk.f32.gmra.mrb[66].mxu1 %vm385_vm0, %v3183_v26 }
 0x667   :  { %8422 = vmatprep.mubr.msk.f32.mxu0 %vm385_vm0, %v3184_v62  ;;  %8454 = vmatprep.mubr.msk.f32.mxu1 %vm385_vm0, %v3184_v62 }
 0x66a   :  { %8423 = vmatmul.mubr.msk.f32.gmra.mrb[50].mxu0 %vm385_vm0, %v3185_v54  ;;  %8455 = vmatmul.mubr.msk.f32.gmra.mrb[68].mxu1 %vm385_vm0, %v3185_v54 }
 0x66b   :  { %8425 = vmatprep.mubr.msk.f32.mxu0 %vm385_vm0, %v3186_v1  ;;  %8457 = vmatprep.mubr.msk.f32.mxu1 %vm385_vm0, %v3186_v1 }
 0x66e   :  { %8426 = vmatmul.mubr.msk.f32.gmra.mrb[52].mxu0 %vm385_vm0, %v3187_v57  ;;  %8458 = vmatmul.mubr.msk.f32.gmra.mrb[70].mxu1 %vm385_vm0, %v3187_v57 }
 0x66f   :  { %8428 = vmatprep.mubr.msk.f32.mxu0 %vm385_vm0, %v3188_v48  ;;  %8460 = vmatprep.mubr.msk.f32.mxu1 %vm385_vm0, %v3188_v48 }
 0x672   :  { %8429 = vmatmul.mubr.msk.f32.gmra.mrb[54].mxu0 %vm385_vm0, %v3189_v16  ;;  %8461 = vmatmul.mubr.msk.f32.gmra.mrb[72].mxu1 %vm385_vm0, %v3189_v16 }
 0x673   :  { %8431 = vmatprep.mubr.msk.f32.mxu0 %vm385_vm0, %v3190_v5  ;;  %8463 = vmatprep.mubr.msk.f32.mxu1 %vm385_vm0, %v3190_v5 }
 0x676   :  { %8432 = vmatmul.mubr.msk.f32.gmra.mrb[56].mxu0 %vm385_vm0, %v3191_v35  ;;  %8464 = vmatmul.mubr.msk.f32.gmra.mrb[74].mxu1 %vm385_vm0, %v3191_v35 }
 0x72b   :  { %v11279_v37 = vpop.f32.mrb[42].mxu0  ;;  %v8444_v20 = vpop.f32.mrb[60].mxu1 }
 0x72c   :  { %v3479_v33 = vadd.f32 %v8444_v20, %v11277_v17  ;;  %v11282_v15 = vpop.f32.mrb[43].mxu0  ;;  %v3473_v11 = vpop.f32.mrb[61].mxu1 }
 0x72d   :  { %v3474_v53 = vadd.f32 %v11277_v17, %v3473_v11 }
 0x72e   :  { %v7464_v43 = vmul.f32 -1.442695, %v3479_v33 }
 0x72f   :  { %v7463_v29 = vmul.f32 -1.442695, %v3474_v53 }
 0x730   :  { %9204 = vpow2.f32 %v7464_v43 }
 0x731   :  { %9206 = vpow2.f32 %v7463_v29  ;;  %v11285_v59 = vpop.f32.mrb[44].mxu0  ;;  %v8447_v10 = vpop.f32.mrb[62].mxu1  ;;  %v3323_v29 = vadd.f32 %v11279_v37, %v11317_v7 }
 0x732   :  { %v3489_v23 = vadd.f32 %v8447_v10, %v11277_v17  ;;  %v11288_v30 = vpop.f32.mrb[45].mxu0  ;;  %v3483_v46 = vpop.f32.mrb[63].mxu1 }
 0x733   :  { %v3484_v27 = vadd.f32 %v11277_v17, %v3483_v46 }
 0x734   :  { %v7466_v49 = vmul.f32 -1.442695, %v3489_v23 }
 0x735   :  { %v7465_v38 = vmul.f32 -1.442695, %v3484_v27  ;;  %v11291_v31 = vpop.f32.mrb[46].mxu0  ;;  %v8450_v2 = vpop.f32.mrb[64].mxu1 }
 0x736   :  { %9208 = vpow2.f32 %v7466_v49  ;;  %v3499_v8 = vadd.f32 %v8450_v2, %v11277_v17  ;;  %v11294_v32 = vpop.f32.mrb[47].mxu0  ;;  %v3493_v34 = vpop.f32.mrb[65].mxu1 }
 0x737   :  { %9210 = vpow2.f32 %v7465_v38  ;;  %v3494_v19 = vadd.f32 %v11277_v17, %v3493_v34  ;;  %v3318_v38 = vadd.f32 %v11317_v7, %v11282_v15 }
 0x738   :  { %v7468_v58 = vmul.f32 -1.442695, %v3499_v8 }
 0x739   :  { %v7467_v0 = vmul.f32 -1.442695, %v3494_v19  ;;  %v11297_v45 = vpop.f32.mrb[48].mxu0  ;;  %v8453_v24 = vpop.f32.mrb[66].mxu1 }
 0x73a   :  { %v9205_v9 = vpop.eup %9204  ;;  %9212 = vpow2.f32 %v7468_v58  ;;  %v3509_v3 = vadd.f32 %v8453_v24, %v11277_v17  ;;  %v11300_v56 = vpop.f32.mrb[49].mxu0 }
 0x73b   :  { %v3503_v36 = vpop.f32.mrb[67].mxu1  ;;  %v9207_v47 = vpop.eup %9206  ;;  %v3601_v51 = vadd.f32 1.0, %v9205_v9  ;;  %9214 = vpow2.f32 %v7467_v0 }
 0x73c   :  { %v3504_v13 = vadd.f32 %v11277_v17, %v3503_v36  ;;  %v3600_v40 = vadd.f32 1.0, %v9207_v47  ;;  %v7470_v61 = vmul.f32 -1.442695, %v3509_v3  ;;  %v13205_v36 = vld [vmem:[#allocation32_spill] sm:$0xff] }
 0x73d   :  { %9216 = vrcp.f32 %v3601_v51  ;;  %v11303_v26 = vpop.f32.mrb[50].mxu0  ;;  %v8456_v62 = vpop.f32.mrb[68].mxu1 }
 0x73e   :  { %v7469_v21 = vmul.f32 -1.442695, %v3504_v13  ;;  %9218 = vrcp.f32 %v3600_v40  ;;  %v3519_v54 = vadd.f32 %v8456_v62, %v11277_v17  ;;  %v11306_v1 = vpop.f32.mrb[51].mxu0  ;;  %v3513_v57 = vpop.f32.mrb[69].mxu1  ;;  %v13206_v40 = vld [vmem:[#allocation34_spill] sm:$0xff] }
 0x73f   :  { %9220 = vpow2.f32 %v7470_v61  ;;  %v3514_v48 = vadd.f32 %v11277_v17, %v3513_v57  ;;  %v3333_v57 = vadd.f32 %v11285_v59, %v11317_v7  ;;  %v13207_v59 = vld [vmem:[#allocation39_spill] sm:$0xff] }
 0x740   :  { %v9209_v16 = vpop.eup %9208  ;;  %9222 = vpow2.f32 %v7469_v21  ;;  %v7472_v5 = vmul.f32 -1.442695, %v3519_v54 }
 0x741   :  { %v9211_v35 = vpop.eup %9210  ;;  %v3603_v55 = vadd.f32 1.0, %v9209_v16  ;;  %v7471_v63 = vmul.f32 -1.442695, %v3514_v48  ;;  %v11309_v6 = vpop.f32.mrb[52].mxu0 }
 0x742   :  { %v8459_v25 = vpop.f32.mrb[70].mxu1  ;;  %v3602_v42 = vadd.f32 1.0, %v9211_v35  ;;  %9224 = vpow2.f32 %v7472_v5  ;;  %v11312_v4 = vpop.f32.mrb[53].mxu0  ;;  %v3328_v5 = vadd.f32 %v11317_v7, %v11288_v30 }
 0x743   :  { %v3529_v12 = vadd.f32 %v8459_v25, %v11277_v17  ;;  %v3523_v18 = vpop.f32.mrb[71].mxu1  ;;  %9226 = vrcp.f32 %v3603_v55 }
 0x744   :  { %v3524_v28 = vadd.f32 %v11277_v17, %v3523_v18  ;;  %v9213_v39 = vpop.eup %9212  ;;  %9228 = vrcp.f32 %v3602_v42 }
 0x745   :  { %v7474_v60 = vmul.f32 -1.442695, %v3529_v12  ;;  %v9215_v20 = vpop.eup %9214  ;;  %v3605_v33 = vadd.f32 1.0, %v9213_v39  ;;  %9230 = vpow2.f32 %v7471_v63  ;;  %v11320_v53 = vpop.f32.mrb[54].mxu0 }
 0x746   :  { %v7473_v11 = vmul.f32 -1.442695, %v3524_v28  ;;  %v8462_v43 = vpop.f32.mrb[72].mxu1  ;;  %v3604_v10 = vadd.f32 1.0, %v9215_v20  ;;  %v11325_v46 = vpop.f32.mrb[55].mxu0 }
 0x747   :  { %9232 = vpow2.f32 %v7474_v60  ;;  %v3539_v23 = vadd.f32 %v8462_v43, %v11277_v17  ;;  %v3533_v27 = vpop.f32.mrb[73].mxu1  ;;  %v9217_v49 = vpop.eup %9216 }
 0x748   :  { %9234 = vrcp.f32 %v3605_v33  ;;  %v3534_v2 = vadd.f32 %v11277_v17, %v3533_v27  ;;  %v9219_v8 = vpop.eup %9218  ;;  %v3649_v34 = vmul.f32 %v9217_v49, %v3323_v29  ;;  %v13208_v33 = vld [vmem:[#allocation40_spill] sm:$0xff] }
 0x749   :  { %9236 = vrcp.f32 %v3604_v10  ;;  %v7476_v19 = vmul.f32 -1.442695, %v3539_v23  ;;  %v9221_v58 = vpop.eup %9220  ;;  %v3648_v37 = vmul.f32 %v9219_v8, %v3318_v38  ;;  %v11330_v24 = vpop.f32.mrb[56].mxu0  ;;  %v13209_v38 = vld [vmem:[#allocation42_spill] sm:$0xff] }
 0x74a   :  { %9238 = vpow2.f32 %v7473_v11  ;;  %v7475_v0 = vmul.f32 -1.442695, %v3534_v2  ;;  %v8465_v9 = vpop.f32.mrb[74].mxu1  ;;  %v9223_v3 = vpop.eup %9222  ;;  %v3665_v47 = vadd.f32 %v3649_v34, %v13205_v36  ;;  %v3607_v51 = vadd.f32 1.0, %v9221_v58 }
 0x74b   :  { %9240 = vpow2.f32 %v7476_v19  ;;  %v11333_v15 = vpop.f32.mrb[57].mxu0  ;;  %v3543_v13 = vpop.f32.mrb[75].mxu1  ;;  %v3664_v61 = vadd.f32 %v3648_v37, %v13206_v40  ;;  %v3606_v21 = vadd.f32 1.0, %v9223_v3  ;;  %v3549_v62 = vadd.f32 %v8465_v9, %v11277_v17 }
 0x74c   :  { %9242 = vpow2.f32 %v7475_v0  ;;  %v9225_v54 = vpop.eup %9224  ;;  %3681 = vst.msk [vmem:[#allocation2 + $0x8] sm:$0xff] %vm385_vm0, %v3665_v47  ;;  %v3544_v48 = vadd.f32 %v11277_v17, %v3543_v13  ;;  %v3343_v17 = vadd.f32 %v11291_v31, %v11317_v7  ;;  %v3338_v11 = vadd.f32 %v11317_v7, %v11294_v32 }
 0x74d   :  { %9244 = vrcp.f32 %v3607_v51  ;;  %v9227_v16 = vpop.eup %9226  ;;  %3680 = vst.msk [vmem:[#allocation2] sm:$0xff] %vm385_vm0, %v3664_v61  ;;  %v3609_v35 = vadd.f32 1.0, %v9225_v54  ;;  %v7478_v55 = vmul.f32 -1.442695, %v3549_v62  ;;  %v3353_v58 = vadd.f32 %v11297_v45, %v11317_v7 }
 0x74e   :  { %9246 = vrcp.f32 %v3606_v21  ;;  %v9229_v63 = vpop.eup %9228  ;;  %v3651_v25 = vmul.f32 %v9227_v16, %v3333_v57  ;;  %v7477_v42 = vmul.f32 -1.442695, %v3544_v48  ;;  %v3348_v3 = vadd.f32 %v11317_v7, %v11300_v56 }
 0x74f   :  { %v9231_v12 = vpop.eup %9230  ;;  %v3650_v18 = vmul.f32 %v9229_v63, %v3328_v5  ;;  %9248 = vrcp.f32 %v3609_v35  ;;  %v3363_v51 = vadd.f32 %v11303_v26, %v11317_v7  ;;  %v3358_v54 = vadd.f32 %v11317_v7, %v11306_v1 }
 0x750   :  { %v3667_v39 = vadd.f32 %v3651_v25, %v13207_v59  ;;  %v3608_v60 = vadd.f32 1.0, %v9231_v12  ;;  %9250 = vpow2.f32 %v7478_v55  ;;  %v3373_v16 = vadd.f32 %v11309_v6, %v11317_v7 }
 0x751   :  { %v9233_v28 = vpop.eup %9232  ;;  %v3666_v30 = vadd.f32 %v3650_v18, %v13208_v33  ;;  %9252 = vpow2.f32 %v7477_v42  ;;  %v3368_v1 = vadd.f32 %v11317_v7, %v11312_v4  ;;  %v3378_v12 = vadd.f32 %v11317_v7, %v11325_v46 }
 0x752   :  { %v9235_v20 = vpop.eup %9234  ;;  %v3611_v43 = vadd.f32 1.0, %v9233_v28  ;;  %3683 = vst.msk [vmem:[#allocation2 + $0x18] sm:$0xff] %vm385_vm0, %v3667_v39  ;;  %9254 = vrcp.f32 %v3608_v60  ;;  %v13210_v28 = vld [vmem:[#allocation57_spill] sm:$0xff]  ;;  %v3393_v46 = vadd.f32 %v11330_v24, %v11317_v7 }
 0x753   :  { %v9237_v29 = vpop.eup %9236  ;;  %v3653_v10 = vmul.f32 %v9235_v20, %v3343_v17  ;;  %3682 = vst.msk [vmem:[#allocation2 + $0x10] sm:$0xff] %vm385_vm0, %v3666_v30  ;;  %v11352_v31 = vld [vmem:[#allocation2 + $0x8] sm:$0xff] }
 0x754   :  { %v9239_v23 = vpop.eup %9238  ;;  %v3652_v27 = vmul.f32 %v9237_v29, %v3338_v11  ;;  %9256 = vrcp.f32 %v3611_v43  ;;  %v11355_v34 = vld [vmem:[#allocation2] sm:$0xff]  ;;  %v3388_v29 = vadd.f32 %v11317_v7, %v11333_v15  ;;  %v3759_v24 = vsel %vm385_vm0, %v11352_v31, 0.0 }
 0x755   :  { %v9241_v49 = vpop.eup %9240  ;;  %v3669_v2 = vadd.f32 %v3653_v10, %v13209_v38  ;;  %v3610_v8 = vadd.f32 1.0, %v9239_v23  ;;  %v11362_v0 = vpack.c.bf16 %v11352_v31, %v11355_v34 }
 0x756   :  { %v9243_v32 = vpop.eup %9242  ;;  %v3668_v19 = vadd.f32 %v3652_v27, %v10621_v41  ;;  %v3613_v37 = vadd.f32 1.0, %v9241_v49 }
 0x757   :  { %v9245_v9 = vpop.eup %9244  ;;  %3685 = vst.msk [vmem:[#allocation2 + $0x28] sm:$0xff] %vm385_vm0, %v3669_v2  ;;  %9258 = vrcp.f32 %v3610_v8  ;;  %v3612_v36 = vadd.f32 1.0, %v9243_v32  ;;  %8956 = vmatprep.subr.bf16.mxu1 %v11362_v0 }
 0x758   :  { %v9247_v47 = vpop.eup %9246  ;;  %3684 = vst.msk [vmem:[#allocation2 + $0x20] sm:$0xff] %vm385_vm0, %v3668_v19  ;;  %v3655_v41 = vmul.f32 %v9245_v9, %v3353_v58  ;;  %9260 = vrcp.f32 %v3613_v37  ;;  %v13213_v58 = vld [vmem:[#allocation50_spill] sm:$0xff] }
 0x759   :  { %v3654_v45 = vmul.f32 %v9247_v47, %v3348_v3  ;;  %9262 = vrcp.f32 %v3612_v36  ;;  %v9249_v13 = vpop.eup %9248  ;;  %v11392_v39 = vld [vmem:[#allocation2 + $0x18] sm:$0xff]  ;;  %v13214_v36 = vld [vmem:[#allocation52_spill] sm:$0xff] }
 0x75a   :  { %v3671_v40 = vadd.f32 %v3655_v41, %v10678_v52  ;;  %v9251_v61 = vpop.eup %9250  ;;  %v3657_v21 = vmul.f32 %v9249_v13, %v3363_v51  ;;  %v11395_v60 = vld [vmem:[#allocation2 + $0x10] sm:$0xff]  ;;  %v3760_v11 = vsel %vm385_vm0, %v11392_v39, 0.0 }
 0x75b   :  { %v3670_v56 = vadd.f32 %v3654_v45, %v10703_v22  ;;  %v9253_v62 = vpop.eup %9252  ;;  %v3615_v57 = vadd.f32 1.0, %v9251_v61  ;;  %v3729_v23 = vsel %vm385_vm0, %v11395_v60, 0.0  ;;  %v3761_v19 = vadd.f32 %v3760_v11, %v3759_v24 }
 0x75c   :  { %3687 = vst.msk [vmem:[#allocation2 + $0x38] sm:$0xff] %vm385_vm0, %v3671_v40  ;;  %v9255_v48 = vpop.eup %9254  ;;  %v3673_v26 = vadd.f32 %v3657_v21, %v10705_v44  ;;  %v3614_v52 = vadd.f32 1.0, %v9253_v62  ;;  %v3383_v44 = vadd.f32 %v11320_v53, %v11317_v7  ;;  %v13212_v53 = vld [vmem:[#allocation59_spill] sm:$0xff]  ;;  %v3728_v7 = vsel %vm385_vm0, %v11355_v34, 0.0 }
 0x75d   :  { %3686 = vst.msk [vmem:[#allocation2 + $0x30] sm:$0xff] %vm385_vm0, %v3670_v56  ;;  %v3656_v35 = vmul.f32 %v9255_v48, %v3358_v54  ;;  %9264 = vrcp.f32 %v3615_v57  ;;  %v3730_v3 = vadd.f32 %v3729_v23, %v3728_v7  ;;  %v11485_v23 = vld [vmem:[#allocation2 + $0xb8] sm:$0xff] }
 0x75e   :  { %v9257_v5 = vpop.eup %9256  ;;  %3689 = vst.msk [vmem:[#allocation2 + $0x48] sm:$0xff] %vm385_vm0, %v3673_v26  ;;  %9266 = vrcp.f32 %v3614_v52  ;;  %v11399_v33 = vld [vmem:[#allocation2 + $0x28] sm:$0xff] }
 0x75f   :  { %v3659_v22 = vmul.f32 %v9257_v5, %v3373_v16  ;;  %v3672_v55 = vadd.f32 %v3656_v35, %v10707_v14  ;;  %v11404_v30 = vld [vmem:[#allocation2 + $0x20] sm:$0xff]  ;;  %v3762_v2 = vsel %vm385_vm0, %v11399_v33, 0.0 }
 0x760   :  { %v3731_v15 = vsel %vm385_vm0, %v11404_v30, 0.0  ;;  %v3763_v34 = vadd.f32 %v3762_v2, %v3761_v19 }
 0x761   :  { %v9259_v63 = vpop.eup %9258  ;;  %v3675_v25 = vadd.f32 %v3659_v22, %v10756_v50  ;;  %3688 = vst.msk [vmem:[#allocation2 + $0x40] sm:$0xff] %vm385_vm0, %v3672_v55  ;;  %v13211_v50 = vld [vmem:[#allocation58_spill] sm:$0xff]  ;;  %v3732_v13 = vadd.f32 %v3731_v15, %v3730_v3 }
 0x762   :  { %v9261_v6 = vpop.eup %9260  ;;  %v3658_v42 = vmul.f32 %v9259_v63, %v3368_v1  ;;  %v11459_v1 = vld [vmem:[#allocation2 + $0x88] sm:$0xff]  ;;  %v11495_v15 = vld [vmem:[#allocation2 + $0xc0] sm:$0xff]  ;;  %v11501_v3 = vld [vmem:[#allocation2 + $0xd8] sm:$0xff] }
 0x763   :  { %v9263_v18 = vpop.eup %9262  ;;  %3691 = vst.msk [vmem:[#allocation2 + $0x58] sm:$0xff] %vm385_vm0, %v3675_v25  ;;  %v3661_v14 = vmul.f32 %v9261_v6, %v3383_v44  ;;  %v11411_v10 = vld [vmem:[#allocation2 + $0x38] sm:$0xff] }
 0x764   :  { %v3674_v59 = vadd.f32 %v3658_v42, %v13210_v28  ;;  %v3660_v4 = vmul.f32 %v9263_v18, %v3378_v12  ;;  %v11415_v38 = vld [vmem:[#allocation2 + $0x30] sm:$0xff]  ;;  %v3764_v31 = vsel %vm385_vm0, %v11411_v10, 0.0  ;;  %v11465_v42 = vld [vmem:[#allocation2 + $0x80] sm:$0xff]  ;;  %v11467_v12 = vld [vmem:[#allocation2 + $0x98] sm:$0xff]  ;;  %v3774_v28 = vsel %vm385_vm0, %v11459_v1, 0.0 }
 0x765   :  { %v3677_v17 = vadd.f32 %v3661_v14, %v13211_v50  ;;  %v11421_v32 = vld [vmem:[#allocation2 + $0x48] sm:$0xff]  ;;  %v3733_v45 = vsel %vm385_vm0, %v11415_v38, 0.0  ;;  %v3765_v21 = vadd.f32 %v3764_v31, %v3763_v34  ;;  %v3751_v34 = vsel %vm385_vm0, %v11495_v15, 0.0 }
 0x766   :  { %3690 = vst.msk [vmem:[#allocation2 + $0x50] sm:$0xff] %vm385_vm0, %v3674_v59  ;;  %v3676_v20 = vadd.f32 %v3660_v4, %v13212_v53  ;;  %v3766_v40 = vsel %vm385_vm0, %v11421_v32, 0.0  ;;  %v3734_v54 = vadd.f32 %v3733_v45, %v3732_v13  ;;  %v11473_v59 = vld [vmem:[#allocation2 + $0x90] sm:$0xff]  ;;  %v11477_v53 = vld [vmem:[#allocation2 + $0xa8] sm:$0xff] }
 0x767   :  { %3693 = vst.msk [vmem:[#allocation2 + $0x68] sm:$0xff] %vm385_vm0, %v3677_v17  ;;  %v9265_v43 = vpop.eup %9264  ;;  %v3767_v26 = vadd.f32 %v3766_v40, %v3765_v21  ;;  %v3743_v17 = vsel %vm385_vm0, %v11465_v42, 0.0  ;;  %v3778_v24 = vsel %vm385_vm0, %v11477_v53, 0.0  ;;  %v11509_v13 = vld [vmem:[#allocation2 + $0xe8] sm:$0xff] }
 0x768   :  { %3692 = vst.msk [vmem:[#allocation2 + $0x60] sm:$0xff] %vm385_vm0, %v3676_v20  ;;  %v9267_v27 = vpop.eup %9266  ;;  %v3663_v49 = vmul.f32 %v9265_v43, %v3393_v46  ;;  %v11428_v9 = vld [vmem:[#allocation2 + $0x40] sm:$0xff]  ;;  %v3776_v20 = vsel %vm385_vm0, %v11467_v12, 0.0 }
 0x769   :  { %v3662_v8 = vmul.f32 %v9267_v27, %v3388_v29  ;;  %v3735_v56 = vsel %vm385_vm0, %v11428_v9, 0.0  ;;  %v11481_v46 = vld [vmem:[#allocation2 + $0xa0] sm:$0xff]  ;;  %v3745_v29 = vsel %vm385_vm0, %v11473_v59, 0.0  ;;  %v11487_v27 = vld [vmem:[#allocation2 + $0xb0] sm:$0xff] }
 0x76a   :  { %v3679_v37 = vadd.f32 %v3663_v49, %v13213_v58  ;;  %v11433_v41 = vld [vmem:[#allocation2 + $0x58] sm:$0xff]  ;;  %v3736_v16 = vadd.f32 %v3735_v56, %v3734_v54  ;;  %v3747_v2 = vsel %vm385_vm0, %v11481_v46, 0.0  ;;  %v3780_v58 = vsel %vm385_vm0, %v11485_v23, 0.0  ;;  %v11511_v56 = vld [vmem:[#allocation2 + $0xe0] sm:$0xff] }
 0x76b   :  { %v3678_v47 = vadd.f32 %v3662_v8, %v13214_v36  ;;  %v3768_v57 = vsel %vm385_vm0, %v11433_v41, 0.0  ;;  %v11493_v8 = vld [vmem:[#allocation2 + $0xc8] sm:$0xff]  ;;  %v11503_v36 = vld [vmem:[#allocation2 + $0xd0] sm:$0xff]  ;;  %v3784_v54 = vsel %vm385_vm0, %v11501_v3, 0.0 }
 0x76c   :  { %3695 = vst.msk [vmem:[#allocation2 + $0x78] sm:$0xff] %vm385_vm0, %v3679_v37  ;;  %v3769_v35 = vadd.f32 %v3768_v57, %v3767_v26  ;;  %v3749_v37 = vsel %vm385_vm0, %v11487_v27, 0.0  ;;  %v3782_v45 = vsel %vm385_vm0, %v11493_v8, 0.0  ;;  %v3753_v57 = vsel %vm385_vm0, %v11503_v36, 0.0 }
 0x76d   :  { %v11438_v51 = vld [vmem:[#allocation2 + $0x50] sm:$0xff]  ;;  %3694 = vst.msk [vmem:[#allocation2 + $0x70] sm:$0xff] %vm385_vm0, %v3678_v47 }
 0x76e   :  { %v11443_v61 = vld [vmem:[#allocation2 + $0x68] sm:$0xff]  ;;  %v3737_v48 = vsel %vm385_vm0, %v11438_v51, 0.0 }
 0x76f   :  { %v11447_v62 = vld [vmem:[#allocation2 + $0x60] sm:$0xff]  ;;  %v3770_v52 = vsel %vm385_vm0, %v11443_v61, 0.0  ;;  %v3738_v22 = vadd.f32 %v3737_v48, %v3736_v16  ;;  %v11517_v48 = vld [vmem:[#allocation2 + $0xf8] sm:$0xff]  ;;  %v11519_v16 = vld [vmem:[#allocation2 + $0xf0] sm:$0xff] }
 0x770   :  { %v3739_v5 = vsel %vm385_vm0, %v11447_v62, 0.0  ;;  %v3771_v63 = vadd.f32 %v3770_v52, %v3769_v35  ;;  %v3755_v35 = vsel %vm385_vm0, %v11511_v56, 0.0 }
 0x771   :  { %v3740_v25 = vadd.f32 %v3739_v5, %v3738_v22  ;;  %v3786_v5 = vsel %vm385_vm0, %v11509_v13, 0.0 }
 0x773   :  { %v11457_v55 = vld [vmem:[#allocation2 + $0x78] sm:$0xff] }
 0x774   :  { %v3772_v44 = vsel %vm385_vm0, %v11457_v55, 0.0  ;;  %v11463_v6 = vld [vmem:[#allocation2 + $0x70] sm:$0xff] }
 0x775   :  { %v3773_v18 = vadd.f32 %v3772_v44, %v3771_v63  ;;  %v3741_v14 = vsel %vm385_vm0, %v11463_v6, 0.0  ;;  %v3757_v44 = vsel %vm385_vm0, %v11519_v16, 0.0 }
 0x776   :  { %v3742_v4 = vadd.f32 %v3741_v14, %v3740_v25  ;;  %v3788_v25 = vsel %vm385_vm0, %v11517_v48, 0.0 }
 0x777   :  { %v3775_v50 = vadd.f32 %v3774_v28, %v3773_v18 }
 0x778   :  { %v3744_v11 = vadd.f32 %v3743_v17, %v3742_v4 }
 0x779   :  { %v3777_v43 = vadd.f32 %v3776_v20, %v3775_v50  ;;  %v8959_v50 = vpack.c.bf16 %v11392_v39, %v11395_v60 }
 0x77a   :  { %v3746_v49 = vadd.f32 %v3745_v29, %v3744_v11 }
 0x77b   :  { %v3779_v7 = vadd.f32 %v3778_v24, %v3777_v43  ;;  %v8963_v24 = vpack.c.bf16 %v11399_v33, %v11404_v30 }
 0x77c   :  { %v3748_v19 = vadd.f32 %v3747_v2, %v3746_v49 }
 0x77d   :  { %v3781_v31 = vadd.f32 %v3780_v58, %v3779_v7 }
 0x77e   :  { %v3750_v47 = vadd.f32 %v3749_v37, %v3748_v19 }
 0x77f   :  { %v3783_v40 = vadd.f32 %v3782_v45, %v3781_v31 }
 0x780   :  { %v3752_v21 = vadd.f32 %v3751_v34, %v3750_v47 }
 0x781   :  { %v3785_v26 = vadd.f32 %v3784_v54, %v3783_v40 }
 0x782   :  { %v3754_v52 = vadd.f32 %v3753_v57, %v3752_v21 }
 0x783   :  { %v3787_v22 = vadd.f32 %v3786_v5, %v3785_v26 }
 0x784   :  { %v3756_v63 = vadd.f32 %v3755_v35, %v3754_v52  ;;  %v8967_v35 = vpack.c.bf16 %v11411_v10, %v11415_v38  ;;  %v8975_v10 = vpack.c.bf16 %v11433_v41, %v11438_v51  ;;  %v8987_v38 = vpack.c.bf16 %v11459_v1, %v11465_v42  ;;  %v7527_v1 = vld [vmem:[%s13037_s7 + $0x20] sm:$0xff] }
 0x785   :  { %v3789_v18 = vadd.f32 %v3788_v25, %v3787_v22  ;;  %v8979_v22 = vpack.c.bf16 %v11443_v61, %v11447_v62  ;;  %v8983_v41 = vpack.c.bf16 %v11457_v55, %v11463_v6  ;;  %v8995_v51 = vpack.c.bf16 %v11477_v53, %v11481_v46  ;;  %v7528_v6 = vld [vmem:[%s13037_s7 + $0x28] sm:$0xff]  ;;  %v7529_v53 = vld [vmem:[%s13037_s7 + $0x30] sm:$0xff]  ;;  %v7530_v46 = vld [vmem:[%s13037_s7 + $0x38] sm:$0xff]  ;;  %s11785_s7 = sld [smem:[#allocation7 + $0x2b]] }
 0x786   :  { %v3758_v14 = vadd.f32 %v3757_v44, %v3756_v63  ;;  %v8991_v61 = vpack.c.bf16 %v11467_v12, %v11473_v59  ;;  %v9003_v62 = vpack.c.bf16 %v11493_v8, %v11495_v15  ;;  %v8999_v55 = vpack.c.bf16 %v11485_v23, %v11487_v27  ;;  %v7565_v23 = vld [vmem:[%s13039_s9 + $0x20] sm:$0xff]  ;;  %v7566_v27 = vld [vmem:[%s13039_s9 + $0x28] sm:$0xff] }
 0x787   :  { %v3791_v4 = vmul.f32 0.0625, %v3789_v18  ;;  %v9011_v42 = vpack.c.bf16 %v11509_v13, %v11511_v56  ;;  %v9019_v12 = vpack.c.bf16 %v7528_v6, %v7527_v1  ;;  %v9007_v59 = vpack.c.bf16 %v11501_v3, %v11503_v36  ;;  %v7567_v36 = vld [vmem:[%s13039_s9 + $0x30] sm:$0xff]  ;;  %v7568_v13 = vld [vmem:[%s13039_s9 + $0x38] sm:$0xff]  ;;  %s11810_s9 = sld [smem:[#allocation7 + $0x2c]] }
 0x788   :  { %v3790_v28 = vmul.f32 0.0625, %v3758_v14  ;;  %v9023_v8 = vpack.c.bf16 %v7530_v46, %v7529_v53  ;;  %v9015_v15 = vpack.c.bf16 %v11517_v48, %v11519_v16  ;;  %v9027_v3 = vpack.c.bf16 %v7566_v27, %v7565_v23 }
 0x789   :  { %v9031_v56 = vpack.c.bf16 %v7568_v13, %v7567_v36 }
 0x78a   :  { %8474 = vmatprep.mubr.msk.f32.mxu0 %vm385_vm0, %v3790_v28  ;;  %8485 = vmatprep.mubr.msk.f32.mxu1 %vm385_vm0, %v3790_v28 }
 0x78b   :  { %8475 = vmatmul.mubr.msk.f32.vlgmr.msra.gmra.mrb[58].mxu0 %vm385_vm0, %v3791_v4  ;;  %8486 = vmatmul.mubr.msk.f32.vlgmr.msra.gmra.mrb[76].mxu1 %vm385_vm0, %v3791_v4 }
 0x78c   :  { %8958 = vmatpush3.bf16.msra.mxu1 %v11362_v0  ;;  %v8971_v0 = vpack.c.bf16 %v11421_v32, %v11428_v9 }
 0x78d   :  { %8960 = vmatprep.subr.bf16.mxu1 %v8959_v50 }
 0x85e   :  { %v8476_v17 = vpop.f32.mrb[58].mxu0  ;;  %v8487_v20 = vpop.f32.mrb[76].mxu1 }
 0x85f   :  { %v3869_v11 = vpop.f32.mrb[59].mxu0  ;;  %v3949_v43 = vpop.f32.mrb[77].mxu1 }
 0x860   :  { %v8949_v29 = vpack.c.bf16 %v8487_v20, %v3949_v43  ;;  %8492 = vmatprep.mubr.msk.f32.mxu0 %vm385_vm0, %v3869_v11 }
 0x862   :  { %8951 = vmatprep.subr.msk.bf16.mxu0 %vm10032_vm1, %v8949_v29 }
 0x863   :  { %8954 = vmatpush3.bf16.xpose.msk.msra.mxu0 %vm10032_vm1, %v8949_v29 }
 0x864   :  { %8964 = vmatprep.subr.bf16.mxu0 %v8963_v24 }
 0x86a   :  { %8493 = vmatmul.mubr.msk.f32.vlgmr.msra.gmra.mrb[60].mxu0 %vm385_vm0, %v8476_v17 }
 0x86b   :  { %8966 = vmatpush3.bf16.msra.mxu0 %v8963_v24 }
 0x86c   :  { %8972 = vmatprep.subr.bf16.mxu0 %v8971_v0 }
 0x93d   :  { %v8494_v39 = vpop.f32.mrb[60].mxu0 }
 0x93e   :  { %v4046_v60 = vmul.f32 0.17677669, %v8494_v39  ;;  %v4036_v2 = vpop.f32.mrb[61].mxu0 }
 0x93f   :  { %v4045_v7 = vmul.f32 0.17677669, %v4036_v2 }
 0x940   :  { %v4050_v19 = vsel %vm768_vm2, %v4046_v60, -inf }
 0x941   :  { %4051 = vmax.xlane.f32.xlu0 %v4050_v19  ;;  %v4047_v33 = vsel %vm768_vm2, %v4045_v7, -inf }
 0x942   :  { %4048 = vmax.xlane.f32.xlu1 %v4047_v33 }
 0x9ce   :  { %v4052_v30 = vpop.xlane.xlu0 %4051 }
 0x9cf   :  { %v4054_v58 = vsub.f32 %v4046_v60, %v4052_v30  ;;  %v4049_v37 = vpop.xlane.xlu1 %4048 }
 0x9d0   :  { %v4053_v31 = vsub.f32 %v4045_v7, %v4049_v37 }
 0x9d1   :  { %v4057_v47 = vmul.f32 1.442695, %v4054_v58 }
 0x9d2   :  { %v4055_v45 = vmul.f32 1.442695, %v4053_v31 }
 0x9d3   :  { %9268 = vpow2.f32 %v4057_v47 }
 0x9d4   :  { %9270 = vpow2.f32 %v4055_v45 }
 0x9dd   :  { %v9269_v32 = vpop.eup %9268 }
 0x9de   :  { %v9271_v9 = vpop.eup %9270  ;;  %v4062_v34 = vsel %vm768_vm2, %v9269_v32, 0.0 }
 0x9df   :  { %4063 = vadd.xlane.f32.xlu0 %v4062_v34  ;;  %v4059_v40 = vsel %vm768_vm2, %v9271_v9, 0.0  ;;  %v7689_v34 = vld [vmem:[%s13043_s13 + $0x20] sm:$0xff] }
 0x9e0   :  { %4060 = vadd.xlane.f32.xlu1 %v4059_v40  ;;  %v7690_v40 = vld [vmem:[%s13043_s13 + $0x28] sm:$0xff] }
 0xa6c   :  { %v4064_v21 = vpop.xlane.xlu0 %4063 }
 0xa6d   :  { %9272 = vrcp.f32 %v4064_v21  ;;  %v4061_v54 = vpop.xlane.xlu1 %4060  ;;  %v9043_v21 = vpack.c.bf16 %v7690_v40, %v7689_v34  ;;  %v11870_v34 = vstv %s11787_s3 }
 0xa6e   :  { %9274 = vrcp.f32 %v4061_v54  ;;  %v11739_v54 = vld [vmem:[%s13040_s10 + $0x1] ss:$0 sm:$0xff]  ;;  %13216 = vst [vmem:[#allocation25_spill] sm:$0xff] %v11870_v34 }
 0xa77   :  { %v9273_v57 = vpop.eup %9272 }
 0xa78   :  { %v9275_v26 = vpop.eup %9274  ;;  %v11552_v5 = vmul.f32 %v9273_v57, %v9269_v32 }
 0xa79   :  { %v11550_v52 = vmul.f32 %v9275_v26, %v9271_v9 }
 0xa7b   :  { %8499 = vmatprep.mubr.msk.f32.mxu1 %vm768_vm2, %v11550_v52  ;;  %8513 = vmatprep.mubr.msk.f32.mxu0 %vm768_vm2, %v11550_v52 }
 0xa7c   :  { %8500 = vmatmul.mubr.msk.f32.vlgmr.msra.gmra.mrb[78].mxu1 %vm768_vm2, %v11552_v5  ;;  %8514 = vmatmul.mubr.msk.f32.vlgmr.msra.gmra.mrb[62].mxu0 %vm768_vm2, %v11552_v5 }
 0xa7d   :  { %8962 = vmatpush3.bf16.msra.mxu1 %v8959_v50  ;;  %8974 = vmatpush3.bf16.msra.mxu0 %v8971_v0 }
 0xa7e   :  { %8506 = vmatprep.mubr.msk.f32.mxu1 %vm768_vm2, %v11550_v52  ;;  %8968 = vmatprep.subr.bf16.mxu1 %v8967_v35 }
 0xa7f   :  { %8527 = vmatprep.mubr.msk.f32.mxu0 %vm768_vm2, %v11550_v52  ;;  %8980 = vmatprep.subr.bf16.mxu0 %v8979_v22 }
 0xa80   :  { %8507 = vmatmul.mubr.msk.f32.vlgmr.msra.gmra.mrb[80].mxu1 %vm768_vm2, %v11552_v5  ;;  %8528 = vmatmul.mubr.msk.f32.vlgmr.msra.gmra.mrb[64].mxu0 %vm768_vm2, %v11552_v5 }
 0xa81   :  { %8970 = vmatpush3.bf16.msra.mxu1 %v8967_v35  ;;  %8982 = vmatpush3.bf16.msra.mxu0 %v8979_v22 }
 0xa82   :  { %8520 = vmatprep.mubr.msk.f32.mxu1 %vm768_vm2, %v11550_v52  ;;  %8976 = vmatprep.subr.bf16.mxu1 %v8975_v10 }
 0xa83   :  { %8541 = vmatprep.mubr.msk.f32.mxu0 %vm768_vm2, %v11550_v52  ;;  %8988 = vmatprep.subr.bf16.mxu0 %v8987_v38 }
 0xa84   :  { %8521 = vmatmul.mubr.msk.f32.vlgmr.msra.gmra.mrb[82].mxu1 %vm768_vm2, %v11552_v5  ;;  %8542 = vmatmul.mubr.msk.f32.vlgmr.msra.gmra.mrb[66].mxu0 %vm768_vm2, %v11552_v5 }
 0xa85   :  { %8978 = vmatpush3.bf16.msra.mxu1 %v8975_v10  ;;  %8990 = vmatpush3.bf16.msra.mxu0 %v8987_v38 }
 0xa86   :  { %8534 = vmatprep.mubr.msk.f32.mxu1 %vm768_vm2, %v11550_v52  ;;  %8984 = vmatprep.subr.bf16.mxu1 %v8983_v41 }
 0xa87   :  { %8555 = vmatprep.mubr.msk.f32.mxu0 %vm768_vm2, %v11550_v52  ;;  %8996 = vmatprep.subr.bf16.mxu0 %v8995_v51 }
 0xa88   :  { %8535 = vmatmul.mubr.msk.f32.vlgmr.msra.gmra.mrb[84].mxu1 %vm768_vm2, %v11552_v5  ;;  %8556 = vmatmul.mubr.msk.f32.vlgmr.msra.gmra.mrb[68].mxu0 %vm768_vm2, %v11552_v5 }
 0xa89   :  { %8986 = vmatpush3.bf16.msra.mxu1 %v8983_v41  ;;  %8998 = vmatpush3.bf16.msra.mxu0 %v8995_v51 }
 0xa8a   :  { %8548 = vmatprep.mubr.msk.f32.mxu1 %vm768_vm2, %v11550_v52  ;;  %8992 = vmatprep.subr.bf16.mxu1 %v8991_v61 }
 0xa8b   :  { %8569 = vmatprep.mubr.msk.f32.mxu0 %vm768_vm2, %v11550_v52  ;;  %9004 = vmatprep.subr.bf16.mxu0 %v9003_v62 }
 0xa8c   :  { %8549 = vmatmul.mubr.msk.f32.vlgmr.msra.gmra.mrb[86].mxu1 %vm768_vm2, %v11552_v5  ;;  %8570 = vmatmul.mubr.msk.f32.vlgmr.msra.gmra.mrb[70].mxu0 %vm768_vm2, %v11552_v5 }
 0xa8d   :  { %8994 = vmatpush3.bf16.msra.mxu1 %v8991_v61  ;;  %9006 = vmatpush3.bf16.msra.mxu0 %v9003_v62 }
 0xa8e   :  { %8562 = vmatprep.mubr.msk.f32.mxu1 %vm768_vm2, %v11550_v52  ;;  %9000 = vmatprep.subr.bf16.mxu1 %v8999_v55 }
 0xa8f   :  { %8583 = vmatprep.mubr.msk.f32.mxu0 %vm768_vm2, %v11550_v52  ;;  %9012 = vmatprep.subr.bf16.mxu0 %v9011_v42 }
 0xa90   :  { %8563 = vmatmul.mubr.msk.f32.vlgmr.msra.gmra.mrb[88].mxu1 %vm768_vm2, %v11552_v5  ;;  %8584 = vmatmul.mubr.msk.f32.vlgmr.msra.gmra.mrb[72].mxu0 %vm768_vm2, %v11552_v5 }
 0xa91   :  { %9002 = vmatpush3.bf16.msra.mxu1 %v8999_v55  ;;  %9014 = vmatpush3.bf16.msra.mxu0 %v9011_v42 }
 0xa92   :  { %8576 = vmatprep.mubr.msk.f32.mxu1 %vm768_vm2, %v11550_v52  ;;  %9008 = vmatprep.subr.bf16.mxu1 %v9007_v59 }
 0xa93   :  { %8597 = vmatprep.mubr.msk.f32.mxu0 %vm768_vm2, %v11550_v52  ;;  %9020 = vmatprep.subr.bf16.mxu0 %v9019_v12 }
 0xa94   :  { %8577 = vmatmul.mubr.msk.f32.vlgmr.msra.gmra.mrb[90].mxu1 %vm768_vm2, %v11552_v5  ;;  %8598 = vmatmul.mubr.msk.f32.vlgmr.msra.gmra.mrb[74].mxu0 %vm768_vm2, %v11552_v5 }
 0xa95   :  { %9010 = vmatpush3.bf16.msra.mxu1 %v9007_v59  ;;  %8590 = vmatprep.mubr.msk.f32.mxu1 %vm768_vm2, %v11550_v52 }
 0xa96   :  { %9016 = vmatprep.subr.bf16.mxu1 %v9015_v15  ;;  %9022 = vmatpush3.bf16.msra.mxu0 %v9019_v12 }
 0xa97   :  { %9024 = vmatprep.subr.bf16.mxu0 %v9023_v8 }
 0xa98   :  { %8591 = vmatmul.mubr.msk.f32.vlgmr.msra.gmra.mrb[92].mxu1 %vm768_vm2, %v11552_v5 }
 0xa99   :  { %9018 = vmatpush3.bf16.msra.mxu1 %v9015_v15  ;;  %8604 = vmatprep.mubr.msk.f32.mxu1 %vm768_vm2, %v11550_v52  ;;  %v11790_v15 = vstv %s11746_s18  ;;  %s11859_s18 = sld [smem:[#allocation7 + $0x3d]] }
 0xa9a   :  { %9028 = vmatprep.subr.bf16.mxu1 %v9027_v3  ;;  %9026 = vmatpush3.bf16.msra.mxu0 %v9023_v8 }
 0xa9c   :  { %8605 = vmatmul.mubr.msk.f32.vlgmr.msra.gmra.mrb[94].mxu1 %vm768_vm2, %v11552_v5 }
 0xa9d   :  { %9030 = vmatpush3.bf16.msra.mxu1 %v9027_v3  ;;  %v11793_v3 = vstv %s11749_s19  ;;  %s11861_s19 = sld [smem:[#allocation7 + $0x26]] }
 0xa9e   :  { %9032 = vmatprep.subr.bf16.mxu1 %v9031_v56 }
 0xaa1   :  { %9034 = vmatpush3.bf16.msra.mxu1 %v9031_v56 }
 0xaa2   :  { %9044 = vmatprep.subr.bf16.mxu1 %v9043_v21 }
 0xb4f   :  { %v8501_v48 = vpop.f32.mrb[78].mxu1  ;;  %v8515_v16 = vpop.f32.mrb[62].mxu0 }
 0xb50   :  { %v4141_v63 = vpop.f32.mrb[79].mxu1  ;;  %v4291_v25 = vpop.f32.mrb[63].mxu0 }
 0xb51   :  { %8615 = vmatprep.mubr.msk.f32.mxu0 %vm385_vm0, %v4141_v63  ;;  %8671 = vmatprep.mubr.msk.f32.mxu1 %vm385_vm0, %v4141_v63 }
 0xb52   :  { %8616 = vmatmul.mubr.msk.f32.vlgmr.msra.gmra.mrb[76].mxu0 %vm385_vm0, %v8501_v48  ;;  %8672 = vmatmul.mubr.msk.f32.vlgmr.msra.gmra.mrb[96].mxu1 %vm385_vm0, %v8501_v48  ;;  %v11800_v48 = vstv %s11751_s1 }
 0xb53   :  { %v8508_v44 = vpop.f32.mrb[80].mxu1  ;;  %v8529_v18 = vpop.f32.mrb[64].mxu0  ;;  %9046 = vmatpush3.bf16.msra.mxu1 %v9043_v21 }
 0xb54   :  { %v4216_v14 = vpop.f32.mrb[81].mxu1  ;;  %v4441_v28 = vpop.f32.mrb[65].mxu0 }
 0xb55   :  { %8618 = vmatprep.mubr.msk.f32.mxu0 %vm385_vm0, %v4216_v14  ;;  %8674 = vmatprep.mubr.msk.f32.mxu1 %vm385_vm0, %v4216_v14  ;;  %v11816_v14 = vstv %s11762_s21 }
 0xb56   :  { %8619 = vmatmul.mubr.msk.f32.gmra.mrb[78].mxu0 %vm385_vm0, %v8508_v44  ;;  %8675 = vmatmul.mubr.msk.f32.gmra.mrb[98].mxu1 %vm385_vm0, %v8508_v44 }
 0xb57   :  { %v8522_v4 = vpop.f32.mrb[82].mxu1  ;;  %v8543_v50 = vpop.f32.mrb[66].mxu0  ;;  %8621 = vmatprep.mubr.msk.f32.mxu0 %vm385_vm0, %v4291_v25  ;;  %8677 = vmatprep.mubr.msk.f32.mxu1 %vm385_vm0, %v4291_v25 }
 0xb58   :  { %v4366_v17 = vpop.f32.mrb[83].mxu1  ;;  %v4591_v20 = vpop.f32.mrb[67].mxu0 }
 0xb5a   :  { %8622 = vmatmul.mubr.msk.f32.gmra.mrb[80].mxu0 %vm385_vm0, %v8515_v16  ;;  %8678 = vmatmul.mubr.msk.f32.gmra.mrb[100].mxu1 %vm385_vm0, %v8515_v16  ;;  %v11803_v16 = vstv %s11753_s16 }
 0xb5b   :  { %v8536_v11 = vpop.f32.mrb[84].mxu1  ;;  %v8557_v43 = vpop.f32.mrb[68].mxu0  ;;  %8624 = vmatprep.mubr.msk.f32.mxu0 %vm385_vm0, %v4366_v17  ;;  %8680 = vmatprep.mubr.msk.f32.mxu1 %vm385_vm0, %v4366_v17  ;;  %v11827_v17 = vstv %s11767_s27  ;;  %s11874_s27 = sld [smem:[#allocation7 + $0x36]] }
 0xb5c   :  { %v4516_v29 = vpop.f32.mrb[85].mxu1  ;;  %v4741_v49 = vpop.f32.mrb[69].mxu0 }
 0xb5e   :  { %8625 = vmatmul.mubr.msk.f32.gmra.mrb[82].mxu0 %vm385_vm0, %v8522_v4  ;;  %8681 = vmatmul.mubr.msk.f32.gmra.mrb[102].mxu1 %vm385_vm0, %v8522_v4 }
 0xb5f   :  { %v8550_v24 = vpop.f32.mrb[86].mxu1  ;;  %v8571_v0 = vpop.f32.mrb[70].mxu0  ;;  %8627 = vmatprep.mubr.msk.f32.mxu0 %vm385_vm0, %v4441_v28  ;;  %8683 = vmatprep.mubr.msk.f32.mxu1 %vm385_vm0, %v4441_v28 }
 0xb60   :  { %v4666_v39 = vpop.f32.mrb[87].mxu1  ;;  %v4891_v60 = vpop.f32.mrb[71].mxu0 }
 0xb62   :  { %8628 = vmatmul.mubr.msk.f32.gmra.mrb[84].mxu0 %vm385_vm0, %v8529_v18  ;;  %8684 = vmatmul.mubr.msk.f32.gmra.mrb[104].mxu1 %vm385_vm0, %v8529_v18  ;;  %v11813_v18 = vstv %s11760_s20 }
 0xb63   :  { %v8564_v2 = vpop.f32.mrb[88].mxu1  ;;  %v8585_v7 = vpop.f32.mrb[72].mxu0  ;;  %8630 = vmatprep.mubr.msk.f32.mxu0 %vm385_vm0, %v4516_v29  ;;  %8686 = vmatprep.mubr.msk.f32.mxu1 %vm385_vm0, %v4516_v29 }
 0xb64   :  { %v4816_v19 = vpop.f32.mrb[89].mxu1  ;;  %v5041_v33 = vpop.f32.mrb[73].mxu0 }
 0xb66   :  { %8631 = vmatmul.mubr.msk.f32.gmra.mrb[86].mxu0 %vm385_vm0, %v8536_v11  ;;  %8687 = vmatmul.mubr.msk.f32.gmra.mrb[106].mxu1 %vm385_vm0, %v8536_v11  ;;  %v11830_v11 = vstv %s11769_s22  ;;  %s11887_s22 = sld [smem:[#allocation7 + $0x3e]] }
 0xb67   :  { %v8578_v30 = vpop.f32.mrb[90].mxu1  ;;  %v8599_v58 = vpop.f32.mrb[74].mxu0  ;;  %8633 = vmatprep.mubr.msk.f32.mxu0 %vm385_vm0, %v4591_v20  ;;  %8689 = vmatprep.mubr.msk.f32.mxu1 %vm385_vm0, %v4591_v20 }
 0xb68   :  { %v4966_v37 = vpop.f32.mrb[91].mxu1  ;;  %v5191_v31 = vpop.f32.mrb[75].mxu0 }
 0xb6a   :  { %8634 = vmatmul.mubr.msk.f32.gmra.mrb[88].mxu0 %vm385_vm0, %v8543_v50  ;;  %8690 = vmatmul.mubr.msk.f32.gmra.mrb[108].mxu1 %vm385_vm0, %v8543_v50  ;;  %v11824_v50 = vstv %s11765_s2  ;;  %s11872_s2 = sld [smem:[#allocation7 + $0x2e]] }
 0xb6b   :  { %v8592_v47 = vpop.f32.mrb[92].mxu1  ;;  %8636 = vmatprep.mubr.msk.f32.mxu0 %vm385_vm0, %v4666_v39  ;;  %8692 = vmatprep.mubr.msk.f32.mxu1 %vm385_vm0, %v4666_v39  ;;  %v11839_v39 = vstv %s11771_s28  ;;  %s11893_s28 = sld [smem:[#allocation7 + $0x27]] }
 0xb6c   :  { %v5116_v45 = vpop.f32.mrb[93].mxu1 }
 0xb6e   :  { %8637 = vmatmul.mubr.msk.f32.gmra.mrb[90].mxu0 %vm385_vm0, %v8550_v24  ;;  %8693 = vmatmul.mubr.msk.f32.gmra.mrb[110].mxu1 %vm385_vm0, %v8550_v24 }
 0xb6f   :  { %v8606_v32 = vpop.f32.mrb[94].mxu1  ;;  %8639 = vmatprep.mubr.msk.f32.mxu0 %vm385_vm0, %v4741_v49  ;;  %8695 = vmatprep.mubr.msk.f32.mxu1 %vm385_vm0, %v4741_v49 }
 0xb70   :  { %v5266_v9 = vpop.f32.mrb[95].mxu1 }
 0xb72   :  { %8640 = vmatmul.mubr.msk.f32.gmra.mrb[92].mxu0 %vm385_vm0, %v8557_v43  ;;  %8696 = vmatmul.mubr.msk.f32.gmra.mrb[112].mxu1 %vm385_vm0, %v8557_v43 }
 0xb73   :  { %8642 = vmatprep.mubr.msk.f32.mxu0 %vm385_vm0, %v4816_v19  ;;  %8698 = vmatprep.mubr.msk.f32.mxu1 %vm385_vm0, %v4816_v19  ;;  %v11846_v19 = vstv %s11780_s23 }
 0xb76   :  { %8643 = vmatmul.mubr.msk.f32.gmra.mrb[94].mxu0 %vm385_vm0, %v8564_v2  ;;  %8699 = vmatmul.mubr.msk.f32.gmra.mrb[114].mxu1 %vm385_vm0, %v8564_v2 }
 0xb77   :  { %8645 = vmatprep.mubr.msk.f32.mxu0 %vm385_vm0, %v4891_v60  ;;  %8701 = vmatprep.mubr.msk.f32.mxu1 %vm385_vm0, %v4891_v60  ;;  %v11842_v60 = vstv %s11775_s29  ;;  %s7199_s29 = sld [smem:[#allocation5]] }
 0xb7a   :  { %8646 = vmatmul.mubr.msk.f32.gmra.mrb[96].mxu0 %vm385_vm0, %v8571_v0  ;;  %8702 = vmatmul.mubr.msk.f32.gmra.mrb[116].mxu1 %vm385_vm0, %v8571_v0 }
 0xb7b   :  { %8648 = vmatprep.mubr.msk.f32.mxu0 %vm385_vm0, %v4966_v37  ;;  %8704 = vmatprep.mubr.msk.f32.mxu1 %vm385_vm0, %v4966_v37  ;;  %v11854_v37 = vstv %s11783_s24 }
 0xb7e   :  { %8649 = vmatmul.mubr.msk.f32.gmra.mrb[98].mxu0 %vm385_vm0, %v8578_v30  ;;  %8705 = vmatmul.mubr.msk.f32.gmra.mrb[118].mxu1 %vm385_vm0, %v8578_v30 }
 0xb7f   :  { %8651 = vmatprep.mubr.msk.f32.mxu0 %vm385_vm0, %v5041_v33  ;;  %8707 = vmatprep.mubr.msk.f32.mxu1 %vm385_vm0, %v5041_v33 }
 0xb82   :  { %8652 = vmatmul.mubr.msk.f32.gmra.mrb[100].mxu0 %vm385_vm0, %v8585_v7  ;;  %8708 = vmatmul.mubr.msk.f32.gmra.mrb[120].mxu1 %vm385_vm0, %v8585_v7 }
 0xb83   :  { %8654 = vmatprep.mubr.msk.f32.mxu0 %vm385_vm0, %v5116_v45  ;;  %8710 = vmatprep.mubr.msk.f32.mxu1 %vm385_vm0, %v5116_v45  ;;  %v7668_v45 = vld [vmem:[%s13041_s11 + $0x28] sm:$0xff] }
 0xb86   :  { %8655 = vmatmul.mubr.msk.f32.gmra.mrb[102].mxu0 %vm385_vm0, %v8592_v47  ;;  %8711 = vmatmul.mubr.msk.f32.gmra.mrb[122].mxu1 %vm385_vm0, %v8592_v47  ;;  %v7667_v47 = vld [vmem:[%s13041_s11 + $0x20] sm:$0xff] }
 0xb87   :  { %8657 = vmatprep.mubr.msk.f32.mxu0 %vm385_vm0, %v5191_v31  ;;  %8713 = vmatprep.mubr.msk.f32.mxu1 %vm385_vm0, %v5191_v31  ;;  %v11857_v31 = vstv %s11785_s7  ;;  %v9035_v40 = vpack.c.bf16 %v7668_v45, %v7667_v47  ;;  %v11924_v47 = vstv %s11832_s6  ;;  %v11927_v45 = vstv %s11834_s30 }
 0xb88   :  { %13222 = vst [vmem:[#allocation55_spill] sm:$0xff] %v11924_v47  ;;  %13223 = vst [vmem:[#allocation41_spill] sm:$0xff] %v11927_v45 }
 0xb89   :  { %9036 = vmatprep.subr.bf16.mxu0 %v9035_v40 }
 0xb8a   :  { %8658 = vmatmul.mubr.msk.f32.gmra.mrb[104].mxu0 %vm385_vm0, %v8599_v58  ;;  %8714 = vmatmul.mubr.msk.f32.gmra.mrb[124].mxu1 %vm385_vm0, %v8599_v58 }
 0xb8b   :  { %8660 = vmatprep.mubr.msk.f32.mxu0 %vm385_vm0, %v5266_v9  ;;  %8716 = vmatprep.mubr.msk.f32.mxu1 %vm385_vm0, %v5266_v9 }
 0xb8c   :  { %9038 = vmatpush3.bf16.msra.mxu0 %v9035_v40 }
 0xb8e   :  { %8661 = vmatmul.mubr.msk.f32.gmra.mrb[106].mxu0 %vm385_vm0, %v8606_v32  ;;  %8717 = vmatmul.mubr.msk.f32.gmra.mrb[126].mxu1 %vm385_vm0, %v8606_v32 }
 0xc25   :  { %v11741_v57 = vpop.f32.mrb[76].mxu0  ;;  %v8673_v26 = vpop.f32.mrb[96].mxu1 }
 0xc26   :  { %v5694_v52 = vadd.f32 %v8673_v26, %v11739_v54  ;;  %v11744_v5 = vpop.f32.mrb[77].mxu0  ;;  %v5688_v35 = vpop.f32.mrb[97].mxu1 }
 0xc27   :  { %v5689_v22 = vadd.f32 %v11739_v54, %v5688_v35 }
 0xc28   :  { %v7604_v10 = vmul.f32 -1.442695, %v5694_v52 }
 0xc29   :  { %v7603_v38 = vmul.f32 -1.442695, %v5689_v22  ;;  %v11755_v41 = vpop.f32.mrb[78].mxu0  ;;  %v8676_v51 = vpop.f32.mrb[98].mxu1 }
 0xc2a   :  { %9276 = vpow2.f32 %v7604_v10  ;;  %v5704_v61 = vadd.f32 %v8676_v51, %v11739_v54  ;;  %v11758_v62 = vpop.f32.mrb[79].mxu0  ;;  %v5698_v55 = vpop.f32.mrb[99].mxu1  ;;  %v11879_v10 = vstv %s11797_s4 }
 0xc2b   :  { %9278 = vpow2.f32 %v7603_v38  ;;  %v5699_v1 = vadd.f32 %v11739_v54, %v5698_v55  ;;  %13217 = vst [vmem:[#allocation26_spill] sm:$0xff] %v11879_v10 }
 0xc2c   :  { %v7606_v6 = vmul.f32 -1.442695, %v5704_v61 }
 0xc2d   :  { %v7605_v42 = vmul.f32 -1.442695, %v5699_v1  ;;  %v11773_v12 = vpop.f32.mrb[80].mxu0  ;;  %v8679_v59 = vpop.f32.mrb[100].mxu1  ;;  %v11885_v1 = vstv %s11808_s25 }
 0xc2e   :  { %9280 = vpow2.f32 %v7606_v6  ;;  %v5714_v53 = vadd.f32 %v8679_v59, %v11739_v54  ;;  %v11778_v46 = vpop.f32.mrb[81].mxu0  ;;  %v5708_v23 = vpop.f32.mrb[101].mxu1  ;;  %13218 = vst [vmem:[#allocation27_spill] sm:$0xff] %v11885_v1  ;;  %v7691_v59 = vld [vmem:[%s13043_s13 + $0x30] sm:$0xff] }
 0xc2f   :  { %9282 = vpow2.f32 %v7605_v42  ;;  %v5709_v27 = vadd.f32 %v11739_v54, %v5708_v23  ;;  %v11891_v42 = vstv %s11810_s9  ;;  %v7669_v23 = vld [vmem:[%s13041_s11 + $0x30] sm:$0xff] }
 0xc30   :  { %v7608_v8 = vmul.f32 -1.442695, %v5714_v53  ;;  %13219 = vst [vmem:[#allocation53_spill] sm:$0xff] %v11891_v42  ;;  %v7692_v53 = vld [vmem:[%s13043_s13 + $0x38] sm:$0xff] }
 0xc31   :  { %v7607_v36 = vmul.f32 -1.442695, %v5709_v27  ;;  %v11795_v13 = vpop.f32.mrb[82].mxu0  ;;  %v8682_v56 = vpop.f32.mrb[102].mxu1 }
 0xc32   :  { %9284 = vpow2.f32 %v7608_v8  ;;  %v5724_v63 = vadd.f32 %v8682_v56, %v11739_v54  ;;  %v11806_v25 = vpop.f32.mrb[83].mxu0  ;;  %v5718_v44 = vpop.f32.mrb[103].mxu1  ;;  %v9047_v56 = vpack.c.bf16 %v7692_v53, %v7691_v59  ;;  %v11945_v59 = vstv %s11872_s2 }
 0xc33   :  { %9286 = vpow2.f32 %v7607_v36  ;;  %v5719_v28 = vadd.f32 %v11739_v54, %v5718_v44  ;;  %v11905_v36 = vstv %s11819_s26  ;;  %13227 = vst [vmem:[#allocation49_spill] sm:$0xff] %v11945_v59  ;;  %s12620_s26 = sld [smem:[#allocation7 + $0x37]] }
 0xc34   :  { %v9277_v4 = vpop.eup %9276  ;;  %v7610_v20 = vmul.f32 -1.442695, %v5724_v63  ;;  %13220 = vst [vmem:[#allocation28_spill] sm:$0xff] %v11905_v36  ;;  %v7670_v63 = vld [vmem:[%s13041_s11 + $0x38] sm:$0xff]  ;;  %9048 = vmatprep.subr.bf16.mxu1 %v9047_v56 }
 0xc35   :  { %v9279_v43 = vpop.eup %9278  ;;  %v5944_v29 = vadd.f32 1.0, %v9277_v4  ;;  %v7609_v49 = vmul.f32 -1.442695, %v5719_v28  ;;  %v11836_v24 = vpop.f32.mrb[84].mxu0  ;;  %v11913_v28 = vld [vmem:[%s13038_s8 + $0x1] ss:$0 sm:$0xff]  ;;  %9050 = vmatpush3.bf16.msra.mxu1 %v9047_v56  ;;  %v11953_v56 = vstv %s11887_s22 }
 0xc36   :  { %v8685_v0 = vpop.f32.mrb[104].mxu1  ;;  %v5943_v2 = vadd.f32 1.0, %v9279_v43  ;;  %9288 = vpow2.f32 %v7610_v20  ;;  %v11848_v33 = vpop.f32.mrb[85].mxu0  ;;  %v5456_v40 = vadd.f32 %v11741_v57, %v11913_v28  ;;  %13229 = vst [vmem:[#allocation19_spill] sm:$0xff] %v11953_v56 }
 0xc37   :  { %v5734_v7 = vadd.f32 %v8685_v0, %v11739_v54  ;;  %v5728_v30 = vpop.f32.mrb[105].mxu1  ;;  %9290 = vrcp.f32 %v5944_v29  ;;  %v11918_v29 = vstv %s11821_s0  ;;  %s12622_s0 = sld [smem:[#allocation7 + $0x3f]] }
 0xc38   :  { %v5729_v58 = vadd.f32 %v11739_v54, %v5728_v30  ;;  %v9281_v32 = vpop.eup %9280  ;;  %9292 = vrcp.f32 %v5943_v2  ;;  %13221 = vst [vmem:[#allocation54_spill] sm:$0xff] %v11918_v29 }
 0xc39   :  { %v7612_v9 = vmul.f32 -1.442695, %v5734_v7  ;;  %v9283_v21 = vpop.eup %9282  ;;  %v5946_v26 = vadd.f32 1.0, %v9281_v32  ;;  %9294 = vpow2.f32 %v7609_v49  ;;  %v11876_v35 = vpop.f32.mrb[86].mxu0  ;;  %v9039_v49 = vpack.c.bf16 %v7670_v63, %v7669_v23 }
 0xc3a   :  { %v7611_v52 = vmul.f32 -1.442695, %v5729_v58  ;;  %v8688_v22 = vpop.f32.mrb[106].mxu1  ;;  %v5945_v38 = vadd.f32 1.0, %v9283_v21  ;;  %v11882_v61 = vpop.f32.mrb[87].mxu0  ;;  %v11930_v32 = vstv %s11850_s5 }
 0xc3b   :  { %9296 = vpow2.f32 %v7612_v9  ;;  %v5744_v51 = vadd.f32 %v8688_v22, %v11739_v54  ;;  %v5738_v55 = vpop.f32.mrb[107].mxu1  ;;  %13224 = vst [vmem:[#allocation56_spill] sm:$0xff] %v11930_v32  ;;  %9040 = vmatprep.subr.bf16.mxu0 %v9039_v49  ;;  %v5451_v22 = vadd.f32 %v11913_v28, %v11744_v5 }
 0xc3c   :  { %9298 = vrcp.f32 %v5946_v26  ;;  %v5739_v6 = vadd.f32 %v11739_v54, %v5738_v55  ;;  %v9285_v27 = vpop.eup %9284  ;;  %v11935_v26 = vstv %s11859_s18  ;;  %9042 = vmatpush3.bf16.msra.mxu0 %v9039_v49  ;;  %v9500_v49 = vld [vmem:[#allocation2 + $0x8] sm:$0xff] }
 0xc3d   :  { %9300 = vrcp.f32 %v5945_v38  ;;  %v7614_v8 = vmul.f32 -1.442695, %v5744_v51  ;;  %v9287_v44 = vpop.eup %9286  ;;  %v5948_v4 = vadd.f32 1.0, %v9285_v27  ;;  %v11915_v20 = vpop.f32.mrb[88].mxu0  ;;  %13225 = vst [vmem:[#allocation47_spill] sm:$0xff] %v11935_v26  ;;  %v12002_v26 = vadd.f32 %v11913_v28, %v11882_v61 }
 0xc3e   :  { %9302 = vpow2.f32 %v7611_v52  ;;  %v8691_v43 = vpop.f32.mrb[108].mxu1  ;;  %v5947_v0 = vadd.f32 1.0, %v9287_v44  ;;  %v7613_v2 = vmul.f32 -1.442695, %v5739_v6  ;;  %v11921_v30 = vpop.f32.mrb[89].mxu0  ;;  %v11942_v6 = vstv %s11861_s19 }
 0xc3f   :  { %9304 = vpow2.f32 %v7614_v8  ;;  %v5754_v7 = vadd.f32 %v8691_v43, %v11739_v54  ;;  %v5748_v58 = vpop.f32.mrb[109].mxu1  ;;  %13226 = vst [vmem:[#allocation48_spill] sm:$0xff] %v11942_v6  ;;  %v11950_v8 = vstv %s11874_s27 }
 0xc40   :  { %9306 = vrcp.f32 %v5948_v4  ;;  %v9289_v9 = vpop.eup %9288  ;;  %13228 = vst [vmem:[#allocation29_spill] sm:$0xff] %v11950_v8  ;;  %v5749_v44 = vadd.f32 %v11739_v54, %v5748_v58  ;;  %v11957_v4 = vstv %s11893_s28  ;;  %v5476_v58 = vadd.f32 %v11773_v12, %v11913_v28 }
 0xc41   :  { %9308 = vrcp.f32 %v5947_v0  ;;  %v7616_v21 = vmul.f32 -1.442695, %v5754_v7  ;;  %v9291_v52 = vpop.eup %9290  ;;  %v5950_v38 = vadd.f32 1.0, %v9289_v9  ;;  %v11939_v51 = vpop.f32.mrb[90].mxu0  ;;  %13230 = vst [vmem:[#allocation30_spill] sm:$0xff] %v11957_v4  ;;  %v11983_v12 = vadd.f32 %v11836_v24, %v11913_v28 }
 0xc42   :  { %v8694_v55 = vpop.f32.mrb[110].mxu1  ;;  %v9293_v57 = vpop.eup %9292  ;;  %v6040_v53 = vmul.f32 %v9291_v52, %v5456_v40  ;;  %9310 = vpow2.f32 %v7613_v2  ;;  %v5466_v2 = vadd.f32 %v11755_v41, %v11913_v28  ;;  %v9501_v40 = vld [vmem:[#allocation2] sm:$0xff]  ;;  %v5471_v41 = vadd.f32 %v11913_v28, %v11778_v46 }
 0xc43   :  { %v11947_v23 = vpop.f32.mrb[91].mxu0  ;;  %v5758_v27 = vpop.f32.mrb[111].mxu1  ;;  %v6039_v63 = vmul.f32 %v9293_v57, %v5451_v22  ;;  %9312 = vrcp.f32 %v5950_v38  ;;  %v5461_v22 = vadd.f32 %v11913_v28, %v11758_v62  ;;  %v11979_v62 = vadd.f32 %v11913_v28, %v11806_v25 }
 0xc44   :  { %v9295_v5 = vpop.eup %9294  ;;  %v11959_v0 = vadd.f32 %v9500_v49, %v6040_v53  ;;  %9314 = vpow2.f32 %v7616_v21  ;;  %v5486_v21 = vadd.f32 %v11795_v13, %v11913_v28  ;;  %v11993_v46 = vadd.f32 %v11913_v28, %v11848_v33 }
 0xc45   :  { %v9297_v43 = vpop.eup %9296  ;;  %v5949_v7 = vadd.f32 1.0, %v9295_v5  ;;  %v11963_v52 = vadd.f32 %v9501_v40, %v6039_v63  ;;  %v11969_v57 = vpop.f32.mrb[92].mxu0  ;;  %v11997_v13 = vadd.f32 %v11876_v35, %v11913_v28  ;;  %v7615_v25 = vmul.f32 -1.442695, %v5749_v44 }
 0xc46   :  { %13231 = vst [vmem:[#allocation31_spill] sm:$0xff] %v11959_v0  ;;  %v9299_v9 = vpop.eup %9298  ;;  %v5952_v38 = vadd.f32 1.0, %v9297_v43  ;;  %v8697_v53 = vpop.f32.mrb[112].mxu1  ;;  %6104 = vst.msk [vmem:[#allocation2 + $0x8] sm:$0xff] %vm385_vm0, %v11959_v0  ;;  %v5764_v24 = vadd.f32 %v8694_v55, %v11739_v54  ;;  %v5759_v33 = vadd.f32 %v11739_v54, %v5758_v27  ;;  %v9502_v55 = vld [vmem:[#allocation2 + $0x18] sm:$0xff]  ;;  %v12019_v27 = vadd.f32 %v11915_v20, %v11913_v28 }
 0xc47   :  { %13232 = vst [vmem:[#allocation33_spill] sm:$0xff] %v11963_v52  ;;  %v9301_v49 = vpop.eup %9300  ;;  %v11985_v5 = vpop.f32.mrb[93].mxu0  ;;  %6103 = vst.msk [vmem:[#allocation2] sm:$0xff] %vm385_vm0, %v11963_v52  ;;  %v6042_v4 = vmul.f32 %v9299_v9, %v5466_v2  ;;  %9316 = vrcp.f32 %v5949_v7  ;;  %v9503_v2 = vld [vmem:[#allocation2 + $0x10] sm:$0xff]  ;;  %v12035_v20 = vadd.f32 %v11913_v28, %v11947_v23  ;;  %v12054_v23 = vmul.f32 %v11800_v48, %v11959_v0 }
 0xc48   :  { %v11987_v63 = vpop.f32.mrb[113].mxu1  ;;  %v9303_v43 = vpop.eup %9302  ;;  %v6041_v56 = vmul.f32 %v9301_v49, %v5461_v22  ;;  %9318 = vrcp.f32 %v5952_v38  ;;  %v12023_v49 = vadd.f32 %v11913_v28, %v11921_v30  ;;  %v12039_v30 = vmul.f32 %v11790_v15, %v11959_v0 }
 0xc49   :  { %v9305_v40 = vpop.eup %9304  ;;  %v5951_v8 = vadd.f32 1.0, %v9303_v43  ;;  %v12005_v32 = vpop.f32.mrb[94].mxu0  ;;  %v12009_v45 = vadd.f32 %v9502_v55, %v6042_v4  ;;  %13237 = vst [vmem:[#allocation38_spill] sm:$0xff] %v12035_v20  ;;  %v12070_v29 = vmul.f32 %v11790_v15, %v11963_v52 }
 0xc4a   :  { %v9307_v59 = vpop.eup %9306  ;;  %v5954_v6 = vadd.f32 1.0, %v9305_v40  ;;  %v12007_v35 = vpop.f32.mrb[114].mxu1  ;;  %v12011_v7 = vadd.f32 %v9503_v2, %v6041_v56  ;;  %v12043_v56 = vmul.f32 %v11793_v3, %v11959_v0 }
 0xc4b   :  { %v9309_v44 = vpop.eup %9308  ;;  %13233 = vst [vmem:[#allocation21_spill] sm:$0xff] %v12009_v45  ;;  %v6044_v9 = vmul.f32 %v9307_v59, %v5476_v58  ;;  %9320 = vrcp.f32 %v5951_v8  ;;  %v12013_v22 = vpop.f32.mrb[95].mxu0  ;;  %6106 = vst.msk [vmem:[#allocation2 + $0x18] sm:$0xff] %vm385_vm0, %v12009_v45  ;;  %v12031_v59 = vadd.f32 %v11939_v51, %v11913_v28  ;;  %v12045_v58 = vmul.f32 -1.442695, %v5759_v33 }
 0xc4c   :  { %13234 = vst [vmem:[#allocation35_spill] sm:$0xff] %v12011_v7  ;;  %13235 = vst [vmem:[#allocation36_spill] sm:$0xff] %v12013_v22  ;;  %v12015_v38 = vpop.f32.mrb[115].mxu1  ;;  %v6043_v61 = vmul.f32 %v9309_v44, %v5471_v41  ;;  %9322 = vrcp.f32 %v5954_v6  ;;  %v9311_v4 = vpop.eup %9310  ;;  %v7618_v6 = vmul.f32 -1.442695, %v5764_v24  ;;  %v5774_v41 = vadd.f32 %v8697_v53, %v11739_v54  ;;  %v9504_v24 = vld [vmem:[#allocation2 + $0x28] sm:$0xff] }
 0xc4d   :  { %6105 = vst.msk [vmem:[#allocation2 + $0x10] sm:$0xff] %vm385_vm0, %v12011_v7  ;;  %9324 = vpow2.f32 %v7615_v25  ;;  %13236 = vst [vmem:[#allocation37_spill] sm:$0xff] %v12031_v59  ;;  %v9313_v8 = vpop.eup %9312  ;;  %v12048_v51 = vpop.f32.mrb[96].mxu0  ;;  %v12056_v40 = vadd.f32 %v9504_v24, %v6044_v9  ;;  %v9505_v44 = vld [vmem:[#allocation2 + $0x20] sm:$0xff]  ;;  %v12066_v53 = vmul.f32 %v11803_v16, %v11959_v0  ;;  %v12074_v9 = vmul.f32 %v11793_v3, %v11963_v52 }
 0xc4e   :  { %13238 = vst [vmem:[#allocation22_spill] sm:$0xff] %v12048_v51  ;;  %v12050_v43 = vpop.f32.mrb[116].mxu1  ;;  %v9315_v25 = vpop.eup %9314  ;;  %v12058_v55 = vadd.f32 %v9505_v44, %v6043_v61  ;;  %v6046_v2 = vmul.f32 %v9313_v8, %v5486_v21  ;;  %v12078_v61 = vmul.f32 %v11800_v48, %v11963_v52  ;;  %v12082_v21 = vmul.f32 %v11803_v16, %v11963_v52  ;;  %v9506_v51 = vld [vmem:[#allocation2 + $0x38] sm:$0xff] }
 0xc4f   :  { %13239 = vst [vmem:[#allocation23_spill] sm:$0xff] %v12056_v40  ;;  %v12060_v33 = vpop.f32.mrb[97].mxu0  ;;  %v12062_v47 = vpop.f32.mrb[117].mxu1  ;;  %6108 = vst.msk [vmem:[#allocation2 + $0x28] sm:$0xff] %vm385_vm0, %v12056_v40  ;;  %v5953_v8 = vadd.f32 1.0, %v9311_v4  ;;  %9326 = vpow2.f32 %v7618_v6  ;;  %v12090_v24 = vadd.f32 %v11969_v57, %v11913_v28  ;;  %v12094_v44 = vmul.f32 %v11790_v15, %v12009_v45 }
 0xc50   :  { %13240 = vst [vmem:[#allocation24_spill] sm:$0xff] %v12058_v55  ;;  %13241 = vst [vmem:[#allocation12_spill] sm:$0xff] %v12060_v33  ;;  %v5956_v0 = vadd.f32 1.0, %v9315_v25  ;;  %v12096_v36 = vmul.f32 -1.442695, %v5774_v41  ;;  %v12100_v52 = vadd.f32 %v11913_v28, %v11985_v5  ;;  %v12108_v57 = vmul.f32 %v11793_v3, %v12009_v45 }
 0xc51   :  { %13242 = vst [vmem:[#allocation13_spill] sm:$0xff] %v12062_v47  ;;  %6107 = vst.msk [vmem:[#allocation2 + $0x20] sm:$0xff] %vm385_vm0, %v12058_v55  ;;  %v12102_v42 = vpop.f32.mrb[98].mxu0  ;;  %v12104_v1 = vpop.f32.mrb[118].mxu1  ;;  %v12112_v6 = vmul.f32 %v11800_v48, %v12009_v45  ;;  %v12116_v41 = vmul.f32 %v11803_v16, %v12009_v45  ;;  %v12120_v5 = vmul.f32 %v11790_v15, %v12011_v7  ;;  %9328 = vrcp.f32 %v5953_v8 }
 0xc52   :  { %13243 = vst [vmem:[#allocation14_spill] sm:$0xff] %v12090_v24  ;;  %13244 = vst [vmem:[#allocation15_spill] sm:$0xff] %v12100_v52  ;;  %v9317_v4 = vpop.eup %9316  ;;  %v12122_v25 = vpop.f32.mrb[99].mxu0  ;;  %v12128_v20 = vmul.f32 %v11793_v3, %v12011_v7  ;;  %v6224_v45 = vmul.f32 %v11816_v14, %v12056_v40  ;;  %v5769_v33 = vadd.f32 %v11739_v54, %v11987_v63  ;;  %9330 = vrcp.f32 %v5956_v0 }
 0xc53   :  { %13245 = vst [vmem:[#allocation43_spill] sm:$0xff] %v12102_v42  ;;  %13246 = vst [vmem:[#allocation44_spill] sm:$0xff] %v12104_v1  ;;  %v12124_v52 = vpop.f32.mrb[119].mxu1  ;;  %v9319_v24 = vpop.eup %9318  ;;  %v6144_v42 = vmul.f32 %v11813_v18, %v12056_v40  ;;  %v12136_v1 = vadd.f32 %v9506_v51, %v6046_v2  ;;  %v6304_v22 = vmul.f32 %v11824_v50, %v12056_v40 }
 0xc54   :  { %13247 = vst [vmem:[#allocation45_spill] sm:$0xff] %v12122_v25  ;;  %13248 = vst [vmem:[#allocation46_spill] sm:$0xff] %v12124_v52  ;;  %v6045_v25 = vmul.f32 %v9317_v4, %v11979_v62  ;;  %v6048_v52 = vmul.f32 %v9319_v24, %v11983_v12  ;;  %v6384_v47 = vmul.f32 %v11827_v17, %v12056_v40  ;;  %v9507_v24 = vld [vmem:[#allocation2 + $0x30] sm:$0xff] }
 0xc55   :  { %v9321_v15 = vpop.eup %9320  ;;  %13249 = vst [vmem:[#allocation16_spill] sm:$0xff] %v12136_v1  ;;  %v12145_v63 = vpop.f32.mrb[100].mxu0  ;;  %v6143_v62 = vmul.f32 %v11813_v18, %v12058_v55  ;;  %v6223_v12 = vmul.f32 %v11816_v14, %v12058_v55  ;;  %v6303_v2 = vmul.f32 %v11824_v50, %v12058_v55  ;;  %v6383_v8 = vmul.f32 %v11827_v17, %v12058_v55 }
 0xc56   :  { %v9323_v3 = vpop.eup %9322  ;;  %v6047_v59 = vmul.f32 %v9321_v15, %v11993_v46  ;;  %13250 = vst [vmem:[#allocation51_spill] sm:$0xff] %v12145_v63  ;;  %v12147_v10 = vpop.f32.mrb[120].mxu1  ;;  %6110 = vst.msk [vmem:[#allocation2 + $0x38] sm:$0xff] %vm385_vm0, %v12136_v1  ;;  %v12163_v4 = vadd.f32 %v9507_v24, %v6045_v25  ;;  %v9508_v15 = vld [vmem:[#allocation2 + $0x48] sm:$0xff]  ;;  %v9509_v63 = vld [vmem:[#allocation2 + $0x40] sm:$0xff]  ;;  %v12172_v55 = vmul.f32 %v11800_v48, %v12011_v7 }
 0xc57   :  { %13251 = vst [vmem:[#allocation17_spill] sm:$0xff] %v12147_v10  ;;  %v9325_v51 = vpop.eup %9324  ;;  %v12159_v0 = vpop.f32.mrb[101].mxu0  ;;  %v12165_v40 = vadd.f32 %v9508_v15, %v6048_v52  ;;  %v6050_v34 = vmul.f32 %v9323_v3, %v11997_v13  ;;  %v6146_v25 = vmul.f32 %v11813_v18, %v12136_v1  ;;  %v6226_v52 = vmul.f32 %v11816_v14, %v12136_v1 }
 0xc58   :  { %13252 = vst [vmem:[#allocation18_spill] sm:$0xff] %v12159_v0  ;;  %v12161_v46 = vpop.f32.mrb[121].mxu1  ;;  %13253 = vst [vmem:[#allocation20_spill] sm:$0xff] %v12163_v4  ;;  %v12167_v10 = vadd.f32 %v9509_v63, %v6047_v59  ;;  %v12176_v0 = vmul.f32 %v11803_v16, %v12011_v7  ;;  %v12183_v24 = vadd.f32 %v6144_v42, %v12039_v30  ;;  %v5955_v48 = vadd.f32 1.0, %v9325_v51 }
 0xc59   :  { %13254 = vst [vmem:[#allocation32_spill] sm:$0xff] %v12165_v40  ;;  %v12186_v59 = vadd.f32 %v6224_v45, %v12043_v56  ;;  %v12189_v13 = vadd.f32 %v6304_v22, %v12054_v23  ;;  %6109 = vst.msk [vmem:[#allocation2 + $0x30] sm:$0xff] %vm385_vm0, %v12163_v4  ;;  %v12197_v16 = vpop.f32.mrb[102].mxu0  ;;  %v12199_v42 = vpop.f32.mrb[122].mxu1  ;;  %v12202_v45 = vadd.f32 %v6384_v47, %v12066_v53 }
 0xc5a   :  { %13255 = vst [vmem:[#allocation34_spill] sm:$0xff] %v12167_v10  ;;  %6112 = vst.msk [vmem:[#allocation2 + $0x48] sm:$0xff] %vm385_vm0, %v12165_v40  ;;  %v9327_v30 = vpop.eup %9326  ;;  %v12205_v22 = vadd.f32 %v6143_v62, %v12070_v29  ;;  %v6306_v56 = vmul.f32 %v11824_v50, %v12136_v1  ;;  %v6386_v23 = vmul.f32 %v11827_v17, %v12136_v1  ;;  %v12211_v3 = vpop.f32.mrb[103].mxu0  ;;  %v7619_v29 = vmul.f32 -1.442695, %v5769_v33 }
 0xc5b   :  { %6111 = vst.msk [vmem:[#allocation2 + $0x40] sm:$0xff] %vm385_vm0, %v12167_v10  ;;  %v12213_v63 = vpop.f32.mrb[123].mxu1  ;;  %v12216_v51 = vadd.f32 %v6223_v12, %v12074_v9  ;;  %v12219_v15 = vadd.f32 %v6303_v2, %v12078_v61  ;;  %v12222_v47 = vadd.f32 %v6383_v8, %v12082_v21  ;;  %v12225_v53 = vadd.f32 %v6146_v25, %v12094_v44  ;;  %v9510_v12 = vld [vmem:[#allocation2 + $0x58] sm:$0xff] }
 0xc5c   :  { %v12228_v62 = vadd.f32 %v6226_v52, %v12108_v57  ;;  %v6145_v1 = vmul.f32 %v11813_v18, %v12163_v4  ;;  %v12234_v9 = vadd.f32 %v12005_v32, %v11913_v28  ;;  %v6225_v61 = vmul.f32 %v11816_v14, %v12163_v4  ;;  %v9329_v57 = vpop.eup %9328 }
 0xc5d   :  { %v12238_v21 = vadd.f32 %v9510_v12, %v6050_v34  ;;  %9332 = vrcp.f32 %v5955_v48  ;;  %v5958_v33 = vadd.f32 1.0, %v9327_v30  ;;  %v12240_v44 = vpop.f32.mrb[104].mxu0  ;;  %v12242_v2 = vpop.f32.mrb[124].mxu1  ;;  %v12245_v8 = vadd.f32 %v6306_v56, %v12112_v6 }
 0xc5e   :  { %v12248_v18 = vadd.f32 %v6386_v23, %v12116_v41  ;;  %v6305_v32 = vmul.f32 %v11824_v50, %v12163_v4  ;;  %9334 = vpow2.f32 %v12045_v58  ;;  %v12253_v14 = vpop.f32.mrb[105].mxu0  ;;  %v12255_v34 = vpop.f32.mrb[125].mxu1  ;;  %v6385_v52 = vmul.f32 %v11827_v17, %v12163_v4 }
 0xc5f   :  { %13256 = vst [vmem:[#allocation39_spill] sm:$0xff] %v12238_v21  ;;  %v9331_v25 = vpop.eup %9330  ;;  %v6154_v6 = vmul.f32 %v11830_v11, %v12165_v40  ;;  %v6234_v41 = vmul.f32 %v11839_v39, %v12165_v40  ;;  %v6314_v48 = vmul.f32 %v11842_v60, %v12165_v40  ;;  %6114 = vst.msk [vmem:[#allocation2 + $0x58] sm:$0xff] %vm385_vm0, %v12238_v21  ;;  %9336 = vrcp.f32 %v5958_v33 }
 0xc60   :  { %v6394_v50 = vmul.f32 %v11846_v19, %v12165_v40  ;;  %v6049_v58 = vmul.f32 %v9329_v57, %v12002_v26  ;;  %v6052_v30 = vmul.f32 %v9331_v25, %v12019_v27  ;;  %v12272_v17 = vadd.f32 %v6145_v1, %v12120_v5  ;;  %v9511_v40 = vld [vmem:[#allocation2 + $0x50] sm:$0xff]  ;;  %v9512_v27 = vld [vmem:[#allocation2 + $0x68] sm:$0xff] }
 0xc61   :  { %v12275_v56 = vadd.f32 %v6225_v61, %v12128_v20  ;;  %v6153_v23 = vmul.f32 %v11830_v11, %v12167_v10  ;;  %9338 = vpow2.f32 %v12096_v36  ;;  %v12280_v12 = vpop.f32.mrb[106].mxu0  ;;  %v12282_v4 = vpop.f32.mrb[126].mxu1  ;;  %v5784_v1 = vadd.f32 %v12007_v35, %v11739_v54 }
 0xc62   :  { %v12284_v26 = vadd.f32 %v9511_v40, %v6049_v58  ;;  %v12286_v33 = vadd.f32 %v9512_v27, %v6052_v30  ;;  %9340 = vpow2.f32 %v7619_v29  ;;  %v12290_v20 = vpop.f32.mrb[107].mxu0  ;;  %v12292_v5 = vpop.f32.mrb[127].mxu1  ;;  %v6233_v36 = vmul.f32 %v11839_v39, %v12167_v10 }
 0xc63   :  { %v6313_v61 = vmul.f32 %v11842_v60, %v12167_v10  ;;  %v6393_v40 = vmul.f32 %v11846_v19, %v12167_v10  ;;  %v6156_v57 = vmul.f32 %v11830_v11, %v12238_v21  ;;  %v6309_v29 = vadd.f32 %v6305_v32, %v12172_v55 }
 0xc64   :  { %13257 = vst [vmem:[#allocation40_spill] sm:$0xff] %v12284_v26  ;;  %13258 = vst [vmem:[#allocation42_spill] sm:$0xff] %v12286_v33  ;;  %v12304_v35 = vadd.f32 %v6385_v52, %v12176_v0  ;;  %v6236_v25 = vmul.f32 %v11839_v39, %v12238_v21  ;;  %v6158_v58 = vadd.f32 %v6154_v6, %v12183_v24  ;;  %v7622_v10 = vmul.f32 -1.442695, %v5784_v1 }
 0xc65   :  { %6113 = vst.msk [vmem:[#allocation2 + $0x50] sm:$0xff] %vm385_vm0, %v12284_v26  ;;  %6116 = vst.msk [vmem:[#allocation2 + $0x68] sm:$0xff] %vm385_vm0, %v12286_v33  ;;  %v6316_v30 = vmul.f32 %v11842_v60, %v12238_v21  ;;  %v6238_v27 = vadd.f32 %v6234_v41, %v12186_v59  ;;  %v6318_v55 = vadd.f32 %v6314_v48, %v12189_v13 }
 0xc66   :  { %v6398_v0 = vadd.f32 %v6394_v50, %v12202_v45  ;;  %v6396_v32 = vmul.f32 %v11846_v19, %v12238_v21  ;;  %v12321_v52 = vadd.f32 %v6153_v23, %v12205_v22  ;;  %v5779_v7 = vadd.f32 %v11739_v54, %v12015_v38  ;;  %v9519_v21 = vld [vmem:[#allocation2 + $0x90] sm:$0xff] }
 0xc67   :  { %v9333_v24 = vpop.eup %9332  ;;  %v12326_v6 = vadd.f32 %v6233_v36, %v12216_v51  ;;  %v12329_v59 = vadd.f32 %v6313_v61, %v12219_v15  ;;  %v12332_v13 = vadd.f32 %v6393_v40, %v12222_v47  ;;  %v12335_v45 = vadd.f32 %v6156_v57, %v12225_v53  ;;  %v13262_v61 = vld [vmem:[#allocation37_spill] sm:$0xff] }
 0xc68   :  { %v9335_v41 = vpop.eup %9334  ;;  %v6051_v22 = vmul.f32 %v9333_v24, %v12023_v49  ;;  %9342 = vpow2.f32 %v7622_v10  ;;  %v12339_v48 = vadd.f32 %v6236_v25, %v12228_v62  ;;  %v7621_v38 = vmul.f32 -1.442695, %v5779_v7  ;;  %v9513_v49 = vld [vmem:[#allocation2 + $0x60] sm:$0xff] }
 0xc69   :  { %v6155_v51 = vmul.f32 %v11830_v11, %v12284_v26  ;;  %v6235_v15 = vmul.f32 %v11839_v39, %v12284_v26  ;;  %v6164_v47 = vmul.f32 %v11854_v37, %v12286_v33  ;;  %v5957_v50 = vadd.f32 1.0, %v9335_v41  ;;  %v9337_v53 = vpop.eup %9336  ;;  %v13260_v11 = vld [vmem:[#allocation25_spill] sm:$0xff]  ;;  %v13261_v39 = vld [vmem:[#allocation26_spill] sm:$0xff] }
 0xc6a   :  { %v6244_v23 = vmul.f32 %v11857_v31, %v12286_v33  ;;  %v12349_v10 = vadd.f32 %v9513_v49, %v6051_v22  ;;  %9344 = vpow2.f32 %v7621_v38  ;;  %v5794_v7 = vadd.f32 %v12050_v43, %v11739_v54  ;;  %v13263_v41 = vld [vmem:[#allocation13_spill] sm:$0xff] }
 0xc6b   :  { %v9339_v62 = vpop.eup %9338  ;;  %v6324_v1 = vmul.f32 %v13260_v11, %v12286_v33  ;;  %v6404_v36 = vmul.f32 %v13261_v39, %v12286_v33  ;;  %v6054_v40 = vmul.f32 %v9337_v53, %v13262_v61  ;;  %9346 = vrcp.f32 %v5957_v50  ;;  %v9514_v50 = vld [vmem:[#allocation2 + $0x78] sm:$0xff]  ;;  %v13265_v33 = vld [vmem:[#allocation36_spill] sm:$0xff] }
 0xc6c   :  { %13259 = vst [vmem:[#allocation57_spill] sm:$0xff] %v12349_v10  ;;  %v9341_v57 = vpop.eup %9340  ;;  %v6315_v25 = vmul.f32 %v11842_v60, %v12284_v26  ;;  %6115 = vst.msk [vmem:[#allocation2 + $0x60] sm:$0xff] %vm385_vm0, %v12349_v10  ;;  %v12363_v24 = vadd.f32 %v6316_v30, %v12245_v8  ;;  %v12366_v43 = vadd.f32 %v6396_v32, %v12248_v18  ;;  %v5960_v49 = vadd.f32 1.0, %v9339_v62 }
 0xc6d   :  { %v5789_v22 = vadd.f32 %v11739_v54, %v13263_v41  ;;  %v6395_v38 = vmul.f32 %v11846_v19, %v12284_v26  ;;  %v12372_v53 = vadd.f32 %v9514_v50, %v6054_v40  ;;  %v5959_v60 = vadd.f32 1.0, %v9341_v57 }
 0xc6e   :  { %v12374_v61 = vadd.f32 %v6164_v47, %v6158_v58  ;;  %v12378_v8 = vadd.f32 %v11913_v28, %v13265_v33  ;;  %v12381_v18 = vadd.f32 %v6155_v51, %v12272_v17  ;;  %v7624_v30 = vmul.f32 -1.442695, %v5794_v7  ;;  %v13266_v17 = vld [vmem:[#allocation44_spill] sm:$0xff] }
 0xc6f   :  { %13264 = vst [vmem:[#allocation58_spill] sm:$0xff] %v12372_v53  ;;  %6118 = vst.msk [vmem:[#allocation2 + $0x78] sm:$0xff] %vm385_vm0, %v12372_v53  ;;  %v12385_v32 = vadd.f32 %v6244_v23, %v6238_v27  ;;  %v12387_v19 = vadd.f32 %v6324_v1, %v6318_v55  ;;  %v12389_v40 = vadd.f32 %v6404_v36, %v6398_v0  ;;  %9348 = vrcp.f32 %v5960_v49  ;;  %v13267_v27 = vld [vmem:[#allocation22_spill] sm:$0xff]  ;;  %v13268_v0 = vld [vmem:[#allocation12_spill] sm:$0xff] }
 0xc70   :  { %v12392_v58 = vadd.f32 %v6235_v15, %v12275_v56  ;;  %v12394_v47 = vadd.f32 %v6315_v25, %v6309_v29  ;;  %v7623_v33 = vmul.f32 -1.442695, %v5789_v22  ;;  %v5804_v51 = vadd.f32 %v13266_v17, %v11739_v54  ;;  %v13269_v29 = vld [vmem:[#allocation43_spill] sm:$0xff]  ;;  %v13270_v1 = vld [vmem:[#allocation46_spill] sm:$0xff]  ;;  %v13271_v25 = vld [vmem:[#allocation17_spill] sm:$0xff] }
 0xc71   :  { %9350 = vrcp.f32 %v5959_v60  ;;  %v12399_v7 = vadd.f32 %v6395_v38, %v12304_v35  ;;  %v12403_v55 = vadd.f32 %v13267_v27, %v11913_v28  ;;  %v12407_v23 = vadd.f32 %v11913_v28, %v13268_v0 }
 0xc72   :  { %v9343_v56 = vpop.eup %9342  ;;  %9352 = vpow2.f32 %v7624_v30  ;;  %v12411_v15 = vadd.f32 %v13269_v29, %v11913_v28  ;;  %v7626_v62 = vmul.f32 -1.442695, %v5804_v51  ;;  %v5799_v36 = vadd.f32 %v11739_v54, %v13270_v1  ;;  %v13272_v51 = vld [vmem:[#allocation38_spill] sm:$0xff] }
 0xc73   :  { %v6163_v35 = vmul.f32 %v11854_v37, %v12349_v10  ;;  %v5962_v57 = vadd.f32 1.0, %v9343_v56  ;;  %9354 = vpow2.f32 %v7623_v33  ;;  %v5814_v41 = vadd.f32 %v13271_v25, %v11739_v54 }
 0xc74   :  { %v9345_v22 = vpop.eup %9344  ;;  %v6243_v38 = vmul.f32 %v11857_v31, %v12349_v10  ;;  %9356 = vpow2.f32 %v7626_v62  ;;  %v7625_v50 = vmul.f32 -1.442695, %v5799_v36  ;;  %v5809_v49 = vadd.f32 %v11739_v54, %v12161_v46  ;;  %v9515_v36 = vld [vmem:[#allocation2 + $0x70] sm:$0xff] }
 0xc75   :  { %v9347_v60 = vpop.eup %9346  ;;  %v6323_v30 = vmul.f32 %v13260_v11, %v12349_v10  ;;  %v6403_v17 = vmul.f32 %v13261_v39, %v12349_v10  ;;  %9358 = vrcp.f32 %v5962_v57  ;;  %v5961_v33 = vadd.f32 1.0, %v9345_v22  ;;  %v9518_v10 = vld [vmem:[#allocation2 + $0x98] sm:$0xff] }
 0xc76   :  { %v6053_v27 = vmul.f32 %v9347_v60, %v13272_v51  ;;  %9360 = vpow2.f32 %v7625_v50  ;;  %v7628_v0 = vmul.f32 -1.442695, %v5814_v41  ;;  %v5824_v56 = vadd.f32 %v12199_v42, %v11739_v54 }
 0xc77   :  { %v6166_v29 = vmul.f32 %v11854_v37, %v12372_v53  ;;  %9362 = vrcp.f32 %v5961_v33  ;;  %v7627_v46 = vmul.f32 -1.442695, %v5809_v49  ;;  %v5819_v62 = vadd.f32 %v11739_v54, %v12213_v63 }
 0xc78   :  { %v6246_v1 = vmul.f32 %v11857_v31, %v12372_v53  ;;  %v12436_v57 = vadd.f32 %v9515_v36, %v6053_v27  ;;  %v7630_v25 = vmul.f32 -1.442695, %v5824_v56  ;;  %v5834_v41 = vadd.f32 %v12242_v2, %v11739_v54  ;;  %v13276_v27 = vld [vmem:[#allocation15_spill] sm:$0xff] }
 0xc79   :  { %v12441_v42 = vadd.f32 %v6163_v35, %v12321_v52  ;;  %v12444_v22 = vadd.f32 %v6243_v38, %v12326_v6  ;;  %v12447_v50 = vadd.f32 %v6323_v30, %v12329_v59  ;;  %v7629_v63 = vmul.f32 -1.442695, %v5819_v62  ;;  %v9349_v49 = vpop.eup %9348  ;;  %v13274_v6 = vld [vmem:[#allocation14_spill] sm:$0xff]  ;;  %v13275_v59 = vld [vmem:[#allocation45_spill] sm:$0xff] }
 0xc7a   :  { %13273 = vst [vmem:[#allocation59_spill] sm:$0xff] %v12436_v57  ;;  %v6326_v60 = vmul.f32 %v13260_v11, %v12372_v53  ;;  %v6406_v33 = vmul.f32 %v13261_v39, %v12372_v53  ;;  %6117 = vst.msk [vmem:[#allocation2 + $0x70] sm:$0xff] %vm385_vm0, %v12436_v57  ;;  %v12456_v2 = vadd.f32 %v6403_v17, %v12332_v13  ;;  %9364 = vpow2.f32 %v7628_v0  ;;  %v9516_v0 = vld [vmem:[#allocation2 + $0x88] sm:$0xff] }
 0xc7b   :  { %v9351_v52 = vpop.eup %9350  ;;  %v6056_v35 = vmul.f32 %v9349_v49, %v13274_v6  ;;  %v12461_v38 = vadd.f32 %v11913_v28, %v13275_v59  ;;  %9366 = vpow2.f32 %v7627_v46  ;;  %v7632_v30 = vmul.f32 -1.442695, %v5834_v41  ;;  %v9517_v6 = vld [vmem:[#allocation2 + $0x80] sm:$0xff] }
 0xc7c   :  { %v9353_v51 = vpop.eup %9352  ;;  %v6055_v56 = vmul.f32 %v9351_v52, %v13276_v27  ;;  %v12465_v62 = vadd.f32 %v6166_v29, %v12335_v45  ;;  %v12468_v36 = vadd.f32 %v6246_v1, %v12339_v48  ;;  %9368 = vpow2.f32 %v7630_v25  ;;  %v13277_v1 = vld [vmem:[#allocation51_spill] sm:$0xff] }
 0xc7d   :  { %v9355_v13 = vpop.eup %9354  ;;  %v6165_v17 = vmul.f32 %v11854_v37, %v12436_v57  ;;  %v6088_v49 = vadd.f32 %v9516_v0, %v6056_v35  ;;  %9370 = vpow2.f32 %v7629_v63  ;;  %v5829_v46 = vadd.f32 %v11739_v54, %v12255_v34  ;;  %v13278_v63 = vld [vmem:[#allocation18_spill] sm:$0xff]  ;;  %v13279_v27 = vld [vmem:[#allocation27_spill] sm:$0xff]  ;;  %v13281_v0 = vld [vmem:[#allocation28_spill] sm:$0xff] }
 0xc7e   :  { %v9357_v41 = vpop.eup %9356  ;;  %v6087_v52 = vadd.f32 %v9517_v6, %v6055_v56  ;;  %v12475_v45 = vadd.f32 %v6326_v60, %v12363_v24  ;;  %v12478_v48 = vadd.f32 %v6406_v33, %v12366_v43  ;;  %9372 = vpow2.f32 %v7632_v30 }
 0xc7f   :  { %v9359_v29 = vpop.eup %9358  ;;  %6120 = vst.msk [vmem:[#allocation2 + $0x88] sm:$0xff] %vm385_vm0, %v6088_v49  ;;  %v5964_v37 = vadd.f32 1.0, %v9353_v51  ;;  %v12483_v25 = vadd.f32 %v13277_v1, %v11913_v28  ;;  %v12487_v54 = vadd.f32 %v11913_v28, %v13278_v63  ;;  %v12491_v34 = vadd.f32 %v12197_v16, %v11913_v28 }
 0xc80   :  { %v9361_v24 = vpop.eup %9360  ;;  %v6245_v43 = vmul.f32 %v11857_v31, %v12436_v57  ;;  %6119 = vst.msk [vmem:[#allocation2 + $0x80] sm:$0xff] %vm385_vm0, %v6087_v52  ;;  %v5963_v60 = vadd.f32 1.0, %v9355_v13  ;;  %v12498_v33 = vadd.f32 %v11913_v28, %v12211_v3  ;;  %v12502_v35 = vadd.f32 %v12240_v44, %v11913_v28  ;;  %v13280_v3 = vld [vmem:[#allocation53_spill] sm:$0xff]  ;;  %v13282_v28 = vld [vmem:[#allocation54_spill] sm:$0xff] }
 0xc81   :  { %v9363_v59 = vpop.eup %9362  ;;  %v6325_v16 = vmul.f32 %v13260_v11, %v12436_v57  ;;  %v6405_v30 = vmul.f32 %v13261_v39, %v12436_v57  ;;  %v12509_v31 = vadd.f32 %v6165_v17, %v12381_v18  ;;  %v12511_v51 = vmul.f32 -1.442695, %v5829_v46 }
 0xc82   :  { %v6174_v56 = vmul.f32 %v13279_v27, %v6088_v49  ;;  %v6254_v13 = vmul.f32 %v13280_v3, %v6088_v49  ;;  %v6334_v6 = vmul.f32 %v13281_v0, %v6088_v49  ;;  %v6414_v44 = vmul.f32 %v13282_v28, %v6088_v49 }
 0xc83   :  { %v6058_v1 = vmul.f32 %v9359_v29, %v12234_v9  ;;  %v6057_v11 = vmul.f32 %v9363_v59, %v12378_v8  ;;  %9374 = vrcp.f32 %v5964_v37  ;;  %v5966_v63 = vadd.f32 1.0, %v9357_v41 }
 0xc84   :  { %v9365_v39 = vpop.eup %9364  ;;  %v6173_v18 = vmul.f32 %v13279_v27, %v6087_v52  ;;  %v6253_v17 = vmul.f32 %v13280_v3, %v6087_v52  ;;  %9376 = vrcp.f32 %v5963_v60  ;;  %v5965_v46 = vadd.f32 1.0, %v9361_v24 }
 0xc85   :  { %v9367_v57 = vpop.eup %9366  ;;  %v6333_v53 = vmul.f32 %v13281_v0, %v6087_v52  ;;  %v6090_v26 = vadd.f32 %v9518_v10, %v6058_v1  ;;  %v6089_v49 = vadd.f32 %v9519_v21, %v6057_v11  ;;  %9378 = vrcp.f32 %v5966_v63 }
 0xc86   :  { %v9369_v9 = vpop.eup %9368  ;;  %v6413_v8 = vmul.f32 %v13282_v28, %v6087_v52  ;;  %v12524_v41 = vadd.f32 %v6245_v43, %v12392_v58  ;;  %v12527_v29 = vadd.f32 %v6325_v16, %v12394_v47  ;;  %9380 = vrcp.f32 %v5965_v46 }
 0xc87   :  { %v9371_v37 = vpop.eup %9370  ;;  %v12530_v24 = vadd.f32 %v6174_v56, %v12374_v61  ;;  %v12533_v60 = vadd.f32 %v6254_v13, %v12385_v32  ;;  %6122 = vst.msk [vmem:[#allocation2 + $0x98] sm:$0xff] %vm385_vm0, %v6090_v26  ;;  %6121 = vst.msk [vmem:[#allocation2 + $0x90] sm:$0xff] %vm385_vm0, %v6089_v49  ;;  %v12538_v21 = vadd.f32 %v6405_v30, %v12399_v7  ;;  %v5968_v10 = vadd.f32 1.0, %v9365_v39  ;;  %v9520_v56 = vld [vmem:[%s13040_s10 + $0x1] ss:$0 sm:$0xff]  ;;  %s12601_s10 = sld [smem:[#allocation7 + $0x2f]] }
 0xc88   :  { %v9373_v58 = vpop.eup %9372  ;;  %v6338_v47 = vadd.f32 %v6334_v6, %v12387_v19  ;;  %v6418_v52 = vadd.f32 %v6414_v44, %v12389_v40  ;;  %v6177_v43 = vadd.f32 %v6173_v18, %v12441_v42  ;;  %v5967_v61 = vadd.f32 1.0, %v9367_v57 }
 0xc89   :  { %v6257_v59 = vadd.f32 %v6253_v17, %v12444_v22  ;;  %v6337_v32 = vadd.f32 %v6333_v53, %v12447_v50  ;;  %v5970_v16 = vadd.f32 1.0, %v9369_v9  ;;  %v5844_v7 = vadd.f32 %v9520_v56, %v12282_v4  ;;  %v9521_v17 = vld [vmem:[#allocation2 + $0xa8] sm:$0xff]  ;;  %v13284_v9 = vld [vmem:[#allocation41_spill] sm:$0xff] }
 0xc8a   :  { %v6417_v30 = vadd.f32 %v6413_v8, %v12456_v2  ;;  %v6176_v19 = vmul.f32 %v13279_v27, %v6090_v26  ;;  %v6256_v40 = vmul.f32 %v13280_v3, %v6090_v26  ;;  %v6336_v42 = vmul.f32 %v13281_v0, %v6090_v26 }
 0xc8b   :  { %v6416_v57 = vmul.f32 %v13282_v28, %v6090_v26  ;;  %9382 = vrcp.f32 %v5968_v10  ;;  %v5969_v22 = vadd.f32 1.0, %v9371_v37  ;;  %v5972_v53 = vadd.f32 1.0, %v9373_v58  ;;  %v13285_v37 = vld [vmem:[#allocation56_spill] sm:$0xff]  ;;  %v13286_v10 = vld [vmem:[#allocation47_spill] sm:$0xff] }
 0xc8c   :  { %v6175_v50 = vmul.f32 %v13279_v27, %v6089_v49  ;;  %v6255_v13 = vmul.f32 %v13280_v3, %v6089_v49  ;;  %9384 = vrcp.f32 %v5967_v61  ;;  %v5839_v4 = vadd.f32 %v9520_v56, %v12292_v5 }
 0xc8d   :  { %v9375_v6 = vpop.eup %9374  ;;  %v6335_v2 = vmul.f32 %v13281_v0, %v6089_v49  ;;  %v6415_v44 = vmul.f32 %v13282_v28, %v6089_v49  ;;  %9386 = vrcp.f32 %v5970_v16  ;;  %v7634_v1 = vmul.f32 -1.442695, %v5844_v7 }
 0xc8e   :  { %v9377_v11 = vpop.eup %9376  ;;  %v12560_v26 = vadd.f32 %v6176_v19, %v12465_v62  ;;  %v12563_v63 = vadd.f32 %v6256_v40, %v12468_v36  ;;  %v6060_v27 = vmul.f32 %v9375_v6, %v12403_v55  ;;  %9388 = vrcp.f32 %v5969_v22  ;;  %v9522_v36 = vld [vmem:[#allocation2 + $0xa0] sm:$0xff] }
 0xc8f   :  { %v9379_v3 = vpop.eup %9378  ;;  %v6340_v5 = vadd.f32 %v6336_v42, %v12475_v45  ;;  %v6420_v39 = vadd.f32 %v6416_v57, %v12478_v48  ;;  %v6059_v0 = vmul.f32 %v9377_v11, %v12407_v23  ;;  %9390 = vrcp.f32 %v5972_v53  ;;  %v13283_v48 = vld [vmem:[#allocation55_spill] sm:$0xff] }
 0xc90   :  { %v9381_v28 = vpop.eup %9380  ;;  %v6179_v18 = vadd.f32 %v6175_v50, %v12509_v31  ;;  %v6092_v62 = vadd.f32 %v9521_v17, %v6060_v27  ;;  %v6062_v46 = vmul.f32 %v9379_v3, %v12411_v15  ;;  %9392 = vpow2.f32 %v12511_v51  ;;  %v9523_v50 = vld [vmem:[#allocation2 + $0xb8] sm:$0xff] }
 0xc91   :  { %v6091_v55 = vadd.f32 %v9522_v36, %v6059_v0  ;;  %v6061_v49 = vmul.f32 %v9381_v28, %v12461_v38  ;;  %9394 = vpow2.f32 %v7634_v1  ;;  %v7633_v45 = vmul.f32 -1.442695, %v5839_v4 }
 0xc92   :  { %6124 = vst.msk [vmem:[#allocation2 + $0xa8] sm:$0xff] %vm385_vm0, %v6092_v62  ;;  %v6184_v23 = vmul.f32 %v13283_v48, %v6092_v62  ;;  %v6264_v8 = vmul.f32 %v13284_v9, %v6092_v62  ;;  %v6344_v31 = vmul.f32 %v13285_v37, %v6092_v62  ;;  %v6424_v58 = vmul.f32 %v13286_v10, %v6092_v62 }
 0xc93   :  { %6123 = vst.msk [vmem:[#allocation2 + $0xa0] sm:$0xff] %vm385_vm0, %v6091_v55  ;;  %v6183_v15 = vmul.f32 %v13283_v48, %v6091_v55  ;;  %v6263_v51 = vmul.f32 %v13284_v9, %v6091_v55  ;;  %v6343_v38 = vmul.f32 %v13285_v37, %v6091_v55  ;;  %v6423_v61 = vmul.f32 %v13286_v10, %v6091_v55 }
 0xc94   :  { %v12584_v16 = vadd.f32 %v6184_v23, %v12530_v24  ;;  %v12587_v56 = vadd.f32 %v6264_v8, %v12533_v60  ;;  %v12589_v7 = vadd.f32 %v6344_v31, %v6338_v47  ;;  %v12591_v19 = vadd.f32 %v6424_v58, %v6418_v52  ;;  %v9524_v60 = vld [vmem:[#allocation2 + $0xb0] sm:$0xff]  ;;  %v9526_v23 = vld [vmem:[#allocation2 + $0xc0] sm:$0xff] }
 0xc95   :  { %v9383_v40 = vpop.eup %9382  ;;  %v12593_v42 = vadd.f32 %v6183_v15, %v6177_v43  ;;  %v12595_v57 = vadd.f32 %v6263_v51, %v6257_v59  ;;  %v12597_v22 = vadd.f32 %v6343_v38, %v6337_v32  ;;  %v12599_v53 = vadd.f32 %v6423_v61, %v6417_v30  ;;  %v13289_v15 = vld [vmem:[#allocation29_spill] sm:$0xff]  ;;  %v13290_v38 = vld [vmem:[#allocation19_spill] sm:$0xff] }
 0xc96   :  { %v9385_v24 = vpop.eup %9384  ;;  %v6094_v4 = vadd.f32 %v9523_v50, %v6062_v46  ;;  %v6093_v6 = vadd.f32 %v9524_v60, %v6061_v49  ;;  %v6064_v47 = vmul.f32 %v9383_v40, %v12483_v25  ;;  %9396 = vpow2.f32 %v7633_v45  ;;  %v9525_v45 = vld [vmem:[#allocation2 + $0xc8] sm:$0xff] }
 0xc97   :  { %v9387_v52 = vpop.eup %9386  ;;  %v6259_v43 = vadd.f32 %v6255_v13, %v12524_v41  ;;  %v6339_v59 = vadd.f32 %v6335_v2, %v12527_v29  ;;  %v6419_v32 = vadd.f32 %v6415_v44, %v12538_v21  ;;  %v6063_v30 = vmul.f32 %v9385_v24, %v12487_v54 }
 0xc98   :  { %v9389_v1 = vpop.eup %9388  ;;  %6126 = vst.msk [vmem:[#allocation2 + $0xb8] sm:$0xff] %vm385_vm0, %v6094_v4  ;;  %v6186_v11 = vmul.f32 %v13283_v48, %v6094_v4  ;;  %v6266_v27 = vmul.f32 %v13284_v9, %v6094_v4  ;;  %v6346_v3 = vmul.f32 %v13285_v37, %v6094_v4  ;;  %v6426_v25 = vmul.f32 %v13286_v10, %v6094_v4 }
 0xc99   :  { %6125 = vst.msk [vmem:[#allocation2 + $0xb0] sm:$0xff] %vm385_vm0, %v6093_v6  ;;  %v9391_v41 = vpop.eup %9390  ;;  %v6185_v29 = vmul.f32 %v13283_v48, %v6093_v6  ;;  %v6265_v21 = vmul.f32 %v13284_v9, %v6093_v6  ;;  %v6345_v54 = vmul.f32 %v13285_v37, %v6093_v6  ;;  %v6425_v13 = vmul.f32 %v13286_v10, %v6093_v6  ;;  %v13287_v37 = vld [vmem:[#allocation48_spill] sm:$0xff]  ;;  %v13288_v10 = vld [vmem:[#allocation49_spill] sm:$0xff] }
 0xc9a   :  { %v9393_v2 = vpop.eup %9392  ;;  %v6190_v44 = vadd.f32 %v6186_v11, %v12560_v26  ;;  %v6270_v0 = vadd.f32 %v6266_v27, %v12563_v63  ;;  %v6350_v28 = vadd.f32 %v6346_v3, %v6340_v5  ;;  %v6430_v17 = vadd.f32 %v6426_v25, %v6420_v39 }
 0xc9b   :  { %v9395_v62 = vpop.eup %9394  ;;  %v6189_v46 = vadd.f32 %v6185_v29, %v6179_v18  ;;  %v6269_v36 = vadd.f32 %v6265_v21, %v6259_v43  ;;  %v6349_v55 = vadd.f32 %v6345_v54, %v6339_v59  ;;  %v6429_v49 = vadd.f32 %v6425_v13, %v6419_v32 }
 0xc9c   :  { %v6096_v48 = vadd.f32 %v9525_v45, %v6064_v47  ;;  %v6095_v9 = vadd.f32 %v9526_v23, %v6063_v30  ;;  %v6066_v26 = vmul.f32 %v9387_v52, %v12491_v34  ;;  %v6065_v63 = vmul.f32 %v9389_v1, %v12498_v33  ;;  %v9528_v30 = vld [vmem:[#allocation2 + $0xd0] sm:$0xff]  ;;  %v9529_v1 = vld [vmem:[#allocation2 + $0xe8] sm:$0xff] }
 0xc9d   :  { %v6068_v5 = vmul.f32 %v9391_v41, %v12502_v35  ;;  %v12628_v39 = vstv %s12601_s10  ;;  %v5971_v18 = vadd.f32 1.0, %v9393_v2  ;;  %v5974_v8 = vadd.f32 1.0, %v9395_v62 }
 0xc9e   :  { %6128 = vst.msk [vmem:[#allocation2 + $0xc8] sm:$0xff] %vm385_vm0, %v6096_v48  ;;  %v6194_v31 = vmul.f32 %v13287_v37, %v6096_v48  ;;  %v6274_v58 = vmul.f32 %v13288_v10, %v6096_v48  ;;  %v6354_v51 = vmul.f32 %v13289_v15, %v6096_v48  ;;  %v6434_v61 = vmul.f32 %v13290_v38, %v6096_v48 }
 0xc9f   :  { %6127 = vst.msk [vmem:[#allocation2 + $0xc0] sm:$0xff] %vm385_vm0, %v6095_v9  ;;  %v6193_v34 = vmul.f32 %v13287_v37, %v6095_v9  ;;  %v6273_v33 = vmul.f32 %v13288_v10, %v6095_v9  ;;  %v6353_v35 = vmul.f32 %v13289_v15, %v6095_v9  ;;  %v6433_v40 = vmul.f32 %v13290_v38, %v6095_v9  ;;  %v13291_v9 = vld [vmem:[#allocation30_spill] sm:$0xff] }
 0xca0   :  { %v9397_v24 = vpop.eup %9396  ;;  %v6198_v50 = vadd.f32 %v6194_v31, %v12584_v16  ;;  %v6278_v4 = vadd.f32 %v6274_v58, %v12587_v56  ;;  %v6358_v60 = vadd.f32 %v6354_v51, %v12589_v7  ;;  %v6438_v6 = vadd.f32 %v6434_v61, %v12591_v19  ;;  %v9527_v16 = vld [vmem:[#allocation2 + $0xd8] sm:$0xff] }
 0xca1   :  { %v12645_v47 = vadd.f32 %v6193_v34, %v12593_v42  ;;  %v12648_v52 = vadd.f32 %v6273_v33, %v12595_v57  ;;  %v12651_v43 = vadd.f32 %v6353_v35, %v12597_v22  ;;  %v12654_v59 = vadd.f32 %v6433_v40, %v12599_v53 }
 0xca2   :  { %v6098_v32 = vadd.f32 %v9527_v16, %v6066_v26  ;;  %v6097_v56 = vadd.f32 %v9528_v30, %v6065_v63  ;;  %v6100_v7 = vadd.f32 %v9529_v1, %v6068_v5  ;;  %9398 = vrcp.f32 %v5971_v18 }
 0xca3   :  { %v12657_v19 = vstv %s12620_s26  ;;  %v12660_v42 = vstv %s12622_s0  ;;  %9400 = vrcp.f32 %v5974_v8  ;;  %v5973_v57 = vadd.f32 1.0, %v9397_v24 }
 0xca4   :  { %6130 = vst.msk [vmem:[#allocation2 + $0xd8] sm:$0xff] %vm385_vm0, %v6098_v32  ;;  %v6196_v22 = vmul.f32 %v13287_v37, %v6098_v32  ;;  %v6276_v53 = vmul.f32 %v13288_v10, %v6098_v32  ;;  %v6356_v11 = vmul.f32 %v13289_v15, %v6098_v32  ;;  %v6436_v27 = vmul.f32 %v13290_v38, %v6098_v32 }
 0xca5   :  { %6129 = vst.msk [vmem:[#allocation2 + $0xd0] sm:$0xff] %vm385_vm0, %v6097_v56  ;;  %6132 = vst.msk [vmem:[#allocation2 + $0xe8] sm:$0xff] %vm385_vm0, %v6100_v7  ;;  %v6195_v3 = vmul.f32 %v13287_v37, %v6097_v56  ;;  %v6275_v25 = vmul.f32 %v13288_v10, %v6097_v56  ;;  %v6355_v41 = vmul.f32 %v13289_v15, %v6097_v56  ;;  %9402 = vrcp.f32 %v5973_v57  ;;  %v9531_v10 = vld [vmem:[#allocation2 + $0xe0] sm:$0xff]  ;;  %v9532_v15 = vld [vmem:[#allocation2 + $0xf8] sm:$0xff] }
 0xca6   :  { %v6435_v29 = vmul.f32 %v13290_v38, %v6097_v56  ;;  %v6200_v21 = vadd.f32 %v6196_v22, %v6190_v44  ;;  %v6280_v54 = vadd.f32 %v6276_v53, %v6270_v0  ;;  %v6360_v13 = vadd.f32 %v6356_v11, %v6350_v28 }
 0xca7   :  { %v6440_v2 = vadd.f32 %v6436_v27, %v6430_v17  ;;  %v12673_v62 = vadd.f32 %v6195_v3, %v6189_v46  ;;  %v12675_v45 = vadd.f32 %v6275_v25, %v6269_v36  ;;  %v12677_v48 = vadd.f32 %v6355_v41, %v6349_v55  ;;  %v9530_v46 = vld [vmem:[%s13038_s8 + $0x1] ss:$0 sm:$0xff] }
 0xca8   :  { %v12679_v23 = vadd.f32 %v6435_v29, %v6429_v49  ;;  %v6204_v26 = vmul.f32 %v13291_v9, %v6100_v7  ;;  %v6284_v63 = vmul.f32 %v12628_v39, %v6100_v7  ;;  %v6364_v5 = vmul.f32 %v12657_v19, %v6100_v7 }
 0xca9   :  { %v6444_v18 = vmul.f32 %v12660_v42, %v6100_v7  ;;  %v5591_v36 = vadd.f32 %v9530_v46, %v12253_v14  ;;  %v5606_v49 = vadd.f32 %v9530_v46, %v12280_v12  ;;  %v5601_v14 = vadd.f32 %v9530_v46, %v12290_v20 }
 0xcaa   :  { %v6208_v44 = vadd.f32 %v6204_v26, %v6198_v50  ;;  %v6288_v0 = vadd.f32 %v6284_v63, %v6278_v4  ;;  %v6368_v28 = vadd.f32 %v6364_v5, %v6358_v60  ;;  %v6995_v26 = vld [vmem:[%s13045_s15] sm:$0xff]  ;;  %v6996_v63 = vld [vmem:[%s13045_s15 + $0x8] sm:$0xff] }
 0xcab   :  { %v6448_v17 = vadd.f32 %v6444_v18, %v6438_v6  ;;  %v9051_v5 = vpack.c.bf16 %v6996_v63, %v6995_v26  ;;  %v6997_v18 = vld [vmem:[%s13045_s15 + $0x10] sm:$0xff] }
 0xcac   :  { %v9399_v55 = vpop.eup %9398  ;;  %6212 = vst.msk [vmem:[#allocation3 + $0x8] sm:$0xff] %vm385_vm0, %v6208_v44  ;;  %6292 = vst.msk [vmem:[#allocation3 + $0x28] sm:$0xff] %vm385_vm0, %v6288_v0  ;;  %v6998_v44 = vld [vmem:[%s13045_s15 + $0x18] sm:$0xff] }
 0xcad   :  { %6372 = vst.msk [vmem:[#allocation3 + $0x48] sm:$0xff] %vm385_vm0, %v6368_v28  ;;  %6452 = vst.msk [vmem:[#allocation3 + $0x68] sm:$0xff] %vm385_vm0, %v6448_v17  ;;  %v9401_v8 = vpop.eup %9400  ;;  %v6067_v37 = vmul.f32 %v9399_v55, %v5591_v36  ;;  %9052 = vmatprep.subr.bf16.mxu0 %v9051_v5  ;;  %v9055_v0 = vpack.c.bf16 %v6998_v44, %v6997_v18  ;;  %v12777_v28 = vld [vmem:[%s13044_s14 + $0x1] ss:$0 sm:$0xff] }
 0xcae   :  { %v6070_v31 = vmul.f32 %v9401_v8, %v5606_v49 }
 0xcaf   :  { %v6099_v58 = vadd.f32 %v9531_v10, %v6067_v37  ;;  %v9403_v24 = vpop.eup %9402 }
 0xcb0   :  { %v6102_v51 = vadd.f32 %v9532_v15, %v6070_v31  ;;  %v6069_v1 = vmul.f32 %v9403_v24, %v5601_v14 }
 0xcb1   :  { %6131 = vst.msk [vmem:[#allocation2 + $0xe0] sm:$0xff] %vm385_vm0, %v6099_v58  ;;  %v6203_v38 = vmul.f32 %v13291_v9, %v6099_v58  ;;  %v6283_v61 = vmul.f32 %v12628_v39, %v6099_v58  ;;  %v6363_v34 = vmul.f32 %v12657_v19, %v6099_v58  ;;  %v6443_v33 = vmul.f32 %v12660_v42, %v6099_v58 }
 0xcb2   :  { %6134 = vst.msk [vmem:[#allocation2 + $0xf8] sm:$0xff] %vm385_vm0, %v6102_v51  ;;  %v6206_v12 = vmul.f32 %v13291_v9, %v6102_v51  ;;  %v6286_v35 = vmul.f32 %v12628_v39, %v6102_v51  ;;  %v6366_v40 = vmul.f32 %v12657_v19, %v6102_v51  ;;  %v6446_v20 = vmul.f32 %v12660_v42, %v6102_v51 }
 0xcb3   :  { %v6207_v50 = vadd.f32 %v6203_v38, %v12645_v47  ;;  %v6287_v4 = vadd.f32 %v6283_v61, %v12648_v52  ;;  %v6367_v60 = vadd.f32 %v6363_v34, %v12651_v43  ;;  %v6447_v6 = vadd.f32 %v6443_v33, %v12654_v59  ;;  %v9533_v47 = vld [vmem:[#allocation2 + $0xf0] sm:$0xff]  ;;  %v6460_v41 = vld [vmem:[#allocation3 + $0x28] sm:$0xff] }
 0xcb4   :  { %v6210_v16 = vadd.f32 %v6206_v12, %v6200_v21  ;;  %v6290_v32 = vadd.f32 %v6286_v35, %v6280_v54  ;;  %v6370_v30 = vadd.f32 %v6366_v40, %v6360_v13  ;;  %v6450_v56 = vadd.f32 %v6446_v20, %v6440_v2  ;;  %v6464_v13 = vld [vmem:[#allocation3 + $0x48] sm:$0xff] }
 0xcb5   :  { %6211 = vst.msk [vmem:[#allocation3] sm:$0xff] %vm385_vm0, %v6207_v50  ;;  %6291 = vst.msk [vmem:[#allocation3 + $0x20] sm:$0xff] %vm385_vm0, %v6287_v4  ;;  %v6101_v52 = vadd.f32 %v9533_v47, %v6069_v1 }
 0xcb6   :  { %6371 = vst.msk [vmem:[#allocation3 + $0x40] sm:$0xff] %vm385_vm0, %v6367_v60  ;;  %6451 = vst.msk [vmem:[#allocation3 + $0x60] sm:$0xff] %vm385_vm0, %v6447_v6 }
 0xcb7   :  { %6214 = vst.msk [vmem:[#allocation3 + $0x18] sm:$0xff] %vm385_vm0, %v6210_v16  ;;  %6294 = vst.msk [vmem:[#allocation3 + $0x38] sm:$0xff] %vm385_vm0, %v6290_v32  ;;  %v6205_v43 = vmul.f32 %v13291_v9, %v6101_v52  ;;  %v6285_v59 = vmul.f32 %v12628_v39, %v6101_v52  ;;  %v6365_v7 = vmul.f32 %v12657_v19, %v6101_v52  ;;  %v6456_v39 = vld [vmem:[#allocation3 + $0x8] sm:$0xff] }
 0xcb8   :  { %6374 = vst.msk [vmem:[#allocation3 + $0x58] sm:$0xff] %vm385_vm0, %v6370_v30  ;;  %6454 = vst.msk [vmem:[#allocation3 + $0x78] sm:$0xff] %vm385_vm0, %v6450_v56  ;;  %v6445_v57 = vmul.f32 %v12660_v42, %v6101_v52 }
 0xcb9   :  { %6133 = vst.msk [vmem:[#allocation2 + $0xf0] sm:$0xff] %vm385_vm0, %v6101_v52  ;;  %v6209_v22 = vadd.f32 %v6205_v43, %v12673_v62  ;;  %v6289_v53 = vadd.f32 %v6285_v59, %v12675_v45  ;;  %v6369_v11 = vadd.f32 %v6365_v7, %v12677_v48  ;;  %v6468_v48 = vld [vmem:[#allocation3 + $0x68] sm:$0xff] }
 0xcba   :  { %v6449_v27 = vadd.f32 %v6445_v57, %v12679_v23 }
 0xcbb   :  { %6213 = vst.msk [vmem:[#allocation3 + $0x10] sm:$0xff] %vm385_vm0, %v6209_v22  ;;  %6293 = vst.msk [vmem:[#allocation3 + $0x30] sm:$0xff] %vm385_vm0, %v6289_v53 }
 0xcbc   :  { %v6455_v3 = vld [vmem:[#allocation3] sm:$0xff]  ;;  %6373 = vst.msk [vmem:[#allocation3 + $0x50] sm:$0xff] %vm385_vm0, %v6369_v11  ;;  %6453 = vst.msk [vmem:[#allocation3 + $0x70] sm:$0xff] %vm385_vm0, %v6449_v27 }
 0xcbd   :  { %8727 = vmatprep.mubr.msk.f32.mxu0 %vm385_vm0, %v6455_v3  ;;  %8759 = vmatprep.mubr.msk.f32.mxu1 %vm385_vm0, %v6455_v3  ;;  %v6459_v25 = vld [vmem:[#allocation3 + $0x20] sm:$0xff] }
 0xcbe   :  { %8728 = vmatmul.mubr.msk.f32.vlgmr.msra.gmra.mrb[108].mxu0 %vm385_vm0, %v6456_v39  ;;  %8760 = vmatmul.mubr.msk.f32.vlgmr.msra.gmra.mrb[128].mxu1 %vm385_vm0, %v6456_v39  ;;  %v6458_v42 = vld [vmem:[#allocation3 + $0x18] sm:$0xff]  ;;  %v6463_v54 = vld [vmem:[#allocation3 + $0x40] sm:$0xff] }
 0xcbf   :  { %v6462_v21 = vld [vmem:[#allocation3 + $0x38] sm:$0xff]  ;;  %v6467_v45 = vld [vmem:[#allocation3 + $0x60] sm:$0xff]  ;;  %9054 = vmatpush3.bf16.msra.mxu0 %v9051_v5 }
 0xcc0   :  { %v6466_v62 = vld [vmem:[#allocation3 + $0x58] sm:$0xff]  ;;  %9056 = vmatprep.subr.bf16.mxu0 %v9055_v0 }
 0xcc1   :  { %v6470_v9 = vld [vmem:[#allocation3 + $0x78] sm:$0xff] }
 0xcc2   :  { %v6457_v19 = vld [vmem:[#allocation3 + $0x10] sm:$0xff] }
 0xcc3   :  { %8730 = vmatprep.mubr.msk.f32.mxu0 %vm385_vm0, %v6457_v19  ;;  %8762 = vmatprep.mubr.msk.f32.mxu1 %vm385_vm0, %v6457_v19  ;;  %v6461_v29 = vld [vmem:[#allocation3 + $0x30] sm:$0xff]  ;;  %v12812_v19 = vld [vmem:[%s13042_s12 + $0x1] ss:$0 sm:$0xff]  ;;  %s7744_s12 = sld [smem:[#allocation5 + $0x1]] }
 0xcc4   :  { %8731 = vmatmul.mubr.msk.f32.gmra.mrb[110].mxu0 %vm385_vm0, %v6458_v42  ;;  %8763 = vmatmul.mubr.msk.f32.gmra.mrb[130].mxu1 %vm385_vm0, %v6458_v42  ;;  %v6465_v2 = vld [vmem:[#allocation3 + $0x50] sm:$0xff] }
 0xcc5   :  { %8733 = vmatprep.mubr.msk.f32.mxu0 %vm385_vm0, %v6459_v25  ;;  %8765 = vmatprep.mubr.msk.f32.mxu1 %vm385_vm0, %v6459_v25  ;;  %v6469_v23 = vld [vmem:[#allocation3 + $0x70] sm:$0xff] }
 0xcc6   :  { %9058 = vmatpush3.bf16.msra.mxu0 %v9055_v0 }
 0xcc8   :  { %8734 = vmatmul.mubr.msk.f32.gmra.mrb[112].mxu0 %vm385_vm0, %v6460_v41  ;;  %8766 = vmatmul.mubr.msk.f32.gmra.mrb[132].mxu1 %vm385_vm0, %v6460_v41 }
 0xcc9   :  { %8736 = vmatprep.mubr.msk.f32.mxu0 %vm385_vm0, %v6461_v29  ;;  %8768 = vmatprep.mubr.msk.f32.mxu1 %vm385_vm0, %v6461_v29 }
 0xccc   :  { %8737 = vmatmul.mubr.msk.f32.gmra.mrb[114].mxu0 %vm385_vm0, %v6462_v21  ;;  %8769 = vmatmul.mubr.msk.f32.gmra.mrb[134].mxu1 %vm385_vm0, %v6462_v21 }
 0xccd   :  { %8739 = vmatprep.mubr.msk.f32.mxu0 %vm385_vm0, %v6463_v54  ;;  %8771 = vmatprep.mubr.msk.f32.mxu1 %vm385_vm0, %v6463_v54 }
 0xcd0   :  { %8740 = vmatmul.mubr.msk.f32.gmra.mrb[116].mxu0 %vm385_vm0, %v6464_v13  ;;  %8772 = vmatmul.mubr.msk.f32.gmra.mrb[136].mxu1 %vm385_vm0, %v6464_v13 }
 0xcd1   :  { %8742 = vmatprep.mubr.msk.f32.mxu0 %vm385_vm0, %v6465_v2  ;;  %8774 = vmatprep.mubr.msk.f32.mxu1 %vm385_vm0, %v6465_v2 }
 0xcd4   :  { %8743 = vmatmul.mubr.msk.f32.gmra.mrb[118].mxu0 %vm385_vm0, %v6466_v62  ;;  %8775 = vmatmul.mubr.msk.f32.gmra.mrb[138].mxu1 %vm385_vm0, %v6466_v62 }
 0xcd5   :  { %8745 = vmatprep.mubr.msk.f32.mxu0 %vm385_vm0, %v6467_v45  ;;  %8777 = vmatprep.mubr.msk.f32.mxu1 %vm385_vm0, %v6467_v45 }
 0xcd8   :  { %8746 = vmatmul.mubr.msk.f32.gmra.mrb[120].mxu0 %vm385_vm0, %v6468_v48  ;;  %8778 = vmatmul.mubr.msk.f32.gmra.mrb[140].mxu1 %vm385_vm0, %v6468_v48 }
 0xcd9   :  { %8748 = vmatprep.mubr.msk.f32.mxu0 %vm385_vm0, %v6469_v23  ;;  %8780 = vmatprep.mubr.msk.f32.mxu1 %vm385_vm0, %v6469_v23 }
 0xcdc   :  { %8749 = vmatmul.mubr.msk.f32.gmra.mrb[122].mxu0 %vm385_vm0, %v6470_v9  ;;  %8781 = vmatmul.mubr.msk.f32.gmra.mrb[142].mxu1 %vm385_vm0, %v6470_v9 }
 0xd91   :  { %v12779_v17 = vpop.f32.mrb[108].mxu0  ;;  %v8761_v46 = vpop.f32.mrb[128].mxu1 }
 0xd92   :  { %v6762_v36 = vadd.f32 %v8761_v46, %v12777_v28  ;;  %v12782_v55 = vpop.f32.mrb[109].mxu0  ;;  %v6756_v49 = vpop.f32.mrb[129].mxu1  ;;  %v6604_v9 = vadd.f32 %v12779_v17, %v12812_v19 }
 0xd93   :  { %v6757_v8 = vadd.f32 %v12777_v28, %v6756_v49  ;;  %v6599_v5 = vadd.f32 %v12812_v19, %v12782_v55 }
 0xd94   :  { %v7712_v37 = vmul.f32 -1.442695, %v6762_v36 }
 0xd95   :  { %v7711_v31 = vmul.f32 -1.442695, %v6757_v8 }
 0xd96   :  { %9404 = vpow2.f32 %v7712_v37 }
 0xd97   :  { %9406 = vpow2.f32 %v7711_v31  ;;  %v12785_v10 = vpop.f32.mrb[110].mxu0  ;;  %v8764_v58 = vpop.f32.mrb[130].mxu1 }
 0xd98   :  { %v6772_v15 = vadd.f32 %v8764_v58, %v12777_v28  ;;  %v12788_v51 = vpop.f32.mrb[111].mxu0  ;;  %v6766_v14 = vpop.f32.mrb[131].mxu1 }
 0xd99   :  { %v6767_v38 = vadd.f32 %v12777_v28, %v6766_v14  ;;  %v13292_v14 = vld [vmem:[#allocation31_spill] sm:$0xff] }
 0xd9a   :  { %v7714_v61 = vmul.f32 -1.442695, %v6772_v15 }
 0xd9b   :  { %v7713_v34 = vmul.f32 -1.442695, %v6767_v38  ;;  %v12791_v33 = vpop.f32.mrb[112].mxu0  ;;  %v8767_v12 = vpop.f32.mrb[132].mxu1 }
 0xd9c   :  { %9408 = vpow2.f32 %v7714_v61  ;;  %v6782_v35 = vadd.f32 %v8767_v12, %v12777_v28  ;;  %v12794_v40 = vpop.f32.mrb[113].mxu0  ;;  %v6776_v20 = vpop.f32.mrb[133].mxu1  ;;  %v13293_v12 = vld [vmem:[#allocation33_spill] sm:$0xff] }
 0xd9d   :  { %9410 = vpow2.f32 %v7713_v34  ;;  %v6777_v24 = vadd.f32 %v12777_v28, %v6776_v20 }
 0xd9e   :  { %v7716_v4 = vmul.f32 -1.442695, %v6782_v35 }
 0xd9f   :  { %v7715_v16 = vmul.f32 -1.442695, %v6777_v24  ;;  %v12797_v32 = vpop.f32.mrb[114].mxu0  ;;  %v8770_v30 = vpop.f32.mrb[134].mxu1 }
 0xda0   :  { %v9405_v50 = vpop.eup %9404  ;;  %9412 = vpow2.f32 %v7716_v4  ;;  %v6792_v1 = vadd.f32 %v8770_v30, %v12777_v28  ;;  %v12800_v47 = vpop.f32.mrb[115].mxu0 }
 0xda1   :  { %v9407_v60 = vpop.eup %9406  ;;  %v6884_v6 = vadd.f32 1.0, %v9405_v50  ;;  %v6786_v52 = vpop.f32.mrb[135].mxu1 }
 0xda2   :  { %v6883_v56 = vadd.f32 1.0, %v9407_v60  ;;  %v6787_v43 = vadd.f32 %v12777_v28, %v6786_v52  ;;  %v7718_v59 = vmul.f32 -1.442695, %v6792_v1 }
 0xda3   :  { %9414 = vrcp.f32 %v6884_v6  ;;  %v12803_v57 = vpop.f32.mrb[116].mxu0  ;;  %v8773_v22 = vpop.f32.mrb[136].mxu1 }
 0xda4   :  { %9416 = vrcp.f32 %v6883_v56  ;;  %v7717_v7 = vmul.f32 -1.442695, %v6787_v43  ;;  %v6802_v53 = vadd.f32 %v8773_v22, %v12777_v28  ;;  %v12806_v11 = vpop.f32.mrb[117].mxu0  ;;  %v6796_v27 = vpop.f32.mrb[137].mxu1  ;;  %v6614_v43 = vadd.f32 %v12785_v10, %v12812_v19 }
 0xda5   :  { %9418 = vpow2.f32 %v7715_v16  ;;  %v6797_v3 = vadd.f32 %v12777_v28, %v6796_v27  ;;  %v6609_v22 = vadd.f32 %v12812_v19, %v12788_v51  ;;  %v6624_v10 = vadd.f32 %v12791_v33, %v12812_v19 }
 0xda6   :  { %9420 = vpow2.f32 %v7718_v59  ;;  %v9409_v39 = vpop.eup %9408  ;;  %v7720_v42 = vmul.f32 -1.442695, %v6802_v53 }
 0xda7   :  { %9422 = vpow2.f32 %v7717_v7  ;;  %v9411_v25 = vpop.eup %9410  ;;  %v6886_v41 = vadd.f32 1.0, %v9409_v39  ;;  %v7719_v29 = vmul.f32 -1.442695, %v6797_v3  ;;  %v12814_v21 = vpop.f32.mrb[118].mxu0 }
 0xda8   :  { %v8776_v54 = vpop.f32.mrb[138].mxu1  ;;  %v6885_v13 = vadd.f32 1.0, %v9411_v25  ;;  %9424 = vpow2.f32 %v7720_v42  ;;  %v12817_v62 = vpop.f32.mrb[119].mxu0 }
 0xda9   :  { %v6812_v2 = vadd.f32 %v8776_v54, %v12777_v28  ;;  %v6806_v45 = vpop.f32.mrb[139].mxu1  ;;  %9426 = vrcp.f32 %v6886_v41  ;;  %v13294_v41 = vld [vmem:[#allocation21_spill] sm:$0xff] }
 0xdaa   :  { %v6807_v48 = vadd.f32 %v12777_v28, %v6806_v45  ;;  %v9413_v23 = vpop.eup %9412  ;;  %9428 = vrcp.f32 %v6885_v13 }
 0xdab   :  { %v7722_v26 = vmul.f32 -1.442695, %v6812_v2  ;;  %v6888_v18 = vadd.f32 1.0, %v9413_v23  ;;  %9430 = vpow2.f32 %v7719_v29  ;;  %v12824_v0 = vpop.f32.mrb[120].mxu0  ;;  %v8779_v46 = vpop.f32.mrb[140].mxu1  ;;  %v13295_v2 = vld [vmem:[#allocation35_spill] sm:$0xff] }
 0xdac   :  { %v7721_v44 = vmul.f32 -1.442695, %v6807_v48  ;;  %v6822_v8 = vadd.f32 %v8779_v46, %v12777_v28  ;;  %v12827_v37 = vpop.f32.mrb[121].mxu0  ;;  %v6816_v17 = vpop.f32.mrb[141].mxu1  ;;  %v6634_v46 = vadd.f32 %v12797_v32, %v12812_v19  ;;  %v6644_v32 = vadd.f32 %v12803_v57, %v12812_v19 }
 0xdad   :  { %v9415_v63 = vpop.eup %9414  ;;  %9432 = vpow2.f32 %v7722_v26  ;;  %v6817_v15 = vadd.f32 %v12777_v28, %v6816_v17  ;;  %v6619_v26 = vadd.f32 %v12812_v19, %v12794_v40 }
 0xdae   :  { %v9417_v36 = vpop.eup %9416  ;;  %v6932_v49 = vmul.f32 %v9415_v63, %v6604_v9  ;;  %9434 = vrcp.f32 %v6888_v18  ;;  %v7724_v24 = vmul.f32 -1.442695, %v6822_v8  ;;  %v13296_v18 = vld [vmem:[#allocation23_spill] sm:$0xff]  ;;  %v6629_v8 = vadd.f32 %v12812_v19, %v12800_v47  ;;  %v13299_v47 = vld [vmem:[#allocation20_spill] sm:$0xff] }
 0xdaf   :  { %v9419_v31 = vpop.eup %9418  ;;  %v6931_v58 = vmul.f32 %v9417_v36, %v6599_v5  ;;  %9436 = vpow2.f32 %v7721_v44  ;;  %v12832_v50 = vpop.f32.mrb[122].mxu0  ;;  %v7723_v6 = vmul.f32 -1.442695, %v6817_v15 }
 0xdb0   :  { %v9421_v55 = vpop.eup %9420  ;;  %v6948_v38 = vadd.f32 %v6932_v49, %v13292_v14  ;;  %v6887_v61 = vadd.f32 1.0, %v9419_v31  ;;  %v8782_v4 = vpop.f32.mrb[142].mxu1 }
 0xdb1   :  { %v9423_v34 = vpop.eup %9422  ;;  %v6947_v35 = vadd.f32 %v6931_v58, %v13293_v12  ;;  %v6890_v20 = vadd.f32 1.0, %v9421_v55  ;;  %v6832_v16 = vadd.f32 %v8782_v4, %v12777_v28  ;;  %v12836_v30 = vpop.f32.mrb[123].mxu0  ;;  %v13297_v58 = vld [vmem:[#allocation24_spill] sm:$0xff] }
 0xdb2   :  { %6964 = vst.msk [vmem:[#allocation2 + $0x8] sm:$0xff] %vm385_vm0, %v6948_v38  ;;  %9438 = vrcp.f32 %v6887_v61  ;;  %v6889_v60 = vadd.f32 1.0, %v9423_v34  ;;  %v6826_v56 = vpop.f32.mrb[143].mxu1  ;;  %v9425_v52 = vpop.eup %9424  ;;  %v13298_v38 = vld [vmem:[#allocation16_spill] sm:$0xff] }
 0xdb3   :  { %6963 = vst.msk [vmem:[#allocation2] sm:$0xff] %vm385_vm0, %v6947_v35  ;;  %9440 = vrcp.f32 %v6890_v20  ;;  %v6827_v1 = vadd.f32 %v12777_v28, %v6826_v56  ;;  %v7726_v59 = vmul.f32 -1.442695, %v6832_v16  ;;  %v9427_v7 = vpop.eup %9426  ;;  %v6892_v53 = vadd.f32 1.0, %v9425_v52  ;;  %v13300_v52 = vld [vmem:[#allocation32_spill] sm:$0xff] }
 0xdb4   :  { %9442 = vrcp.f32 %v6889_v60  ;;  %v9429_v3 = vpop.eup %9428  ;;  %v6934_v39 = vmul.f32 %v9427_v7, %v6614_v43  ;;  %v6639_v16 = vadd.f32 %v12812_v19, %v12806_v11 }
 0xdb5   :  { %9444 = vpow2.f32 %v7724_v24  ;;  %v7725_v27 = vmul.f32 -1.442695, %v6827_v1  ;;  %v9431_v42 = vpop.eup %9430  ;;  %v6933_v25 = vmul.f32 %v9429_v3, %v6609_v22 }
 0xdb6   :  { %9446 = vpow2.f32 %v7723_v6  ;;  %v6950_v29 = vadd.f32 %v6934_v39, %v13294_v41  ;;  %v6891_v54 = vadd.f32 1.0, %v9431_v42  ;;  %v13301_v39 = vld [vmem:[#allocation34_spill] sm:$0xff] }
 0xdb7   :  { %9448 = vrcp.f32 %v6892_v53  ;;  %v9433_v28 = vpop.eup %9432  ;;  %v6949_v51 = vadd.f32 %v6933_v25, %v13295_v2  ;;  %v13302_v25 = vld [vmem:[#allocation39_spill] sm:$0xff] }
 0xdb8   :  { %9450 = vpow2.f32 %v7726_v59  ;;  %v9435_v13 = vpop.eup %9434  ;;  %v6894_v45 = vadd.f32 1.0, %v9433_v28  ;;  %6966 = vst.msk [vmem:[#allocation2 + $0x18] sm:$0xff] %vm385_vm0, %v6950_v29  ;;  %v6654_v59 = vadd.f32 %v12814_v21, %v12812_v19 }
 0xdb9   :  { %9452 = vpow2.f32 %v7725_v27  ;;  %v9437_v48 = vpop.eup %9436  ;;  %v6936_v23 = vmul.f32 %v9435_v13, %v6624_v10  ;;  %6965 = vst.msk [vmem:[#allocation2 + $0x10] sm:$0xff] %vm385_vm0, %v6949_v51  ;;  %v6980_v63 = vld [vmem:[#allocation2 + $0x8] sm:$0xff]  ;;  %v6649_v27 = vadd.f32 %v12812_v19, %v12817_v62  ;;  %v6664_v13 = vadd.f32 %v12824_v0, %v12812_v19 }
 0xdba   :  { %9454 = vrcp.f32 %v6891_v54  ;;  %v6979_v9 = vld [vmem:[#allocation2] sm:$0xff]  ;;  %v6893_v33 = vadd.f32 1.0, %v9437_v48  ;;  %v13303_v10 = vld [vmem:[#allocation40_spill] sm:$0xff]  ;;  %v6659_v51 = vadd.f32 %v12812_v19, %v12827_v37 }
 0xdbb   :  { %9456 = vrcp.f32 %v6894_v45  ;;  %8791 = vmatprep.mubr.msk.f32.mxu0 %vm385_vm0, %v6979_v9  ;;  %v6952_v44 = vadd.f32 %v6936_v23, %v13296_v18 }
 0xdbc   :  { %v9439_v5 = vpop.eup %9438  ;;  %8792 = vmatmul.mubr.msk.f32.vlgmr.msra.gmra.mrb[124].mxu0 %vm385_vm0, %v6980_v63  ;;  %9458 = vrcp.f32 %v6893_v33  ;;  %v13304_v63 = vld [vmem:[#allocation42_spill] sm:$0xff] }
 0xdbd   :  { %v9441_v36 = vpop.eup %9440  ;;  %v6935_v49 = vmul.f32 %v9439_v5, %v6619_v26  ;;  %6968 = vst.msk [vmem:[#allocation2 + $0x28] sm:$0xff] %vm385_vm0, %v6952_v44  ;;  %v6674_v26 = vadd.f32 %v12832_v50, %v12812_v19  ;;  %v6669_v5 = vadd.f32 %v12812_v19, %v12836_v30  ;;  %v13305_v44 = vld [vmem:[#allocation57_spill] sm:$0xff]  ;;  %v13306_v50 = vld [vmem:[#allocation58_spill] sm:$0xff] }
 0xdbe   :  { %v9443_v40 = vpop.eup %9442  ;;  %v6938_v17 = vmul.f32 %v9441_v36, %v6634_v46 }
 0xdbf   :  { %v9445_v31 = vpop.eup %9444  ;;  %v6951_v15 = vadd.f32 %v6935_v49, %v13297_v58  ;;  %v6937_v55 = vmul.f32 %v9443_v40, %v6629_v8  ;;  %v6982_v56 = vld [vmem:[#allocation2 + $0x18] sm:$0xff] }
 0xdc0   :  { %v9447_v14 = vpop.eup %9446  ;;  %v6954_v61 = vadd.f32 %v6938_v17, %v13298_v38  ;;  %v6896_v34 = vadd.f32 1.0, %v9445_v31  ;;  %v6981_v60 = vld [vmem:[#allocation2 + $0x10] sm:$0xff]  ;;  %v13307_v17 = vld [vmem:[#allocation59_spill] sm:$0xff]  ;;  %v12912_v38 = vld [vmem:[#allocation4] ss:$0 sm:$0xff] }
 0xdc1   :  { %v9449_v12 = vpop.eup %9448  ;;  %6967 = vst.msk [vmem:[#allocation2 + $0x20] sm:$0xff] %vm385_vm0, %v6951_v15  ;;  %v6953_v35 = vadd.f32 %v6937_v55, %v13299_v47  ;;  %v6895_v20 = vadd.f32 1.0, %v9447_v14  ;;  %8794 = vmatprep.mubr.msk.f32.mxu0 %vm385_vm0, %v6981_v60  ;;  %v12917_v47 = vstv %s7199_s29 }
 0xdc2   :  { %v9451_v24 = vpop.eup %9450  ;;  %6970 = vst.msk [vmem:[#allocation2 + $0x38] sm:$0xff] %vm385_vm0, %v6954_v61  ;;  %v6940_v4 = vmul.f32 %v9449_v12, %v6644_v32  ;;  %9460 = vrcp.f32 %v6896_v34  ;;  %8795 = vmatmul.mubr.msk.f32.gmra.mrb[126].mxu0 %vm385_vm0, %v6982_v56  ;;  %v12914_v32 = vstv %s7744_s12 }
 0xdc3   :  { %v9453_v6 = vpop.eup %9452  ;;  %6969 = vst.msk [vmem:[#allocation2 + $0x30] sm:$0xff] %vm385_vm0, %v6953_v35  ;;  %9462 = vrcp.f32 %v6895_v20  ;;  %v6898_v57 = vadd.f32 1.0, %v9451_v24 }
 0xdc4   :  { %v9455_v1 = vpop.eup %9454  ;;  %v6956_v43 = vadd.f32 %v6940_v4, %v13300_v52  ;;  %v6897_v7 = vadd.f32 1.0, %v9453_v6  ;;  %v6984_v29 = vld [vmem:[#allocation2 + $0x28] sm:$0xff] }
 0xdc5   :  { %v9457_v22 = vpop.eup %9456  ;;  %v6939_v53 = vmul.f32 %v9455_v1, %v6639_v16  ;;  %9464 = vrcp.f32 %v6898_v57 }
 0xdc6   :  { %6972 = vst.msk [vmem:[#allocation2 + $0x48] sm:$0xff] %vm385_vm0, %v6956_v43  ;;  %v6942_v11 = vmul.f32 %v9457_v22, %v6654_v59  ;;  %9466 = vrcp.f32 %v6897_v7  ;;  %v9459_v3 = vpop.eup %9458 }
 0xdc7   :  { %v6955_v42 = vadd.f32 %v6939_v53, %v13301_v39  ;;  %v6941_v41 = vmul.f32 %v9459_v3, %v6649_v27 }
 0xdc8   :  { %v6958_v28 = vadd.f32 %v6942_v11, %v13302_v25  ;;  %v6983_v21 = vld [vmem:[#allocation2 + $0x20] sm:$0xff] }
 0xdc9   :  { %6971 = vst.msk [vmem:[#allocation2 + $0x40] sm:$0xff] %vm385_vm0, %v6955_v42  ;;  %8797 = vmatprep.mubr.msk.f32.mxu0 %vm385_vm0, %v6983_v21  ;;  %v6957_v54 = vadd.f32 %v6941_v41, %v13303_v10  ;;  %v6986_v23 = vld [vmem:[#allocation2 + $0x38] sm:$0xff] }
 0xdca   :  { %6974 = vst.msk [vmem:[#allocation2 + $0x58] sm:$0xff] %vm385_vm0, %v6958_v28  ;;  %8798 = vmatmul.mubr.msk.f32.gmra.mrb[128].mxu0 %vm385_vm0, %v6984_v29  ;;  %v6985_v62 = vld [vmem:[#allocation2 + $0x30] sm:$0xff] }
 0xdcb   :  { %8800 = vmatprep.mubr.msk.f32.mxu0 %vm385_vm0, %v6985_v62  ;;  %6973 = vst.msk [vmem:[#allocation2 + $0x50] sm:$0xff] %vm385_vm0, %v6957_v54 }
 0xdcc   :  { %v9461_v2 = vpop.eup %9460 }
 0xdcd   :  { %v9463_v45 = vpop.eup %9462  ;;  %v6944_v48 = vmul.f32 %v9461_v2, %v6664_v13  ;;  %v6988_v8 = vld [vmem:[#allocation2 + $0x48] sm:$0xff] }
 0xdce   :  { %v6943_v9 = vmul.f32 %v9463_v45, %v6659_v51  ;;  %8801 = vmatmul.mubr.msk.f32.gmra.mrb[130].mxu0 %vm385_vm0, %v6986_v23 }
 0xdcf   :  { %v9465_v33 = vpop.eup %9464  ;;  %v6960_v0 = vadd.f32 %v6944_v48, %v13304_v63 }
 0xdd0   :  { %v9467_v18 = vpop.eup %9466  ;;  %v6959_v46 = vadd.f32 %v6943_v9, %v13305_v44  ;;  %v6946_v36 = vmul.f32 %v9465_v33, %v6674_v26  ;;  %v6987_v37 = vld [vmem:[#allocation2 + $0x40] sm:$0xff] }
 0xdd1   :  { %6976 = vst.msk [vmem:[#allocation2 + $0x68] sm:$0xff] %vm385_vm0, %v6960_v0  ;;  %v6945_v49 = vmul.f32 %v9467_v18, %v6669_v5  ;;  %8803 = vmatprep.mubr.msk.f32.mxu0 %vm385_vm0, %v6987_v37  ;;  %v6990_v30 = vld [vmem:[#allocation2 + $0x58] sm:$0xff] }
 0xdd2   :  { %6975 = vst.msk [vmem:[#allocation2 + $0x60] sm:$0xff] %vm385_vm0, %v6959_v46  ;;  %v6962_v40 = vadd.f32 %v6946_v36, %v13306_v50  ;;  %8804 = vmatmul.mubr.msk.f32.gmra.mrb[132].mxu0 %vm385_vm0, %v6988_v8  ;;  %v6989_v19 = vld [vmem:[#allocation2 + $0x50] sm:$0xff] }
 0xdd3   :  { %v6961_v31 = vadd.f32 %v6945_v49, %v13307_v17  ;;  %8806 = vmatprep.mubr.msk.f32.mxu0 %vm385_vm0, %v6989_v19 }
 0xdd4   :  { %6978 = vst.msk [vmem:[#allocation2 + $0x78] sm:$0xff] %vm385_vm0, %v6962_v40 }
 0xdd5   :  { %6977 = vst.msk [vmem:[#allocation2 + $0x70] sm:$0xff] %vm385_vm0, %v6961_v31 }
 0xdd6   :  { %8807 = vmatmul.mubr.msk.f32.gmra.mrb[134].mxu0 %vm385_vm0, %v6990_v30 }
 0xdd8   :  { %v6992_v15 = vld [vmem:[#allocation2 + $0x68] sm:$0xff] }
 0xdd9   :  { %v6991_v58 = vld [vmem:[#allocation2 + $0x60] sm:$0xff] }
 0xdda   :  { %8809 = vmatprep.mubr.msk.f32.mxu0 %vm385_vm0, %v6991_v58 }
 0xddb   :  { %8810 = vmatmul.mubr.msk.f32.gmra.mrb[136].mxu0 %vm385_vm0, %v6992_v15  ;;  %v6994_v14 = vld [vmem:[#allocation2 + $0x78] sm:$0xff] }
 0xddc   :  { %v6993_v55 = vld [vmem:[#allocation2 + $0x70] sm:$0xff] }
 0xddd   :  { %8812 = vmatprep.mubr.msk.f32.mxu0 %vm385_vm0, %v6993_v55 }
 0xddf   :  { %8813 = vmatmul.mubr.msk.f32.gmra.mrb[138].mxu0 %vm385_vm0, %v6994_v14 }
 0xe8f   :  { %v8793_v61 = vpop.f32.mrb[124].mxu0 }
 0xe90   :  { %v7126_v34 = vadd.f32 %v8793_v61, %v12912_v38  ;;  %v7120_v12 = vpop.f32.mrb[125].mxu0 }
 0xe91   :  { %v7121_v35 = vadd.f32 %v12912_v38, %v7120_v12 }
 0xe92   :  { %v7203_v20 = vmul.f32 %v12914_v32, %v7126_v34 }
 0xe93   :  { %v7202_v24 = vmul.f32 %v12914_v32, %v7121_v35 }
 0xe94   :  { %v7220_v4 = vadd.f32 %v12917_v47, %v7203_v20 }
 0xe95   :  { %v7219_v60 = vadd.f32 %v12917_v47, %v7202_v24  ;;  %v8796_v6 = vpop.f32.mrb[126].mxu0 }
 0xe96   :  { %7237 = vst.msk [vmem:[%s13047_s17 + $0x8] sm:$0xff] %vm7235_vm3, %v7220_v4  ;;  %v7136_v16 = vadd.f32 %v8796_v6, %v12912_v38  ;;  %v7130_v57 = vpop.f32.mrb[127].mxu0 }
 0xe97   :  { %7236 = vst.msk [vmem:[%s13047_s17] sm:$0xff] %vm7235_vm3, %v7219_v60  ;;  %v7131_v56 = vadd.f32 %v12912_v38, %v7130_v57 }
 0xe98   :  { %v7205_v1 = vmul.f32 %v12914_v32, %v7136_v16 }
 0xe99   :  { %v7204_v52 = vmul.f32 %v12914_v32, %v7131_v56 }
 0xe9a   :  { %v7222_v43 = vadd.f32 %v12917_v47, %v7205_v1 }
 0xe9b   :  { %v7221_v59 = vadd.f32 %v12917_v47, %v7204_v52 }
 0xe9c   :  { %7239 = vst.msk [vmem:[%s13047_s17 + $0x18] sm:$0xff] %vm7235_vm3, %v7222_v43 }
 0xe9d   :  { %v8799_v7 = vpop.f32.mrb[128].mxu0  ;;  %7238 = vst.msk [vmem:[%s13047_s17 + $0x10] sm:$0xff] %vm7235_vm3, %v7221_v59 }
 0xe9e   :  { %v7146_v22 = vadd.f32 %v8799_v7, %v12912_v38  ;;  %v7140_v53 = vpop.f32.mrb[129].mxu0 }
 0xe9f   :  { %v7141_v11 = vadd.f32 %v12912_v38, %v7140_v53 }
 0xea0   :  { %v7207_v27 = vmul.f32 %v12914_v32, %v7146_v22 }
 0xea1   :  { %v7206_v3 = vmul.f32 %v12914_v32, %v7141_v11  ;;  %v8802_v39 = vpop.f32.mrb[130].mxu0 }
 0xea2   :  { %v7224_v42 = vadd.f32 %v12917_v47, %v7207_v27  ;;  %v7156_v25 = vadd.f32 %v8802_v39, %v12912_v38  ;;  %v7150_v28 = vpop.f32.mrb[131].mxu0 }
 0xea3   :  { %v7223_v41 = vadd.f32 %v12917_v47, %v7206_v3  ;;  %v7151_v21 = vadd.f32 %v12912_v38, %v7150_v28 }
 0xea4   :  { %7241 = vst.msk [vmem:[%s13047_s17 + $0x28] sm:$0xff] %vm7235_vm3, %v7224_v42  ;;  %v7209_v29 = vmul.f32 %v12914_v32, %v7156_v25 }
 0xea5   :  { %7240 = vst.msk [vmem:[%s13047_s17 + $0x20] sm:$0xff] %vm7235_vm3, %v7223_v41  ;;  %v7208_v10 = vmul.f32 %v12914_v32, %v7151_v21  ;;  %v8805_v54 = vpop.f32.mrb[132].mxu0 }
 0xea6   :  { %v7226_v62 = vadd.f32 %v12917_v47, %v7209_v29  ;;  %v7166_v13 = vadd.f32 %v8805_v54, %v12912_v38  ;;  %v7160_v2 = vpop.f32.mrb[133].mxu0 }
 0xea7   :  { %v7225_v51 = vadd.f32 %v12917_v47, %v7208_v10  ;;  %v7161_v45 = vadd.f32 %v12912_v38, %v7160_v2 }
 0xea8   :  { %7243 = vst.msk [vmem:[%s13047_s17 + $0x38] sm:$0xff] %vm7235_vm3, %v7226_v62  ;;  %v7211_v48 = vmul.f32 %v12914_v32, %v7166_v13 }
 0xea9   :  { %7242 = vst.msk [vmem:[%s13047_s17 + $0x30] sm:$0xff] %vm7235_vm3, %v7225_v51  ;;  %v7210_v23 = vmul.f32 %v12914_v32, %v7161_v45  ;;  %v8808_v9 = vpop.f32.mrb[134].mxu0 }
 0xeaa   :  { %v7228_v26 = vadd.f32 %v12917_v47, %v7211_v48  ;;  %v7176_v33 = vadd.f32 %v8808_v9, %v12912_v38  ;;  %v7170_v63 = vpop.f32.mrb[135].mxu0 }
 0xeab   :  { %v7227_v0 = vadd.f32 %v12917_v47, %v7210_v23  ;;  %v7171_v5 = vadd.f32 %v12912_v38, %v7170_v63 }
 0xeac   :  { %7245 = vst.msk [vmem:[%s13047_s17 + $0x48] sm:$0xff] %vm7235_vm3, %v7228_v26  ;;  %v7213_v18 = vmul.f32 %v12914_v32, %v7176_v33 }
 0xead   :  { %7244 = vst.msk [vmem:[%s13047_s17 + $0x40] sm:$0xff] %vm7235_vm3, %v7227_v0  ;;  %v7212_v44 = vmul.f32 %v12914_v32, %v7171_v5 }
 0xeae   :  { %v7230_v46 = vadd.f32 %v12917_v47, %v7213_v18  ;;  %v8811_v36 = vpop.f32.mrb[136].mxu0 }
 0xeaf   :  { %v7229_v37 = vadd.f32 %v12917_v47, %v7212_v44  ;;  %v7186_v49 = vadd.f32 %v8811_v36, %v12912_v38  ;;  %v7180_v8 = vpop.f32.mrb[137].mxu0 }
 0xeb0   :  { %7247 = vst.msk [vmem:[%s13047_s17 + $0x58] sm:$0xff] %vm7235_vm3, %v7230_v46  ;;  %v7181_v50 = vadd.f32 %v12912_v38, %v7180_v8 }
 0xeb1   :  { %7246 = vst.msk [vmem:[%s13047_s17 + $0x50] sm:$0xff] %vm7235_vm3, %v7229_v37  ;;  %v7215_v40 = vmul.f32 %v12914_v32, %v7186_v49 }
 0xeb2   :  { %v7214_v17 = vmul.f32 %v12914_v32, %v7181_v50  ;;  %v8814_v31 = vpop.f32.mrb[138].mxu0 }
 0xeb3   :  { %v7232_v19 = vadd.f32 %v12917_v47, %v7215_v40  ;;  %v7196_v30 = vadd.f32 %v8814_v31, %v12912_v38  ;;  %v7190_v58 = vpop.f32.mrb[139].mxu0 }
 0xeb4   :  { %v7231_v15 = vadd.f32 %v12917_v47, %v7214_v17  ;;  %v7191_v55 = vadd.f32 %v12912_v38, %v7190_v58 }
 0xeb5   :  { %7249 = vst.msk [vmem:[%s13047_s17 + $0x68] sm:$0xff] %vm7235_vm3, %v7232_v19  ;;  %v7217_v14 = vmul.f32 %v12914_v32, %v7196_v30 }
 0xeb6   :  { %7248 = vst.msk [vmem:[%s13047_s17 + $0x60] sm:$0xff] %vm7235_vm3, %v7231_v15  ;;  %v7216_v61 = vmul.f32 %v12914_v32, %v7191_v55 }
 0xeb7   :  { %v7234_v34 = vadd.f32 %v12917_v47, %v7217_v14 }
 0xeb8   :  { %v7233_v12 = vadd.f32 %v12917_v47, %v7216_v61 }
 0xeb9   :  { %7251 = vst.msk [vmem:[%s13047_s17 + $0x78] sm:$0xff] %vm7235_vm3, %v7234_v34 }
 0xeba   :  { %7250 = vst.msk [vmem:[%s13047_s17 + $0x70] sm:$0xff] %vm7235_vm3, %v7233_v12 }
 0xebb   :  { %7256 = vsyncpa [#allocation6], 1 }
 0xebc   :  { %7257 = vsyncpa [#allocation8], 1 }

</bundles_post_ra>
